<compile_context>
chip_gen: v7x
topology: tpu7x:2x2x1
jax: 0.10.0
libtpu: 0.0.40
codegen_flags: <defaults>
</compile_context>

<pallas_src>
import functools

import jax
import jax.numpy as jnp
from jax.experimental import pallas as pl
from jax.experimental.pallas import tpu as pltpu


# ----------------------------------------------------------------------------
# Fused CPN kernel: one grid step = one (branch, batch element) UNet forward.
# ----------------------------------------------------------------------------
def _cpn_kernel(x_ref,
                inc1_w, inc1_b, inc2_w, inc2_b,
                d1a_w, d1a_b, d1b_w, d1b_b,
                up1a_wu, up1a_ws, up1a_b,
                up1b_w, up1b_b,
                outc_w, outc_b, intc_w, intc_b,
                logits_ref, inter_ref,
                *, H, W):
    """Activations are (channels, H*W) f32 values kept in VMEM/vregs.

    Full-resolution maps use all H*W lanes; half-resolution (H/2 x W/2) maps
    keep the same lane width with the valid data packed into lanes [0, H*W/4)
    and the spare lanes masked out of every convolution.
    """
    f32 = jnp.float32
    bf16 = jnp.bfloat16
    HW = H * W
    Hh, Wh = H // 2, W // 2
    P = Hh * Wh                               # valid lanes of half-res maps

    lane = jax.lax.broadcasted_iota(jnp.int32, (1, HW), 1)

    def tap_masks(hr, wr, limit):
        """Source-validity masks (1, HW) for the 9 taps of a 'same' 3x3 conv."""
        lw = wr.bit_length() - 1              # log2(wr); wr is a power of two
        hh = lane >> lw
        ww = lane & (wr - 1)
        masks = []
        for kh in range(3):
            for kw in range(3):
                dh, dw = kh - 1, kw - 1
                ok = ((hh + dh >= 0) & (hh + dh < hr)
                      & (ww + dw >= 0) & (ww + dw < wr))
                if limit is not None:
                    ok = ok & (lane < limit)
                masks.append(jnp.where(ok, 1.0, 0.0).astype(f32))
        return masks

    masks_full = tap_masks(H, W, None)        # 16x16 maps
    masks_half = tap_masks(Hh, Wh, P)         # 8x8 maps packed into lanes [0, P)

    def conv3x3(srcs, b_ref, wr, masks):
        """3x3 conv + bias + ReLU as 9 lane-rolled bf16 MXU matmuls (f32 acc).

        srcs: list of (activation (Cin, HW) f32, weight ref (1, 9, Cout, Cin)).
        Multiple sources implement the skip-connection concat without copies.
        """
        acc = None
        for a, w_ref in srcs:
            for kh in range(3):
                for kw in range(3):
                    t = kh * 3 + kw
                    s = (kh - 1) * wr + (kw - 1)          # source lane offset
                    shifted = a if s == 0 else pltpu.roll(a, shift=(-s) % HW, axis=1)
                    shifted = (shifted * masks[t]).astype(bf16)
                    c = jnp.dot(w_ref[0, t], shifted, preferred_element_type=f32)
                    acc = c if acc is None else acc + c
        return jnp.maximum(acc + b_ref[0], 0.0)

    def conv1x1(a, w_ref, b_ref):
        return jnp.dot(w_ref[0], a.astype(bf16), preferred_element_type=f32) + b_ref[0]

    # 0/1 gather matrices for maxpool compaction / nearest-neighbour upsampling.
    src = jax.lax.broadcasted_iota(jnp.int32, (HW, HW), 0)
    dst = jax.lax.broadcasted_iota(jnp.int32, (HW, HW), 1)
    ph = dst >> (Wh.bit_length() - 1)
    pw = dst & (Wh - 1)
    pool_sel = jnp.where((dst < P) & (src == 2 * ph * W + 2 * pw),
                         1.0, 0.0).astype(bf16)           # (HW, HW)
    parent = ((dst >> (W.bit_length() - 1)) >> 1) * Wh + ((dst & (W - 1)) >> 1)
    up_sel = jnp.where(src == parent, 1.0, 0.0).astype(bf16)

    def maxpool2x2(a):
        m = jnp.maximum(a, pltpu.roll(a, shift=(-1) % HW, axis=1))   # max(w, w+1)
        m = jnp.maximum(m, pltpu.roll(m, shift=(-W) % HW, axis=1))   # max(h, h+1)
        return jnp.dot(m.astype(bf16), pool_sel, preferred_element_type=f32)

    def upsample2x(a):
        return jnp.dot(a.astype(bf16), up_sel, preferred_element_type=f32)

    # ------------------------------ UNet forward ------------------------------
    x = x_ref[0]                                               # (2, HW)

    x1 = conv3x3([(x, inc1_w)], inc1_b, W, masks_full)         # (8, HW)
    x1 = conv3x3([(x1, inc2_w)], inc2_b, W, masks_full)        # (8, HW)

    x2 = maxpool2x2(x1)                                        # (8, HW) packed 8x8
    x2 = conv3x3([(x2, d1a_w)], d1a_b, Wh, masks_half)         # (16, HW) packed
    x2 = conv3x3([(x2, d1b_w)], d1b_b, Wh, masks_half)         # (16, HW) packed

    up = upsample2x(x2)                                        # (16, HW)
    u = conv3x3([(up, up1a_wu), (x1, up1a_ws)],                # concat([up, x1]) conv
                up1a_b, W, masks_full)                         # (8, HW)
    u = conv3x3([(u, up1b_w)], up1b_b, W, masks_full)          # (8, HW)

    logits = conv1x1(u, outc_w, outc_b)                        # (2, HW)
    inter = upsample2x(conv1x1(x2, intc_w, intc_b))            # (2, HW)

    branch = pl.program_id(0)

    @pl.when(branch == 0)        # self.unet branch: CPN sigmoids fused here.
    def _():
        logits_ref[0, 0] = jax.nn.sigmoid(logits)
        inter_ref[0, 0] = jax.nn.sigmoid(inter)

    @pl.when(branch != 0)        # embedding branch: raw logits.
    def _():
        logits_ref[0, 0] = logits
        inter_ref[0, 0] = inter


# ----------------------------------------------------------------------------
# Wrapper: one pallas_call for the whole CPN forward.
# ----------------------------------------------------------------------------
_PARAM_ORDER = ("inc1_w", "inc1_b", "inc2_w", "inc2_b",
                "d1a_w", "d1a_b", "d1b_w", "d1b_b",
                "up1a_wu", "up1a_ws", "up1a_b",
                "up1b_w", "up1b_b",
                "outc_w", "outc_b", "intc_w", "intc_b")


def cpn_forward(x_nchw, kp):
    """CPN.forward: x (N, 2, H, W) -> (mask_pred, embed_predict, interseg, interseg)."""
    N, Cin, H, W = x_nchw.shape
    HW = H * W
    assert H % 2 == 0 and (W & (W - 1)) == 0 and HW % 128 == 0, (
        "kernel assumes even H, power-of-two W and H*W a multiple of 128")
    x = x_nchw.reshape(N, Cin, HW)                 # NCHW-flat: lane-dense, no transpose

    weights = [kp[k] for k in _PARAM_ORDER]

    def wspec(a):
        nd = a.ndim
        return pl.BlockSpec((1,) + tuple(a.shape[1:]),
                            lambda b, n, _nd=nd: (b,) + (0,) * (_nd - 1))

    in_specs = [pl.BlockSpec((1, Cin, HW), lambda b, n: (n, 0, 0))]
    in_specs += [wspec(a) for a in weights]
    out_spec = pl.BlockSpec((1, 1, 2, HW), lambda b, n: (b, n, 0, 0))

    logits, inter = pl.pallas_call(
        functools.partial(_cpn_kernel, H=H, W=W),
        grid=(2, N),                                # (branch, batch) - both parallel
        in_specs=in_specs,
        out_specs=(out_spec, out_spec),
        out_shape=(jax.ShapeDtypeStruct((2, N, 2, HW), jnp.float32),
                   jax.ShapeDtypeStruct((2, N, 2, HW), jnp.float32)),
        compiler_params=pltpu.CompilerParams(
            dimension_semantics=("parallel", "parallel"),
            vmem_limit_bytes=32 * 1024 * 1024),
    )(x, *weights)

    mask_pred = logits[0].reshape(N, 2, H, W)            # sigmoid fused in-kernel
    embed_predict = logits[1, :, :1, :].reshape(N, 1, H, W)
    interseg = inter[0].reshape(N, 2, H, W)              # sigmoid fused in-kernel
    return mask_pred, embed_predict, interseg, interseg


# ----------------------------------------------------------------------------
# Deterministic parameter init (PyTorch layout) + one-time kernel-layout prep
# ----------------------------------------------------------------------------
def _init_conv(key, cout, cin, k):
    kw, kb = jax.random.split(key)
    fan_in = cin * k * k
    w = jax.random.normal(kw, (cout, cin, k, k), jnp.float32) * jnp.sqrt(2.0 / fan_in)
    b = jax.random.normal(kb, (cout,), jnp.float32) * 0.01
    return {"w": w, "b": b}


def init_unet_params(key, n_channels, n_classes, base=8):
    keys = jax.random.split(key, 9)
    return {
        "inc1": _init_conv(keys[0], base, n_channels, 3),
        "inc2": _init_conv(keys[1], base, base, 3),
        "down1a": _init_conv(keys[2], 2 * base, base, 3),
        "down1b": _init_conv(keys[3], 2 * base, 2 * base, 3),
        "up1a": _init_conv(keys[4], base, 3 * base, 3),
        "up1b": _init_conv(keys[5], base, base, 3),
        "outc": _init_conv(keys[6], n_classes, base, 1),
        "interc": _init_conv(keys[7], n_classes, 2 * base, 1),
    }


def init_cpn_params(key):
    k1, k2 = jax.random.split(key)
    return {
        "unet": init_unet_params(k1, n_channels=2, n_classes=2),   # UNet(2, 2, 2)
        "embed": init_unet_params(k2, n_channels=2, n_classes=1),  # UNet(2, 1, 2)
    }


def prep_cpn_params(params, base=8):
    """One-time conversion to the stacked, GEMM-ready, bf16 layout the kernel uses.

    Branch order on the leading axis: [0] = self.unet, [1] = self.embedNet_inter.
    The embedding UNet's 1-class heads are zero-padded to 2 classes so both
    branches share one kernel body; the padded channel is dropped by the wrapper.
    """
    branches = ("unet", "embed")

    def w3x3(w):                       # (Co, Ci, 3, 3) -> (9, Co, Ci), tap = kh*3 + kw
        co, ci = w.shape[:2]
        return jnp.transpose(w, (2, 3, 0, 1)).reshape(9, co, ci)

    def stack3x3(name, ci_slice=None):
        ws = []
        for br in branches:
            w = params[br][name]["w"]
            if ci_slice is not None:
                w = w[:, ci_slice]
            ws.append(w3x3(w))
        return jnp.stack(ws).astype(jnp.bfloat16)

    def stack_bias(name, pad_to=None):
        bs = []
        for br in branches:
            b = params[br][name]["b"]
            if pad_to is not None and b.shape[0] < pad_to:
                b = jnp.pad(b, (0, pad_to - b.shape[0]))
            bs.append(b)
        return jnp.stack(bs)[:, :, None].astype(jnp.float32)     # (2, Cout, 1)

    def stack1x1(name, pad_to=2):
        ws = []
        for br in branches:
            w = params[br][name]["w"][:, :, 0, 0]                 # (Cout, Cin)
            if w.shape[0] < pad_to:
                w = jnp.pad(w, ((0, pad_to - w.shape[0]), (0, 0)))
            ws.append(w)
        return jnp.stack(ws).astype(jnp.bfloat16)

    return {
        "inc1_w": stack3x3("inc1"), "inc1_b": stack_bias("inc1"),
        "inc2_w": stack3x3("inc2"), "inc2_b": stack_bias("inc2"),
        "d1a_w": stack3x3("down1a"), "d1a_b": stack_bias("down1a"),
        "d1b_w": stack3x3("down1b"), "d1b_b": stack_bias("down1b"),
        # up1a consumes concat([upsample(x2), x1]); split its input channels so
        # the kernel never materializes the concat.
        "up1a_wu": stack3x3("up1a", ci_slice=slice(0, 2 * base)),
        "up1a_ws": stack3x3("up1a", ci_slice=slice(2 * base, 3 * base)),
        "up1a_b": stack_bias("up1a"),
        "up1b_w": stack3x3("up1b"), "up1b_b": stack_bias("up1b"),
        "outc_w": stack1x1("outc"), "outc_b": stack_bias("outc", pad_to=2),
        "intc_w": stack1x1("interc"), "intc_b": stack_bias("interc", pad_to=2),
    }


# ----------------------------------------------------------------------------
if __name__ == "__main__":
    key = jax.random.PRNGKey(0)
    kx, kparam = jax.random.split(key)

    # Small NCHW input consistent with CPN (UNet in_channels = 2).
    x = jax.random.normal(kx, (2, 2, 16, 16), jnp.float32)
    params = init_cpn_params(kparam)
    kernel_params = prep_cpn_params(params)     # one-time weight layout / bf16 prep

    fwd = jax.jit(cpn_forward)
    outs = fwd(x, kernel_params)
    jax.block_until_ready(outs)

    mask_pred, embed_predict, interseg_a, interseg_b = outs
    assert mask_pred.shape == (2, 2, 16, 16)
    assert embed_predict.shape == (2, 1, 16, 16)
    assert interseg_a.shape == (2, 2, 16, 16)
    assert interseg_b.shape == (2, 2, 16, 16)
    assert bool(jnp.all(jnp.isfinite(mask_pred)))
    assert bool(jnp.all(jnp.isfinite(embed_predict)))
    # sigmoid heads must land in (0, 1)
    assert float(jnp.min(mask_pred)) >= 0.0 and float(jnp.max(mask_pred)) <= 1.0
    assert float(jnp.min(interseg_a)) >= 0.0 and float(jnp.max(interseg_a)) <= 1.0
    print("KERNEL_OK")
</pallas_src>

<mosaic_0001>
module attributes {stable_mosaic.version = 11 : i64} {
  func.func @_cpn_kernel(%arg0: i32, %arg1: i32, %arg2: memref<1x2x256xf32, #tpu.memory_space<vmem>>, %arg3: memref<1x9x8x2xbf16, #tpu.memory_space<vmem>>, %arg4: memref<1x8x1xf32, #tpu.memory_space<vmem>>, %arg5: memref<1x9x8x8xbf16, #tpu.memory_space<vmem>>, %arg6: memref<1x8x1xf32, #tpu.memory_space<vmem>>, %arg7: memref<1x9x16x8xbf16, #tpu.memory_space<vmem>>, %arg8: memref<1x16x1xf32, #tpu.memory_space<vmem>>, %arg9: memref<1x9x16x16xbf16, #tpu.memory_space<vmem>>, %arg10: memref<1x16x1xf32, #tpu.memory_space<vmem>>, %arg11: memref<1x9x8x16xbf16, #tpu.memory_space<vmem>>, %arg12: memref<1x9x8x8xbf16, #tpu.memory_space<vmem>>, %arg13: memref<1x8x1xf32, #tpu.memory_space<vmem>>, %arg14: memref<1x9x8x8xbf16, #tpu.memory_space<vmem>>, %arg15: memref<1x8x1xf32, #tpu.memory_space<vmem>>, %arg16: memref<1x2x8xbf16, #tpu.memory_space<vmem>>, %arg17: memref<1x2x1xf32, #tpu.memory_space<vmem>>, %arg18: memref<1x2x16xbf16, #tpu.memory_space<vmem>>, %arg19: memref<1x2x1xf32, #tpu.memory_space<vmem>>, %arg20: memref<1x1x2x256xf32, #tpu.memory_space<vmem>>, %arg21: memref<1x1x2x256xf32, #tpu.memory_space<vmem>>) attributes {dimension_semantics = [#tpu.dimension_semantics<parallel>, #tpu.dimension_semantics<parallel>], iteration_bounds = array<i64: 2, 2>, scalar_prefetch = 0 : i64, scratch_operands = 0 : i64, tpu.core_type = #tpu.core_type<tc>, window_params = [{transform_indices = @transform_0, window_bounds = array<i64: 1, 2, 256>}, {transform_indices = @transform_1, window_bounds = array<i64: 1, 9, 8, 2>}, {transform_indices = @transform_2, window_bounds = array<i64: 1, 8, 1>}, {transform_indices = @transform_3, window_bounds = array<i64: 1, 9, 8, 8>}, {transform_indices = @transform_4, window_bounds = array<i64: 1, 8, 1>}, {transform_indices = @transform_5, window_bounds = array<i64: 1, 9, 16, 8>}, {transform_indices = @transform_6, window_bounds = array<i64: 1, 16, 1>}, {transform_indices = @transform_7, window_bounds = array<i64: 1, 9, 16, 16>}, {transform_indices = @transform_8, window_bounds = array<i64: 1, 16, 1>}, {transform_indices = @transform_9, window_bounds = array<i64: 1, 9, 8, 16>}, {transform_indices = @transform_10, window_bounds = array<i64: 1, 9, 8, 8>}, {transform_indices = @transform_11, window_bounds = array<i64: 1, 8, 1>}, {transform_indices = @transform_12, window_bounds = array<i64: 1, 9, 8, 8>}, {transform_indices = @transform_13, window_bounds = array<i64: 1, 8, 1>}, {transform_indices = @transform_14, window_bounds = array<i64: 1, 2, 8>}, {transform_indices = @transform_15, window_bounds = array<i64: 1, 2, 1>}, {transform_indices = @transform_16, window_bounds = array<i64: 1, 2, 16>}, {transform_indices = @transform_17, window_bounds = array<i64: 1, 2, 1>}, {transform_indices = @transform_18, window_bounds = array<i64: 1, 1, 2, 256>}, {transform_indices = @transform_19, window_bounds = array<i64: 1, 1, 2, 256>}]} {
    %0 = tpu.iota {dimensions = array<i32: 1>} : vector<1x256xi32>
    %c4_i32 = arith.constant 4 : i32
    %1 = vector.broadcast %c4_i32 : i32 to vector<1x256xi32>
    %2 = arith.shrsi %0, %1 : vector<1x256xi32>
    %c15_i32 = arith.constant 15 : i32
    %3 = vector.broadcast %c15_i32 : i32 to vector<1x256xi32>
    %4 = arith.andi %0, %3 : vector<1x256xi32>
    %c-1_i32 = arith.constant -1 : i32
    %5 = vector.broadcast %c-1_i32 : i32 to vector<1x256xi32>
    %6 = arith.addi %2, %5 : vector<1x256xi32>
    %c0_i32 = arith.constant 0 : i32
    %7 = vector.broadcast %c0_i32 : i32 to vector<1x256xi32>
    %8 = arith.cmpi sge, %6, %7 : vector<1x256xi32>
    %c-1_i32_0 = arith.constant -1 : i32
    %9 = vector.broadcast %c-1_i32_0 : i32 to vector<1x256xi32>
    %10 = arith.addi %2, %9 : vector<1x256xi32>
    %c16_i32 = arith.constant 16 : i32
    %11 = vector.broadcast %c16_i32 : i32 to vector<1x256xi32>
    %12 = arith.cmpi slt, %10, %11 : vector<1x256xi32>
    %13 = arith.andi %8, %12 : vector<1x256xi1>
    %c-1_i32_1 = arith.constant -1 : i32
    %14 = vector.broadcast %c-1_i32_1 : i32 to vector<1x256xi32>
    %15 = arith.addi %4, %14 : vector<1x256xi32>
    %c0_i32_2 = arith.constant 0 : i32
    %16 = vector.broadcast %c0_i32_2 : i32 to vector<1x256xi32>
    %17 = arith.cmpi sge, %15, %16 : vector<1x256xi32>
    %18 = arith.andi %13, %17 : vector<1x256xi1>
    %c-1_i32_3 = arith.constant -1 : i32
    %19 = vector.broadcast %c-1_i32_3 : i32 to vector<1x256xi32>
    %20 = arith.addi %4, %19 : vector<1x256xi32>
    %c16_i32_4 = arith.constant 16 : i32
    %21 = vector.broadcast %c16_i32_4 : i32 to vector<1x256xi32>
    %22 = arith.cmpi slt, %20, %21 : vector<1x256xi32>
    %23 = arith.andi %18, %22 : vector<1x256xi1>
    %cst = arith.constant 1.000000e+00 : f32
    %cst_5 = arith.constant 0.000000e+00 : f32
    %24 = vector.broadcast %cst : f32 to vector<1x256xf32>
    %25 = vector.broadcast %cst_5 : f32 to vector<1x256xf32>
    %26 = arith.select %23, %24, %25 : vector<1x256xi1>, vector<1x256xf32>
    %c-1_i32_6 = arith.constant -1 : i32
    %27 = vector.broadcast %c-1_i32_6 : i32 to vector<1x256xi32>
    %28 = arith.addi %2, %27 : vector<1x256xi32>
    %c0_i32_7 = arith.constant 0 : i32
    %29 = vector.broadcast %c0_i32_7 : i32 to vector<1x256xi32>
    %30 = arith.cmpi sge, %28, %29 : vector<1x256xi32>
    %c-1_i32_8 = arith.constant -1 : i32
    %31 = vector.broadcast %c-1_i32_8 : i32 to vector<1x256xi32>
    %32 = arith.addi %2, %31 : vector<1x256xi32>
    %c16_i32_9 = arith.constant 16 : i32
    %33 = vector.broadcast %c16_i32_9 : i32 to vector<1x256xi32>
    %34 = arith.cmpi slt, %32, %33 : vector<1x256xi32>
    %35 = arith.andi %30, %34 : vector<1x256xi1>
    %c0_i32_10 = arith.constant 0 : i32
    %36 = vector.broadcast %c0_i32_10 : i32 to vector<1x256xi32>
    %37 = arith.addi %4, %36 : vector<1x256xi32>
    %c0_i32_11 = arith.constant 0 : i32
    %38 = vector.broadcast %c0_i32_11 : i32 to vector<1x256xi32>
    %39 = arith.cmpi sge, %37, %38 : vector<1x256xi32>
    %40 = arith.andi %35, %39 : vector<1x256xi1>
    %c0_i32_12 = arith.constant 0 : i32
    %41 = vector.broadcast %c0_i32_12 : i32 to vector<1x256xi32>
    %42 = arith.addi %4, %41 : vector<1x256xi32>
    %c16_i32_13 = arith.constant 16 : i32
    %43 = vector.broadcast %c16_i32_13 : i32 to vector<1x256xi32>
    %44 = arith.cmpi slt, %42, %43 : vector<1x256xi32>
    %45 = arith.andi %40, %44 : vector<1x256xi1>
    %cst_14 = arith.constant 1.000000e+00 : f32
    %cst_15 = arith.constant 0.000000e+00 : f32
    %46 = vector.broadcast %cst_14 : f32 to vector<1x256xf32>
    %47 = vector.broadcast %cst_15 : f32 to vector<1x256xf32>
    %48 = arith.select %45, %46, %47 : vector<1x256xi1>, vector<1x256xf32>
    %c-1_i32_16 = arith.constant -1 : i32
    %49 = vector.broadcast %c-1_i32_16 : i32 to vector<1x256xi32>
    %50 = arith.addi %2, %49 : vector<1x256xi32>
    %c0_i32_17 = arith.constant 0 : i32
    %51 = vector.broadcast %c0_i32_17 : i32 to vector<1x256xi32>
    %52 = arith.cmpi sge, %50, %51 : vector<1x256xi32>
    %c-1_i32_18 = arith.constant -1 : i32
    %53 = vector.broadcast %c-1_i32_18 : i32 to vector<1x256xi32>
    %54 = arith.addi %2, %53 : vector<1x256xi32>
    %c16_i32_19 = arith.constant 16 : i32
    %55 = vector.broadcast %c16_i32_19 : i32 to vector<1x256xi32>
    %56 = arith.cmpi slt, %54, %55 : vector<1x256xi32>
    %57 = arith.andi %52, %56 : vector<1x256xi1>
    %c1_i32 = arith.constant 1 : i32
    %58 = vector.broadcast %c1_i32 : i32 to vector<1x256xi32>
    %59 = arith.addi %4, %58 : vector<1x256xi32>
    %c0_i32_20 = arith.constant 0 : i32
    %60 = vector.broadcast %c0_i32_20 : i32 to vector<1x256xi32>
    %61 = arith.cmpi sge, %59, %60 : vector<1x256xi32>
    %62 = arith.andi %57, %61 : vector<1x256xi1>
    %c1_i32_21 = arith.constant 1 : i32
    %63 = vector.broadcast %c1_i32_21 : i32 to vector<1x256xi32>
    %64 = arith.addi %4, %63 : vector<1x256xi32>
    %c16_i32_22 = arith.constant 16 : i32
    %65 = vector.broadcast %c16_i32_22 : i32 to vector<1x256xi32>
    %66 = arith.cmpi slt, %64, %65 : vector<1x256xi32>
    %67 = arith.andi %62, %66 : vector<1x256xi1>
    %cst_23 = arith.constant 1.000000e+00 : f32
    %cst_24 = arith.constant 0.000000e+00 : f32
    %68 = vector.broadcast %cst_23 : f32 to vector<1x256xf32>
    %69 = vector.broadcast %cst_24 : f32 to vector<1x256xf32>
    %70 = arith.select %67, %68, %69 : vector<1x256xi1>, vector<1x256xf32>
    %c0_i32_25 = arith.constant 0 : i32
    %71 = vector.broadcast %c0_i32_25 : i32 to vector<1x256xi32>
    %72 = arith.addi %2, %71 : vector<1x256xi32>
    %c0_i32_26 = arith.constant 0 : i32
    %73 = vector.broadcast %c0_i32_26 : i32 to vector<1x256xi32>
    %74 = arith.cmpi sge, %72, %73 : vector<1x256xi32>
    %c0_i32_27 = arith.constant 0 : i32
    %75 = vector.broadcast %c0_i32_27 : i32 to vector<1x256xi32>
    %76 = arith.addi %2, %75 : vector<1x256xi32>
    %c16_i32_28 = arith.constant 16 : i32
    %77 = vector.broadcast %c16_i32_28 : i32 to vector<1x256xi32>
    %78 = arith.cmpi slt, %76, %77 : vector<1x256xi32>
    %79 = arith.andi %74, %78 : vector<1x256xi1>
    %c-1_i32_29 = arith.constant -1 : i32
    %80 = vector.broadcast %c-1_i32_29 : i32 to vector<1x256xi32>
    %81 = arith.addi %4, %80 : vector<1x256xi32>
    %c0_i32_30 = arith.constant 0 : i32
    %82 = vector.broadcast %c0_i32_30 : i32 to vector<1x256xi32>
    %83 = arith.cmpi sge, %81, %82 : vector<1x256xi32>
    %84 = arith.andi %79, %83 : vector<1x256xi1>
    %c-1_i32_31 = arith.constant -1 : i32
    %85 = vector.broadcast %c-1_i32_31 : i32 to vector<1x256xi32>
    %86 = arith.addi %4, %85 : vector<1x256xi32>
    %c16_i32_32 = arith.constant 16 : i32
    %87 = vector.broadcast %c16_i32_32 : i32 to vector<1x256xi32>
    %88 = arith.cmpi slt, %86, %87 : vector<1x256xi32>
    %89 = arith.andi %84, %88 : vector<1x256xi1>
    %cst_33 = arith.constant 1.000000e+00 : f32
    %cst_34 = arith.constant 0.000000e+00 : f32
    %90 = vector.broadcast %cst_33 : f32 to vector<1x256xf32>
    %91 = vector.broadcast %cst_34 : f32 to vector<1x256xf32>
    %92 = arith.select %89, %90, %91 : vector<1x256xi1>, vector<1x256xf32>
    %c0_i32_35 = arith.constant 0 : i32
    %93 = vector.broadcast %c0_i32_35 : i32 to vector<1x256xi32>
    %94 = arith.addi %2, %93 : vector<1x256xi32>
    %c0_i32_36 = arith.constant 0 : i32
    %95 = vector.broadcast %c0_i32_36 : i32 to vector<1x256xi32>
    %96 = arith.cmpi sge, %94, %95 : vector<1x256xi32>
    %c0_i32_37 = arith.constant 0 : i32
    %97 = vector.broadcast %c0_i32_37 : i32 to vector<1x256xi32>
    %98 = arith.addi %2, %97 : vector<1x256xi32>
    %c16_i32_38 = arith.constant 16 : i32
    %99 = vector.broadcast %c16_i32_38 : i32 to vector<1x256xi32>
    %100 = arith.cmpi slt, %98, %99 : vector<1x256xi32>
    %101 = arith.andi %96, %100 : vector<1x256xi1>
    %c0_i32_39 = arith.constant 0 : i32
    %102 = vector.broadcast %c0_i32_39 : i32 to vector<1x256xi32>
    %103 = arith.addi %4, %102 : vector<1x256xi32>
    %c0_i32_40 = arith.constant 0 : i32
    %104 = vector.broadcast %c0_i32_40 : i32 to vector<1x256xi32>
    %105 = arith.cmpi sge, %103, %104 : vector<1x256xi32>
    %106 = arith.andi %101, %105 : vector<1x256xi1>
    %c0_i32_41 = arith.constant 0 : i32
    %107 = vector.broadcast %c0_i32_41 : i32 to vector<1x256xi32>
    %108 = arith.addi %4, %107 : vector<1x256xi32>
    %c16_i32_42 = arith.constant 16 : i32
    %109 = vector.broadcast %c16_i32_42 : i32 to vector<1x256xi32>
    %110 = arith.cmpi slt, %108, %109 : vector<1x256xi32>
    %111 = arith.andi %106, %110 : vector<1x256xi1>
    %cst_43 = arith.constant 1.000000e+00 : f32
    %cst_44 = arith.constant 0.000000e+00 : f32
    %112 = vector.broadcast %cst_43 : f32 to vector<1x256xf32>
    %113 = vector.broadcast %cst_44 : f32 to vector<1x256xf32>
    %114 = arith.select %111, %112, %113 : vector<1x256xi1>, vector<1x256xf32>
    %c0_i32_45 = arith.constant 0 : i32
    %115 = vector.broadcast %c0_i32_45 : i32 to vector<1x256xi32>
    %116 = arith.addi %2, %115 : vector<1x256xi32>
    %c0_i32_46 = arith.constant 0 : i32
    %117 = vector.broadcast %c0_i32_46 : i32 to vector<1x256xi32>
    %118 = arith.cmpi sge, %116, %117 : vector<1x256xi32>
    %c0_i32_47 = arith.constant 0 : i32
    %119 = vector.broadcast %c0_i32_47 : i32 to vector<1x256xi32>
    %120 = arith.addi %2, %119 : vector<1x256xi32>
    %c16_i32_48 = arith.constant 16 : i32
    %121 = vector.broadcast %c16_i32_48 : i32 to vector<1x256xi32>
    %122 = arith.cmpi slt, %120, %121 : vector<1x256xi32>
    %123 = arith.andi %118, %122 : vector<1x256xi1>
    %c1_i32_49 = arith.constant 1 : i32
    %124 = vector.broadcast %c1_i32_49 : i32 to vector<1x256xi32>
    %125 = arith.addi %4, %124 : vector<1x256xi32>
    %c0_i32_50 = arith.constant 0 : i32
    %126 = vector.broadcast %c0_i32_50 : i32 to vector<1x256xi32>
    %127 = arith.cmpi sge, %125, %126 : vector<1x256xi32>
    %128 = arith.andi %123, %127 : vector<1x256xi1>
    %c1_i32_51 = arith.constant 1 : i32
    %129 = vector.broadcast %c1_i32_51 : i32 to vector<1x256xi32>
    %130 = arith.addi %4, %129 : vector<1x256xi32>
    %c16_i32_52 = arith.constant 16 : i32
    %131 = vector.broadcast %c16_i32_52 : i32 to vector<1x256xi32>
    %132 = arith.cmpi slt, %130, %131 : vector<1x256xi32>
    %133 = arith.andi %128, %132 : vector<1x256xi1>
    %cst_53 = arith.constant 1.000000e+00 : f32
    %cst_54 = arith.constant 0.000000e+00 : f32
    %134 = vector.broadcast %cst_53 : f32 to vector<1x256xf32>
    %135 = vector.broadcast %cst_54 : f32 to vector<1x256xf32>
    %136 = arith.select %133, %134, %135 : vector<1x256xi1>, vector<1x256xf32>
    %c1_i32_55 = arith.constant 1 : i32
    %137 = vector.broadcast %c1_i32_55 : i32 to vector<1x256xi32>
    %138 = arith.addi %2, %137 : vector<1x256xi32>
    %c0_i32_56 = arith.constant 0 : i32
    %139 = vector.broadcast %c0_i32_56 : i32 to vector<1x256xi32>
    %140 = arith.cmpi sge, %138, %139 : vector<1x256xi32>
    %c1_i32_57 = arith.constant 1 : i32
    %141 = vector.broadcast %c1_i32_57 : i32 to vector<1x256xi32>
    %142 = arith.addi %2, %141 : vector<1x256xi32>
    %c16_i32_58 = arith.constant 16 : i32
    %143 = vector.broadcast %c16_i32_58 : i32 to vector<1x256xi32>
    %144 = arith.cmpi slt, %142, %143 : vector<1x256xi32>
    %145 = arith.andi %140, %144 : vector<1x256xi1>
    %c-1_i32_59 = arith.constant -1 : i32
    %146 = vector.broadcast %c-1_i32_59 : i32 to vector<1x256xi32>
    %147 = arith.addi %4, %146 : vector<1x256xi32>
    %c0_i32_60 = arith.constant 0 : i32
    %148 = vector.broadcast %c0_i32_60 : i32 to vector<1x256xi32>
    %149 = arith.cmpi sge, %147, %148 : vector<1x256xi32>
    %150 = arith.andi %145, %149 : vector<1x256xi1>
    %c-1_i32_61 = arith.constant -1 : i32
    %151 = vector.broadcast %c-1_i32_61 : i32 to vector<1x256xi32>
    %152 = arith.addi %4, %151 : vector<1x256xi32>
    %c16_i32_62 = arith.constant 16 : i32
    %153 = vector.broadcast %c16_i32_62 : i32 to vector<1x256xi32>
    %154 = arith.cmpi slt, %152, %153 : vector<1x256xi32>
    %155 = arith.andi %150, %154 : vector<1x256xi1>
    %cst_63 = arith.constant 1.000000e+00 : f32
    %cst_64 = arith.constant 0.000000e+00 : f32
    %156 = vector.broadcast %cst_63 : f32 to vector<1x256xf32>
    %157 = vector.broadcast %cst_64 : f32 to vector<1x256xf32>
    %158 = arith.select %155, %156, %157 : vector<1x256xi1>, vector<1x256xf32>
    %c1_i32_65 = arith.constant 1 : i32
    %159 = vector.broadcast %c1_i32_65 : i32 to vector<1x256xi32>
    %160 = arith.addi %2, %159 : vector<1x256xi32>
    %c0_i32_66 = arith.constant 0 : i32
    %161 = vector.broadcast %c0_i32_66 : i32 to vector<1x256xi32>
    %162 = arith.cmpi sge, %160, %161 : vector<1x256xi32>
    %c1_i32_67 = arith.constant 1 : i32
    %163 = vector.broadcast %c1_i32_67 : i32 to vector<1x256xi32>
    %164 = arith.addi %2, %163 : vector<1x256xi32>
    %c16_i32_68 = arith.constant 16 : i32
    %165 = vector.broadcast %c16_i32_68 : i32 to vector<1x256xi32>
    %166 = arith.cmpi slt, %164, %165 : vector<1x256xi32>
    %167 = arith.andi %162, %166 : vector<1x256xi1>
    %c0_i32_69 = arith.constant 0 : i32
    %168 = vector.broadcast %c0_i32_69 : i32 to vector<1x256xi32>
    %169 = arith.addi %4, %168 : vector<1x256xi32>
    %c0_i32_70 = arith.constant 0 : i32
    %170 = vector.broadcast %c0_i32_70 : i32 to vector<1x256xi32>
    %171 = arith.cmpi sge, %169, %170 : vector<1x256xi32>
    %172 = arith.andi %167, %171 : vector<1x256xi1>
    %c0_i32_71 = arith.constant 0 : i32
    %173 = vector.broadcast %c0_i32_71 : i32 to vector<1x256xi32>
    %174 = arith.addi %4, %173 : vector<1x256xi32>
    %c16_i32_72 = arith.constant 16 : i32
    %175 = vector.broadcast %c16_i32_72 : i32 to vector<1x256xi32>
    %176 = arith.cmpi slt, %174, %175 : vector<1x256xi32>
    %177 = arith.andi %172, %176 : vector<1x256xi1>
    %cst_73 = arith.constant 1.000000e+00 : f32
    %cst_74 = arith.constant 0.000000e+00 : f32
    %178 = vector.broadcast %cst_73 : f32 to vector<1x256xf32>
    %179 = vector.broadcast %cst_74 : f32 to vector<1x256xf32>
    %180 = arith.select %177, %178, %179 : vector<1x256xi1>, vector<1x256xf32>
    %c1_i32_75 = arith.constant 1 : i32
    %181 = vector.broadcast %c1_i32_75 : i32 to vector<1x256xi32>
    %182 = arith.addi %2, %181 : vector<1x256xi32>
    %c0_i32_76 = arith.constant 0 : i32
    %183 = vector.broadcast %c0_i32_76 : i32 to vector<1x256xi32>
    %184 = arith.cmpi sge, %182, %183 : vector<1x256xi32>
    %c1_i32_77 = arith.constant 1 : i32
    %185 = vector.broadcast %c1_i32_77 : i32 to vector<1x256xi32>
    %186 = arith.addi %2, %185 : vector<1x256xi32>
    %c16_i32_78 = arith.constant 16 : i32
    %187 = vector.broadcast %c16_i32_78 : i32 to vector<1x256xi32>
    %188 = arith.cmpi slt, %186, %187 : vector<1x256xi32>
    %189 = arith.andi %184, %188 : vector<1x256xi1>
    %c1_i32_79 = arith.constant 1 : i32
    %190 = vector.broadcast %c1_i32_79 : i32 to vector<1x256xi32>
    %191 = arith.addi %4, %190 : vector<1x256xi32>
    %c0_i32_80 = arith.constant 0 : i32
    %192 = vector.broadcast %c0_i32_80 : i32 to vector<1x256xi32>
    %193 = arith.cmpi sge, %191, %192 : vector<1x256xi32>
    %194 = arith.andi %189, %193 : vector<1x256xi1>
    %c1_i32_81 = arith.constant 1 : i32
    %195 = vector.broadcast %c1_i32_81 : i32 to vector<1x256xi32>
    %196 = arith.addi %4, %195 : vector<1x256xi32>
    %c16_i32_82 = arith.constant 16 : i32
    %197 = vector.broadcast %c16_i32_82 : i32 to vector<1x256xi32>
    %198 = arith.cmpi slt, %196, %197 : vector<1x256xi32>
    %199 = arith.andi %194, %198 : vector<1x256xi1>
    %cst_83 = arith.constant 1.000000e+00 : f32
    %cst_84 = arith.constant 0.000000e+00 : f32
    %200 = vector.broadcast %cst_83 : f32 to vector<1x256xf32>
    %201 = vector.broadcast %cst_84 : f32 to vector<1x256xf32>
    %202 = arith.select %199, %200, %201 : vector<1x256xi1>, vector<1x256xf32>
    %c3_i32 = arith.constant 3 : i32
    %203 = vector.broadcast %c3_i32 : i32 to vector<1x256xi32>
    %204 = arith.shrsi %0, %203 : vector<1x256xi32>
    %c7_i32 = arith.constant 7 : i32
    %205 = vector.broadcast %c7_i32 : i32 to vector<1x256xi32>
    %206 = arith.andi %0, %205 : vector<1x256xi32>
    %c-1_i32_85 = arith.constant -1 : i32
    %207 = vector.broadcast %c-1_i32_85 : i32 to vector<1x256xi32>
    %208 = arith.addi %204, %207 : vector<1x256xi32>
    %c0_i32_86 = arith.constant 0 : i32
    %209 = vector.broadcast %c0_i32_86 : i32 to vector<1x256xi32>
    %210 = arith.cmpi sge, %208, %209 : vector<1x256xi32>
    %c-1_i32_87 = arith.constant -1 : i32
    %211 = vector.broadcast %c-1_i32_87 : i32 to vector<1x256xi32>
    %212 = arith.addi %204, %211 : vector<1x256xi32>
    %c8_i32 = arith.constant 8 : i32
    %213 = vector.broadcast %c8_i32 : i32 to vector<1x256xi32>
    %214 = arith.cmpi slt, %212, %213 : vector<1x256xi32>
    %215 = arith.andi %210, %214 : vector<1x256xi1>
    %c-1_i32_88 = arith.constant -1 : i32
    %216 = vector.broadcast %c-1_i32_88 : i32 to vector<1x256xi32>
    %217 = arith.addi %206, %216 : vector<1x256xi32>
    %c0_i32_89 = arith.constant 0 : i32
    %218 = vector.broadcast %c0_i32_89 : i32 to vector<1x256xi32>
    %219 = arith.cmpi sge, %217, %218 : vector<1x256xi32>
    %220 = arith.andi %215, %219 : vector<1x256xi1>
    %c-1_i32_90 = arith.constant -1 : i32
    %221 = vector.broadcast %c-1_i32_90 : i32 to vector<1x256xi32>
    %222 = arith.addi %206, %221 : vector<1x256xi32>
    %c8_i32_91 = arith.constant 8 : i32
    %223 = vector.broadcast %c8_i32_91 : i32 to vector<1x256xi32>
    %224 = arith.cmpi slt, %222, %223 : vector<1x256xi32>
    %225 = arith.andi %220, %224 : vector<1x256xi1>
    %c64_i32 = arith.constant 64 : i32
    %226 = vector.broadcast %c64_i32 : i32 to vector<1x256xi32>
    %227 = arith.cmpi slt, %0, %226 : vector<1x256xi32>
    %228 = arith.andi %225, %227 : vector<1x256xi1>
    %cst_92 = arith.constant 1.000000e+00 : f32
    %cst_93 = arith.constant 0.000000e+00 : f32
    %229 = vector.broadcast %cst_92 : f32 to vector<1x256xf32>
    %230 = vector.broadcast %cst_93 : f32 to vector<1x256xf32>
    %231 = arith.select %228, %229, %230 : vector<1x256xi1>, vector<1x256xf32>
    %c-1_i32_94 = arith.constant -1 : i32
    %232 = vector.broadcast %c-1_i32_94 : i32 to vector<1x256xi32>
    %233 = arith.addi %204, %232 : vector<1x256xi32>
    %c0_i32_95 = arith.constant 0 : i32
    %234 = vector.broadcast %c0_i32_95 : i32 to vector<1x256xi32>
    %235 = arith.cmpi sge, %233, %234 : vector<1x256xi32>
    %c-1_i32_96 = arith.constant -1 : i32
    %236 = vector.broadcast %c-1_i32_96 : i32 to vector<1x256xi32>
    %237 = arith.addi %204, %236 : vector<1x256xi32>
    %c8_i32_97 = arith.constant 8 : i32
    %238 = vector.broadcast %c8_i32_97 : i32 to vector<1x256xi32>
    %239 = arith.cmpi slt, %237, %238 : vector<1x256xi32>
    %240 = arith.andi %235, %239 : vector<1x256xi1>
    %c0_i32_98 = arith.constant 0 : i32
    %241 = vector.broadcast %c0_i32_98 : i32 to vector<1x256xi32>
    %242 = arith.addi %206, %241 : vector<1x256xi32>
    %c0_i32_99 = arith.constant 0 : i32
    %243 = vector.broadcast %c0_i32_99 : i32 to vector<1x256xi32>
    %244 = arith.cmpi sge, %242, %243 : vector<1x256xi32>
    %245 = arith.andi %240, %244 : vector<1x256xi1>
    %c0_i32_100 = arith.constant 0 : i32
    %246 = vector.broadcast %c0_i32_100 : i32 to vector<1x256xi32>
    %247 = arith.addi %206, %246 : vector<1x256xi32>
    %c8_i32_101 = arith.constant 8 : i32
    %248 = vector.broadcast %c8_i32_101 : i32 to vector<1x256xi32>
    %249 = arith.cmpi slt, %247, %248 : vector<1x256xi32>
    %250 = arith.andi %245, %249 : vector<1x256xi1>
    %c64_i32_102 = arith.constant 64 : i32
    %251 = vector.broadcast %c64_i32_102 : i32 to vector<1x256xi32>
    %252 = arith.cmpi slt, %0, %251 : vector<1x256xi32>
    %253 = arith.andi %250, %252 : vector<1x256xi1>
    %cst_103 = arith.constant 1.000000e+00 : f32
    %cst_104 = arith.constant 0.000000e+00 : f32
    %254 = vector.broadcast %cst_103 : f32 to vector<1x256xf32>
    %255 = vector.broadcast %cst_104 : f32 to vector<1x256xf32>
    %256 = arith.select %253, %254, %255 : vector<1x256xi1>, vector<1x256xf32>
    %c-1_i32_105 = arith.constant -1 : i32
    %257 = vector.broadcast %c-1_i32_105 : i32 to vector<1x256xi32>
    %258 = arith.addi %204, %257 : vector<1x256xi32>
    %c0_i32_106 = arith.constant 0 : i32
    %259 = vector.broadcast %c0_i32_106 : i32 to vector<1x256xi32>
    %260 = arith.cmpi sge, %258, %259 : vector<1x256xi32>
    %c-1_i32_107 = arith.constant -1 : i32
    %261 = vector.broadcast %c-1_i32_107 : i32 to vector<1x256xi32>
    %262 = arith.addi %204, %261 : vector<1x256xi32>
    %c8_i32_108 = arith.constant 8 : i32
    %263 = vector.broadcast %c8_i32_108 : i32 to vector<1x256xi32>
    %264 = arith.cmpi slt, %262, %263 : vector<1x256xi32>
    %265 = arith.andi %260, %264 : vector<1x256xi1>
    %c1_i32_109 = arith.constant 1 : i32
    %266 = vector.broadcast %c1_i32_109 : i32 to vector<1x256xi32>
    %267 = arith.addi %206, %266 : vector<1x256xi32>
    %c0_i32_110 = arith.constant 0 : i32
    %268 = vector.broadcast %c0_i32_110 : i32 to vector<1x256xi32>
    %269 = arith.cmpi sge, %267, %268 : vector<1x256xi32>
    %270 = arith.andi %265, %269 : vector<1x256xi1>
    %c1_i32_111 = arith.constant 1 : i32
    %271 = vector.broadcast %c1_i32_111 : i32 to vector<1x256xi32>
    %272 = arith.addi %206, %271 : vector<1x256xi32>
    %c8_i32_112 = arith.constant 8 : i32
    %273 = vector.broadcast %c8_i32_112 : i32 to vector<1x256xi32>
    %274 = arith.cmpi slt, %272, %273 : vector<1x256xi32>
    %275 = arith.andi %270, %274 : vector<1x256xi1>
    %c64_i32_113 = arith.constant 64 : i32
    %276 = vector.broadcast %c64_i32_113 : i32 to vector<1x256xi32>
    %277 = arith.cmpi slt, %0, %276 : vector<1x256xi32>
    %278 = arith.andi %275, %277 : vector<1x256xi1>
    %cst_114 = arith.constant 1.000000e+00 : f32
    %cst_115 = arith.constant 0.000000e+00 : f32
    %279 = vector.broadcast %cst_114 : f32 to vector<1x256xf32>
    %280 = vector.broadcast %cst_115 : f32 to vector<1x256xf32>
    %281 = arith.select %278, %279, %280 : vector<1x256xi1>, vector<1x256xf32>
    %c0_i32_116 = arith.constant 0 : i32
    %282 = vector.broadcast %c0_i32_116 : i32 to vector<1x256xi32>
    %283 = arith.addi %204, %282 : vector<1x256xi32>
    %c0_i32_117 = arith.constant 0 : i32
    %284 = vector.broadcast %c0_i32_117 : i32 to vector<1x256xi32>
    %285 = arith.cmpi sge, %283, %284 : vector<1x256xi32>
    %c0_i32_118 = arith.constant 0 : i32
    %286 = vector.broadcast %c0_i32_118 : i32 to vector<1x256xi32>
    %287 = arith.addi %204, %286 : vector<1x256xi32>
    %c8_i32_119 = arith.constant 8 : i32
    %288 = vector.broadcast %c8_i32_119 : i32 to vector<1x256xi32>
    %289 = arith.cmpi slt, %287, %288 : vector<1x256xi32>
    %290 = arith.andi %285, %289 : vector<1x256xi1>
    %c-1_i32_120 = arith.constant -1 : i32
    %291 = vector.broadcast %c-1_i32_120 : i32 to vector<1x256xi32>
    %292 = arith.addi %206, %291 : vector<1x256xi32>
    %c0_i32_121 = arith.constant 0 : i32
    %293 = vector.broadcast %c0_i32_121 : i32 to vector<1x256xi32>
    %294 = arith.cmpi sge, %292, %293 : vector<1x256xi32>
    %295 = arith.andi %290, %294 : vector<1x256xi1>
    %c-1_i32_122 = arith.constant -1 : i32
    %296 = vector.broadcast %c-1_i32_122 : i32 to vector<1x256xi32>
    %297 = arith.addi %206, %296 : vector<1x256xi32>
    %c8_i32_123 = arith.constant 8 : i32
    %298 = vector.broadcast %c8_i32_123 : i32 to vector<1x256xi32>
    %299 = arith.cmpi slt, %297, %298 : vector<1x256xi32>
    %300 = arith.andi %295, %299 : vector<1x256xi1>
    %c64_i32_124 = arith.constant 64 : i32
    %301 = vector.broadcast %c64_i32_124 : i32 to vector<1x256xi32>
    %302 = arith.cmpi slt, %0, %301 : vector<1x256xi32>
    %303 = arith.andi %300, %302 : vector<1x256xi1>
    %cst_125 = arith.constant 1.000000e+00 : f32
    %cst_126 = arith.constant 0.000000e+00 : f32
    %304 = vector.broadcast %cst_125 : f32 to vector<1x256xf32>
    %305 = vector.broadcast %cst_126 : f32 to vector<1x256xf32>
    %306 = arith.select %303, %304, %305 : vector<1x256xi1>, vector<1x256xf32>
    %c0_i32_127 = arith.constant 0 : i32
    %307 = vector.broadcast %c0_i32_127 : i32 to vector<1x256xi32>
    %308 = arith.addi %204, %307 : vector<1x256xi32>
    %c0_i32_128 = arith.constant 0 : i32
    %309 = vector.broadcast %c0_i32_128 : i32 to vector<1x256xi32>
    %310 = arith.cmpi sge, %308, %309 : vector<1x256xi32>
    %c0_i32_129 = arith.constant 0 : i32
    %311 = vector.broadcast %c0_i32_129 : i32 to vector<1x256xi32>
    %312 = arith.addi %204, %311 : vector<1x256xi32>
    %c8_i32_130 = arith.constant 8 : i32
    %313 = vector.broadcast %c8_i32_130 : i32 to vector<1x256xi32>
    %314 = arith.cmpi slt, %312, %313 : vector<1x256xi32>
    %315 = arith.andi %310, %314 : vector<1x256xi1>
    %c0_i32_131 = arith.constant 0 : i32
    %316 = vector.broadcast %c0_i32_131 : i32 to vector<1x256xi32>
    %317 = arith.addi %206, %316 : vector<1x256xi32>
    %c0_i32_132 = arith.constant 0 : i32
    %318 = vector.broadcast %c0_i32_132 : i32 to vector<1x256xi32>
    %319 = arith.cmpi sge, %317, %318 : vector<1x256xi32>
    %320 = arith.andi %315, %319 : vector<1x256xi1>
    %c0_i32_133 = arith.constant 0 : i32
    %321 = vector.broadcast %c0_i32_133 : i32 to vector<1x256xi32>
    %322 = arith.addi %206, %321 : vector<1x256xi32>
    %c8_i32_134 = arith.constant 8 : i32
    %323 = vector.broadcast %c8_i32_134 : i32 to vector<1x256xi32>
    %324 = arith.cmpi slt, %322, %323 : vector<1x256xi32>
    %325 = arith.andi %320, %324 : vector<1x256xi1>
    %c64_i32_135 = arith.constant 64 : i32
    %326 = vector.broadcast %c64_i32_135 : i32 to vector<1x256xi32>
    %327 = arith.cmpi slt, %0, %326 : vector<1x256xi32>
    %328 = arith.andi %325, %327 : vector<1x256xi1>
    %cst_136 = arith.constant 1.000000e+00 : f32
    %cst_137 = arith.constant 0.000000e+00 : f32
    %329 = vector.broadcast %cst_136 : f32 to vector<1x256xf32>
    %330 = vector.broadcast %cst_137 : f32 to vector<1x256xf32>
    %331 = arith.select %328, %329, %330 : vector<1x256xi1>, vector<1x256xf32>
    %c0_i32_138 = arith.constant 0 : i32
    %332 = vector.broadcast %c0_i32_138 : i32 to vector<1x256xi32>
    %333 = arith.addi %204, %332 : vector<1x256xi32>
    %c0_i32_139 = arith.constant 0 : i32
    %334 = vector.broadcast %c0_i32_139 : i32 to vector<1x256xi32>
    %335 = arith.cmpi sge, %333, %334 : vector<1x256xi32>
    %c0_i32_140 = arith.constant 0 : i32
    %336 = vector.broadcast %c0_i32_140 : i32 to vector<1x256xi32>
    %337 = arith.addi %204, %336 : vector<1x256xi32>
    %c8_i32_141 = arith.constant 8 : i32
    %338 = vector.broadcast %c8_i32_141 : i32 to vector<1x256xi32>
    %339 = arith.cmpi slt, %337, %338 : vector<1x256xi32>
    %340 = arith.andi %335, %339 : vector<1x256xi1>
    %c1_i32_142 = arith.constant 1 : i32
    %341 = vector.broadcast %c1_i32_142 : i32 to vector<1x256xi32>
    %342 = arith.addi %206, %341 : vector<1x256xi32>
    %c0_i32_143 = arith.constant 0 : i32
    %343 = vector.broadcast %c0_i32_143 : i32 to vector<1x256xi32>
    %344 = arith.cmpi sge, %342, %343 : vector<1x256xi32>
    %345 = arith.andi %340, %344 : vector<1x256xi1>
    %c1_i32_144 = arith.constant 1 : i32
    %346 = vector.broadcast %c1_i32_144 : i32 to vector<1x256xi32>
    %347 = arith.addi %206, %346 : vector<1x256xi32>
    %c8_i32_145 = arith.constant 8 : i32
    %348 = vector.broadcast %c8_i32_145 : i32 to vector<1x256xi32>
    %349 = arith.cmpi slt, %347, %348 : vector<1x256xi32>
    %350 = arith.andi %345, %349 : vector<1x256xi1>
    %c64_i32_146 = arith.constant 64 : i32
    %351 = vector.broadcast %c64_i32_146 : i32 to vector<1x256xi32>
    %352 = arith.cmpi slt, %0, %351 : vector<1x256xi32>
    %353 = arith.andi %350, %352 : vector<1x256xi1>
    %cst_147 = arith.constant 1.000000e+00 : f32
    %cst_148 = arith.constant 0.000000e+00 : f32
    %354 = vector.broadcast %cst_147 : f32 to vector<1x256xf32>
    %355 = vector.broadcast %cst_148 : f32 to vector<1x256xf32>
    %356 = arith.select %353, %354, %355 : vector<1x256xi1>, vector<1x256xf32>
    %c1_i32_149 = arith.constant 1 : i32
    %357 = vector.broadcast %c1_i32_149 : i32 to vector<1x256xi32>
    %358 = arith.addi %204, %357 : vector<1x256xi32>
    %c0_i32_150 = arith.constant 0 : i32
    %359 = vector.broadcast %c0_i32_150 : i32 to vector<1x256xi32>
    %360 = arith.cmpi sge, %358, %359 : vector<1x256xi32>
    %c1_i32_151 = arith.constant 1 : i32
    %361 = vector.broadcast %c1_i32_151 : i32 to vector<1x256xi32>
    %362 = arith.addi %204, %361 : vector<1x256xi32>
    %c8_i32_152 = arith.constant 8 : i32
    %363 = vector.broadcast %c8_i32_152 : i32 to vector<1x256xi32>
    %364 = arith.cmpi slt, %362, %363 : vector<1x256xi32>
    %365 = arith.andi %360, %364 : vector<1x256xi1>
    %c-1_i32_153 = arith.constant -1 : i32
    %366 = vector.broadcast %c-1_i32_153 : i32 to vector<1x256xi32>
    %367 = arith.addi %206, %366 : vector<1x256xi32>
    %c0_i32_154 = arith.constant 0 : i32
    %368 = vector.broadcast %c0_i32_154 : i32 to vector<1x256xi32>
    %369 = arith.cmpi sge, %367, %368 : vector<1x256xi32>
    %370 = arith.andi %365, %369 : vector<1x256xi1>
    %c-1_i32_155 = arith.constant -1 : i32
    %371 = vector.broadcast %c-1_i32_155 : i32 to vector<1x256xi32>
    %372 = arith.addi %206, %371 : vector<1x256xi32>
    %c8_i32_156 = arith.constant 8 : i32
    %373 = vector.broadcast %c8_i32_156 : i32 to vector<1x256xi32>
    %374 = arith.cmpi slt, %372, %373 : vector<1x256xi32>
    %375 = arith.andi %370, %374 : vector<1x256xi1>
    %c64_i32_157 = arith.constant 64 : i32
    %376 = vector.broadcast %c64_i32_157 : i32 to vector<1x256xi32>
    %377 = arith.cmpi slt, %0, %376 : vector<1x256xi32>
    %378 = arith.andi %375, %377 : vector<1x256xi1>
    %cst_158 = arith.constant 1.000000e+00 : f32
    %cst_159 = arith.constant 0.000000e+00 : f32
    %379 = vector.broadcast %cst_158 : f32 to vector<1x256xf32>
    %380 = vector.broadcast %cst_159 : f32 to vector<1x256xf32>
    %381 = arith.select %378, %379, %380 : vector<1x256xi1>, vector<1x256xf32>
    %c1_i32_160 = arith.constant 1 : i32
    %382 = vector.broadcast %c1_i32_160 : i32 to vector<1x256xi32>
    %383 = arith.addi %204, %382 : vector<1x256xi32>
    %c0_i32_161 = arith.constant 0 : i32
    %384 = vector.broadcast %c0_i32_161 : i32 to vector<1x256xi32>
    %385 = arith.cmpi sge, %383, %384 : vector<1x256xi32>
    %c1_i32_162 = arith.constant 1 : i32
    %386 = vector.broadcast %c1_i32_162 : i32 to vector<1x256xi32>
    %387 = arith.addi %204, %386 : vector<1x256xi32>
    %c8_i32_163 = arith.constant 8 : i32
    %388 = vector.broadcast %c8_i32_163 : i32 to vector<1x256xi32>
    %389 = arith.cmpi slt, %387, %388 : vector<1x256xi32>
    %390 = arith.andi %385, %389 : vector<1x256xi1>
    %c0_i32_164 = arith.constant 0 : i32
    %391 = vector.broadcast %c0_i32_164 : i32 to vector<1x256xi32>
    %392 = arith.addi %206, %391 : vector<1x256xi32>
    %c0_i32_165 = arith.constant 0 : i32
    %393 = vector.broadcast %c0_i32_165 : i32 to vector<1x256xi32>
    %394 = arith.cmpi sge, %392, %393 : vector<1x256xi32>
    %395 = arith.andi %390, %394 : vector<1x256xi1>
    %c0_i32_166 = arith.constant 0 : i32
    %396 = vector.broadcast %c0_i32_166 : i32 to vector<1x256xi32>
    %397 = arith.addi %206, %396 : vector<1x256xi32>
    %c8_i32_167 = arith.constant 8 : i32
    %398 = vector.broadcast %c8_i32_167 : i32 to vector<1x256xi32>
    %399 = arith.cmpi slt, %397, %398 : vector<1x256xi32>
    %400 = arith.andi %395, %399 : vector<1x256xi1>
    %c64_i32_168 = arith.constant 64 : i32
    %401 = vector.broadcast %c64_i32_168 : i32 to vector<1x256xi32>
    %402 = arith.cmpi slt, %0, %401 : vector<1x256xi32>
    %403 = arith.andi %400, %402 : vector<1x256xi1>
    %cst_169 = arith.constant 1.000000e+00 : f32
    %cst_170 = arith.constant 0.000000e+00 : f32
    %404 = vector.broadcast %cst_169 : f32 to vector<1x256xf32>
    %405 = vector.broadcast %cst_170 : f32 to vector<1x256xf32>
    %406 = arith.select %403, %404, %405 : vector<1x256xi1>, vector<1x256xf32>
    %c1_i32_171 = arith.constant 1 : i32
    %407 = vector.broadcast %c1_i32_171 : i32 to vector<1x256xi32>
    %408 = arith.addi %204, %407 : vector<1x256xi32>
    %c0_i32_172 = arith.constant 0 : i32
    %409 = vector.broadcast %c0_i32_172 : i32 to vector<1x256xi32>
    %410 = arith.cmpi sge, %408, %409 : vector<1x256xi32>
    %c1_i32_173 = arith.constant 1 : i32
    %411 = vector.broadcast %c1_i32_173 : i32 to vector<1x256xi32>
    %412 = arith.addi %204, %411 : vector<1x256xi32>
    %c8_i32_174 = arith.constant 8 : i32
    %413 = vector.broadcast %c8_i32_174 : i32 to vector<1x256xi32>
    %414 = arith.cmpi slt, %412, %413 : vector<1x256xi32>
    %415 = arith.andi %410, %414 : vector<1x256xi1>
    %c1_i32_175 = arith.constant 1 : i32
    %416 = vector.broadcast %c1_i32_175 : i32 to vector<1x256xi32>
    %417 = arith.addi %206, %416 : vector<1x256xi32>
    %c0_i32_176 = arith.constant 0 : i32
    %418 = vector.broadcast %c0_i32_176 : i32 to vector<1x256xi32>
    %419 = arith.cmpi sge, %417, %418 : vector<1x256xi32>
    %420 = arith.andi %415, %419 : vector<1x256xi1>
    %c1_i32_177 = arith.constant 1 : i32
    %421 = vector.broadcast %c1_i32_177 : i32 to vector<1x256xi32>
    %422 = arith.addi %206, %421 : vector<1x256xi32>
    %c8_i32_178 = arith.constant 8 : i32
    %423 = vector.broadcast %c8_i32_178 : i32 to vector<1x256xi32>
    %424 = arith.cmpi slt, %422, %423 : vector<1x256xi32>
    %425 = arith.andi %420, %424 : vector<1x256xi1>
    %c64_i32_179 = arith.constant 64 : i32
    %426 = vector.broadcast %c64_i32_179 : i32 to vector<1x256xi32>
    %427 = arith.cmpi slt, %0, %426 : vector<1x256xi32>
    %428 = arith.andi %425, %427 : vector<1x256xi1>
    %cst_180 = arith.constant 1.000000e+00 : f32
    %cst_181 = arith.constant 0.000000e+00 : f32
    %429 = vector.broadcast %cst_180 : f32 to vector<1x256xf32>
    %430 = vector.broadcast %cst_181 : f32 to vector<1x256xf32>
    %431 = arith.select %428, %429, %430 : vector<1x256xi1>, vector<1x256xf32>
    %432 = tpu.iota {dimensions = array<i32: 0>} : vector<256x256xi32>
    %433 = tpu.iota {dimensions = array<i32: 1>} : vector<256x256xi32>
    %c3_i32_182 = arith.constant 3 : i32
    %434 = vector.broadcast %c3_i32_182 : i32 to vector<256x256xi32>
    %435 = arith.shrsi %433, %434 : vector<256x256xi32>
    %c7_i32_183 = arith.constant 7 : i32
    %436 = vector.broadcast %c7_i32_183 : i32 to vector<256x256xi32>
    %437 = arith.andi %433, %436 : vector<256x256xi32>
    %c64_i32_184 = arith.constant 64 : i32
    %438 = vector.broadcast %c64_i32_184 : i32 to vector<256x256xi32>
    %439 = arith.cmpi slt, %433, %438 : vector<256x256xi32>
    %c2_i32 = arith.constant 2 : i32
    %440 = vector.broadcast %c2_i32 : i32 to vector<256x256xi32>
    %441 = arith.muli %440, %435 : vector<256x256xi32>
    %c16_i32_185 = arith.constant 16 : i32
    %442 = vector.broadcast %c16_i32_185 : i32 to vector<256x256xi32>
    %443 = arith.muli %441, %442 : vector<256x256xi32>
    %c2_i32_186 = arith.constant 2 : i32
    %444 = vector.broadcast %c2_i32_186 : i32 to vector<256x256xi32>
    %445 = arith.muli %444, %437 : vector<256x256xi32>
    %446 = arith.addi %443, %445 : vector<256x256xi32>
    %447 = arith.cmpi eq, %432, %446 : vector<256x256xi32>
    %448 = arith.andi %439, %447 : vector<256x256xi1>
    %cst_187 = arith.constant 1.000000e+00 : f32
    %cst_188 = arith.constant 0.000000e+00 : f32
    %449 = vector.broadcast %cst_187 : f32 to vector<256x256xf32>
    %450 = vector.broadcast %cst_188 : f32 to vector<256x256xf32>
    %451 = arith.select %448, %449, %450 : vector<256x256xi1>, vector<256x256xf32>
    %452 = arith.truncf %451 : vector<256x256xf32> to vector<256x256xbf16>
    %c4_i32_189 = arith.constant 4 : i32
    %453 = vector.broadcast %c4_i32_189 : i32 to vector<256x256xi32>
    %454 = arith.shrsi %433, %453 : vector<256x256xi32>
    %c1_i32_190 = arith.constant 1 : i32
    %455 = vector.broadcast %c1_i32_190 : i32 to vector<256x256xi32>
    %456 = arith.shrsi %454, %455 : vector<256x256xi32>
    %c8_i32_191 = arith.constant 8 : i32
    %457 = vector.broadcast %c8_i32_191 : i32 to vector<256x256xi32>
    %458 = arith.muli %456, %457 : vector<256x256xi32>
    %c15_i32_192 = arith.constant 15 : i32
    %459 = vector.broadcast %c15_i32_192 : i32 to vector<256x256xi32>
    %460 = arith.andi %433, %459 : vector<256x256xi32>
    %c1_i32_193 = arith.constant 1 : i32
    %461 = vector.broadcast %c1_i32_193 : i32 to vector<256x256xi32>
    %462 = arith.shrsi %460, %461 : vector<256x256xi32>
    %463 = arith.addi %458, %462 : vector<256x256xi32>
    %464 = arith.cmpi eq, %432, %463 : vector<256x256xi32>
    %cst_194 = arith.constant 1.000000e+00 : f32
    %cst_195 = arith.constant 0.000000e+00 : f32
    %465 = vector.broadcast %cst_194 : f32 to vector<256x256xf32>
    %466 = vector.broadcast %cst_195 : f32 to vector<256x256xf32>
    %467 = arith.select %464, %465, %466 : vector<256x256xi1>, vector<256x256xf32>
    %468 = arith.truncf %467 : vector<256x256xf32> to vector<256x256xbf16>
    %c0 = arith.constant 0 : index
    %c0_196 = arith.constant 0 : index
    %c0_197 = arith.constant 0 : index
    %469 = vector.load %arg2[%c0, %c0_196, %c0_197] : memref<1x2x256xf32, #tpu.memory_space<vmem>>, vector<1x2x256xf32>
    %470 = vector.shape_cast %469 : vector<1x2x256xf32> to vector<2x256xf32>
    %c17_i32 = arith.constant 17 : i32
    %471 = tpu.dynamic_rotate %470 by %c17_i32 dim 1 : vector<2x256xf32>, i32 -> vector<2x256xf32>
    %472 = vector.broadcast %26 : vector<1x256xf32> to vector<2x256xf32>
    %473 = arith.mulf %471, %472 : vector<2x256xf32>
    %474 = arith.truncf %473 : vector<2x256xf32> to vector<2x256xbf16>
    %c0_198 = arith.constant 0 : index
    %c0_199 = arith.constant 0 : index
    %c0_200 = arith.constant 0 : index
    %c0_201 = arith.constant 0 : index
    %475 = vector.load %arg3[%c0_198, %c0_199, %c0_200, %c0_201] : memref<1x9x8x2xbf16, #tpu.memory_space<vmem>>, vector<1x1x8x2xbf16>
    %476 = vector.shape_cast %475 : vector<1x1x8x2xbf16> to vector<8x2xbf16>
    %cst_202 = arith.constant dense<0.000000e+00> : vector<8x256xf32>
    %477 = tpu.matmul %476, %474, %cst_202 {dimension_numbers = #tpu.dot_dimension_numbers<[1], [0], [0], [1], [0, 0, 1, 1], [], []>} : vector<8x2xbf16>, vector<2x256xbf16>, vector<8x256xf32> -> vector<8x256xf32>
    %c16_i32_203 = arith.constant 16 : i32
    %478 = tpu.dynamic_rotate %470 by %c16_i32_203 dim 1 : vector<2x256xf32>, i32 -> vector<2x256xf32>
    %479 = vector.broadcast %48 : vector<1x256xf32> to vector<2x256xf32>
    %480 = arith.mulf %478, %479 : vector<2x256xf32>
    %481 = arith.truncf %480 : vector<2x256xf32> to vector<2x256xbf16>
    %c0_204 = arith.constant 0 : index
    %c1 = arith.constant 1 : index
    %c0_205 = arith.constant 0 : index
    %c0_206 = arith.constant 0 : index
    %482 = vector.load %arg3[%c0_204, %c1, %c0_205, %c0_206] : memref<1x9x8x2xbf16, #tpu.memory_space<vmem>>, vector<1x1x8x2xbf16>
    %483 = vector.shape_cast %482 : vector<1x1x8x2xbf16> to vector<8x2xbf16>
    %cst_207 = arith.constant dense<0.000000e+00> : vector<8x256xf32>
    %484 = tpu.matmul %483, %481, %cst_207 {dimension_numbers = #tpu.dot_dimension_numbers<[1], [0], [0], [1], [0, 0, 1, 1], [], []>} : vector<8x2xbf16>, vector<2x256xbf16>, vector<8x256xf32> -> vector<8x256xf32>
    %485 = arith.addf %477, %484 : vector<8x256xf32>
    %c15_i32_208 = arith.constant 15 : i32
    %486 = tpu.dynamic_rotate %470 by %c15_i32_208 dim 1 : vector<2x256xf32>, i32 -> vector<2x256xf32>
    %487 = vector.broadcast %70 : vector<1x256xf32> to vector<2x256xf32>
    %488 = arith.mulf %486, %487 : vector<2x256xf32>
    %489 = arith.truncf %488 : vector<2x256xf32> to vector<2x256xbf16>
    %c0_209 = arith.constant 0 : index
    %c2 = arith.constant 2 : index
    %c0_210 = arith.constant 0 : index
    %c0_211 = arith.constant 0 : index
    %490 = vector.load %arg3[%c0_209, %c2, %c0_210, %c0_211] : memref<1x9x8x2xbf16, #tpu.memory_space<vmem>>, vector<1x1x8x2xbf16>
    %491 = vector.shape_cast %490 : vector<1x1x8x2xbf16> to vector<8x2xbf16>
    %cst_212 = arith.constant dense<0.000000e+00> : vector<8x256xf32>
    %492 = tpu.matmul %491, %489, %cst_212 {dimension_numbers = #tpu.dot_dimension_numbers<[1], [0], [0], [1], [0, 0, 1, 1], [], []>} : vector<8x2xbf16>, vector<2x256xbf16>, vector<8x256xf32> -> vector<8x256xf32>
    %493 = arith.addf %485, %492 : vector<8x256xf32>
    %c1_i32_213 = arith.constant 1 : i32
    %494 = tpu.dynamic_rotate %470 by %c1_i32_213 dim 1 : vector<2x256xf32>, i32 -> vector<2x256xf32>
    %495 = vector.broadcast %92 : vector<1x256xf32> to vector<2x256xf32>
    %496 = arith.mulf %494, %495 : vector<2x256xf32>
    %497 = arith.truncf %496 : vector<2x256xf32> to vector<2x256xbf16>
    %c0_214 = arith.constant 0 : index
    %c3 = arith.constant 3 : index
    %c0_215 = arith.constant 0 : index
    %c0_216 = arith.constant 0 : index
    %498 = vector.load %arg3[%c0_214, %c3, %c0_215, %c0_216] : memref<1x9x8x2xbf16, #tpu.memory_space<vmem>>, vector<1x1x8x2xbf16>
    %499 = vector.shape_cast %498 : vector<1x1x8x2xbf16> to vector<8x2xbf16>
    %cst_217 = arith.constant dense<0.000000e+00> : vector<8x256xf32>
    %500 = tpu.matmul %499, %497, %cst_217 {dimension_numbers = #tpu.dot_dimension_numbers<[1], [0], [0], [1], [0, 0, 1, 1], [], []>} : vector<8x2xbf16>, vector<2x256xbf16>, vector<8x256xf32> -> vector<8x256xf32>
    %501 = arith.addf %493, %500 : vector<8x256xf32>
    %502 = vector.broadcast %114 : vector<1x256xf32> to vector<2x256xf32>
    %503 = arith.mulf %470, %502 : vector<2x256xf32>
    %504 = arith.truncf %503 : vector<2x256xf32> to vector<2x256xbf16>
    %c0_218 = arith.constant 0 : index
    %c4 = arith.constant 4 : index
    %c0_219 = arith.constant 0 : index
    %c0_220 = arith.constant 0 : index
    %505 = vector.load %arg3[%c0_218, %c4, %c0_219, %c0_220] : memref<1x9x8x2xbf16, #tpu.memory_space<vmem>>, vector<1x1x8x2xbf16>
    %506 = vector.shape_cast %505 : vector<1x1x8x2xbf16> to vector<8x2xbf16>
    %cst_221 = arith.constant dense<0.000000e+00> : vector<8x256xf32>
    %507 = tpu.matmul %506, %504, %cst_221 {dimension_numbers = #tpu.dot_dimension_numbers<[1], [0], [0], [1], [0, 0, 1, 1], [], []>} : vector<8x2xbf16>, vector<2x256xbf16>, vector<8x256xf32> -> vector<8x256xf32>
    %508 = arith.addf %501, %507 : vector<8x256xf32>
    %c255_i32 = arith.constant 255 : i32
    %509 = tpu.dynamic_rotate %470 by %c255_i32 dim 1 : vector<2x256xf32>, i32 -> vector<2x256xf32>
    %510 = vector.broadcast %136 : vector<1x256xf32> to vector<2x256xf32>
    %511 = arith.mulf %509, %510 : vector<2x256xf32>
    %512 = arith.truncf %511 : vector<2x256xf32> to vector<2x256xbf16>
    %c0_222 = arith.constant 0 : index
    %c5 = arith.constant 5 : index
    %c0_223 = arith.constant 0 : index
    %c0_224 = arith.constant 0 : index
    %513 = vector.load %arg3[%c0_222, %c5, %c0_223, %c0_224] : memref<1x9x8x2xbf16, #tpu.memory_space<vmem>>, vector<1x1x8x2xbf16>
    %514 = vector.shape_cast %513 : vector<1x1x8x2xbf16> to vector<8x2xbf16>
    %cst_225 = arith.constant dense<0.000000e+00> : vector<8x256xf32>
    %515 = tpu.matmul %514, %512, %cst_225 {dimension_numbers = #tpu.dot_dimension_numbers<[1], [0], [0], [1], [0, 0, 1, 1], [], []>} : vector<8x2xbf16>, vector<2x256xbf16>, vector<8x256xf32> -> vector<8x256xf32>
    %516 = arith.addf %508, %515 : vector<8x256xf32>
    %c241_i32 = arith.constant 241 : i32
    %517 = tpu.dynamic_rotate %470 by %c241_i32 dim 1 : vector<2x256xf32>, i32 -> vector<2x256xf32>
    %518 = vector.broadcast %158 : vector<1x256xf32> to vector<2x256xf32>
    %519 = arith.mulf %517, %518 : vector<2x256xf32>
    %520 = arith.truncf %519 : vector<2x256xf32> to vector<2x256xbf16>
    %c0_226 = arith.constant 0 : index
    %c6 = arith.constant 6 : index
    %c0_227 = arith.constant 0 : index
    %c0_228 = arith.constant 0 : index
    %521 = vector.load %arg3[%c0_226, %c6, %c0_227, %c0_228] : memref<1x9x8x2xbf16, #tpu.memory_space<vmem>>, vector<1x1x8x2xbf16>
    %522 = vector.shape_cast %521 : vector<1x1x8x2xbf16> to vector<8x2xbf16>
    %cst_229 = arith.constant dense<0.000000e+00> : vector<8x256xf32>
    %523 = tpu.matmul %522, %520, %cst_229 {dimension_numbers = #tpu.dot_dimension_numbers<[1], [0], [0], [1], [0, 0, 1, 1], [], []>} : vector<8x2xbf16>, vector<2x256xbf16>, vector<8x256xf32> -> vector<8x256xf32>
    %524 = arith.addf %516, %523 : vector<8x256xf32>
    %c240_i32 = arith.constant 240 : i32
    %525 = tpu.dynamic_rotate %470 by %c240_i32 dim 1 : vector<2x256xf32>, i32 -> vector<2x256xf32>
    %526 = vector.broadcast %180 : vector<1x256xf32> to vector<2x256xf32>
    %527 = arith.mulf %525, %526 : vector<2x256xf32>
    %528 = arith.truncf %527 : vector<2x256xf32> to vector<2x256xbf16>
    %c0_230 = arith.constant 0 : index
    %c7 = arith.constant 7 : index
    %c0_231 = arith.constant 0 : index
    %c0_232 = arith.constant 0 : index
    %529 = vector.load %arg3[%c0_230, %c7, %c0_231, %c0_232] : memref<1x9x8x2xbf16, #tpu.memory_space<vmem>>, vector<1x1x8x2xbf16>
    %530 = vector.shape_cast %529 : vector<1x1x8x2xbf16> to vector<8x2xbf16>
    %cst_233 = arith.constant dense<0.000000e+00> : vector<8x256xf32>
    %531 = tpu.matmul %530, %528, %cst_233 {dimension_numbers = #tpu.dot_dimension_numbers<[1], [0], [0], [1], [0, 0, 1, 1], [], []>} : vector<8x2xbf16>, vector<2x256xbf16>, vector<8x256xf32> -> vector<8x256xf32>
    %532 = arith.addf %524, %531 : vector<8x256xf32>
    %c239_i32 = arith.constant 239 : i32
    %533 = tpu.dynamic_rotate %470 by %c239_i32 dim 1 : vector<2x256xf32>, i32 -> vector<2x256xf32>
    %534 = vector.broadcast %202 : vector<1x256xf32> to vector<2x256xf32>
    %535 = arith.mulf %533, %534 : vector<2x256xf32>
    %536 = arith.truncf %535 : vector<2x256xf32> to vector<2x256xbf16>
    %c0_234 = arith.constant 0 : index
    %c8 = arith.constant 8 : index
    %c0_235 = arith.constant 0 : index
    %c0_236 = arith.constant 0 : index
    %537 = vector.load %arg3[%c0_234, %c8, %c0_235, %c0_236] : memref<1x9x8x2xbf16, #tpu.memory_space<vmem>>, vector<1x1x8x2xbf16>
    %538 = vector.shape_cast %537 : vector<1x1x8x2xbf16> to vector<8x2xbf16>
    %cst_237 = arith.constant dense<0.000000e+00> : vector<8x256xf32>
    %539 = tpu.matmul %538, %536, %cst_237 {dimension_numbers = #tpu.dot_dimension_numbers<[1], [0], [0], [1], [0, 0, 1, 1], [], []>} : vector<8x2xbf16>, vector<2x256xbf16>, vector<8x256xf32> -> vector<8x256xf32>
    %540 = arith.addf %532, %539 : vector<8x256xf32>
    %c0_238 = arith.constant 0 : index
    %c0_239 = arith.constant 0 : index
    %c0_240 = arith.constant 0 : index
    %541 = vector.load %arg4[%c0_238, %c0_239, %c0_240] : memref<1x8x1xf32, #tpu.memory_space<vmem>>, vector<1x8x1xf32>
    %542 = vector.shape_cast %541 : vector<1x8x1xf32> to vector<8x1xf32>
    %543 = vector.broadcast %542 : vector<8x1xf32> to vector<8x256xf32>
    %544 = arith.addf %540, %543 : vector<8x256xf32>
    %cst_241 = arith.constant 0.000000e+00 : f32
    %545 = vector.broadcast %cst_241 : f32 to vector<8x256xf32>
    %546 = arith.maximumf %544, %545 : vector<8x256xf32>
    %c17_i32_242 = arith.constant 17 : i32
    %547 = tpu.dynamic_rotate %546 by %c17_i32_242 dim 1 : vector<8x256xf32>, i32 -> vector<8x256xf32>
    %548 = vector.broadcast %26 : vector<1x256xf32> to vector<8x256xf32>
    %549 = arith.mulf %547, %548 : vector<8x256xf32>
    %550 = arith.truncf %549 : vector<8x256xf32> to vector<8x256xbf16>
    %c0_243 = arith.constant 0 : index
    %c0_244 = arith.constant 0 : index
    %c0_245 = arith.constant 0 : index
    %c0_246 = arith.constant 0 : index
    %551 = vector.load %arg5[%c0_243, %c0_244, %c0_245, %c0_246] : memref<1x9x8x8xbf16, #tpu.memory_space<vmem>>, vector<1x1x8x8xbf16>
    %552 = vector.shape_cast %551 : vector<1x1x8x8xbf16> to vector<8x8xbf16>
    %cst_247 = arith.constant dense<0.000000e+00> : vector<8x256xf32>
    %553 = tpu.matmul %552, %550, %cst_247 {dimension_numbers = #tpu.dot_dimension_numbers<[1], [0], [0], [1], [0, 0, 1, 1], [], []>} : vector<8x8xbf16>, vector<8x256xbf16>, vector<8x256xf32> -> vector<8x256xf32>
    %c16_i32_248 = arith.constant 16 : i32
    %554 = tpu.dynamic_rotate %546 by %c16_i32_248 dim 1 : vector<8x256xf32>, i32 -> vector<8x256xf32>
    %555 = vector.broadcast %48 : vector<1x256xf32> to vector<8x256xf32>
    %556 = arith.mulf %554, %555 : vector<8x256xf32>
    %557 = arith.truncf %556 : vector<8x256xf32> to vector<8x256xbf16>
    %c0_249 = arith.constant 0 : index
    %c1_250 = arith.constant 1 : index
    %c0_251 = arith.constant 0 : index
    %c0_252 = arith.constant 0 : index
    %558 = vector.load %arg5[%c0_249, %c1_250, %c0_251, %c0_252] : memref<1x9x8x8xbf16, #tpu.memory_space<vmem>>, vector<1x1x8x8xbf16>
    %559 = vector.shape_cast %558 : vector<1x1x8x8xbf16> to vector<8x8xbf16>
    %cst_253 = arith.constant dense<0.000000e+00> : vector<8x256xf32>
    %560 = tpu.matmul %559, %557, %cst_253 {dimension_numbers = #tpu.dot_dimension_numbers<[1], [0], [0], [1], [0, 0, 1, 1], [], []>} : vector<8x8xbf16>, vector<8x256xbf16>, vector<8x256xf32> -> vector<8x256xf32>
    %561 = arith.addf %553, %560 : vector<8x256xf32>
    %c15_i32_254 = arith.constant 15 : i32
    %562 = tpu.dynamic_rotate %546 by %c15_i32_254 dim 1 : vector<8x256xf32>, i32 -> vector<8x256xf32>
    %563 = vector.broadcast %70 : vector<1x256xf32> to vector<8x256xf32>
    %564 = arith.mulf %562, %563 : vector<8x256xf32>
    %565 = arith.truncf %564 : vector<8x256xf32> to vector<8x256xbf16>
    %c0_255 = arith.constant 0 : index
    %c2_256 = arith.constant 2 : index
    %c0_257 = arith.constant 0 : index
    %c0_258 = arith.constant 0 : index
    %566 = vector.load %arg5[%c0_255, %c2_256, %c0_257, %c0_258] : memref<1x9x8x8xbf16, #tpu.memory_space<vmem>>, vector<1x1x8x8xbf16>
    %567 = vector.shape_cast %566 : vector<1x1x8x8xbf16> to vector<8x8xbf16>
    %cst_259 = arith.constant dense<0.000000e+00> : vector<8x256xf32>
    %568 = tpu.matmul %567, %565, %cst_259 {dimension_numbers = #tpu.dot_dimension_numbers<[1], [0], [0], [1], [0, 0, 1, 1], [], []>} : vector<8x8xbf16>, vector<8x256xbf16>, vector<8x256xf32> -> vector<8x256xf32>
    %569 = arith.addf %561, %568 : vector<8x256xf32>
    %c1_i32_260 = arith.constant 1 : i32
    %570 = tpu.dynamic_rotate %546 by %c1_i32_260 dim 1 : vector<8x256xf32>, i32 -> vector<8x256xf32>
    %571 = vector.broadcast %92 : vector<1x256xf32> to vector<8x256xf32>
    %572 = arith.mulf %570, %571 : vector<8x256xf32>
    %573 = arith.truncf %572 : vector<8x256xf32> to vector<8x256xbf16>
    %c0_261 = arith.constant 0 : index
    %c3_262 = arith.constant 3 : index
    %c0_263 = arith.constant 0 : index
    %c0_264 = arith.constant 0 : index
    %574 = vector.load %arg5[%c0_261, %c3_262, %c0_263, %c0_264] : memref<1x9x8x8xbf16, #tpu.memory_space<vmem>>, vector<1x1x8x8xbf16>
    %575 = vector.shape_cast %574 : vector<1x1x8x8xbf16> to vector<8x8xbf16>
    %cst_265 = arith.constant dense<0.000000e+00> : vector<8x256xf32>
    %576 = tpu.matmul %575, %573, %cst_265 {dimension_numbers = #tpu.dot_dimension_numbers<[1], [0], [0], [1], [0, 0, 1, 1], [], []>} : vector<8x8xbf16>, vector<8x256xbf16>, vector<8x256xf32> -> vector<8x256xf32>
    %577 = arith.addf %569, %576 : vector<8x256xf32>
    %578 = vector.broadcast %114 : vector<1x256xf32> to vector<8x256xf32>
    %579 = arith.mulf %546, %578 : vector<8x256xf32>
    %580 = arith.truncf %579 : vector<8x256xf32> to vector<8x256xbf16>
    %c0_266 = arith.constant 0 : index
    %c4_267 = arith.constant 4 : index
    %c0_268 = arith.constant 0 : index
    %c0_269 = arith.constant 0 : index
    %581 = vector.load %arg5[%c0_266, %c4_267, %c0_268, %c0_269] : memref<1x9x8x8xbf16, #tpu.memory_space<vmem>>, vector<1x1x8x8xbf16>
    %582 = vector.shape_cast %581 : vector<1x1x8x8xbf16> to vector<8x8xbf16>
    %cst_270 = arith.constant dense<0.000000e+00> : vector<8x256xf32>
    %583 = tpu.matmul %582, %580, %cst_270 {dimension_numbers = #tpu.dot_dimension_numbers<[1], [0], [0], [1], [0, 0, 1, 1], [], []>} : vector<8x8xbf16>, vector<8x256xbf16>, vector<8x256xf32> -> vector<8x256xf32>
    %584 = arith.addf %577, %583 : vector<8x256xf32>
    %c255_i32_271 = arith.constant 255 : i32
    %585 = tpu.dynamic_rotate %546 by %c255_i32_271 dim 1 : vector<8x256xf32>, i32 -> vector<8x256xf32>
    %586 = vector.broadcast %136 : vector<1x256xf32> to vector<8x256xf32>
    %587 = arith.mulf %585, %586 : vector<8x256xf32>
    %588 = arith.truncf %587 : vector<8x256xf32> to vector<8x256xbf16>
    %c0_272 = arith.constant 0 : index
    %c5_273 = arith.constant 5 : index
    %c0_274 = arith.constant 0 : index
    %c0_275 = arith.constant 0 : index
    %589 = vector.load %arg5[%c0_272, %c5_273, %c0_274, %c0_275] : memref<1x9x8x8xbf16, #tpu.memory_space<vmem>>, vector<1x1x8x8xbf16>
    %590 = vector.shape_cast %589 : vector<1x1x8x8xbf16> to vector<8x8xbf16>
    %cst_276 = arith.constant dense<0.000000e+00> : vector<8x256xf32>
    %591 = tpu.matmul %590, %588, %cst_276 {dimension_numbers = #tpu.dot_dimension_numbers<[1], [0], [0], [1], [0, 0, 1, 1], [], []>} : vector<8x8xbf16>, vector<8x256xbf16>, vector<8x256xf32> -> vector<8x256xf32>
    %592 = arith.addf %584, %591 : vector<8x256xf32>
    %c241_i32_277 = arith.constant 241 : i32
    %593 = tpu.dynamic_rotate %546 by %c241_i32_277 dim 1 : vector<8x256xf32>, i32 -> vector<8x256xf32>
    %594 = vector.broadcast %158 : vector<1x256xf32> to vector<8x256xf32>
    %595 = arith.mulf %593, %594 : vector<8x256xf32>
    %596 = arith.truncf %595 : vector<8x256xf32> to vector<8x256xbf16>
    %c0_278 = arith.constant 0 : index
    %c6_279 = arith.constant 6 : index
    %c0_280 = arith.constant 0 : index
    %c0_281 = arith.constant 0 : index
    %597 = vector.load %arg5[%c0_278, %c6_279, %c0_280, %c0_281] : memref<1x9x8x8xbf16, #tpu.memory_space<vmem>>, vector<1x1x8x8xbf16>
    %598 = vector.shape_cast %597 : vector<1x1x8x8xbf16> to vector<8x8xbf16>
    %cst_282 = arith.constant dense<0.000000e+00> : vector<8x256xf32>
    %599 = tpu.matmul %598, %596, %cst_282 {dimension_numbers = #tpu.dot_dimension_numbers<[1], [0], [0], [1], [0, 0, 1, 1], [], []>} : vector<8x8xbf16>, vector<8x256xbf16>, vector<8x256xf32> -> vector<8x256xf32>
    %600 = arith.addf %592, %599 : vector<8x256xf32>
    %c240_i32_283 = arith.constant 240 : i32
    %601 = tpu.dynamic_rotate %546 by %c240_i32_283 dim 1 : vector<8x256xf32>, i32 -> vector<8x256xf32>
    %602 = vector.broadcast %180 : vector<1x256xf32> to vector<8x256xf32>
    %603 = arith.mulf %601, %602 : vector<8x256xf32>
    %604 = arith.truncf %603 : vector<8x256xf32> to vector<8x256xbf16>
    %c0_284 = arith.constant 0 : index
    %c7_285 = arith.constant 7 : index
    %c0_286 = arith.constant 0 : index
    %c0_287 = arith.constant 0 : index
    %605 = vector.load %arg5[%c0_284, %c7_285, %c0_286, %c0_287] : memref<1x9x8x8xbf16, #tpu.memory_space<vmem>>, vector<1x1x8x8xbf16>
    %606 = vector.shape_cast %605 : vector<1x1x8x8xbf16> to vector<8x8xbf16>
    %cst_288 = arith.constant dense<0.000000e+00> : vector<8x256xf32>
    %607 = tpu.matmul %606, %604, %cst_288 {dimension_numbers = #tpu.dot_dimension_numbers<[1], [0], [0], [1], [0, 0, 1, 1], [], []>} : vector<8x8xbf16>, vector<8x256xbf16>, vector<8x256xf32> -> vector<8x256xf32>
    %608 = arith.addf %600, %607 : vector<8x256xf32>
    %c239_i32_289 = arith.constant 239 : i32
    %609 = tpu.dynamic_rotate %546 by %c239_i32_289 dim 1 : vector<8x256xf32>, i32 -> vector<8x256xf32>
    %610 = vector.broadcast %202 : vector<1x256xf32> to vector<8x256xf32>
    %611 = arith.mulf %609, %610 : vector<8x256xf32>
    %612 = arith.truncf %611 : vector<8x256xf32> to vector<8x256xbf16>
    %c0_290 = arith.constant 0 : index
    %c8_291 = arith.constant 8 : index
    %c0_292 = arith.constant 0 : index
    %c0_293 = arith.constant 0 : index
    %613 = vector.load %arg5[%c0_290, %c8_291, %c0_292, %c0_293] : memref<1x9x8x8xbf16, #tpu.memory_space<vmem>>, vector<1x1x8x8xbf16>
    %614 = vector.shape_cast %613 : vector<1x1x8x8xbf16> to vector<8x8xbf16>
    %cst_294 = arith.constant dense<0.000000e+00> : vector<8x256xf32>
    %615 = tpu.matmul %614, %612, %cst_294 {dimension_numbers = #tpu.dot_dimension_numbers<[1], [0], [0], [1], [0, 0, 1, 1], [], []>} : vector<8x8xbf16>, vector<8x256xbf16>, vector<8x256xf32> -> vector<8x256xf32>
    %616 = arith.addf %608, %615 : vector<8x256xf32>
    %c0_295 = arith.constant 0 : index
    %c0_296 = arith.constant 0 : index
    %c0_297 = arith.constant 0 : index
    %617 = vector.load %arg6[%c0_295, %c0_296, %c0_297] : memref<1x8x1xf32, #tpu.memory_space<vmem>>, vector<1x8x1xf32>
    %618 = vector.shape_cast %617 : vector<1x8x1xf32> to vector<8x1xf32>
    %619 = vector.broadcast %618 : vector<8x1xf32> to vector<8x256xf32>
    %620 = arith.addf %616, %619 : vector<8x256xf32>
    %cst_298 = arith.constant 0.000000e+00 : f32
    %621 = vector.broadcast %cst_298 : f32 to vector<8x256xf32>
    %622 = arith.maximumf %620, %621 : vector<8x256xf32>
    %c255_i32_299 = arith.constant 255 : i32
    %623 = tpu.dynamic_rotate %622 by %c255_i32_299 dim 1 : vector<8x256xf32>, i32 -> vector<8x256xf32>
    %624 = arith.maximumf %622, %623 : vector<8x256xf32>
    %c240_i32_300 = arith.constant 240 : i32
    %625 = tpu.dynamic_rotate %624 by %c240_i32_300 dim 1 : vector<8x256xf32>, i32 -> vector<8x256xf32>
    %626 = arith.maximumf %624, %625 : vector<8x256xf32>
    %627 = arith.truncf %626 : vector<8x256xf32> to vector<8x256xbf16>
    %cst_301 = arith.constant dense<0.000000e+00> : vector<8x256xf32>
    %628 = tpu.matmul %627, %452, %cst_301 {dimension_numbers = #tpu.dot_dimension_numbers<[1], [0], [0], [1], [0, 0, 1, 1], [], []>} : vector<8x256xbf16>, vector<256x256xbf16>, vector<8x256xf32> -> vector<8x256xf32>
    %c9_i32 = arith.constant 9 : i32
    %629 = tpu.dynamic_rotate %628 by %c9_i32 dim 1 : vector<8x256xf32>, i32 -> vector<8x256xf32>
    %630 = vector.broadcast %231 : vector<1x256xf32> to vector<8x256xf32>
    %631 = arith.mulf %629, %630 : vector<8x256xf32>
    %632 = arith.truncf %631 : vector<8x256xf32> to vector<8x256xbf16>
    %c0_302 = arith.constant 0 : index
    %c0_303 = arith.constant 0 : index
    %c0_304 = arith.constant 0 : index
    %c0_305 = arith.constant 0 : index
    %633 = vector.load %arg7[%c0_302, %c0_303, %c0_304, %c0_305] : memref<1x9x16x8xbf16, #tpu.memory_space<vmem>>, vector<1x1x16x8xbf16>
    %634 = vector.shape_cast %633 : vector<1x1x16x8xbf16> to vector<16x8xbf16>
    %cst_306 = arith.constant dense<0.000000e+00> : vector<16x256xf32>
    %635 = tpu.matmul %634, %632, %cst_306 {dimension_numbers = #tpu.dot_dimension_numbers<[1], [0], [0], [1], [0, 0, 1, 1], [], []>} : vector<16x8xbf16>, vector<8x256xbf16>, vector<16x256xf32> -> vector<16x256xf32>
    %c8_i32_307 = arith.constant 8 : i32
    %636 = tpu.dynamic_rotate %628 by %c8_i32_307 dim 1 : vector<8x256xf32>, i32 -> vector<8x256xf32>
    %637 = vector.broadcast %256 : vector<1x256xf32> to vector<8x256xf32>
    %638 = arith.mulf %636, %637 : vector<8x256xf32>
    %639 = arith.truncf %638 : vector<8x256xf32> to vector<8x256xbf16>
    %c0_308 = arith.constant 0 : index
    %c1_309 = arith.constant 1 : index
    %c0_310 = arith.constant 0 : index
    %c0_311 = arith.constant 0 : index
    %640 = vector.load %arg7[%c0_308, %c1_309, %c0_310, %c0_311] : memref<1x9x16x8xbf16, #tpu.memory_space<vmem>>, vector<1x1x16x8xbf16>
    %641 = vector.shape_cast %640 : vector<1x1x16x8xbf16> to vector<16x8xbf16>
    %cst_312 = arith.constant dense<0.000000e+00> : vector<16x256xf32>
    %642 = tpu.matmul %641, %639, %cst_312 {dimension_numbers = #tpu.dot_dimension_numbers<[1], [0], [0], [1], [0, 0, 1, 1], [], []>} : vector<16x8xbf16>, vector<8x256xbf16>, vector<16x256xf32> -> vector<16x256xf32>
    %643 = arith.addf %635, %642 : vector<16x256xf32>
    %c7_i32_313 = arith.constant 7 : i32
    %644 = tpu.dynamic_rotate %628 by %c7_i32_313 dim 1 : vector<8x256xf32>, i32 -> vector<8x256xf32>
    %645 = vector.broadcast %281 : vector<1x256xf32> to vector<8x256xf32>
    %646 = arith.mulf %644, %645 : vector<8x256xf32>
    %647 = arith.truncf %646 : vector<8x256xf32> to vector<8x256xbf16>
    %c0_314 = arith.constant 0 : index
    %c2_315 = arith.constant 2 : index
    %c0_316 = arith.constant 0 : index
    %c0_317 = arith.constant 0 : index
    %648 = vector.load %arg7[%c0_314, %c2_315, %c0_316, %c0_317] : memref<1x9x16x8xbf16, #tpu.memory_space<vmem>>, vector<1x1x16x8xbf16>
    %649 = vector.shape_cast %648 : vector<1x1x16x8xbf16> to vector<16x8xbf16>
    %cst_318 = arith.constant dense<0.000000e+00> : vector<16x256xf32>
    %650 = tpu.matmul %649, %647, %cst_318 {dimension_numbers = #tpu.dot_dimension_numbers<[1], [0], [0], [1], [0, 0, 1, 1], [], []>} : vector<16x8xbf16>, vector<8x256xbf16>, vector<16x256xf32> -> vector<16x256xf32>
    %651 = arith.addf %643, %650 : vector<16x256xf32>
    %c1_i32_319 = arith.constant 1 : i32
    %652 = tpu.dynamic_rotate %628 by %c1_i32_319 dim 1 : vector<8x256xf32>, i32 -> vector<8x256xf32>
    %653 = vector.broadcast %306 : vector<1x256xf32> to vector<8x256xf32>
    %654 = arith.mulf %652, %653 : vector<8x256xf32>
    %655 = arith.truncf %654 : vector<8x256xf32> to vector<8x256xbf16>
    %c0_320 = arith.constant 0 : index
    %c3_321 = arith.constant 3 : index
    %c0_322 = arith.constant 0 : index
    %c0_323 = arith.constant 0 : index
    %656 = vector.load %arg7[%c0_320, %c3_321, %c0_322, %c0_323] : memref<1x9x16x8xbf16, #tpu.memory_space<vmem>>, vector<1x1x16x8xbf16>
    %657 = vector.shape_cast %656 : vector<1x1x16x8xbf16> to vector<16x8xbf16>
    %cst_324 = arith.constant dense<0.000000e+00> : vector<16x256xf32>
    %658 = tpu.matmul %657, %655, %cst_324 {dimension_numbers = #tpu.dot_dimension_numbers<[1], [0], [0], [1], [0, 0, 1, 1], [], []>} : vector<16x8xbf16>, vector<8x256xbf16>, vector<16x256xf32> -> vector<16x256xf32>
    %659 = arith.addf %651, %658 : vector<16x256xf32>
    %660 = vector.broadcast %331 : vector<1x256xf32> to vector<8x256xf32>
    %661 = arith.mulf %628, %660 : vector<8x256xf32>
    %662 = arith.truncf %661 : vector<8x256xf32> to vector<8x256xbf16>
    %c0_325 = arith.constant 0 : index
    %c4_326 = arith.constant 4 : index
    %c0_327 = arith.constant 0 : index
    %c0_328 = arith.constant 0 : index
    %663 = vector.load %arg7[%c0_325, %c4_326, %c0_327, %c0_328] : memref<1x9x16x8xbf16, #tpu.memory_space<vmem>>, vector<1x1x16x8xbf16>
    %664 = vector.shape_cast %663 : vector<1x1x16x8xbf16> to vector<16x8xbf16>
    %cst_329 = arith.constant dense<0.000000e+00> : vector<16x256xf32>
    %665 = tpu.matmul %664, %662, %cst_329 {dimension_numbers = #tpu.dot_dimension_numbers<[1], [0], [0], [1], [0, 0, 1, 1], [], []>} : vector<16x8xbf16>, vector<8x256xbf16>, vector<16x256xf32> -> vector<16x256xf32>
    %666 = arith.addf %659, %665 : vector<16x256xf32>
    %c255_i32_330 = arith.constant 255 : i32
    %667 = tpu.dynamic_rotate %628 by %c255_i32_330 dim 1 : vector<8x256xf32>, i32 -> vector<8x256xf32>
    %668 = vector.broadcast %356 : vector<1x256xf32> to vector<8x256xf32>
    %669 = arith.mulf %667, %668 : vector<8x256xf32>
    %670 = arith.truncf %669 : vector<8x256xf32> to vector<8x256xbf16>
    %c0_331 = arith.constant 0 : index
    %c5_332 = arith.constant 5 : index
    %c0_333 = arith.constant 0 : index
    %c0_334 = arith.constant 0 : index
    %671 = vector.load %arg7[%c0_331, %c5_332, %c0_333, %c0_334] : memref<1x9x16x8xbf16, #tpu.memory_space<vmem>>, vector<1x1x16x8xbf16>
    %672 = vector.shape_cast %671 : vector<1x1x16x8xbf16> to vector<16x8xbf16>
    %cst_335 = arith.constant dense<0.000000e+00> : vector<16x256xf32>
    %673 = tpu.matmul %672, %670, %cst_335 {dimension_numbers = #tpu.dot_dimension_numbers<[1], [0], [0], [1], [0, 0, 1, 1], [], []>} : vector<16x8xbf16>, vector<8x256xbf16>, vector<16x256xf32> -> vector<16x256xf32>
    %674 = arith.addf %666, %673 : vector<16x256xf32>
    %c249_i32 = arith.constant 249 : i32
    %675 = tpu.dynamic_rotate %628 by %c249_i32 dim 1 : vector<8x256xf32>, i32 -> vector<8x256xf32>
    %676 = vector.broadcast %381 : vector<1x256xf32> to vector<8x256xf32>
    %677 = arith.mulf %675, %676 : vector<8x256xf32>
    %678 = arith.truncf %677 : vector<8x256xf32> to vector<8x256xbf16>
    %c0_336 = arith.constant 0 : index
    %c6_337 = arith.constant 6 : index
    %c0_338 = arith.constant 0 : index
    %c0_339 = arith.constant 0 : index
    %679 = vector.load %arg7[%c0_336, %c6_337, %c0_338, %c0_339] : memref<1x9x16x8xbf16, #tpu.memory_space<vmem>>, vector<1x1x16x8xbf16>
    %680 = vector.shape_cast %679 : vector<1x1x16x8xbf16> to vector<16x8xbf16>
    %cst_340 = arith.constant dense<0.000000e+00> : vector<16x256xf32>
    %681 = tpu.matmul %680, %678, %cst_340 {dimension_numbers = #tpu.dot_dimension_numbers<[1], [0], [0], [1], [0, 0, 1, 1], [], []>} : vector<16x8xbf16>, vector<8x256xbf16>, vector<16x256xf32> -> vector<16x256xf32>
    %682 = arith.addf %674, %681 : vector<16x256xf32>
    %c248_i32 = arith.constant 248 : i32
    %683 = tpu.dynamic_rotate %628 by %c248_i32 dim 1 : vector<8x256xf32>, i32 -> vector<8x256xf32>
    %684 = vector.broadcast %406 : vector<1x256xf32> to vector<8x256xf32>
    %685 = arith.mulf %683, %684 : vector<8x256xf32>
    %686 = arith.truncf %685 : vector<8x256xf32> to vector<8x256xbf16>
    %c0_341 = arith.constant 0 : index
    %c7_342 = arith.constant 7 : index
    %c0_343 = arith.constant 0 : index
    %c0_344 = arith.constant 0 : index
    %687 = vector.load %arg7[%c0_341, %c7_342, %c0_343, %c0_344] : memref<1x9x16x8xbf16, #tpu.memory_space<vmem>>, vector<1x1x16x8xbf16>
    %688 = vector.shape_cast %687 : vector<1x1x16x8xbf16> to vector<16x8xbf16>
    %cst_345 = arith.constant dense<0.000000e+00> : vector<16x256xf32>
    %689 = tpu.matmul %688, %686, %cst_345 {dimension_numbers = #tpu.dot_dimension_numbers<[1], [0], [0], [1], [0, 0, 1, 1], [], []>} : vector<16x8xbf16>, vector<8x256xbf16>, vector<16x256xf32> -> vector<16x256xf32>
    %690 = arith.addf %682, %689 : vector<16x256xf32>
    %c247_i32 = arith.constant 247 : i32
    %691 = tpu.dynamic_rotate %628 by %c247_i32 dim 1 : vector<8x256xf32>, i32 -> vector<8x256xf32>
    %692 = vector.broadcast %431 : vector<1x256xf32> to vector<8x256xf32>
    %693 = arith.mulf %691, %692 : vector<8x256xf32>
    %694 = arith.truncf %693 : vector<8x256xf32> to vector<8x256xbf16>
    %c0_346 = arith.constant 0 : index
    %c8_347 = arith.constant 8 : index
    %c0_348 = arith.constant 0 : index
    %c0_349 = arith.constant 0 : index
    %695 = vector.load %arg7[%c0_346, %c8_347, %c0_348, %c0_349] : memref<1x9x16x8xbf16, #tpu.memory_space<vmem>>, vector<1x1x16x8xbf16>
    %696 = vector.shape_cast %695 : vector<1x1x16x8xbf16> to vector<16x8xbf16>
    %cst_350 = arith.constant dense<0.000000e+00> : vector<16x256xf32>
    %697 = tpu.matmul %696, %694, %cst_350 {dimension_numbers = #tpu.dot_dimension_numbers<[1], [0], [0], [1], [0, 0, 1, 1], [], []>} : vector<16x8xbf16>, vector<8x256xbf16>, vector<16x256xf32> -> vector<16x256xf32>
    %698 = arith.addf %690, %697 : vector<16x256xf32>
    %c0_351 = arith.constant 0 : index
    %c0_352 = arith.constant 0 : index
    %c0_353 = arith.constant 0 : index
    %699 = vector.load %arg8[%c0_351, %c0_352, %c0_353] : memref<1x16x1xf32, #tpu.memory_space<vmem>>, vector<1x16x1xf32>
    %700 = vector.shape_cast %699 : vector<1x16x1xf32> to vector<16x1xf32>
    %701 = vector.broadcast %700 : vector<16x1xf32> to vector<16x256xf32>
    %702 = arith.addf %698, %701 : vector<16x256xf32>
    %cst_354 = arith.constant 0.000000e+00 : f32
    %703 = vector.broadcast %cst_354 : f32 to vector<16x256xf32>
    %704 = arith.maximumf %702, %703 : vector<16x256xf32>
    %c9_i32_355 = arith.constant 9 : i32
    %705 = tpu.dynamic_rotate %704 by %c9_i32_355 dim 1 : vector<16x256xf32>, i32 -> vector<16x256xf32>
    %706 = vector.broadcast %231 : vector<1x256xf32> to vector<16x256xf32>
    %707 = arith.mulf %705, %706 : vector<16x256xf32>
    %708 = arith.truncf %707 : vector<16x256xf32> to vector<16x256xbf16>
    %c0_356 = arith.constant 0 : index
    %c0_357 = arith.constant 0 : index
    %c0_358 = arith.constant 0 : index
    %c0_359 = arith.constant 0 : index
    %709 = vector.load %arg9[%c0_356, %c0_357, %c0_358, %c0_359] : memref<1x9x16x16xbf16, #tpu.memory_space<vmem>>, vector<1x1x16x16xbf16>
    %710 = vector.shape_cast %709 : vector<1x1x16x16xbf16> to vector<16x16xbf16>
    %cst_360 = arith.constant dense<0.000000e+00> : vector<16x256xf32>
    %711 = tpu.matmul %710, %708, %cst_360 {dimension_numbers = #tpu.dot_dimension_numbers<[1], [0], [0], [1], [0, 0, 1, 1], [], []>} : vector<16x16xbf16>, vector<16x256xbf16>, vector<16x256xf32> -> vector<16x256xf32>
    %c8_i32_361 = arith.constant 8 : i32
    %712 = tpu.dynamic_rotate %704 by %c8_i32_361 dim 1 : vector<16x256xf32>, i32 -> vector<16x256xf32>
    %713 = vector.broadcast %256 : vector<1x256xf32> to vector<16x256xf32>
    %714 = arith.mulf %712, %713 : vector<16x256xf32>
    %715 = arith.truncf %714 : vector<16x256xf32> to vector<16x256xbf16>
    %c0_362 = arith.constant 0 : index
    %c1_363 = arith.constant 1 : index
    %c0_364 = arith.constant 0 : index
    %c0_365 = arith.constant 0 : index
    %716 = vector.load %arg9[%c0_362, %c1_363, %c0_364, %c0_365] : memref<1x9x16x16xbf16, #tpu.memory_space<vmem>>, vector<1x1x16x16xbf16>
    %717 = vector.shape_cast %716 : vector<1x1x16x16xbf16> to vector<16x16xbf16>
    %cst_366 = arith.constant dense<0.000000e+00> : vector<16x256xf32>
    %718 = tpu.matmul %717, %715, %cst_366 {dimension_numbers = #tpu.dot_dimension_numbers<[1], [0], [0], [1], [0, 0, 1, 1], [], []>} : vector<16x16xbf16>, vector<16x256xbf16>, vector<16x256xf32> -> vector<16x256xf32>
    %719 = arith.addf %711, %718 : vector<16x256xf32>
    %c7_i32_367 = arith.constant 7 : i32
    %720 = tpu.dynamic_rotate %704 by %c7_i32_367 dim 1 : vector<16x256xf32>, i32 -> vector<16x256xf32>
    %721 = vector.broadcast %281 : vector<1x256xf32> to vector<16x256xf32>
    %722 = arith.mulf %720, %721 : vector<16x256xf32>
    %723 = arith.truncf %722 : vector<16x256xf32> to vector<16x256xbf16>
    %c0_368 = arith.constant 0 : index
    %c2_369 = arith.constant 2 : index
    %c0_370 = arith.constant 0 : index
    %c0_371 = arith.constant 0 : index
    %724 = vector.load %arg9[%c0_368, %c2_369, %c0_370, %c0_371] : memref<1x9x16x16xbf16, #tpu.memory_space<vmem>>, vector<1x1x16x16xbf16>
    %725 = vector.shape_cast %724 : vector<1x1x16x16xbf16> to vector<16x16xbf16>
    %cst_372 = arith.constant dense<0.000000e+00> : vector<16x256xf32>
    %726 = tpu.matmul %725, %723, %cst_372 {dimension_numbers = #tpu.dot_dimension_numbers<[1], [0], [0], [1], [0, 0, 1, 1], [], []>} : vector<16x16xbf16>, vector<16x256xbf16>, vector<16x256xf32> -> vector<16x256xf32>
    %727 = arith.addf %719, %726 : vector<16x256xf32>
    %c1_i32_373 = arith.constant 1 : i32
    %728 = tpu.dynamic_rotate %704 by %c1_i32_373 dim 1 : vector<16x256xf32>, i32 -> vector<16x256xf32>
    %729 = vector.broadcast %306 : vector<1x256xf32> to vector<16x256xf32>
    %730 = arith.mulf %728, %729 : vector<16x256xf32>
    %731 = arith.truncf %730 : vector<16x256xf32> to vector<16x256xbf16>
    %c0_374 = arith.constant 0 : index
    %c3_375 = arith.constant 3 : index
    %c0_376 = arith.constant 0 : index
    %c0_377 = arith.constant 0 : index
    %732 = vector.load %arg9[%c0_374, %c3_375, %c0_376, %c0_377] : memref<1x9x16x16xbf16, #tpu.memory_space<vmem>>, vector<1x1x16x16xbf16>
    %733 = vector.shape_cast %732 : vector<1x1x16x16xbf16> to vector<16x16xbf16>
    %cst_378 = arith.constant dense<0.000000e+00> : vector<16x256xf32>
    %734 = tpu.matmul %733, %731, %cst_378 {dimension_numbers = #tpu.dot_dimension_numbers<[1], [0], [0], [1], [0, 0, 1, 1], [], []>} : vector<16x16xbf16>, vector<16x256xbf16>, vector<16x256xf32> -> vector<16x256xf32>
    %735 = arith.addf %727, %734 : vector<16x256xf32>
    %736 = vector.broadcast %331 : vector<1x256xf32> to vector<16x256xf32>
    %737 = arith.mulf %704, %736 : vector<16x256xf32>
    %738 = arith.truncf %737 : vector<16x256xf32> to vector<16x256xbf16>
    %c0_379 = arith.constant 0 : index
    %c4_380 = arith.constant 4 : index
    %c0_381 = arith.constant 0 : index
    %c0_382 = arith.constant 0 : index
    %739 = vector.load %arg9[%c0_379, %c4_380, %c0_381, %c0_382] : memref<1x9x16x16xbf16, #tpu.memory_space<vmem>>, vector<1x1x16x16xbf16>
    %740 = vector.shape_cast %739 : vector<1x1x16x16xbf16> to vector<16x16xbf16>
    %cst_383 = arith.constant dense<0.000000e+00> : vector<16x256xf32>
    %741 = tpu.matmul %740, %738, %cst_383 {dimension_numbers = #tpu.dot_dimension_numbers<[1], [0], [0], [1], [0, 0, 1, 1], [], []>} : vector<16x16xbf16>, vector<16x256xbf16>, vector<16x256xf32> -> vector<16x256xf32>
    %742 = arith.addf %735, %741 : vector<16x256xf32>
    %c255_i32_384 = arith.constant 255 : i32
    %743 = tpu.dynamic_rotate %704 by %c255_i32_384 dim 1 : vector<16x256xf32>, i32 -> vector<16x256xf32>
    %744 = vector.broadcast %356 : vector<1x256xf32> to vector<16x256xf32>
    %745 = arith.mulf %743, %744 : vector<16x256xf32>
    %746 = arith.truncf %745 : vector<16x256xf32> to vector<16x256xbf16>
    %c0_385 = arith.constant 0 : index
    %c5_386 = arith.constant 5 : index
    %c0_387 = arith.constant 0 : index
    %c0_388 = arith.constant 0 : index
    %747 = vector.load %arg9[%c0_385, %c5_386, %c0_387, %c0_388] : memref<1x9x16x16xbf16, #tpu.memory_space<vmem>>, vector<1x1x16x16xbf16>
    %748 = vector.shape_cast %747 : vector<1x1x16x16xbf16> to vector<16x16xbf16>
    %cst_389 = arith.constant dense<0.000000e+00> : vector<16x256xf32>
    %749 = tpu.matmul %748, %746, %cst_389 {dimension_numbers = #tpu.dot_dimension_numbers<[1], [0], [0], [1], [0, 0, 1, 1], [], []>} : vector<16x16xbf16>, vector<16x256xbf16>, vector<16x256xf32> -> vector<16x256xf32>
    %750 = arith.addf %742, %749 : vector<16x256xf32>
    %c249_i32_390 = arith.constant 249 : i32
    %751 = tpu.dynamic_rotate %704 by %c249_i32_390 dim 1 : vector<16x256xf32>, i32 -> vector<16x256xf32>
    %752 = vector.broadcast %381 : vector<1x256xf32> to vector<16x256xf32>
    %753 = arith.mulf %751, %752 : vector<16x256xf32>
    %754 = arith.truncf %753 : vector<16x256xf32> to vector<16x256xbf16>
    %c0_391 = arith.constant 0 : index
    %c6_392 = arith.constant 6 : index
    %c0_393 = arith.constant 0 : index
    %c0_394 = arith.constant 0 : index
    %755 = vector.load %arg9[%c0_391, %c6_392, %c0_393, %c0_394] : memref<1x9x16x16xbf16, #tpu.memory_space<vmem>>, vector<1x1x16x16xbf16>
    %756 = vector.shape_cast %755 : vector<1x1x16x16xbf16> to vector<16x16xbf16>
    %cst_395 = arith.constant dense<0.000000e+00> : vector<16x256xf32>
    %757 = tpu.matmul %756, %754, %cst_395 {dimension_numbers = #tpu.dot_dimension_numbers<[1], [0], [0], [1], [0, 0, 1, 1], [], []>} : vector<16x16xbf16>, vector<16x256xbf16>, vector<16x256xf32> -> vector<16x256xf32>
    %758 = arith.addf %750, %757 : vector<16x256xf32>
    %c248_i32_396 = arith.constant 248 : i32
    %759 = tpu.dynamic_rotate %704 by %c248_i32_396 dim 1 : vector<16x256xf32>, i32 -> vector<16x256xf32>
    %760 = vector.broadcast %406 : vector<1x256xf32> to vector<16x256xf32>
    %761 = arith.mulf %759, %760 : vector<16x256xf32>
    %762 = arith.truncf %761 : vector<16x256xf32> to vector<16x256xbf16>
    %c0_397 = arith.constant 0 : index
    %c7_398 = arith.constant 7 : index
    %c0_399 = arith.constant 0 : index
    %c0_400 = arith.constant 0 : index
    %763 = vector.load %arg9[%c0_397, %c7_398, %c0_399, %c0_400] : memref<1x9x16x16xbf16, #tpu.memory_space<vmem>>, vector<1x1x16x16xbf16>
    %764 = vector.shape_cast %763 : vector<1x1x16x16xbf16> to vector<16x16xbf16>
    %cst_401 = arith.constant dense<0.000000e+00> : vector<16x256xf32>
    %765 = tpu.matmul %764, %762, %cst_401 {dimension_numbers = #tpu.dot_dimension_numbers<[1], [0], [0], [1], [0, 0, 1, 1], [], []>} : vector<16x16xbf16>, vector<16x256xbf16>, vector<16x256xf32> -> vector<16x256xf32>
    %766 = arith.addf %758, %765 : vector<16x256xf32>
    %c247_i32_402 = arith.constant 247 : i32
    %767 = tpu.dynamic_rotate %704 by %c247_i32_402 dim 1 : vector<16x256xf32>, i32 -> vector<16x256xf32>
    %768 = vector.broadcast %431 : vector<1x256xf32> to vector<16x256xf32>
    %769 = arith.mulf %767, %768 : vector<16x256xf32>
    %770 = arith.truncf %769 : vector<16x256xf32> to vector<16x256xbf16>
    %c0_403 = arith.constant 0 : index
    %c8_404 = arith.constant 8 : index
    %c0_405 = arith.constant 0 : index
    %c0_406 = arith.constant 0 : index
    %771 = vector.load %arg9[%c0_403, %c8_404, %c0_405, %c0_406] : memref<1x9x16x16xbf16, #tpu.memory_space<vmem>>, vector<1x1x16x16xbf16>
    %772 = vector.shape_cast %771 : vector<1x1x16x16xbf16> to vector<16x16xbf16>
    %cst_407 = arith.constant dense<0.000000e+00> : vector<16x256xf32>
    %773 = tpu.matmul %772, %770, %cst_407 {dimension_numbers = #tpu.dot_dimension_numbers<[1], [0], [0], [1], [0, 0, 1, 1], [], []>} : vector<16x16xbf16>, vector<16x256xbf16>, vector<16x256xf32> -> vector<16x256xf32>
    %774 = arith.addf %766, %773 : vector<16x256xf32>
    %c0_408 = arith.constant 0 : index
    %c0_409 = arith.constant 0 : index
    %c0_410 = arith.constant 0 : index
    %775 = vector.load %arg10[%c0_408, %c0_409, %c0_410] : memref<1x16x1xf32, #tpu.memory_space<vmem>>, vector<1x16x1xf32>
    %776 = vector.shape_cast %775 : vector<1x16x1xf32> to vector<16x1xf32>
    %777 = vector.broadcast %776 : vector<16x1xf32> to vector<16x256xf32>
    %778 = arith.addf %774, %777 : vector<16x256xf32>
    %cst_411 = arith.constant 0.000000e+00 : f32
    %779 = vector.broadcast %cst_411 : f32 to vector<16x256xf32>
    %780 = arith.maximumf %778, %779 : vector<16x256xf32>
    %781 = arith.truncf %780 : vector<16x256xf32> to vector<16x256xbf16>
    %cst_412 = arith.constant dense<0.000000e+00> : vector<16x256xf32>
    %782 = tpu.matmul %781, %468, %cst_412 {dimension_numbers = #tpu.dot_dimension_numbers<[1], [0], [0], [1], [0, 0, 1, 1], [], []>} : vector<16x256xbf16>, vector<256x256xbf16>, vector<16x256xf32> -> vector<16x256xf32>
    %c17_i32_413 = arith.constant 17 : i32
    %783 = tpu.dynamic_rotate %782 by %c17_i32_413 dim 1 : vector<16x256xf32>, i32 -> vector<16x256xf32>
    %784 = vector.broadcast %26 : vector<1x256xf32> to vector<16x256xf32>
    %785 = arith.mulf %783, %784 : vector<16x256xf32>
    %786 = arith.truncf %785 : vector<16x256xf32> to vector<16x256xbf16>
    %c0_414 = arith.constant 0 : index
    %c0_415 = arith.constant 0 : index
    %c0_416 = arith.constant 0 : index
    %c0_417 = arith.constant 0 : index
    %787 = vector.load %arg11[%c0_414, %c0_415, %c0_416, %c0_417] : memref<1x9x8x16xbf16, #tpu.memory_space<vmem>>, vector<1x1x8x16xbf16>
    %788 = vector.shape_cast %787 : vector<1x1x8x16xbf16> to vector<8x16xbf16>
    %cst_418 = arith.constant dense<0.000000e+00> : vector<8x256xf32>
    %789 = tpu.matmul %788, %786, %cst_418 {dimension_numbers = #tpu.dot_dimension_numbers<[1], [0], [0], [1], [0, 0, 1, 1], [], []>} : vector<8x16xbf16>, vector<16x256xbf16>, vector<8x256xf32> -> vector<8x256xf32>
    %c16_i32_419 = arith.constant 16 : i32
    %790 = tpu.dynamic_rotate %782 by %c16_i32_419 dim 1 : vector<16x256xf32>, i32 -> vector<16x256xf32>
    %791 = vector.broadcast %48 : vector<1x256xf32> to vector<16x256xf32>
    %792 = arith.mulf %790, %791 : vector<16x256xf32>
    %793 = arith.truncf %792 : vector<16x256xf32> to vector<16x256xbf16>
    %c0_420 = arith.constant 0 : index
    %c1_421 = arith.constant 1 : index
    %c0_422 = arith.constant 0 : index
    %c0_423 = arith.constant 0 : index
    %794 = vector.load %arg11[%c0_420, %c1_421, %c0_422, %c0_423] : memref<1x9x8x16xbf16, #tpu.memory_space<vmem>>, vector<1x1x8x16xbf16>
    %795 = vector.shape_cast %794 : vector<1x1x8x16xbf16> to vector<8x16xbf16>
    %cst_424 = arith.constant dense<0.000000e+00> : vector<8x256xf32>
    %796 = tpu.matmul %795, %793, %cst_424 {dimension_numbers = #tpu.dot_dimension_numbers<[1], [0], [0], [1], [0, 0, 1, 1], [], []>} : vector<8x16xbf16>, vector<16x256xbf16>, vector<8x256xf32> -> vector<8x256xf32>
    %797 = arith.addf %789, %796 : vector<8x256xf32>
    %c15_i32_425 = arith.constant 15 : i32
    %798 = tpu.dynamic_rotate %782 by %c15_i32_425 dim 1 : vector<16x256xf32>, i32 -> vector<16x256xf32>
    %799 = vector.broadcast %70 : vector<1x256xf32> to vector<16x256xf32>
    %800 = arith.mulf %798, %799 : vector<16x256xf32>
    %801 = arith.truncf %800 : vector<16x256xf32> to vector<16x256xbf16>
    %c0_426 = arith.constant 0 : index
    %c2_427 = arith.constant 2 : index
    %c0_428 = arith.constant 0 : index
    %c0_429 = arith.constant 0 : index
    %802 = vector.load %arg11[%c0_426, %c2_427, %c0_428, %c0_429] : memref<1x9x8x16xbf16, #tpu.memory_space<vmem>>, vector<1x1x8x16xbf16>
    %803 = vector.shape_cast %802 : vector<1x1x8x16xbf16> to vector<8x16xbf16>
    %cst_430 = arith.constant dense<0.000000e+00> : vector<8x256xf32>
    %804 = tpu.matmul %803, %801, %cst_430 {dimension_numbers = #tpu.dot_dimension_numbers<[1], [0], [0], [1], [0, 0, 1, 1], [], []>} : vector<8x16xbf16>, vector<16x256xbf16>, vector<8x256xf32> -> vector<8x256xf32>
    %805 = arith.addf %797, %804 : vector<8x256xf32>
    %c1_i32_431 = arith.constant 1 : i32
    %806 = tpu.dynamic_rotate %782 by %c1_i32_431 dim 1 : vector<16x256xf32>, i32 -> vector<16x256xf32>
    %807 = vector.broadcast %92 : vector<1x256xf32> to vector<16x256xf32>
    %808 = arith.mulf %806, %807 : vector<16x256xf32>
    %809 = arith.truncf %808 : vector<16x256xf32> to vector<16x256xbf16>
    %c0_432 = arith.constant 0 : index
    %c3_433 = arith.constant 3 : index
    %c0_434 = arith.constant 0 : index
    %c0_435 = arith.constant 0 : index
    %810 = vector.load %arg11[%c0_432, %c3_433, %c0_434, %c0_435] : memref<1x9x8x16xbf16, #tpu.memory_space<vmem>>, vector<1x1x8x16xbf16>
    %811 = vector.shape_cast %810 : vector<1x1x8x16xbf16> to vector<8x16xbf16>
    %cst_436 = arith.constant dense<0.000000e+00> : vector<8x256xf32>
    %812 = tpu.matmul %811, %809, %cst_436 {dimension_numbers = #tpu.dot_dimension_numbers<[1], [0], [0], [1], [0, 0, 1, 1], [], []>} : vector<8x16xbf16>, vector<16x256xbf16>, vector<8x256xf32> -> vector<8x256xf32>
    %813 = arith.addf %805, %812 : vector<8x256xf32>
    %814 = vector.broadcast %114 : vector<1x256xf32> to vector<16x256xf32>
    %815 = arith.mulf %782, %814 : vector<16x256xf32>
    %816 = arith.truncf %815 : vector<16x256xf32> to vector<16x256xbf16>
    %c0_437 = arith.constant 0 : index
    %c4_438 = arith.constant 4 : index
    %c0_439 = arith.constant 0 : index
    %c0_440 = arith.constant 0 : index
    %817 = vector.load %arg11[%c0_437, %c4_438, %c0_439, %c0_440] : memref<1x9x8x16xbf16, #tpu.memory_space<vmem>>, vector<1x1x8x16xbf16>
    %818 = vector.shape_cast %817 : vector<1x1x8x16xbf16> to vector<8x16xbf16>
    %cst_441 = arith.constant dense<0.000000e+00> : vector<8x256xf32>
    %819 = tpu.matmul %818, %816, %cst_441 {dimension_numbers = #tpu.dot_dimension_numbers<[1], [0], [0], [1], [0, 0, 1, 1], [], []>} : vector<8x16xbf16>, vector<16x256xbf16>, vector<8x256xf32> -> vector<8x256xf32>
    %820 = arith.addf %813, %819 : vector<8x256xf32>
    %c255_i32_442 = arith.constant 255 : i32
    %821 = tpu.dynamic_rotate %782 by %c255_i32_442 dim 1 : vector<16x256xf32>, i32 -> vector<16x256xf32>
    %822 = vector.broadcast %136 : vector<1x256xf32> to vector<16x256xf32>
    %823 = arith.mulf %821, %822 : vector<16x256xf32>
    %824 = arith.truncf %823 : vector<16x256xf32> to vector<16x256xbf16>
    %c0_443 = arith.constant 0 : index
    %c5_444 = arith.constant 5 : index
    %c0_445 = arith.constant 0 : index
    %c0_446 = arith.constant 0 : index
    %825 = vector.load %arg11[%c0_443, %c5_444, %c0_445, %c0_446] : memref<1x9x8x16xbf16, #tpu.memory_space<vmem>>, vector<1x1x8x16xbf16>
    %826 = vector.shape_cast %825 : vector<1x1x8x16xbf16> to vector<8x16xbf16>
    %cst_447 = arith.constant dense<0.000000e+00> : vector<8x256xf32>
    %827 = tpu.matmul %826, %824, %cst_447 {dimension_numbers = #tpu.dot_dimension_numbers<[1], [0], [0], [1], [0, 0, 1, 1], [], []>} : vector<8x16xbf16>, vector<16x256xbf16>, vector<8x256xf32> -> vector<8x256xf32>
    %828 = arith.addf %820, %827 : vector<8x256xf32>
    %c241_i32_448 = arith.constant 241 : i32
    %829 = tpu.dynamic_rotate %782 by %c241_i32_448 dim 1 : vector<16x256xf32>, i32 -> vector<16x256xf32>
    %830 = vector.broadcast %158 : vector<1x256xf32> to vector<16x256xf32>
    %831 = arith.mulf %829, %830 : vector<16x256xf32>
    %832 = arith.truncf %831 : vector<16x256xf32> to vector<16x256xbf16>
    %c0_449 = arith.constant 0 : index
    %c6_450 = arith.constant 6 : index
    %c0_451 = arith.constant 0 : index
    %c0_452 = arith.constant 0 : index
    %833 = vector.load %arg11[%c0_449, %c6_450, %c0_451, %c0_452] : memref<1x9x8x16xbf16, #tpu.memory_space<vmem>>, vector<1x1x8x16xbf16>
    %834 = vector.shape_cast %833 : vector<1x1x8x16xbf16> to vector<8x16xbf16>
    %cst_453 = arith.constant dense<0.000000e+00> : vector<8x256xf32>
    %835 = tpu.matmul %834, %832, %cst_453 {dimension_numbers = #tpu.dot_dimension_numbers<[1], [0], [0], [1], [0, 0, 1, 1], [], []>} : vector<8x16xbf16>, vector<16x256xbf16>, vector<8x256xf32> -> vector<8x256xf32>
    %836 = arith.addf %828, %835 : vector<8x256xf32>
    %c240_i32_454 = arith.constant 240 : i32
    %837 = tpu.dynamic_rotate %782 by %c240_i32_454 dim 1 : vector<16x256xf32>, i32 -> vector<16x256xf32>
    %838 = vector.broadcast %180 : vector<1x256xf32> to vector<16x256xf32>
    %839 = arith.mulf %837, %838 : vector<16x256xf32>
    %840 = arith.truncf %839 : vector<16x256xf32> to vector<16x256xbf16>
    %c0_455 = arith.constant 0 : index
    %c7_456 = arith.constant 7 : index
    %c0_457 = arith.constant 0 : index
    %c0_458 = arith.constant 0 : index
    %841 = vector.load %arg11[%c0_455, %c7_456, %c0_457, %c0_458] : memref<1x9x8x16xbf16, #tpu.memory_space<vmem>>, vector<1x1x8x16xbf16>
    %842 = vector.shape_cast %841 : vector<1x1x8x16xbf16> to vector<8x16xbf16>
    %cst_459 = arith.constant dense<0.000000e+00> : vector<8x256xf32>
    %843 = tpu.matmul %842, %840, %cst_459 {dimension_numbers = #tpu.dot_dimension_numbers<[1], [0], [0], [1], [0, 0, 1, 1], [], []>} : vector<8x16xbf16>, vector<16x256xbf16>, vector<8x256xf32> -> vector<8x256xf32>
    %844 = arith.addf %836, %843 : vector<8x256xf32>
    %c239_i32_460 = arith.constant 239 : i32
    %845 = tpu.dynamic_rotate %782 by %c239_i32_460 dim 1 : vector<16x256xf32>, i32 -> vector<16x256xf32>
    %846 = vector.broadcast %202 : vector<1x256xf32> to vector<16x256xf32>
    %847 = arith.mulf %845, %846 : vector<16x256xf32>
    %848 = arith.truncf %847 : vector<16x256xf32> to vector<16x256xbf16>
    %c0_461 = arith.constant 0 : index
    %c8_462 = arith.constant 8 : index
    %c0_463 = arith.constant 0 : index
    %c0_464 = arith.constant 0 : index
    %849 = vector.load %arg11[%c0_461, %c8_462, %c0_463, %c0_464] : memref<1x9x8x16xbf16, #tpu.memory_space<vmem>>, vector<1x1x8x16xbf16>
    %850 = vector.shape_cast %849 : vector<1x1x8x16xbf16> to vector<8x16xbf16>
    %cst_465 = arith.constant dense<0.000000e+00> : vector<8x256xf32>
    %851 = tpu.matmul %850, %848, %cst_465 {dimension_numbers = #tpu.dot_dimension_numbers<[1], [0], [0], [1], [0, 0, 1, 1], [], []>} : vector<8x16xbf16>, vector<16x256xbf16>, vector<8x256xf32> -> vector<8x256xf32>
    %852 = arith.addf %844, %851 : vector<8x256xf32>
    %c17_i32_466 = arith.constant 17 : i32
    %853 = tpu.dynamic_rotate %622 by %c17_i32_466 dim 1 : vector<8x256xf32>, i32 -> vector<8x256xf32>
    %854 = vector.broadcast %26 : vector<1x256xf32> to vector<8x256xf32>
    %855 = arith.mulf %853, %854 : vector<8x256xf32>
    %856 = arith.truncf %855 : vector<8x256xf32> to vector<8x256xbf16>
    %c0_467 = arith.constant 0 : index
    %c0_468 = arith.constant 0 : index
    %c0_469 = arith.constant 0 : index
    %c0_470 = arith.constant 0 : index
    %857 = vector.load %arg12[%c0_467, %c0_468, %c0_469, %c0_470] : memref<1x9x8x8xbf16, #tpu.memory_space<vmem>>, vector<1x1x8x8xbf16>
    %858 = vector.shape_cast %857 : vector<1x1x8x8xbf16> to vector<8x8xbf16>
    %cst_471 = arith.constant dense<0.000000e+00> : vector<8x256xf32>
    %859 = tpu.matmul %858, %856, %cst_471 {dimension_numbers = #tpu.dot_dimension_numbers<[1], [0], [0], [1], [0, 0, 1, 1], [], []>} : vector<8x8xbf16>, vector<8x256xbf16>, vector<8x256xf32> -> vector<8x256xf32>
    %860 = arith.addf %852, %859 : vector<8x256xf32>
    %c16_i32_472 = arith.constant 16 : i32
    %861 = tpu.dynamic_rotate %622 by %c16_i32_472 dim 1 : vector<8x256xf32>, i32 -> vector<8x256xf32>
    %862 = vector.broadcast %48 : vector<1x256xf32> to vector<8x256xf32>
    %863 = arith.mulf %861, %862 : vector<8x256xf32>
    %864 = arith.truncf %863 : vector<8x256xf32> to vector<8x256xbf16>
    %c0_473 = arith.constant 0 : index
    %c1_474 = arith.constant 1 : index
    %c0_475 = arith.constant 0 : index
    %c0_476 = arith.constant 0 : index
    %865 = vector.load %arg12[%c0_473, %c1_474, %c0_475, %c0_476] : memref<1x9x8x8xbf16, #tpu.memory_space<vmem>>, vector<1x1x8x8xbf16>
    %866 = vector.shape_cast %865 : vector<1x1x8x8xbf16> to vector<8x8xbf16>
    %cst_477 = arith.constant dense<0.000000e+00> : vector<8x256xf32>
    %867 = tpu.matmul %866, %864, %cst_477 {dimension_numbers = #tpu.dot_dimension_numbers<[1], [0], [0], [1], [0, 0, 1, 1], [], []>} : vector<8x8xbf16>, vector<8x256xbf16>, vector<8x256xf32> -> vector<8x256xf32>
    %868 = arith.addf %860, %867 : vector<8x256xf32>
    %c15_i32_478 = arith.constant 15 : i32
    %869 = tpu.dynamic_rotate %622 by %c15_i32_478 dim 1 : vector<8x256xf32>, i32 -> vector<8x256xf32>
    %870 = vector.broadcast %70 : vector<1x256xf32> to vector<8x256xf32>
    %871 = arith.mulf %869, %870 : vector<8x256xf32>
    %872 = arith.truncf %871 : vector<8x256xf32> to vector<8x256xbf16>
    %c0_479 = arith.constant 0 : index
    %c2_480 = arith.constant 2 : index
    %c0_481 = arith.constant 0 : index
    %c0_482 = arith.constant 0 : index
    %873 = vector.load %arg12[%c0_479, %c2_480, %c0_481, %c0_482] : memref<1x9x8x8xbf16, #tpu.memory_space<vmem>>, vector<1x1x8x8xbf16>
    %874 = vector.shape_cast %873 : vector<1x1x8x8xbf16> to vector<8x8xbf16>
    %cst_483 = arith.constant dense<0.000000e+00> : vector<8x256xf32>
    %875 = tpu.matmul %874, %872, %cst_483 {dimension_numbers = #tpu.dot_dimension_numbers<[1], [0], [0], [1], [0, 0, 1, 1], [], []>} : vector<8x8xbf16>, vector<8x256xbf16>, vector<8x256xf32> -> vector<8x256xf32>
    %876 = arith.addf %868, %875 : vector<8x256xf32>
    %c1_i32_484 = arith.constant 1 : i32
    %877 = tpu.dynamic_rotate %622 by %c1_i32_484 dim 1 : vector<8x256xf32>, i32 -> vector<8x256xf32>
    %878 = vector.broadcast %92 : vector<1x256xf32> to vector<8x256xf32>
    %879 = arith.mulf %877, %878 : vector<8x256xf32>
    %880 = arith.truncf %879 : vector<8x256xf32> to vector<8x256xbf16>
    %c0_485 = arith.constant 0 : index
    %c3_486 = arith.constant 3 : index
    %c0_487 = arith.constant 0 : index
    %c0_488 = arith.constant 0 : index
    %881 = vector.load %arg12[%c0_485, %c3_486, %c0_487, %c0_488] : memref<1x9x8x8xbf16, #tpu.memory_space<vmem>>, vector<1x1x8x8xbf16>
    %882 = vector.shape_cast %881 : vector<1x1x8x8xbf16> to vector<8x8xbf16>
    %cst_489 = arith.constant dense<0.000000e+00> : vector<8x256xf32>
    %883 = tpu.matmul %882, %880, %cst_489 {dimension_numbers = #tpu.dot_dimension_numbers<[1], [0], [0], [1], [0, 0, 1, 1], [], []>} : vector<8x8xbf16>, vector<8x256xbf16>, vector<8x256xf32> -> vector<8x256xf32>
    %884 = arith.addf %876, %883 : vector<8x256xf32>
    %885 = vector.broadcast %114 : vector<1x256xf32> to vector<8x256xf32>
    %886 = arith.mulf %622, %885 : vector<8x256xf32>
    %887 = arith.truncf %886 : vector<8x256xf32> to vector<8x256xbf16>
    %c0_490 = arith.constant 0 : index
    %c4_491 = arith.constant 4 : index
    %c0_492 = arith.constant 0 : index
    %c0_493 = arith.constant 0 : index
    %888 = vector.load %arg12[%c0_490, %c4_491, %c0_492, %c0_493] : memref<1x9x8x8xbf16, #tpu.memory_space<vmem>>, vector<1x1x8x8xbf16>
    %889 = vector.shape_cast %888 : vector<1x1x8x8xbf16> to vector<8x8xbf16>
    %cst_494 = arith.constant dense<0.000000e+00> : vector<8x256xf32>
    %890 = tpu.matmul %889, %887, %cst_494 {dimension_numbers = #tpu.dot_dimension_numbers<[1], [0], [0], [1], [0, 0, 1, 1], [], []>} : vector<8x8xbf16>, vector<8x256xbf16>, vector<8x256xf32> -> vector<8x256xf32>
    %891 = arith.addf %884, %890 : vector<8x256xf32>
    %c255_i32_495 = arith.constant 255 : i32
    %892 = tpu.dynamic_rotate %622 by %c255_i32_495 dim 1 : vector<8x256xf32>, i32 -> vector<8x256xf32>
    %893 = vector.broadcast %136 : vector<1x256xf32> to vector<8x256xf32>
    %894 = arith.mulf %892, %893 : vector<8x256xf32>
    %895 = arith.truncf %894 : vector<8x256xf32> to vector<8x256xbf16>
    %c0_496 = arith.constant 0 : index
    %c5_497 = arith.constant 5 : index
    %c0_498 = arith.constant 0 : index
    %c0_499 = arith.constant 0 : index
    %896 = vector.load %arg12[%c0_496, %c5_497, %c0_498, %c0_499] : memref<1x9x8x8xbf16, #tpu.memory_space<vmem>>, vector<1x1x8x8xbf16>
    %897 = vector.shape_cast %896 : vector<1x1x8x8xbf16> to vector<8x8xbf16>
    %cst_500 = arith.constant dense<0.000000e+00> : vector<8x256xf32>
    %898 = tpu.matmul %897, %895, %cst_500 {dimension_numbers = #tpu.dot_dimension_numbers<[1], [0], [0], [1], [0, 0, 1, 1], [], []>} : vector<8x8xbf16>, vector<8x256xbf16>, vector<8x256xf32> -> vector<8x256xf32>
    %899 = arith.addf %891, %898 : vector<8x256xf32>
    %c241_i32_501 = arith.constant 241 : i32
    %900 = tpu.dynamic_rotate %622 by %c241_i32_501 dim 1 : vector<8x256xf32>, i32 -> vector<8x256xf32>
    %901 = vector.broadcast %158 : vector<1x256xf32> to vector<8x256xf32>
    %902 = arith.mulf %900, %901 : vector<8x256xf32>
    %903 = arith.truncf %902 : vector<8x256xf32> to vector<8x256xbf16>
    %c0_502 = arith.constant 0 : index
    %c6_503 = arith.constant 6 : index
    %c0_504 = arith.constant 0 : index
    %c0_505 = arith.constant 0 : index
    %904 = vector.load %arg12[%c0_502, %c6_503, %c0_504, %c0_505] : memref<1x9x8x8xbf16, #tpu.memory_space<vmem>>, vector<1x1x8x8xbf16>
    %905 = vector.shape_cast %904 : vector<1x1x8x8xbf16> to vector<8x8xbf16>
    %cst_506 = arith.constant dense<0.000000e+00> : vector<8x256xf32>
    %906 = tpu.matmul %905, %903, %cst_506 {dimension_numbers = #tpu.dot_dimension_numbers<[1], [0], [0], [1], [0, 0, 1, 1], [], []>} : vector<8x8xbf16>, vector<8x256xbf16>, vector<8x256xf32> -> vector<8x256xf32>
    %907 = arith.addf %899, %906 : vector<8x256xf32>
    %c240_i32_507 = arith.constant 240 : i32
    %908 = tpu.dynamic_rotate %622 by %c240_i32_507 dim 1 : vector<8x256xf32>, i32 -> vector<8x256xf32>
    %909 = vector.broadcast %180 : vector<1x256xf32> to vector<8x256xf32>
    %910 = arith.mulf %908, %909 : vector<8x256xf32>
    %911 = arith.truncf %910 : vector<8x256xf32> to vector<8x256xbf16>
    %c0_508 = arith.constant 0 : index
    %c7_509 = arith.constant 7 : index
    %c0_510 = arith.constant 0 : index
    %c0_511 = arith.constant 0 : index
    %912 = vector.load %arg12[%c0_508, %c7_509, %c0_510, %c0_511] : memref<1x9x8x8xbf16, #tpu.memory_space<vmem>>, vector<1x1x8x8xbf16>
    %913 = vector.shape_cast %912 : vector<1x1x8x8xbf16> to vector<8x8xbf16>
    %cst_512 = arith.constant dense<0.000000e+00> : vector<8x256xf32>
    %914 = tpu.matmul %913, %911, %cst_512 {dimension_numbers = #tpu.dot_dimension_numbers<[1], [0], [0], [1], [0, 0, 1, 1], [], []>} : vector<8x8xbf16>, vector<8x256xbf16>, vector<8x256xf32> -> vector<8x256xf32>
    %915 = arith.addf %907, %914 : vector<8x256xf32>
    %c239_i32_513 = arith.constant 239 : i32
    %916 = tpu.dynamic_rotate %622 by %c239_i32_513 dim 1 : vector<8x256xf32>, i32 -> vector<8x256xf32>
    %917 = vector.broadcast %202 : vector<1x256xf32> to vector<8x256xf32>
    %918 = arith.mulf %916, %917 : vector<8x256xf32>
    %919 = arith.truncf %918 : vector<8x256xf32> to vector<8x256xbf16>
    %c0_514 = arith.constant 0 : index
    %c8_515 = arith.constant 8 : index
    %c0_516 = arith.constant 0 : index
    %c0_517 = arith.constant 0 : index
    %920 = vector.load %arg12[%c0_514, %c8_515, %c0_516, %c0_517] : memref<1x9x8x8xbf16, #tpu.memory_space<vmem>>, vector<1x1x8x8xbf16>
    %921 = vector.shape_cast %920 : vector<1x1x8x8xbf16> to vector<8x8xbf16>
    %cst_518 = arith.constant dense<0.000000e+00> : vector<8x256xf32>
    %922 = tpu.matmul %921, %919, %cst_518 {dimension_numbers = #tpu.dot_dimension_numbers<[1], [0], [0], [1], [0, 0, 1, 1], [], []>} : vector<8x8xbf16>, vector<8x256xbf16>, vector<8x256xf32> -> vector<8x256xf32>
    %923 = arith.addf %915, %922 : vector<8x256xf32>
    %c0_519 = arith.constant 0 : index
    %c0_520 = arith.constant 0 : index
    %c0_521 = arith.constant 0 : index
    %924 = vector.load %arg13[%c0_519, %c0_520, %c0_521] : memref<1x8x1xf32, #tpu.memory_space<vmem>>, vector<1x8x1xf32>
    %925 = vector.shape_cast %924 : vector<1x8x1xf32> to vector<8x1xf32>
    %926 = vector.broadcast %925 : vector<8x1xf32> to vector<8x256xf32>
    %927 = arith.addf %923, %926 : vector<8x256xf32>
    %cst_522 = arith.constant 0.000000e+00 : f32
    %928 = vector.broadcast %cst_522 : f32 to vector<8x256xf32>
    %929 = arith.maximumf %927, %928 : vector<8x256xf32>
    %c17_i32_523 = arith.constant 17 : i32
    %930 = tpu.dynamic_rotate %929 by %c17_i32_523 dim 1 : vector<8x256xf32>, i32 -> vector<8x256xf32>
    %931 = vector.broadcast %26 : vector<1x256xf32> to vector<8x256xf32>
    %932 = arith.mulf %930, %931 : vector<8x256xf32>
    %933 = arith.truncf %932 : vector<8x256xf32> to vector<8x256xbf16>
    %c0_524 = arith.constant 0 : index
    %c0_525 = arith.constant 0 : index
    %c0_526 = arith.constant 0 : index
    %c0_527 = arith.constant 0 : index
    %934 = vector.load %arg14[%c0_524, %c0_525, %c0_526, %c0_527] : memref<1x9x8x8xbf16, #tpu.memory_space<vmem>>, vector<1x1x8x8xbf16>
    %935 = vector.shape_cast %934 : vector<1x1x8x8xbf16> to vector<8x8xbf16>
    %cst_528 = arith.constant dense<0.000000e+00> : vector<8x256xf32>
    %936 = tpu.matmul %935, %933, %cst_528 {dimension_numbers = #tpu.dot_dimension_numbers<[1], [0], [0], [1], [0, 0, 1, 1], [], []>} : vector<8x8xbf16>, vector<8x256xbf16>, vector<8x256xf32> -> vector<8x256xf32>
    %c16_i32_529 = arith.constant 16 : i32
    %937 = tpu.dynamic_rotate %929 by %c16_i32_529 dim 1 : vector<8x256xf32>, i32 -> vector<8x256xf32>
    %938 = vector.broadcast %48 : vector<1x256xf32> to vector<8x256xf32>
    %939 = arith.mulf %937, %938 : vector<8x256xf32>
    %940 = arith.truncf %939 : vector<8x256xf32> to vector<8x256xbf16>
    %c0_530 = arith.constant 0 : index
    %c1_531 = arith.constant 1 : index
    %c0_532 = arith.constant 0 : index
    %c0_533 = arith.constant 0 : index
    %941 = vector.load %arg14[%c0_530, %c1_531, %c0_532, %c0_533] : memref<1x9x8x8xbf16, #tpu.memory_space<vmem>>, vector<1x1x8x8xbf16>
    %942 = vector.shape_cast %941 : vector<1x1x8x8xbf16> to vector<8x8xbf16>
    %cst_534 = arith.constant dense<0.000000e+00> : vector<8x256xf32>
    %943 = tpu.matmul %942, %940, %cst_534 {dimension_numbers = #tpu.dot_dimension_numbers<[1], [0], [0], [1], [0, 0, 1, 1], [], []>} : vector<8x8xbf16>, vector<8x256xbf16>, vector<8x256xf32> -> vector<8x256xf32>
    %944 = arith.addf %936, %943 : vector<8x256xf32>
    %c15_i32_535 = arith.constant 15 : i32
    %945 = tpu.dynamic_rotate %929 by %c15_i32_535 dim 1 : vector<8x256xf32>, i32 -> vector<8x256xf32>
    %946 = vector.broadcast %70 : vector<1x256xf32> to vector<8x256xf32>
    %947 = arith.mulf %945, %946 : vector<8x256xf32>
    %948 = arith.truncf %947 : vector<8x256xf32> to vector<8x256xbf16>
    %c0_536 = arith.constant 0 : index
    %c2_537 = arith.constant 2 : index
    %c0_538 = arith.constant 0 : index
    %c0_539 = arith.constant 0 : index
    %949 = vector.load %arg14[%c0_536, %c2_537, %c0_538, %c0_539] : memref<1x9x8x8xbf16, #tpu.memory_space<vmem>>, vector<1x1x8x8xbf16>
    %950 = vector.shape_cast %949 : vector<1x1x8x8xbf16> to vector<8x8xbf16>
    %cst_540 = arith.constant dense<0.000000e+00> : vector<8x256xf32>
    %951 = tpu.matmul %950, %948, %cst_540 {dimension_numbers = #tpu.dot_dimension_numbers<[1], [0], [0], [1], [0, 0, 1, 1], [], []>} : vector<8x8xbf16>, vector<8x256xbf16>, vector<8x256xf32> -> vector<8x256xf32>
    %952 = arith.addf %944, %951 : vector<8x256xf32>
    %c1_i32_541 = arith.constant 1 : i32
    %953 = tpu.dynamic_rotate %929 by %c1_i32_541 dim 1 : vector<8x256xf32>, i32 -> vector<8x256xf32>
    %954 = vector.broadcast %92 : vector<1x256xf32> to vector<8x256xf32>
    %955 = arith.mulf %953, %954 : vector<8x256xf32>
    %956 = arith.truncf %955 : vector<8x256xf32> to vector<8x256xbf16>
    %c0_542 = arith.constant 0 : index
    %c3_543 = arith.constant 3 : index
    %c0_544 = arith.constant 0 : index
    %c0_545 = arith.constant 0 : index
    %957 = vector.load %arg14[%c0_542, %c3_543, %c0_544, %c0_545] : memref<1x9x8x8xbf16, #tpu.memory_space<vmem>>, vector<1x1x8x8xbf16>
    %958 = vector.shape_cast %957 : vector<1x1x8x8xbf16> to vector<8x8xbf16>
    %cst_546 = arith.constant dense<0.000000e+00> : vector<8x256xf32>
    %959 = tpu.matmul %958, %956, %cst_546 {dimension_numbers = #tpu.dot_dimension_numbers<[1], [0], [0], [1], [0, 0, 1, 1], [], []>} : vector<8x8xbf16>, vector<8x256xbf16>, vector<8x256xf32> -> vector<8x256xf32>
    %960 = arith.addf %952, %959 : vector<8x256xf32>
    %961 = vector.broadcast %114 : vector<1x256xf32> to vector<8x256xf32>
    %962 = arith.mulf %929, %961 : vector<8x256xf32>
    %963 = arith.truncf %962 : vector<8x256xf32> to vector<8x256xbf16>
    %c0_547 = arith.constant 0 : index
    %c4_548 = arith.constant 4 : index
    %c0_549 = arith.constant 0 : index
    %c0_550 = arith.constant 0 : index
    %964 = vector.load %arg14[%c0_547, %c4_548, %c0_549, %c0_550] : memref<1x9x8x8xbf16, #tpu.memory_space<vmem>>, vector<1x1x8x8xbf16>
    %965 = vector.shape_cast %964 : vector<1x1x8x8xbf16> to vector<8x8xbf16>
    %cst_551 = arith.constant dense<0.000000e+00> : vector<8x256xf32>
    %966 = tpu.matmul %965, %963, %cst_551 {dimension_numbers = #tpu.dot_dimension_numbers<[1], [0], [0], [1], [0, 0, 1, 1], [], []>} : vector<8x8xbf16>, vector<8x256xbf16>, vector<8x256xf32> -> vector<8x256xf32>
    %967 = arith.addf %960, %966 : vector<8x256xf32>
    %c255_i32_552 = arith.constant 255 : i32
    %968 = tpu.dynamic_rotate %929 by %c255_i32_552 dim 1 : vector<8x256xf32>, i32 -> vector<8x256xf32>
    %969 = vector.broadcast %136 : vector<1x256xf32> to vector<8x256xf32>
    %970 = arith.mulf %968, %969 : vector<8x256xf32>
    %971 = arith.truncf %970 : vector<8x256xf32> to vector<8x256xbf16>
    %c0_553 = arith.constant 0 : index
    %c5_554 = arith.constant 5 : index
    %c0_555 = arith.constant 0 : index
    %c0_556 = arith.constant 0 : index
    %972 = vector.load %arg14[%c0_553, %c5_554, %c0_555, %c0_556] : memref<1x9x8x8xbf16, #tpu.memory_space<vmem>>, vector<1x1x8x8xbf16>
    %973 = vector.shape_cast %972 : vector<1x1x8x8xbf16> to vector<8x8xbf16>
    %cst_557 = arith.constant dense<0.000000e+00> : vector<8x256xf32>
    %974 = tpu.matmul %973, %971, %cst_557 {dimension_numbers = #tpu.dot_dimension_numbers<[1], [0], [0], [1], [0, 0, 1, 1], [], []>} : vector<8x8xbf16>, vector<8x256xbf16>, vector<8x256xf32> -> vector<8x256xf32>
    %975 = arith.addf %967, %974 : vector<8x256xf32>
    %c241_i32_558 = arith.constant 241 : i32
    %976 = tpu.dynamic_rotate %929 by %c241_i32_558 dim 1 : vector<8x256xf32>, i32 -> vector<8x256xf32>
    %977 = vector.broadcast %158 : vector<1x256xf32> to vector<8x256xf32>
    %978 = arith.mulf %976, %977 : vector<8x256xf32>
    %979 = arith.truncf %978 : vector<8x256xf32> to vector<8x256xbf16>
    %c0_559 = arith.constant 0 : index
    %c6_560 = arith.constant 6 : index
    %c0_561 = arith.constant 0 : index
    %c0_562 = arith.constant 0 : index
    %980 = vector.load %arg14[%c0_559, %c6_560, %c0_561, %c0_562] : memref<1x9x8x8xbf16, #tpu.memory_space<vmem>>, vector<1x1x8x8xbf16>
    %981 = vector.shape_cast %980 : vector<1x1x8x8xbf16> to vector<8x8xbf16>
    %cst_563 = arith.constant dense<0.000000e+00> : vector<8x256xf32>
    %982 = tpu.matmul %981, %979, %cst_563 {dimension_numbers = #tpu.dot_dimension_numbers<[1], [0], [0], [1], [0, 0, 1, 1], [], []>} : vector<8x8xbf16>, vector<8x256xbf16>, vector<8x256xf32> -> vector<8x256xf32>
    %983 = arith.addf %975, %982 : vector<8x256xf32>
    %c240_i32_564 = arith.constant 240 : i32
    %984 = tpu.dynamic_rotate %929 by %c240_i32_564 dim 1 : vector<8x256xf32>, i32 -> vector<8x256xf32>
    %985 = vector.broadcast %180 : vector<1x256xf32> to vector<8x256xf32>
    %986 = arith.mulf %984, %985 : vector<8x256xf32>
    %987 = arith.truncf %986 : vector<8x256xf32> to vector<8x256xbf16>
    %c0_565 = arith.constant 0 : index
    %c7_566 = arith.constant 7 : index
    %c0_567 = arith.constant 0 : index
    %c0_568 = arith.constant 0 : index
    %988 = vector.load %arg14[%c0_565, %c7_566, %c0_567, %c0_568] : memref<1x9x8x8xbf16, #tpu.memory_space<vmem>>, vector<1x1x8x8xbf16>
    %989 = vector.shape_cast %988 : vector<1x1x8x8xbf16> to vector<8x8xbf16>
    %cst_569 = arith.constant dense<0.000000e+00> : vector<8x256xf32>
    %990 = tpu.matmul %989, %987, %cst_569 {dimension_numbers = #tpu.dot_dimension_numbers<[1], [0], [0], [1], [0, 0, 1, 1], [], []>} : vector<8x8xbf16>, vector<8x256xbf16>, vector<8x256xf32> -> vector<8x256xf32>
    %991 = arith.addf %983, %990 : vector<8x256xf32>
    %c239_i32_570 = arith.constant 239 : i32
    %992 = tpu.dynamic_rotate %929 by %c239_i32_570 dim 1 : vector<8x256xf32>, i32 -> vector<8x256xf32>
    %993 = vector.broadcast %202 : vector<1x256xf32> to vector<8x256xf32>
    %994 = arith.mulf %992, %993 : vector<8x256xf32>
    %995 = arith.truncf %994 : vector<8x256xf32> to vector<8x256xbf16>
    %c0_571 = arith.constant 0 : index
    %c8_572 = arith.constant 8 : index
    %c0_573 = arith.constant 0 : index
    %c0_574 = arith.constant 0 : index
    %996 = vector.load %arg14[%c0_571, %c8_572, %c0_573, %c0_574] : memref<1x9x8x8xbf16, #tpu.memory_space<vmem>>, vector<1x1x8x8xbf16>
    %997 = vector.shape_cast %996 : vector<1x1x8x8xbf16> to vector<8x8xbf16>
    %cst_575 = arith.constant dense<0.000000e+00> : vector<8x256xf32>
    %998 = tpu.matmul %997, %995, %cst_575 {dimension_numbers = #tpu.dot_dimension_numbers<[1], [0], [0], [1], [0, 0, 1, 1], [], []>} : vector<8x8xbf16>, vector<8x256xbf16>, vector<8x256xf32> -> vector<8x256xf32>
    %999 = arith.addf %991, %998 : vector<8x256xf32>
    %c0_576 = arith.constant 0 : index
    %c0_577 = arith.constant 0 : index
    %c0_578 = arith.constant 0 : index
    %1000 = vector.load %arg15[%c0_576, %c0_577, %c0_578] : memref<1x8x1xf32, #tpu.memory_space<vmem>>, vector<1x8x1xf32>
    %1001 = vector.shape_cast %1000 : vector<1x8x1xf32> to vector<8x1xf32>
    %1002 = vector.broadcast %1001 : vector<8x1xf32> to vector<8x256xf32>
    %1003 = arith.addf %999, %1002 : vector<8x256xf32>
    %cst_579 = arith.constant 0.000000e+00 : f32
    %1004 = vector.broadcast %cst_579 : f32 to vector<8x256xf32>
    %1005 = arith.maximumf %1003, %1004 : vector<8x256xf32>
    %c0_580 = arith.constant 0 : index
    %c0_581 = arith.constant 0 : index
    %c0_582 = arith.constant 0 : index
    %1006 = vector.load %arg16[%c0_580, %c0_581, %c0_582] : memref<1x2x8xbf16, #tpu.memory_space<vmem>>, vector<1x2x8xbf16>
    %1007 = vector.shape_cast %1006 : vector<1x2x8xbf16> to vector<2x8xbf16>
    %1008 = arith.truncf %1005 : vector<8x256xf32> to vector<8x256xbf16>
    %cst_583 = arith.constant dense<0.000000e+00> : vector<2x256xf32>
    %1009 = tpu.matmul %1007, %1008, %cst_583 {dimension_numbers = #tpu.dot_dimension_numbers<[1], [0], [0], [1], [0, 0, 1, 1], [], []>} : vector<2x8xbf16>, vector<8x256xbf16>, vector<2x256xf32> -> vector<2x256xf32>
    %c0_584 = arith.constant 0 : index
    %c0_585 = arith.constant 0 : index
    %c0_586 = arith.constant 0 : index
    %1010 = vector.load %arg17[%c0_584, %c0_585, %c0_586] : memref<1x2x1xf32, #tpu.memory_space<vmem>>, vector<1x2x1xf32>
    %1011 = vector.shape_cast %1010 : vector<1x2x1xf32> to vector<2x1xf32>
    %1012 = vector.broadcast %1011 : vector<2x1xf32> to vector<2x256xf32>
    %1013 = arith.addf %1009, %1012 : vector<2x256xf32>
    %c0_587 = arith.constant 0 : index
    %c0_588 = arith.constant 0 : index
    %c0_589 = arith.constant 0 : index
    %1014 = vector.load %arg18[%c0_587, %c0_588, %c0_589] : memref<1x2x16xbf16, #tpu.memory_space<vmem>>, vector<1x2x16xbf16>
    %1015 = vector.shape_cast %1014 : vector<1x2x16xbf16> to vector<2x16xbf16>
    %1016 = arith.truncf %780 : vector<16x256xf32> to vector<16x256xbf16>
    %cst_590 = arith.constant dense<0.000000e+00> : vector<2x256xf32>
    %1017 = tpu.matmul %1015, %1016, %cst_590 {dimension_numbers = #tpu.dot_dimension_numbers<[1], [0], [0], [1], [0, 0, 1, 1], [], []>} : vector<2x16xbf16>, vector<16x256xbf16>, vector<2x256xf32> -> vector<2x256xf32>
    %c0_591 = arith.constant 0 : index
    %c0_592 = arith.constant 0 : index
    %c0_593 = arith.constant 0 : index
    %1018 = vector.load %arg19[%c0_591, %c0_592, %c0_593] : memref<1x2x1xf32, #tpu.memory_space<vmem>>, vector<1x2x1xf32>
    %1019 = vector.shape_cast %1018 : vector<1x2x1xf32> to vector<2x1xf32>
    %1020 = vector.broadcast %1019 : vector<2x1xf32> to vector<2x256xf32>
    %1021 = arith.addf %1017, %1020 : vector<2x256xf32>
    %1022 = arith.truncf %1021 : vector<2x256xf32> to vector<2x256xbf16>
    %cst_594 = arith.constant dense<0.000000e+00> : vector<2x256xf32>
    %1023 = tpu.matmul %1022, %468, %cst_594 {dimension_numbers = #tpu.dot_dimension_numbers<[1], [0], [0], [1], [0, 0, 1, 1], [], []>} : vector<2x256xbf16>, vector<256x256xbf16>, vector<2x256xf32> -> vector<2x256xf32>
    %c0_i32_595 = arith.constant 0 : i32
    %1024 = arith.cmpi eq, %arg0, %c0_i32_595 : i32
    %1025 = arith.extui %1024 : i1 to i32
    %c0_i32_596 = arith.constant 0 : i32
    %1026 = arith.cmpi ne, %1025, %c0_i32_596 : i32
    scf.if %1026 {
      %1030 = arith.negf %1013 : vector<2x256xf32>
      %1031 = math.exp %1030 : vector<2x256xf32>
      %cst_599 = arith.constant 1.000000e+00 : f32
      %1032 = vector.broadcast %cst_599 : f32 to vector<2x256xf32>
      %1033 = arith.addf %1032, %1031 : vector<2x256xf32>
      %1034 = arith.divf %1032, %1033 : vector<2x256xf32>
      %c0_600 = arith.constant 0 : index
      %c0_601 = arith.constant 0 : index
      %c0_602 = arith.constant 0 : index
      %c0_603 = arith.constant 0 : index
      %1035 = vector.load %arg20[%c0_600, %c0_601, %c0_602, %c0_603] : memref<1x1x2x256xf32, #tpu.memory_space<vmem>>, vector<1x1x2x256xf32>
      %1036 = vector.shape_cast %1035 : vector<1x1x2x256xf32> to vector<2x256xf32>
      %1037 = vector.shape_cast %1034 : vector<2x256xf32> to vector<1x1x2x256xf32>
      tpu.vector_store %arg20[%c0_600, %c0_601, %c0_602, %c0_603], %1037 {strides = array<i32>} : memref<1x1x2x256xf32, #tpu.memory_space<vmem>>, vector<1x1x2x256xf32>,
      %1038 = arith.negf %1023 : vector<2x256xf32>
      %1039 = math.exp %1038 : vector<2x256xf32>
      %cst_604 = arith.constant 1.000000e+00 : f32
      %1040 = vector.broadcast %cst_604 : f32 to vector<2x256xf32>
      %1041 = arith.addf %1040, %1039 : vector<2x256xf32>
      %1042 = arith.divf %1040, %1041 : vector<2x256xf32>
      %c0_605 = arith.constant 0 : index
      %c0_606 = arith.constant 0 : index
      %c0_607 = arith.constant 0 : index
      %c0_608 = arith.constant 0 : index
      %1043 = vector.load %arg21[%c0_605, %c0_606, %c0_607, %c0_608] : memref<1x1x2x256xf32, #tpu.memory_space<vmem>>, vector<1x1x2x256xf32>
      %1044 = vector.shape_cast %1043 : vector<1x1x2x256xf32> to vector<2x256xf32>
      %1045 = vector.shape_cast %1042 : vector<2x256xf32> to vector<1x1x2x256xf32>
      tpu.vector_store %arg21[%c0_605, %c0_606, %c0_607, %c0_608], %1045 {strides = array<i32>} : memref<1x1x2x256xf32, #tpu.memory_space<vmem>>, vector<1x1x2x256xf32>,
    } else {
    }
    %c0_i32_597 = arith.constant 0 : i32
    %1027 = arith.cmpi ne, %arg0, %c0_i32_597 : i32
    %1028 = arith.extui %1027 : i1 to i32
    %c0_i32_598 = arith.constant 0 : i32
    %1029 = arith.cmpi ne, %1028, %c0_i32_598 : i32
    scf.if %1029 {
      %c0_599 = arith.constant 0 : index
      %c0_600 = arith.constant 0 : index
      %c0_601 = arith.constant 0 : index
      %c0_602 = arith.constant 0 : index
      %1030 = vector.load %arg20[%c0_599, %c0_600, %c0_601, %c0_602] : memref<1x1x2x256xf32, #tpu.memory_space<vmem>>, vector<1x1x2x256xf32>
      %1031 = vector.shape_cast %1030 : vector<1x1x2x256xf32> to vector<2x256xf32>
      %1032 = vector.shape_cast %1013 : vector<2x256xf32> to vector<1x1x2x256xf32>
      tpu.vector_store %arg20[%c0_599, %c0_600, %c0_601, %c0_602], %1032 {strides = array<i32>} : memref<1x1x2x256xf32, #tpu.memory_space<vmem>>, vector<1x1x2x256xf32>,
      %c0_603 = arith.constant 0 : index
      %c0_604 = arith.constant 0 : index
      %c0_605 = arith.constant 0 : index
      %c0_606 = arith.constant 0 : index
      %1033 = vector.load %arg21[%c0_603, %c0_604, %c0_605, %c0_606] : memref<1x1x2x256xf32, #tpu.memory_space<vmem>>, vector<1x1x2x256xf32>
      %1034 = vector.shape_cast %1033 : vector<1x1x2x256xf32> to vector<2x256xf32>
      %1035 = vector.shape_cast %1023 : vector<2x256xf32> to vector<1x1x2x256xf32>
      tpu.vector_store %arg21[%c0_603, %c0_604, %c0_605, %c0_606], %1035 {strides = array<i32>} : memref<1x1x2x256xf32, #tpu.memory_space<vmem>>, vector<1x1x2x256xf32>,
    } else {
    }
    return
  }
  func.func @transform_0(%arg0: i32, %arg1: i32) -> (i32, i32, i32) {
    %c0_i32 = arith.constant 0 : i32
    %c0_i32_0 = arith.constant 0 : i32
    %c0_i32_1 = arith.constant 0 : i32
    return %arg1, %c0_i32, %c0_i32_0 : i32, i32, i32
  }
  func.func @transform_1(%arg0: i32, %arg1: i32) -> (i32, i32, i32, i32) {
    %c0_i32 = arith.constant 0 : i32
    %c0_i32_0 = arith.constant 0 : i32
    %c0_i32_1 = arith.constant 0 : i32
    %c0_i32_2 = arith.constant 0 : i32
    return %arg0, %c0_i32, %c0_i32_0, %c0_i32_1 : i32, i32, i32, i32
  }
  func.func @transform_2(%arg0: i32, %arg1: i32) -> (i32, i32, i32) {
    %c0_i32 = arith.constant 0 : i32
    %c0_i32_0 = arith.constant 0 : i32
    %c0_i32_1 = arith.constant 0 : i32
    return %arg0, %c0_i32, %c0_i32_0 : i32, i32, i32
  }
  func.func @transform_3(%arg0: i32, %arg1: i32) -> (i32, i32, i32, i32) {
    %c0_i32 = arith.constant 0 : i32
    %c0_i32_0 = arith.constant 0 : i32
    %c0_i32_1 = arith.constant 0 : i32
    %c0_i32_2 = arith.constant 0 : i32
    return %arg0, %c0_i32, %c0_i32_0, %c0_i32_1 : i32, i32, i32, i32
  }
  func.func @transform_4(%arg0: i32, %arg1: i32) -> (i32, i32, i32) {
    %c0_i32 = arith.constant 0 : i32
    %c0_i32_0 = arith.constant 0 : i32
    %c0_i32_1 = arith.constant 0 : i32
    return %arg0, %c0_i32, %c0_i32_0 : i32, i32, i32
  }
  func.func @transform_5(%arg0: i32, %arg1: i32) -> (i32, i32, i32, i32) {
    %c0_i32 = arith.constant 0 : i32
    %c0_i32_0 = arith.constant 0 : i32
    %c0_i32_1 = arith.constant 0 : i32
    %c0_i32_2 = arith.constant 0 : i32
    return %arg0, %c0_i32, %c0_i32_0, %c0_i32_1 : i32, i32, i32, i32
  }
  func.func @transform_6(%arg0: i32, %arg1: i32) -> (i32, i32, i32) {
    %c0_i32 = arith.constant 0 : i32
    %c0_i32_0 = arith.constant 0 : i32
    %c0_i32_1 = arith.constant 0 : i32
    return %arg0, %c0_i32, %c0_i32_0 : i32, i32, i32
  }
  func.func @transform_7(%arg0: i32, %arg1: i32) -> (i32, i32, i32, i32) {
    %c0_i32 = arith.constant 0 : i32
    %c0_i32_0 = arith.constant 0 : i32
    %c0_i32_1 = arith.constant 0 : i32
    %c0_i32_2 = arith.constant 0 : i32
    return %arg0, %c0_i32, %c0_i32_0, %c0_i32_1 : i32, i32, i32, i32
  }
  func.func @transform_8(%arg0: i32, %arg1: i32) -> (i32, i32, i32) {
    %c0_i32 = arith.constant 0 : i32
    %c0_i32_0 = arith.constant 0 : i32
    %c0_i32_1 = arith.constant 0 : i32
    return %arg0, %c0_i32, %c0_i32_0 : i32, i32, i32
  }
  func.func @transform_9(%arg0: i32, %arg1: i32) -> (i32, i32, i32, i32) {
    %c0_i32 = arith.constant 0 : i32
    %c0_i32_0 = arith.constant 0 : i32
    %c0_i32_1 = arith.constant 0 : i32
    %c0_i32_2 = arith.constant 0 : i32
    return %arg0, %c0_i32, %c0_i32_0, %c0_i32_1 : i32, i32, i32, i32
  }
  func.func @transform_10(%arg0: i32, %arg1: i32) -> (i32, i32, i32, i32) {
    %c0_i32 = arith.constant 0 : i32
    %c0_i32_0 = arith.constant 0 : i32
    %c0_i32_1 = arith.constant 0 : i32
    %c0_i32_2 = arith.constant 0 : i32
    return %arg0, %c0_i32, %c0_i32_0, %c0_i32_1 : i32, i32, i32, i32
  }
  func.func @transform_11(%arg0: i32, %arg1: i32) -> (i32, i32, i32) {
    %c0_i32 = arith.constant 0 : i32
    %c0_i32_0 = arith.constant 0 : i32
    %c0_i32_1 = arith.constant 0 : i32
    return %arg0, %c0_i32, %c0_i32_0 : i32, i32, i32
  }
  func.func @transform_12(%arg0: i32, %arg1: i32) -> (i32, i32, i32, i32) {
    %c0_i32 = arith.constant 0 : i32
    %c0_i32_0 = arith.constant 0 : i32
    %c0_i32_1 = arith.constant 0 : i32
    %c0_i32_2 = arith.constant 0 : i32
    return %arg0, %c0_i32, %c0_i32_0, %c0_i32_1 : i32, i32, i32, i32
  }
  func.func @transform_13(%arg0: i32, %arg1: i32) -> (i32, i32, i32) {
    %c0_i32 = arith.constant 0 : i32
    %c0_i32_0 = arith.constant 0 : i32
    %c0_i32_1 = arith.constant 0 : i32
    return %arg0, %c0_i32, %c0_i32_0 : i32, i32, i32
  }
  func.func @transform_14(%arg0: i32, %arg1: i32) -> (i32, i32, i32) {
    %c0_i32 = arith.constant 0 : i32
    %c0_i32_0 = arith.constant 0 : i32
    %c0_i32_1 = arith.constant 0 : i32
    return %arg0, %c0_i32, %c0_i32_0 : i32, i32, i32
  }
  func.func @transform_15(%arg0: i32, %arg1: i32) -> (i32, i32, i32) {
    %c0_i32 = arith.constant 0 : i32
    %c0_i32_0 = arith.constant 0 : i32
    %c0_i32_1 = arith.constant 0 : i32
    return %arg0, %c0_i32, %c0_i32_0 : i32, i32, i32
  }
  func.func @transform_16(%arg0: i32, %arg1: i32) -> (i32, i32, i32) {
    %c0_i32 = arith.constant 0 : i32
    %c0_i32_0 = arith.constant 0 : i32
    %c0_i32_1 = arith.constant 0 : i32
    return %arg0, %c0_i32, %c0_i32_0 : i32, i32, i32
  }
  func.func @transform_17(%arg0: i32, %arg1: i32) -> (i32, i32, i32) {
    %c0_i32 = arith.constant 0 : i32
    %c0_i32_0 = arith.constant 0 : i32
    %c0_i32_1 = arith.constant 0 : i32
    return %arg0, %c0_i32, %c0_i32_0 : i32, i32, i32
  }
  func.func @transform_18(%arg0: i32, %arg1: i32) -> (i32, i32, i32, i32) {
    %c0_i32 = arith.constant 0 : i32
    %c0_i32_0 = arith.constant 0 : i32
    %c0_i32_1 = arith.constant 0 : i32
    return %arg0, %arg1, %c0_i32, %c0_i32_0 : i32, i32, i32, i32
  }
  func.func @transform_19(%arg0: i32, %arg1: i32) -> (i32, i32, i32, i32) {
    %c0_i32 = arith.constant 0 : i32
    %c0_i32_0 = arith.constant 0 : i32
    %c0_i32_1 = arith.constant 0 : i32
    return %arg0, %arg1, %c0_i32, %c0_i32_0 : i32, i32, i32, i32
  }
}

</mosaic_0001>

<bundles_post_ra>
// kernel: squeeze.4
= control target key start
LH: loop header
LB: loop body
LE: loop exit
PB: predicated region body
PF: predicated region fallthrough
CT: control target
= control target key end

     0   :  { %s149_s0 = inlined_call_operand.vmem [shape: f32[2,256], index: 0, kind: input, shape index: {}]   ;;  %s150_s1 = inlined_call_operand.hbm [shape: f32[2,1,16,16], index: 1, kind: output, shape index: {}]  }
   0x1   :  { %v71_v0 = vld [vmem:[%s149_s0 + $0x2] sm:$0x3]  ;;  %v9_v1 = vld [vmem:[%s149_s0] sm:$0x3] }
   0x2   :  { %8 = vst [vmem:[#allocation2 + $0x8] sm:$0x3] %v71_v0  ;;  %10 = vst [vmem:[#allocation2] sm:$0x3] %v9_v1 }
   0x3   :  { %2 = vsyncpa [#allocation1], 0  ;;  %vm12_vm0 = vcmask 130048   ;;  %s104_s0 = smov 112   ;;  %s105_s10 = smov 80  }
   0x4   :  { %s106_s11 = smov 96   ;;  %s107_s12 = smov 64  }
   0x5   :  { %s108_s13 = smov 48   ;;  %s109_s14 = smov 32  }
   0x6   :  { %s110_s15 = smov 16   ;;  %s111_s16 = smov [#allocation0]  }
   0x7   :  { %s65_s17 = sshll.u32 %s111_s16, 4  ;;  %s66_s17 = int_to_ptr.vmem [resolvable:$true] %s65_s17 }
   0x8   :  { %s80_s18 = scalar_lea.vmem %s66_s17, 512  ;;  %p85_p1 = scmp.lt.s32.totalorder %s66_s17, %s66_s17 }
   0x9   :  { %v19_v2 = vld.sshfl [vmem:[#allocation2] sm:$0xff pattern:$0x99999180]   ;;  %p81_p0 = scmp.ne.s32.totalorder %s66_s17, %s80_s18  ;;  %p86_p2 = scmp.lt.s32.totalorder %s80_s18, %s80_s18 }
   0xa   :  { %v11_v3 = vld [vmem:[#allocation2] sm:$0x3]   ;;  %20 = vrot.lane.b32.xlu0 %v19_v2, %s104_s0  ;;  %32 = vrot.lane.b32.xlu1 %v19_v2, %s105_s10  ;;  %v15_v4 = vld [vmem:[#allocation2 + $0x8] sm:$0x3]  }
   0xb   :  { %13 = vst.msk [vmem:[#allocation0] ss:$16 sm:$0x3] %vm12_vm0, %v11_v3   ;;  %18 = vst.msk [vmem:[#allocation0 + $0x8] ss:$16 sm:$0x3] %vm12_vm0, %v15_v4   ;;  %p87_p3 = por %p86_p2, %p85_p1 }
   0xd   :  { %p88_p4 = pnand %p87_p3, %p81_p0 }
   0xe   :  { %26 = vrot.lane.b32.xlu0 %v19_v2, %s106_s11  ;;  %38 = vrot.lane.b32.xlu1 %v19_v2, %s107_s12 }
  0x12   :  { %44 = vrot.lane.b32.xlu0 %v19_v2, %s108_s13  ;;  %50 = vrot.lane.b32.xlu1 %v19_v2, %s109_s14 }
  0x16   :  { %56 = vrot.lane.b32.xlu0 %v19_v2, %s110_s15 }
  0x7c   :  { %v21_v5 = vpop.permute.xlu0 %20   ;;  %v33_v6 = vpop.permute.xlu1 %32  }
  0x7d   :  { %24 = vst.msk [vmem:[#allocation0 + $0x1] ss:$8 sm:$0xf] %vm12_vm0, %v21_v5   ;;  %36 = vst.msk [vmem:[#allocation0 + $0x3] ss:$8 sm:$0xf] %vm12_vm0, %v33_v6  }
  0x80   :  { %v27_v7 = vpop.permute.xlu0 %26   ;;  %v39_v8 = vpop.permute.xlu1 %38  }
  0x81   :  { %30 = vst.msk [vmem:[#allocation0 + $0x2] ss:$8 sm:$0xf] %vm12_vm0, %v27_v7   ;;  %42 = vst.msk [vmem:[#allocation0 + $0x4] ss:$8 sm:$0xf] %vm12_vm0, %v39_v8  }
  0x84   :  { %v45_v9 = vpop.permute.xlu0 %44   ;;  %v51_v10 = vpop.permute.xlu1 %50  }
  0x85   :  { %48 = vst.msk [vmem:[#allocation0 + $0x5] ss:$8 sm:$0xf] %vm12_vm0, %v45_v9   ;;  %54 = vst.msk [vmem:[#allocation0 + $0x6] ss:$8 sm:$0xf] %vm12_vm0, %v51_v10  }
  0x88   :  { %v57_v11 = vpop.permute.xlu0 %56  }
  0x89   :  { %60 = vst.msk [vmem:[#allocation0 + $0x7] ss:$8 sm:$0xf] %vm12_vm0, %v57_v11  }
  0x8a   :  { %91 = shalt.err (!%p88_p4)
}
  0x8b   :  { %s92_s21 = scalar_lea.hbm %s150_s1, 512 }
  0x8c   :  { %p93_p5 = scmp.ne.s32.totalorder %s150_s1, %s92_s21  ;;  %p96_p6 = scmp.lt.u32.totalorder %s92_s21, %s150_s1 }
  0x8e   :  { %p98_p7 = pnand %p96_p6, %p93_p5 }
  0x90   :  { %101 = shalt.err (!%p98_p7)
}
  0x91   :  { %68 = dma.vmem_to_hbm [thread:$0]  %s66_s17, 512, %s150_s1, [#allocation1]  }
  0x92   :  { %102 = dma.done.wait [#allocation1], 512  }
  0x93   :  { %103 = vsyncadd [#allocation1], 4294966784 }
  0x94   :  { %70 = vsyncpa [#allocation1], 1 }

// kernel: squeeze.5
= control target key start
LH: loop header
LB: loop body
LE: loop exit
PB: predicated region body
PF: predicated region fallthrough
CT: control target
= control target key end

     0   :  { %vm21_vm0 = vcmask 130048   ;;  %vm41_vm1 = vcmask 1047556   ;;  %s151_s17 = smov 112   ;;  %s152_s22 = smov 80   ;;  %s252_s0 = inlined_call_operand.vmem [shape: f32[1,2,2,256], index: 0, kind: input, shape index: {}]   ;;  %s253_s1 = inlined_call_operand.vmem [shape: f32[2,2,16,16], index: 1, kind: output, shape index: {}]  }
   0x1   :  { %v124_v0 = vld [vmem:[%s252_s0 + $0x6] sm:$0x3]  ;;  %v125_v1 = vld [vmem:[%s252_s0 + $0x4] sm:$0x3]  ;;  %v126_v2 = vld [vmem:[%s252_s0 + $0x2] sm:$0x3] }
   0x2   :  { %8 = vst [vmem:[#allocation0 + $0x18] sm:$0x3] %v124_v0  ;;  %13 = vst [vmem:[#allocation0 + $0x10] sm:$0x3] %v125_v1  ;;  %v18_v3 = vld [vmem:[%s252_s0] sm:$0x3] }
   0x3   :  { %17 = vst [vmem:[#allocation0 + $0x8] sm:$0x3] %v126_v2  ;;  %19 = vst [vmem:[#allocation0] sm:$0x3] %v18_v3  ;;  %s153_s23 = smov 96   ;;  %s154_s24 = smov 64  }
   0x4   :  { %s155_s25 = smov 48   ;;  %s156_s26 = smov 32  }
   0x5   :  { %s157_s27 = smov 16  }
   0x9   :  { %v29_v4 = vld [vmem:[#allocation0 + $0x10] sm:$0x3]   ;;  %v34_v7 = vld [vmem:[#allocation0 + $0x18] sm:$0x3]  }
   0xa   :  { %v40_v5 = vld.sshfl [vmem:[#allocation0 + $0x10] sm:$0xff pattern:$0x91800000]   ;;  %128 = vst.msk [vmem:[%s253_s1 + $0x20] ss:$16 sm:$0x3] %vm21_vm0, %v29_v4  }
   0xb   :  { %v38_v6 = vld.sshfl [vmem:[#allocation0] sm:$0xff pattern:$0x99999180]   ;;  %129 = vst.msk [vmem:[%s253_s1 + $0x28] ss:$16 sm:$0x3] %vm21_vm0, %v34_v7  }
   0xc   :  { %v42_v8 = vsel %vm41_vm1, %v40_v5, %v38_v6  ;;  %v20_v9 = vld [vmem:[#allocation0] sm:$0x3]   ;;  %v24_v10 = vld [vmem:[#allocation0 + $0x8] sm:$0x3]  }
   0xd   :  { %43 = vrot.lane.b32.xlu0 %v42_v8, %s151_s17  ;;  %22 = vst.msk [vmem:[%s253_s1] ss:$16 sm:$0x3] %vm21_vm0, %v20_v9   ;;  %127 = vst.msk [vmem:[%s253_s1 + $0x8] ss:$16 sm:$0x3] %vm21_vm0, %v24_v10   ;;  %67 = vrot.lane.b32.xlu1 %v42_v8, %s152_s22 }
  0x11   :  { %55 = vrot.lane.b32.xlu0 %v42_v8, %s153_s23  ;;  %79 = vrot.lane.b32.xlu1 %v42_v8, %s154_s24 }
  0x15   :  { %91 = vrot.lane.b32.xlu0 %v42_v8, %s155_s25  ;;  %103 = vrot.lane.b32.xlu1 %v42_v8, %s156_s26 }
  0x19   :  { %115 = vrot.lane.b32.xlu0 %v42_v8, %s157_s27 }
  0x7f   :  { %v44_v11 = vpop.permute.xlu0 %43   ;;  %v68_v12 = vpop.permute.xlu1 %67  }
  0x80   :  { %130 = vst.msk [vmem:[%s253_s1 + $0x1] ss:$8 sm:$0xf] %vm21_vm0, %v44_v11   ;;  %131 = vst.msk [vmem:[%s253_s1 + $0x1] ss:$8 sm:$0xf0] %vm21_vm0, %v44_v11  }
  0x81   :  { %134 = vst.msk [vmem:[%s253_s1 + $0x3] ss:$8 sm:$0xf] %vm21_vm0, %v68_v12   ;;  %135 = vst.msk [vmem:[%s253_s1 + $0x3] ss:$8 sm:$0xf0] %vm21_vm0, %v68_v12  }
  0x83   :  { %v56_v13 = vpop.permute.xlu0 %55   ;;  %v80_v14 = vpop.permute.xlu1 %79  }
  0x84   :  { %132 = vst.msk [vmem:[%s253_s1 + $0x2] ss:$8 sm:$0xf] %vm21_vm0, %v56_v13   ;;  %133 = vst.msk [vmem:[%s253_s1 + $0x2] ss:$8 sm:$0xf0] %vm21_vm0, %v56_v13  }
  0x85   :  { %136 = vst.msk [vmem:[%s253_s1 + $0x4] ss:$8 sm:$0xf] %vm21_vm0, %v80_v14   ;;  %137 = vst.msk [vmem:[%s253_s1 + $0x4] ss:$8 sm:$0xf0] %vm21_vm0, %v80_v14  }
  0x87   :  { %v92_v15 = vpop.permute.xlu0 %91   ;;  %v104_v16 = vpop.permute.xlu1 %103  }
  0x88   :  { %138 = vst.msk [vmem:[%s253_s1 + $0x5] ss:$8 sm:$0xf] %vm21_vm0, %v92_v15   ;;  %139 = vst.msk [vmem:[%s253_s1 + $0x5] ss:$8 sm:$0xf0] %vm21_vm0, %v92_v15  }
  0x89   :  { %140 = vst.msk [vmem:[%s253_s1 + $0x6] ss:$8 sm:$0xf] %vm21_vm0, %v104_v16   ;;  %141 = vst.msk [vmem:[%s253_s1 + $0x6] ss:$8 sm:$0xf0] %vm21_vm0, %v104_v16  }
  0x8b   :  { %v116_v17 = vpop.permute.xlu0 %115  }
  0x8c   :  { %142 = vst.msk [vmem:[%s253_s1 + $0x7] ss:$8 sm:$0xf] %vm21_vm0, %v116_v17   ;;  %143 = vst.msk [vmem:[%s253_s1 + $0x7] ss:$8 sm:$0xf0] %vm21_vm0, %v116_v17  }

// kernel: squeeze.3
= control target key start
LH: loop header
LB: loop body
LE: loop exit
PB: predicated region body
PF: predicated region fallthrough
CT: control target
= control target key end

     0   :  { %s230_s0 = inlined_call_operand.vmem [shape: f32[1,2,2,256], index: 0, kind: input, shape index: {}]   ;;  %s231_s1 = inlined_call_operand.hbm [shape: f32[2,2,16,16], index: 1, kind: output, shape index: {}]  }
   0x1   :  { %v135_v0 = vld [vmem:[%s230_s0 + $0x6] sm:$0x3]  ;;  %v136_v1 = vld [vmem:[%s230_s0 + $0x4] sm:$0x3]  ;;  %v137_v2 = vld [vmem:[%s230_s0 + $0x2] sm:$0x3] }
   0x2   :  { %9 = vst [vmem:[#allocation2 + $0x18] sm:$0x3] %v135_v0  ;;  %14 = vst [vmem:[#allocation2 + $0x10] sm:$0x3] %v136_v1  ;;  %v19_v3 = vld [vmem:[%s230_s0] sm:$0x3] }
   0x3   :  { %18 = vst [vmem:[#allocation2 + $0x8] sm:$0x3] %v137_v2  ;;  %20 = vst [vmem:[#allocation2] sm:$0x3] %v19_v3 }
   0x4   :  { %2 = vsyncpa [#allocation1], 0  ;;  %vm42_vm0 = vcmask 1047556   ;;  %vm22_vm1 = vcmask 130048   ;;  %s170_s0 = smov 112   ;;  %s171_s14 = smov 80  }
   0x5   :  { %s172_s15 = smov 96   ;;  %s173_s16 = smov 64  }
   0x6   :  { %s174_s17 = smov 48   ;;  %s175_s18 = smov 32  }
   0x7   :  { %s176_s19 = smov 16   ;;  %s177_s20 = smov [#allocation0]  }
   0x8   :  { %s127_s21 = sshll.u32 %s177_s20, 4  ;;  %s128_s21 = int_to_ptr.vmem [resolvable:$true] %s127_s21 }
   0x9   :  { %v41_v4 = vld.sshfl [vmem:[#allocation2 + $0x10] sm:$0xff pattern:$0x91800000]   ;;  %s146_s22 = scalar_lea.vmem %s128_s21, 1024  ;;  %p151_p1 = scmp.lt.s32.totalorder %s128_s21, %s128_s21 }
   0xa   :  { %v39_v5 = vld.sshfl [vmem:[#allocation2] sm:$0xff pattern:$0x99999180]   ;;  %v30_v9 = vld [vmem:[#allocation2 + $0x10] sm:$0x3]   ;;  %p147_p0 = scmp.ne.s32.totalorder %s128_s21, %s146_s22  ;;  %p152_p2 = scmp.lt.s32.totalorder %s146_s22, %s146_s22 }
   0xb   :  { %v21_v6 = vld [vmem:[#allocation2] sm:$0x3]   ;;  %v43_v7 = vsel %vm42_vm0, %v41_v4, %v39_v5  ;;  %v25_v8 = vld [vmem:[#allocation2 + $0x8] sm:$0x3]   ;;  %v35_v10 = vld [vmem:[#allocation2 + $0x18] sm:$0x3]  }
   0xc   :  { %23 = vst.msk [vmem:[#allocation0] ss:$16 sm:$0x3] %vm22_vm1, %v21_v6   ;;  %44 = vrot.lane.b32.xlu0 %v43_v7, %s170_s0  ;;  %68 = vrot.lane.b32.xlu1 %v43_v7, %s171_s14  ;;  %28 = vst.msk [vmem:[#allocation0 + $0x8] ss:$16 sm:$0x3] %vm22_vm1, %v25_v8   ;;  %p153_p3 = por %p152_p2, %p151_p1 }
   0xd   :  { %33 = vst.msk [vmem:[#allocation0 + $0x20] ss:$16 sm:$0x3] %vm22_vm1, %v30_v9   ;;  %38 = vst.msk [vmem:[#allocation0 + $0x28] ss:$16 sm:$0x3] %vm22_vm1, %v35_v10  }
   0xe   :  { %p154_p4 = pnand %p153_p3, %p147_p0 }
  0x10   :  { %56 = vrot.lane.b32.xlu0 %v43_v7, %s172_s15  ;;  %80 = vrot.lane.b32.xlu1 %v43_v7, %s173_s16 }
  0x14   :  { %92 = vrot.lane.b32.xlu0 %v43_v7, %s174_s17  ;;  %104 = vrot.lane.b32.xlu1 %v43_v7, %s175_s18 }
  0x18   :  { %116 = vrot.lane.b32.xlu0 %v43_v7, %s176_s19 }
  0x7e   :  { %v45_v11 = vpop.permute.xlu0 %44   ;;  %v69_v12 = vpop.permute.xlu1 %68  }
  0x7f   :  { %48 = vst.msk [vmem:[#allocation0 + $0x1] ss:$8 sm:$0xf] %vm22_vm1, %v45_v11   ;;  %50 = vst.msk [vmem:[#allocation0 + $0x1] ss:$8 sm:$0xf0] %vm22_vm1, %v45_v11  }
  0x80   :  { %72 = vst.msk [vmem:[#allocation0 + $0x3] ss:$8 sm:$0xf] %vm22_vm1, %v69_v12   ;;  %74 = vst.msk [vmem:[#allocation0 + $0x3] ss:$8 sm:$0xf0] %vm22_vm1, %v69_v12  }
  0x82   :  { %v57_v13 = vpop.permute.xlu0 %56   ;;  %v81_v14 = vpop.permute.xlu1 %80  }
  0x83   :  { %60 = vst.msk [vmem:[#allocation0 + $0x2] ss:$8 sm:$0xf] %vm22_vm1, %v57_v13   ;;  %62 = vst.msk [vmem:[#allocation0 + $0x2] ss:$8 sm:$0xf0] %vm22_vm1, %v57_v13  }
  0x84   :  { %84 = vst.msk [vmem:[#allocation0 + $0x4] ss:$8 sm:$0xf] %vm22_vm1, %v81_v14   ;;  %86 = vst.msk [vmem:[#allocation0 + $0x4] ss:$8 sm:$0xf0] %vm22_vm1, %v81_v14  }
  0x86   :  { %v93_v15 = vpop.permute.xlu0 %92   ;;  %v105_v16 = vpop.permute.xlu1 %104  }
  0x87   :  { %96 = vst.msk [vmem:[#allocation0 + $0x5] ss:$8 sm:$0xf] %vm22_vm1, %v93_v15   ;;  %98 = vst.msk [vmem:[#allocation0 + $0x5] ss:$8 sm:$0xf0] %vm22_vm1, %v93_v15  }
  0x88   :  { %108 = vst.msk [vmem:[#allocation0 + $0x6] ss:$8 sm:$0xf] %vm22_vm1, %v105_v16   ;;  %110 = vst.msk [vmem:[#allocation0 + $0x6] ss:$8 sm:$0xf0] %vm22_vm1, %v105_v16  }
  0x8a   :  { %v117_v17 = vpop.permute.xlu0 %116  }
  0x8b   :  { %120 = vst.msk [vmem:[#allocation0 + $0x7] ss:$8 sm:$0xf] %vm22_vm1, %v117_v17   ;;  %122 = vst.msk [vmem:[#allocation0 + $0x7] ss:$8 sm:$0xf0] %vm22_vm1, %v117_v17  }
  0x8c   :  { %157 = shalt.err (!%p154_p4)
}
  0x8d   :  { %s158_s25 = scalar_lea.hbm %s231_s1, 1024 }
  0x8e   :  { %p159_p5 = scmp.ne.s32.totalorder %s231_s1, %s158_s25  ;;  %p162_p6 = scmp.lt.u32.totalorder %s158_s25, %s231_s1 }
  0x90   :  { %p164_p7 = pnand %p162_p6, %p159_p5 }
  0x92   :  { %167 = shalt.err (!%p164_p7)
}
  0x93   :  { %130 = dma.vmem_to_hbm [thread:$0]  %s128_s21, 1024, %s231_s1, [#allocation1]  }
  0x94   :  { %168 = dma.done.wait [#allocation1], 1024  }
  0x95   :  { %169 = vsyncadd [#allocation1], 4294966272 }
  0x96   :  { %132 = vsyncpa [#allocation1], 1 }

// kernel: cpn_forward.1
= control target key start
LH: loop header
LB: loop body
LE: loop exit
PB: predicated region body
PF: predicated region fallthrough
CT: control target
= control target key end

     0   :  { %s7317_s30 = smov 0   ;;  %s7319_s20 = smov 0   ;;  %s9446_s0 = inlined_call_operand.vmem [shape: f32[2,2,256], index: 0, kind: input, shape index: {}]   ;;  %s9447_s1 = inlined_call_operand.vmem [shape: bf16[2,9,8,2], index: 1, kind: input, shape index: {}]   ;;  %s9448_s2 = inlined_call_operand.vmem [shape: f32[2,8,1], index: 2, kind: input, shape index: {}]   ;;  %s9449_s3 = inlined_call_operand.vmem [shape: bf16[2,9,8,8], index: 3, kind: input, shape index: {}]   ;;  %s9450_s4 = inlined_call_operand.vmem [shape: f32[2,8,1], index: 4, kind: input, shape index: {}]   ;;  %s9451_s5 = inlined_call_operand.vmem [shape: bf16[2,9,16,8], index: 5, kind: input, shape index: {}]   ;;  %s9452_s6 = inlined_call_operand.vmem [shape: f32[2,16,1], index: 6, kind: input, shape index: {}]   ;;  %s9453_s7 = inlined_call_operand.vmem [shape: bf16[2,9,16,16], index: 7, kind: input, shape index: {}]   ;;  %s9454_s8 = inlined_call_operand.vmem [shape: f32[2,16,1], index: 8, kind: input, shape index: {}]   ;;  %s9455_s9 = inlined_call_operand.vmem [shape: bf16[2,9,8,16], index: 9, kind: input, shape index: {}]   ;;  %s9456_s10 = inlined_call_operand.vmem [shape: bf16[2,9,8,8], index: 10, kind: input, shape index: {}]   ;;  %s9457_s11 = inlined_call_operand.vmem [shape: f32[2,8,1], index: 11, kind: input, shape index: {}]   ;;  %s9458_s12 = inlined_call_operand.vmem [shape: bf16[2,9,8,8], index: 12, kind: input, shape index: {}]   ;;  %s9459_s13 = inlined_call_operand.vmem [shape: f32[2,8,1], index: 13, kind: input, shape index: {}]   ;;  %s9460_s14 = inlined_call_operand.vmem [shape: bf16[2,2,8], index: 14, kind: input, shape index: {}]   ;;  %s9461_s15 = inlined_call_operand.vmem [shape: f32[2,2,1], index: 15, kind: input, shape index: {}]   ;;  %s9462_s16 = inlined_call_operand.vmem [shape: bf16[2,2,16], index: 16, kind: input, shape index: {}]   ;;  %s9463_s17 = inlined_call_operand.vmem [shape: f32[2,2,1], index: 17, kind: input, shape index: {}]   ;;  %s9464_s18 = inlined_call_operand.vmem [shape: f32[2,2,2,256], index: 18, kind: output, shape index: {0}]   ;;  %s9465_s19 = inlined_call_operand.vmem [shape: f32[2,2,2,256], index: 19, kind: output, shape index: {1}]  }
   0x1   :  { %9592 = sst [smem:[#allocation42_spill]] %s9446_s0  ;;  %s7315_s0 = smov 0  }
   0x2   :  { %9593 = sst [smem:[#allocation43_spill]] %s9447_s1  ;;  %s7321_s21 = smov 0  }
   0x3   :  { %9594 = sst [smem:[#allocation44_spill]] %s9448_s2  ;;  %s7323_s1 = smov 0  }
   0x4   :  { %9595 = sst [smem:[#allocation45_spill]] %s9449_s3 }
   0x5   :  { %9596 = sst [smem:[#allocation46_spill]] %s9450_s4 }
   0x6   :  { %9597 = sst [smem:[#allocation47_spill]] %s9451_s5 }
   0x7   :  { %9598 = sst [smem:[#allocation48_spill]] %s9464_s18 }
   0x8   :  { %9599 = sst [smem:[#allocation49_spill]] %s9465_s19 }
   0x9 LB: > { %9600 = sst [smem:[#allocation2_spill]] %s7182_s30  ;;  %s39_s22 = sadd.s32 1, %s7186_s20  ;;  %s7194_s1 = sphi %s7323_s1, %s30_s1   ;;  %s7190_s21 = sphi %s7321_s21, %s9981_s21   ;;  %s7186_s20 = sphi %s7319_s20, %s9980_s20   ;;  %s7182_s30 = sphi %s7317_s30, %s9979_s30   ;;  %s7178_s0 = sphi %s7315_s0, %s9978_s0  }
   0xa   : > { %9601 = sst [smem:[#allocation3_spill]] %s7186_s20  ;;  %s42_s2 = sadd.s32 1, %s7190_s21 }
   0xb   : > { %9602 = sst [smem:[#allocation4_spill]] %s7190_s21  ;;  %p40_p0 = scmp.ge.s32.totalorder %s39_s22, 2 }
   0xc   : > { %9603 = sst [smem:[#allocation5_spill]] %s7194_s1  ;;  %p6566_p1 = scmp.ge.s32.totalorder %s7194_s1, 1 }
   0xd   : > { %p716_p2 = scmp.lt.s32.totalorder %s7194_s1, 5  ;;  %s9983_s22 = smov (%p40_p0, %s39_s22), 0 }
   0xe   : > { %9604 = sst [smem:[#allocation6_spill]] %s9983_s22  ;;  %s9985_s2 = smov (!%p40_p0, %s42_s2), %s7190_s21 }
   0xf   : > { %p717_p3 = pnand %p6566_p1, %p716_p2  ;;  %p44_p4 = scmp.ge.s32.totalorder %s9985_s2, 2 }
  0x11   : > { %s9987_s2 = smov (%p44_p4, %s9985_s2), 0  ;;  %720 = sbr.rel (%p717_p3) target bundleno = 3513 (0xdb9), region = 92 }
  0x12   : > { %9605 = sst [smem:[#allocation7_spill]] %s9987_s2 }
  0x18   : > { %p860_p5 = scmp.lt.s32.totalorder %s7178_s0, 1  ;;  %p865_p6 = scmp.lt.s32.totalorder %s7182_s30, 1  ;;  %v959_v0 = vlaneseq  ;;  %v7196_v1 = vmov 1983009808   ;;  %v9490_v23 = vmov 0   ;;  %v9488_v26 = vmov 0.0  }
  0x19   : > { %v1610_v2 = vunpack.c.l.s4 %v7196_v1  ;;  %s9606_s27 = sld [smem:[#allocation42_spill]]  ;;  %s9607_s18 = sld [smem:[#allocation48_spill]]  ;;  %1687 = vmatprep.mubr.bf16.mxu0 %v9490_v23  ;;  %2139 = vmatprep.mubr.bf16.mxu1 %v9490_v23 }
  0x1a   : > { %s9989_s0 = smov (!%p860_p5, %s7178_s0), 1  ;;  %v7348_v3 = vshrl.u32 %v959_v0, 7  ;;  %v7350_v4 = vand.u32 127, %v959_v0  ;;  %s9609_s19 = sld [smem:[#allocation49_spill]]  ;;  %7115 = vset.pattern.permute.xlu0 %v9490_v23  ;;  %7121 = vset.pattern.permute.xlu1 %v9490_v23 }
  0x1b   : > { %s7353_s23 = scalar_select %p865_p6, %s7182_s30, 1  ;;  %v1611_v5 = vunpack.c.0.s8 %v1610_v2 }
  0x1c   : > { %s6965_s24 = sshll.u32 %s9989_s0, 2  ;;  %s6586_s25 = sshll.u32 %s9989_s0, 1  ;;  %v961_v6 = vadd.s32 128, %v7350_v4  ;;  %v7362_v8 = vshra.s32 %v7350_v4, 4  ;;  %v7365_v9 = vand.u32 15, %v7350_v4 }
  0x1d   : > { %s6587_s29 = sshll.u32 %s7353_s23, 2  ;;  %v1614_v7 = vsub.s32 %v1611_v5, %v7348_v3  ;;  %s9473_s0 = smov 113  }
  0x1e   : > { %s946_s2 = sadd.s32 %s6587_s29, %s6586_s25  ;;  %v7367_v12 = vshra.s32 %v961_v6, 4  ;;  %v1439_v13 = vshra.s32 %v7362_v8, 1  ;;  %v1443_v14 = vshra.s32 %v7365_v9, 1  ;;  %v7381_v15 = vand.u32 15, %v961_v6  ;;  %s9483_s25 = smov 17  }
  0x1f   : > { %s864_s28 = scalar_lea.vmem %s9606_s27, %s6965_s24  ;;  %s6588_s22 = sshll.u32 %s946_s2, 1  ;;  %vm1008_vm0 = vcmp.ge.s32.totalorder %v7362_v8, 0  ;;  %vm1010_vm2 = vcmp.lt.s32.totalorder %v7362_v8, 16  ;;  %v966_v34 = vadd.s32 4294967295, %v7362_v8  ;;  %v7444_v35 = vadd.s32 4294967295, %v7365_v9 }
  0x20   : > { %v1607_v10 = vld [vmem:[%s864_s28] sm:$0xf]  ;;  %s7374_s3 = scalar_lea.vmem %s9607_s18, %s6588_s22  ;;  %s7379_s21 = scalar_lea.vmem %s9609_s19, %s6588_s22  ;;  %v1440_v17 = vshra.s32 %v7367_v12, 1  ;;  %v1441_v18 = vmul.u32 8, %v1439_v13  ;;  %v1444_v19 = vshra.s32 %v7381_v15, 1  ;;  %vm1009_vm1 = vcmp.ge.s32.totalorder %v7367_v12, 0  ;;  %vm7403_vm4 = vmand %vm1008_vm0, %vm1010_vm2 }
  0x21   : > { %v1615_v11 = vrot.slane %v1607_v10, %v1614_v7  ;;  %9608 = sst [smem:[#allocation8_spill]] %s7374_s3  ;;  %s9480_s2 = smov 16   ;;  %vm1011_vm3 = vcmp.lt.s32.totalorder %v7367_v12, 16  ;;  %v7416_v27 = vsel %vm7403_vm4, 1.0, %v9488_v26  ;;  %v967_v36 = vadd.s32 4294967295, %v7367_v12 }
  0x22   : > { %9610 = sst [smem:[#allocation9_spill]] %s7379_s21  ;;  %v1442_v20 = vmul.u32 8, %v1440_v17  ;;  %v7387_v21 = vadd.s32 %v1443_v14, %v1441_v18  ;;  %s9471_s22 = smov 15   ;;  %vm7407_vm5 = vmand %vm1009_vm1, %vm1011_vm3  ;;  %v7448_v37 = vadd.s32 4294967295, %v7381_v15  ;;  %vm968_vm6 = vcmp.ge.s32.totalorder %v966_v34, 0 }
  0x23   : > { %1631 = vrot.lane.b32.xlu0 %v1615_v11, %s9480_s2  ;;  %1619 = vrot.lane.b32.xlu1 %v1615_v11, %s9483_s25  ;;  %v1616_v16 = vcombine.high %v1615_v11, %v1615_v11  ;;  %s9469_s28 = smov 1   ;;  %v7421_v28 = vsel %vm7407_vm5, 1.0, %v9488_v26  ;;  %s9467_s29 = smov 127   ;;  %vm970_vm7 = vcmp.lt.s32.totalorder %v966_v34, 16  ;;  %vm976_vm8 = vcmp.ge.s32.totalorder %v7444_v35, 0 }
  0x24   : > { %v7391_v22 = vadd.s32 %v1444_v19, %v1442_v20  ;;  %v1878_v29 = vcombine.low %v7416_v27, %v7421_v28  ;;  %s9508_s24 = smov 112   ;;  %s9475_s26 = smov 111   ;;  %vm969_vm9 = vcmp.ge.s32.totalorder %v967_v36, 0  ;;  %vm971_vm10 = vcmp.lt.s32.totalorder %v967_v36, 16  ;;  %vm7451_vm11 = vmand %vm968_vm6, %vm970_vm7 }
  0x25   : > { %s7436_s27 = sshll.u32 %s7353_s23, 3  ;;  %vm977_vm12 = vcmp.ge.s32.totalorder %v7448_v37, 0  ;;  %v7457_v39 = vadd.s32 1, %v7381_v15  ;;  %vm978_vm13 = vmand %vm7451_vm11, %vm976_vm8  ;;  %v7468_v41 = vadd.s32 1, %v7365_v9  ;;  %vm9487_vm1 = vcmp.lt.s32.totalorder %v7350_v4, 16  ;;  %s9645_s4 = sld [smem:[#allocation46_spill]] }
  0x26   : > { %v1885_v30 = vrot.slane %v1878_v29, %v1614_v7  ;;  %vm7463_vm14 = vmand %vm969_vm9, %vm971_vm10  ;;  %v7477_v44 = vsel %vm978_vm13, 1.0, %v9488_v26  ;;  %vm9478_vm2 = vcmp.lt.s32.totalorder %v7350_v4, 17  ;;  %v7491_v47 = vsel %vm7451_vm11, 1.0, %v9488_v26  ;;  %s9646_s20 = smov 111   ;;  %s9510_s18 = smov 9  }
  0x27   : > { %1633 = vrot.lane.b32.xlu0 %v1616_v16, %s9480_s2  ;;  %1621 = vrot.lane.b32.xlu1 %v1616_v16, %s9483_s25  ;;  %vm979_vm15 = vmand %vm7463_vm14, %vm977_vm12  ;;  %vm1003_vm0 = vcmp.lt.s32.totalorder %v7457_v39, 16  ;;  %9620 = vst [vmem:[#allocation10_spill] sm:$0xff] %v7477_v44  ;;  %v7486_v46 = vsel %vm7463_vm14, 1.0, %v9488_v26  ;;  %vm1002_vm3 = vcmp.lt.s32.totalorder %v7468_v41, 16  ;;  %vm9477_vm7 = vcmp.lt.s32.totalorder %v7350_v4, 15  ;;  %s9512_s19 = smov 7   ;;  %s916_s21 = scalar_lea.vmem %s9457_s11, %s7436_s27 }
  0x28   : > { %v1887_v31 = vmul.f32 %v1885_v30, %v1607_v10  ;;  %v7481_v45 = vsel %vm979_vm15, 1.0, %v9488_v26  ;;  %9622 = vst [vmem:[#allocation12_spill] sm:$0xff] %v7486_v46  ;;  %9623 = vst [vmem:[#allocation13_spill] sm:$0xff] %v7491_v47  ;;  %vm1648_vm10 = vcmask 1040384   ;;  %vm9479_vm13 = vcmp.lt.s32.totalorder %v7350_v4, 1  ;;  %s9658_s5 = sld [smem:[#allocation47_spill]] }
  0x29   : > { %9621 = vst [vmem:[#allocation11_spill] sm:$0xff] %v7481_v45  ;;  %vm1005_vm6 = vmand %vm7463_vm14, %vm1003_vm0  ;;  %vm1644_vm14 = vcmask 15360   ;;  %v1032_v18 = vadd.s32 1, %v7362_v8  ;;  %v1033_v19 = vadd.s32 1, %v7367_v12  ;;  %s9664_s30 = smov 119  }
  0x2a   : > { %v7429_v32 = vrot.slane %v1887_v31, %v1614_v7  ;;  %vm1004_vm9 = vmand %vm7451_vm11, %vm1002_vm3  ;;  %v7519_v58 = vsel %vm1005_vm6, 1.0, %v9488_v26 }
  0x2b   : > { %1748 = vrot.lane.b32.xlu1 %v1616_v16, %s9471_s22  ;;  %1746 = vrot.lane.b32.xlu0 %v1615_v11, %s9471_s22  ;;  %s9615_s22 = sld [smem:[#allocation44_spill]]  ;;  %9624 = vst [vmem:[#allocation14_spill] sm:$0xff] %v7519_v58  ;;  %v7528_v1 = vsel %vm1004_vm9, 1.0, %v9488_v26  ;;  %vm1015_vm11 = vmand %vm7407_vm5, %vm977_vm12  ;;  %vm1034_vm6 = vcmp.ge.s32.totalorder %v1032_v18, 0  ;;  %vm1036_vm9 = vcmp.lt.s32.totalorder %v1032_v18, 16 }
  0x2c   : > { %9626 = vst [vmem:[#allocation15_spill] sm:$0xff] %v7528_v1  ;;  %vm1014_vm15 = vmand %vm7403_vm4, %vm976_vm8 }
  0x2f   : > { %1813 = vrot.lane.b32.xlu1 %v1616_v16, %s9469_s28  ;;  %1811 = vrot.lane.b32.xlu0 %v1615_v11, %s9469_s28  ;;  %s9642_s28 = smov 1  }
  0x33   : > { %1957 = vrot.lane.b32.xlu1 %v1616_v16, %s9467_s29  ;;  %1955 = vrot.lane.b32.xlu0 %v1615_v11, %s9467_s29  ;;  %s9643_s29 = smov 127  }
  0x37   : > { %2022 = vrot.lane.b32.xlu1 %v1616_v16, %s9473_s0  ;;  %2020 = vrot.lane.b32.xlu0 %v1615_v11, %s9473_s0  ;;  %s873_s0 = scalar_lea.vmem %s9615_s22, %s7436_s27  ;;  %s7495_s22 = smul.u32 36, %s7353_s23 }
  0x38   : > { %v2215_v33 = vld [vmem:[%s873_s0] sm:$0xff]  ;;  %s9625_s0 = sld [smem:[#allocation43_spill]] }
  0x3b   : > { %2087 = vrot.lane.b32.xlu1 %v1616_v16, %s9508_s24  ;;  %2085 = vrot.lane.b32.xlu0 %v1615_v11, %s9508_s24 }
  0x3f   : > { %2152 = vrot.lane.b32.xlu1 %v1616_v16, %s9475_s26  ;;  %2150 = vrot.lane.b32.xlu0 %v1615_v11, %s9475_s26  ;;  %s7525_s26 = scalar_lea.vmem %s9625_s0, %s7495_s22  ;;  %v7547_v16 = vsel %vm1015_vm11, 1.0, %v9488_v26  ;;  %vm1035_vm11 = vcmp.ge.s32.totalorder %v1033_v19, 0  ;;  %s9644_s0 = smov 113  }
  0x40   : > { %v6592_v9 = vld [vmem:[%s7525_s26 + $0x4] sm:$0xf]  ;;  %9627 = vst [vmem:[#allocation16_spill] sm:$0xff] %v7547_v16  ;;  %v1630_v8 = vld [vmem:[%s7525_s26] sm:$0xf] }
  0x41   : > { %v6606_v41 = vld [vmem:[%s7525_s26 + $0x14] sm:$0xf] }
  0x43   : > { %2218 = vperm.xlu0 %7115, %v2215_v33   ;;  %v7562_v33 = vsel %vm1014_vm15, 1.0, %v9488_v26 }
  0x44   : > { %9628 = vst [vmem:[#allocation17_spill] sm:$0xff] %v7562_v33 }
  0x95   : > { %v1632_v42 = vpop.permute.xlu0 %1631  ;;  %v1620_v43 = vpop.permute.xlu1 %1619 }
  0x99   : > { %v1634_v48 = vpop.permute.xlu0 %1633  ;;  %v1622_v49 = vpop.permute.xlu1 %1621 }
  0x9a   : > { %v1637_v50 = vsel %vm9487_vm1, %v1634_v48, %v1632_v42  ;;  %v1624_v51 = vsel %vm9478_vm2, %v1620_v43, %v1622_v49  ;;  %v1625_v52 = vsel %vm9478_vm2, %v1622_v49, %v1620_v43  ;;  %v1636_v53 = vsel %vm9487_vm1, %v1632_v42, %v1634_v48  ;;  %vm7569_vm2 = vmand %vm1034_vm6, %vm1036_vm9 }
  0x9b   : > { %v1626_v54 = vmul.f32 %v1625_v52, %v7477_v44  ;;  %v1627_v55 = vmul.f32 %v1624_v51, %v7481_v45  ;;  %v1639_v56 = vmul.f32 %v1636_v53, %v7486_v46  ;;  %v1638_v57 = vmul.f32 %v1637_v50, %v7491_v47 }
  0x9c   : > { %v7588_v50 = vsel %vm7569_vm2, 1.0, %v9488_v26  ;;  %v1896_v52 = vcombine.high %v7429_v32, %v7429_v32  ;;  %vm9551_vm6 = vcmp.lt.s32.totalorder %v7350_v4, 127  ;;  %vm9486_vm9 = vcmp.lt.s32.totalorder %v7350_v4, 113 }
  0x9d   : > { %v1628_v59 = vpack.c.bf16 %v1626_v54, %v1626_v54  ;;  %v1629_v60 = vpack.c.bf16 %v1627_v55, %v1627_v55  ;;  %v1641_v61 = vpack.c.bf16 %v1639_v56, %v1639_v56  ;;  %v1640_v62 = vpack.c.bf16 %v1638_v57, %v1638_v57  ;;  %v1749_v63 = vpop.permute.xlu1 %1748  ;;  %v1747_v0 = vpop.permute.xlu0 %1746  ;;  %9634 = vst [vmem:[#allocation19_spill] sm:$0xff] %v7588_v50 }
  0x9e   : > { %v1751_v2 = vsel %vm9477_vm7, %v1747_v0, %v1749_v63  ;;  %v1752_v5 = vsel %vm9477_vm7, %v1749_v63, %v1747_v0  ;;  %vm1037_vm7 = vcmp.lt.s32.totalorder %v1033_v19, 16 }
  0x9f   : > { %6593 = vmatprep.subr.msk.bf16.mxu0 %vm1648_vm10, %v1641_v61  ;;  %v1650_v6 = vsel %vm1648_vm10, %v1640_v62, 0  ;;  %v1754_v7 = vmul.f32 %v1751_v2, %v7519_v58  ;;  %v1700_v10 = vsel %vm1648_vm10, %v1628_v59, 0  ;;  %v1753_v11 = vmul.f32 %v1752_v5, %v7528_v1  ;;  %vm7574_vm15 = vmand %vm1035_vm11, %vm1037_vm7 }
  0xa0   : > { %1656 = vmatpush1.bf16.msra.mxu0 %v1650_v6  ;;  %v7583_v49 = vsel %vm7574_vm15, 1.0, %v9488_v26  ;;  %vm1029_vm7 = vmand %vm7407_vm5, %vm1003_vm0  ;;  %v1900_v62 = vpack.c.bf16 %v1896_v52, %v1896_v52  ;;  %v1899_v6 = vpack.c.bf16 %v7429_v32, %v7429_v32  ;;  %vm9485_vm11 = vcmp.lt.s32.totalorder %v7350_v4, 111 }
  0xa1   : > { %6595 = vmatprep.subr.msk.bf16.mxu0 %vm1648_vm10, %v1629_v60  ;;  %v1756_v13 = vpack.c.bf16 %v1754_v7, %v1754_v7  ;;  %v1814_v14 = vpop.permute.xlu1 %1813  ;;  %v1812_v15 = vpop.permute.xlu0 %1811  ;;  %v1755_v20 = vpack.c.bf16 %v1753_v11, %v1753_v11  ;;  %9633 = vst [vmem:[#allocation18_spill] sm:$0xff] %v7583_v49  ;;  %v6597_v60 = vld [vmem:[%s7525_s26 + $0x8] sm:$0xf]  ;;  %v7607_v2 = vsel %vm1029_vm7, 1.0, %v9488_v26  ;;  %vm1028_vm5 = vmand %vm7403_vm4, %vm1002_vm3  ;;  %v6600_v11 = vld [vmem:[%s7525_s26 + $0xc] sm:$0xf] }
  0xa2   : > { %v1816_v17 = vsel %vm9479_vm13, %v1812_v15, %v1814_v14  ;;  %v1817_v34 = vsel %vm9479_vm13, %v1814_v14, %v1812_v15  ;;  %vm9547_vm13 = vcmp.lt.s32.totalorder %v7350_v4, 112  ;;  %9635 = vst [vmem:[#allocation20_spill] sm:$0xff] %v7607_v2  ;;  %vm1041_vm4 = vmand %vm7574_vm15, %vm977_vm12  ;;  %v1907_v32 = vsel %vm1648_vm10, %v1899_v6, 0 }
  0xa3   : > { %6594 = vmatmul.mubr.msk.bf16.vlgmr.msra.gmra.mrb[0].mxu0 %vm1644_vm14, %v6592_v9  ;;  %v1819_v29 = vmul.f32 %v1816_v17, %v7547_v16  ;;  %v1763_v12 = vsel %vm1648_vm10, %v1755_v20, 0  ;;  %v1818_v36 = vmul.f32 %v1817_v34, %v7562_v33  ;;  %v6612_v9 = vld [vmem:[%s7525_s26 + $0x1c] sm:$0xf]  ;;  %v7640_v15 = vsel %vm1041_vm4, 1.0, %v9488_v26  ;;  %vm1040_vm12 = vmand %vm7569_vm2, %vm976_vm8 }
  0xa4   : > { %1706 = vmatpush1.bf16.msra.mxu0 %v1700_v10  ;;  %1737 = vmatprep.mubr.bf16.mxu0 %v9490_v23  ;;  %v7625_v10 = vsel %vm1028_vm5, 1.0, %v9488_v26  ;;  %9637 = vst [vmem:[#allocation22_spill] sm:$0xff] %v7640_v15  ;;  %v7653_v19 = vsel %vm1040_vm12, 1.0, %v9488_v26  ;;  %vm1055_vm8 = vmand %vm7574_vm15, %vm1003_vm0  ;;  %vm9650_vm15 = vcmp.lt.s32.totalorder %v7350_v4, 15  ;;  %vm9652_vm5 = vcmp.lt.s32.totalorder %v7350_v4, 1 }
  0xa5   : > { %6598 = vmatprep.subr.msk.bf16.mxu0 %vm1648_vm10, %v1756_v13  ;;  %v1958_v30 = vpop.permute.xlu1 %1957  ;;  %v1956_v31 = vpop.permute.xlu0 %1955  ;;  %v1821_v38 = vpack.c.bf16 %v1819_v29, %v1819_v29  ;;  %v1820_v51 = vpack.c.bf16 %v1818_v36, %v1818_v36  ;;  %9636 = vst [vmem:[#allocation21_spill] sm:$0xff] %v7625_v10  ;;  %9638 = vst [vmem:[#allocation23_spill] sm:$0xff] %v7653_v19  ;;  %vm1080_vm12 = vcmp.lt.s32.totalorder %v7350_v4, 64 }
  0xa6   : > { %v1961_v25 = vsel %vm9551_vm6, %v1958_v30, %v1956_v31  ;;  %v1960_v24 = vsel %vm9551_vm6, %v1956_v31, %v1958_v30  ;;  %v6603_v30 = vld [vmem:[%s7525_s26 + $0x10] sm:$0xf]  ;;  %vm1054_vm0 = vmand %vm7569_vm2, %vm1002_vm3  ;;  %vm9648_vm2 = vcmp.lt.s32.totalorder %v7350_v4, 17 }
  0xa7   : > { %v1828_v61 = vsel %vm1648_vm10, %v1820_v51, 0  ;;  %v1963_v7 = vmul.f32 %v1961_v25, %v7607_v2  ;;  %v1962_v13 = vmul.f32 %v1960_v24, %v7625_v10  ;;  %vm9649_vm3 = vmmov %vm9648_vm2 }
  0xa8   : > { %vm9651_vm7 = vmmov %vm9650_vm15 }
  0xa9   : > { %v2023_v40 = vpop.permute.xlu1 %2022  ;;  %v2021_v42 = vpop.permute.xlu0 %2020  ;;  %v1965_v14 = vpack.c.bf16 %v1963_v7, %v1963_v7  ;;  %v1964_v17 = vpack.c.bf16 %v1962_v13, %v1962_v13  ;;  %vm9653_vm4 = vmmov %vm9652_vm5 }
  0xaa   : > { %v2026_v37 = vsel %vm9486_vm9, %v2023_v40, %v2021_v42  ;;  %v2025_v20 = vsel %vm9486_vm9, %v2021_v42, %v2023_v40  ;;  %v7679_v40 = vsel %vm1054_vm0, 1.0, %v9488_v26 }
  0xab   : > { %6596 = vmatmul.mubr.msk.bf16.vlgmr.msra.gmra.mrb[4].mxu0 %vm1644_vm14, %v1630_v8  ;;  %v2028_v18 = vmul.f32 %v2026_v37, %v7640_v15  ;;  %v2027_v31 = vmul.f32 %v2025_v20, %v7653_v19  ;;  %v1972_v8 = vsel %vm1648_vm10, %v1964_v17, 0  ;;  %9640 = vst [vmem:[#allocation25_spill] sm:$0xff] %v7679_v40 }
  0xac   : > { %1769 = vmatpush1.bf16.msra.mxu0 %v1763_v12  ;;  %1800 = vmatprep.mubr.bf16.mxu0 %v9490_v23  ;;  %v7666_v12 = vsel %vm1055_vm8, 1.0, %v9488_v26 }
  0xad   : > { %6601 = vmatprep.subr.msk.bf16.mxu0 %vm1648_vm10, %v1821_v38  ;;  %v2088_v53 = vpop.permute.xlu1 %2087  ;;  %v2086_v54 = vpop.permute.xlu0 %2085  ;;  %v2030_v34 = vpack.c.bf16 %v2028_v18, %v2028_v18  ;;  %9639 = vst [vmem:[#allocation24_spill] sm:$0xff] %v7666_v12  ;;  %v2029_v39 = vpack.c.bf16 %v2027_v31, %v2027_v31 }
  0xae   : > { %v2090_v55 = vsel %vm9547_vm13, %v2086_v54, %v2088_v53  ;;  %v2091_v56 = vsel %vm9547_vm13, %v2088_v53, %v2086_v54  ;;  %v6609_v53 = vld [vmem:[%s7525_s26 + $0x18] sm:$0xf] }
  0xaf   : > { %v2093_v57 = vmul.f32 %v2091_v56, %v7583_v49  ;;  %v2092_v59 = vmul.f32 %v2090_v55, %v7588_v50  ;;  %v2037_v43 = vsel %vm1648_vm10, %v2029_v39, 0  ;;  %v6615_v55 = vld [vmem:[%s7525_s26 + $0x20] sm:$0xf]  ;;  %s9641_s26 = smov 15  }
  0xb1   : > { %v2095_v63 = vpack.c.bf16 %v2093_v57, %v2093_v57  ;;  %v2094_v0 = vpack.c.bf16 %v2092_v59, %v2092_v59  ;;  %v2153_v29 = vpop.permute.xlu1 %2152  ;;  %v2151_v35 = vpop.permute.xlu0 %2150 }
  0xb2   : > { %v2156_v36 = vsel %vm9485_vm11, %v2153_v29, %v2151_v35  ;;  %v2155_v42 = vsel %vm9485_vm11, %v2151_v35, %v2153_v29 }
  0xb3   : > { %6599 = vmatmul.mubr.msk.bf16.vlgmr.msra.gmra.mrb[8].mxu0 %vm1644_vm14, %v6597_v60  ;;  %6613 = vmatprep.subr.msk.bf16.mxu1 %vm1648_vm10, %v2095_v63  ;;  %v2102_v5 = vsel %vm1648_vm10, %v2094_v0, 0  ;;  %v2158_v38 = vmul.f32 %v2156_v36, %v7666_v12  ;;  %v2157_v48 = vmul.f32 %v2155_v42, %v7679_v40 }
  0xb4   : > { %1834 = vmatpush1.bf16.msra.mxu0 %v1828_v61  ;;  %1865 = vmatprep.mubr.bf16.mxu0 %v9490_v23 }
  0xb5   : > { %6604 = vmatprep.subr.msk.bf16.mxu0 %vm1648_vm10, %v1900_v62  ;;  %2108 = vmatpush1.bf16.msra.mxu1 %v2102_v5  ;;  %v2160_v51 = vpack.c.bf16 %v2158_v38, %v2158_v38  ;;  %v2159_v52 = vpack.c.bf16 %v2157_v48, %v2157_v48 }
  0xb7   : > { %v2167_v54 = vsel %vm1648_vm10, %v2159_v52, 0 }
  0xb8   : > { %6614 = vmatmul.mubr.msk.bf16.vlgmr.msra.gmra.mrb[0].mxu1 %vm1644_vm14, %v6612_v9 }
  0xb9   : > { %2291 = vmatprep.mubr.bf16.mxu1 %v9490_v23 }
  0xbb   : > { %6602 = vmatmul.mubr.msk.bf16.vlgmr.msra.gmra.mrb[12].mxu0 %vm1644_vm14, %v6600_v11 }
  0xbc   : > { %1913 = vmatpush1.bf16.msra.mxu0 %v1907_v32  ;;  %1944 = vmatprep.mubr.bf16.mxu0 %v9490_v23 }
  0xbd   : > { %6607 = vmatprep.subr.msk.bf16.mxu0 %vm1648_vm10, %v1965_v14 }
  0xc3   : > { %6605 = vmatmul.mubr.msk.bf16.vlgmr.msra.gmra.mrb[16].mxu0 %vm1644_vm14, %v6603_v30 }
  0xc4   : > { %1978 = vmatpush1.bf16.msra.mxu0 %v1972_v8  ;;  %2009 = vmatprep.mubr.bf16.mxu0 %v9490_v23 }
  0xc5   : > { %6610 = vmatprep.subr.msk.bf16.mxu0 %vm1648_vm10, %v2030_v34 }
  0xcb   : > { %6608 = vmatmul.mubr.msk.bf16.vlgmr.msra.gmra.mrb[20].mxu0 %vm1644_vm14, %v6606_v41 }
  0xcc   : > { %2043 = vmatpush1.bf16.msra.mxu0 %v2037_v43  ;;  %2074 = vmatprep.mubr.bf16.mxu0 %v9490_v23 }
  0xcd   : > { %6616 = vmatprep.subr.msk.bf16.mxu0 %vm1648_vm10, %v2160_v51  ;;  %vm9546_vm10 = vcmask 1043456  }
  0xd3   : > { %6611 = vmatmul.mubr.msk.bf16.vlgmr.msra.gmra.mrb[24].mxu0 %vm1644_vm14, %v6609_v53 }
  0xd4   : > { %2173 = vmatpush1.bf16.msra.mxu0 %v2167_v54  ;;  %2204 = vmatprep.mubr.bf16.mxu0 %v9490_v23 }
  0xdb   : > { %6617 = vmatmul.mubr.msk.bf16.vlgmr.msra.gmra.mrb[28].mxu0 %vm1644_vm14, %v6615_v55  ;;  %vm9545_vm14 = vcmask 64512  }
  0xdc   : > { %2341 = vmatprep.mubr.bf16.mxu0 %v9490_v23 }
 0x176   : > { %v1689_v56 = vpop.f32.mrb[0].mxu0 }
 0x177   : > { %v1691_v57 = vpop.f32.mrb[1].mxu0 }
 0x178   : > { %v1693_v59 = vpop.f32.mrb[2].mxu0 }
 0x179   : > { %v1694_v60 = vpop.f32.mrb[3].mxu0 }
 0x17e   : > { %v1739_v61 = vpop.f32.mrb[4].mxu0 }
 0x17f   : > { %v1740_v62 = vadd.f32 %v1739_v61, %v1689_v56  ;;  %v1741_v63 = vpop.f32.mrb[5].mxu0 }
 0x180   : > { %v1742_v0 = vadd.f32 %v1741_v63, %v1691_v57  ;;  %v1743_v25 = vpop.f32.mrb[6].mxu0 }
 0x181   : > { %v1744_v5 = vpop.f32.mrb[7].mxu0 }
 0x186   : > { %v1802_v6 = vpop.f32.mrb[8].mxu0 }
 0x187   : > { %v1809_v7 = vadd.f32 %v1802_v6, %v1740_v62  ;;  %v1804_v9 = vpop.f32.mrb[9].mxu0 }
 0x188   : > { %v1810_v24 = vadd.f32 %v1804_v9, %v1742_v0  ;;  %v1806_v11 = vpop.f32.mrb[10].mxu0  ;;  %v2219_v0 = vpop.permute.xlu0 %2218 }
 0x189   : > { %v1807_v32 = vpop.f32.mrb[11].mxu0 }
 0x18b   : > { %v2141_v13 = vpop.f32.mrb[0].mxu1 }
 0x18c   : > { %v2143_v14 = vpop.f32.mrb[1].mxu1 }
 0x18d   : > { %v2145_v37 = vpop.f32.mrb[2].mxu1 }
 0x18e   : > { %v1867_v17 = vpop.f32.mrb[12].mxu0  ;;  %v2146_v18 = vpop.f32.mrb[3].mxu1 }
 0x18f   : > { %v1874_v20 = vadd.f32 %v1867_v17, %v1809_v7  ;;  %v1869_v29 = vpop.f32.mrb[13].mxu0 }
 0x190   : > { %v1875_v35 = vadd.f32 %v1869_v29, %v1810_v24  ;;  %v1871_v30 = vpop.f32.mrb[14].mxu0 }
 0x191   : > { %v1872_v31 = vpop.f32.mrb[15].mxu0 }
 0x196   : > { %v1946_v34 = vpop.f32.mrb[16].mxu0 }
 0x197   : > { %v1953_v8 = vadd.f32 %v1946_v34, %v1874_v20  ;;  %v1948_v36 = vpop.f32.mrb[17].mxu0 }
 0x198   : > { %v1954_v39 = vadd.f32 %v1948_v36, %v1875_v35  ;;  %v1950_v38 = vpop.f32.mrb[18].mxu0 }
 0x199   : > { %v1951_v42 = vpop.f32.mrb[19].mxu0 }
 0x19e   : > { %v2011_v41 = vpop.f32.mrb[20].mxu0 }
 0x19f   : > { %v2018_v43 = vadd.f32 %v2011_v41, %v1953_v8  ;;  %v2013_v48 = vpop.f32.mrb[21].mxu0 }
 0x1a0   : > { %v2019_v51 = vadd.f32 %v2013_v48, %v1954_v39  ;;  %v2015_v52 = vpop.f32.mrb[22].mxu0 }
 0x1a1   : > { %v2016_v53 = vpop.f32.mrb[23].mxu0 }
 0x1a6   : > { %v2076_v54 = vpop.f32.mrb[24].mxu0 }
 0x1a7   : > { %v2083_v55 = vadd.f32 %v2076_v54, %v2018_v43  ;;  %v2078_v56 = vpop.f32.mrb[25].mxu0 }
 0x1a8   : > { %v2084_v57 = vadd.f32 %v2078_v56, %v2019_v51  ;;  %v2080_v59 = vpop.f32.mrb[26].mxu0 }
 0x1a9   : > { %v2148_v60 = vadd.f32 %v2141_v13, %v2083_v55  ;;  %v2081_v61 = vpop.f32.mrb[27].mxu0 }
 0x1aa   : > { %v2149_v62 = vadd.f32 %v2143_v14, %v2084_v57 }
 0x1ae   : > { %v2206_v63 = vpop.f32.mrb[28].mxu0 }
 0x1af   : > { %v2213_v25 = vadd.f32 %v2206_v63, %v2148_v60  ;;  %v2208_v5 = vpop.f32.mrb[29].mxu0 }
 0x1b0   : > { %v2214_v6 = vadd.f32 %v2208_v5, %v2149_v62  ;;  %v2210_v7 = vpop.f32.mrb[30].mxu0 }
 0x1b1   : > { %v2221_v9 = vadd.f32 %v2219_v0, %v2213_v25  ;;  %v2211_v24 = vpop.f32.mrb[31].mxu0 }
 0x1b2   : > { %v2222_v11 = vadd.f32 %v2219_v0, %v2214_v6 }
 0x1b3   : > { %v2223_v32 = vmax.f32 %v2221_v9, 0.0 }
 0x1b4   : > { %v2224_v37 = vmax.f32 %v2222_v11, 0.0 }
 0x1b5   : > { %2225 = vrot.lane.b32.xlu0 %v2223_v32, %s9483_s25  ;;  %2236 = vrot.lane.b32.xlu1 %v2223_v32, %s9480_s2  ;;  %v2478_v57 = vmul.f32 %v2223_v32, %v7416_v27 }
 0x1b6   : > { %v2479_v63 = vmul.f32 %v2224_v37, %v7421_v28 }
 0x1b7   : > { %v2480_v24 = vpack.c.bf16 %v2478_v57, %v2478_v57 }
 0x1b9   : > { %2350 = vrot.lane.b32.xlu0 %v2223_v32, %s9641_s26  ;;  %2238 = vrot.lane.b32.xlu1 %v2224_v37, %s9480_s2  ;;  %s882_s2 = scalar_lea.vmem %s9645_s4, %s7436_s27  ;;  %s9662_s4 = smov 121  }
 0x1ba   : > { %v2792_v13 = vld [vmem:[%s882_s2] sm:$0xff]  ;;  %s9647_s2 = sld [smem:[#allocation45_spill]] }
 0x1bd   : > { %2414 = vrot.lane.b32.xlu0 %v2223_v32, %s9642_s28  ;;  %2227 = vrot.lane.b32.xlu1 %v2224_v37, %s9483_s25 }
 0x1c0   : > { %s7726_s25 = scalar_lea.vmem %s9647_s2, %s7495_s22  ;;  %s9519_s2 = smov 121  }
 0x1c1   : > { %2536 = vrot.lane.b32.xlu0 %v2223_v32, %s9643_s29  ;;  %2352 = vrot.lane.b32.xlu1 %v2224_v37, %s9641_s26  ;;  %v6618_v51 = vld [vmem:[%s7726_s25 + $0x4] sm:$0xf]  ;;  %v2235_v0 = vld [vmem:[%s7726_s25] sm:$0xf] }
 0x1c5   : > { %2600 = vrot.lane.b32.xlu0 %v2223_v32, %s9644_s0  ;;  %2416 = vrot.lane.b32.xlu1 %v2224_v37, %s9642_s28 }
 0x1c9   : > { %2664 = vrot.lane.b32.xlu0 %v2223_v32, %s9508_s24  ;;  %2538 = vrot.lane.b32.xlu1 %v2224_v37, %s9643_s29 }
 0x1cd   : > { %2728 = vrot.lane.b32.xlu0 %v2223_v32, %s9646_s20  ;;  %2602 = vrot.lane.b32.xlu1 %v2224_v37, %s9644_s0 }
 0x1d1   : > { %2795 = vperm.xlu0 %7115, %v2792_v13   ;;  %2666 = vrot.lane.b32.xlu1 %v2224_v37, %s9508_s24  ;;  %v2481_v13 = vpack.c.bf16 %v2479_v63, %v2479_v63 }
 0x1d5   : > { %2730 = vrot.lane.b32.xlu1 %v2224_v37, %s9646_s20 }
 0x227   : > { %v2226_v14 = vpop.permute.xlu0 %2225  ;;  %v2237_v17 = vpop.permute.xlu1 %2236 }
 0x22b   : > { %v2351_v18 = vpop.permute.xlu0 %2350  ;;  %v2239_v20 = vpop.permute.xlu1 %2238 }
 0x22c   : > { %v2240_v29 = vsel %vm9487_vm1, %v2237_v17, %v2239_v20  ;;  %v2241_v35 = vsel %vm9487_vm1, %v2239_v20, %v2237_v17 }
 0x22d   : > { %v2242_v30 = vmul.f32 %v2241_v35, %v7491_v47  ;;  %v2243_v31 = vmul.f32 %v2240_v29, %v7486_v46 }
 0x22f   : > { %v2244_v34 = vpack.c.bf16 %v2242_v30, %v2242_v30  ;;  %v2245_v8 = vpack.c.bf16 %v2243_v31, %v2243_v31  ;;  %v2415_v36 = vpop.permute.xlu0 %2414  ;;  %v2228_v39 = vpop.permute.xlu1 %2227 }
 0x230   : > { %v2229_v38 = vsel %vm9648_vm2, %v2226_v14, %v2228_v39  ;;  %v2230_v42 = vsel %vm9649_vm3, %v2228_v39, %v2226_v14  ;;  %v6623_v14 = vld [vmem:[%s7726_s25 + $0x8] sm:$0xf]  ;;  %v6626_v39 = vld [vmem:[%s7726_s25 + $0xc] sm:$0xf] }
 0x231   : > { %v2231_v41 = vmul.f32 %v2230_v42, %v7477_v44  ;;  %v2232_v43 = vmul.f32 %v2229_v38, %v7481_v45  ;;  %6619 = vmatprep.subr.msk.bf16.mxu1 %vm9546_vm10, %v2245_v8  ;;  %v2254_v48 = vsel %vm9546_vm10, %v2244_v34, 0 }
 0x232   : > { %2260 = vmatpush1.bf16.msra.mxu1 %v2254_v48 }
 0x233   : > { %v2233_v52 = vpack.c.bf16 %v2231_v41, %v2231_v41  ;;  %v2234_v53 = vpack.c.bf16 %v2232_v43, %v2232_v43  ;;  %v2353_v54 = vpop.permute.xlu1 %2352  ;;  %v2537_v59 = vpop.permute.xlu0 %2536 }
 0x234   : > { %v2354_v55 = vsel %vm9650_vm15, %v2351_v18, %v2353_v54  ;;  %v2355_v56 = vsel %vm9651_vm7, %v2353_v54, %v2351_v18 }
 0x235   : > { %v2356_v60 = vmul.f32 %v2355_v56, %v7528_v1  ;;  %v2357_v61 = vmul.f32 %v2354_v55, %v7519_v58  ;;  %6620 = vmatmul.mubr.msk.bf16.vlgmr.msra.gmra.mrb[4].mxu1 %vm9545_vm14, %v6618_v51  ;;  %6621 = vmatprep.subr.msk.bf16.mxu0 %vm9546_vm10, %v2234_v53  ;;  %v2304_v62 = vsel %vm9546_vm10, %v2233_v52, 0  ;;  %v6629_v55 = vld [vmem:[%s7726_s25 + $0x10] sm:$0xf] }
 0x236   : > { %2310 = vmatpush1.bf16.msra.mxu0 %v2304_v62  ;;  %2403 = vmatprep.mubr.bf16.mxu1 %v9490_v23 }
 0x237   : > { %v2358_v25 = vpack.c.bf16 %v2356_v60, %v2356_v60  ;;  %v2359_v5 = vpack.c.bf16 %v2357_v61, %v2357_v61  ;;  %v2417_v6 = vpop.permute.xlu1 %2416  ;;  %v2601_v17 = vpop.permute.xlu0 %2600 }
 0x238   : > { %v2418_v7 = vsel %vm9652_vm5, %v2415_v36, %v2417_v6  ;;  %v2419_v9 = vsel %vm9653_vm4, %v2417_v6, %v2415_v36  ;;  %v2488_v36 = vsel %vm9546_vm10, %v2480_v24, 0 }
 0x239   : > { %v2420_v11 = vmul.f32 %v2419_v9, %v7562_v33  ;;  %v2421_v32 = vmul.f32 %v2418_v7, %v7547_v16  ;;  %6622 = vmatmul.mubr.msk.bf16.vlgmr.msra.gmra.mrb[32].mxu0 %vm9545_vm14, %v2235_v0  ;;  %6624 = vmatprep.subr.msk.bf16.mxu1 %vm9546_vm10, %v2359_v5  ;;  %v2366_v37 = vsel %vm9546_vm10, %v2358_v25, 0  ;;  %v6632_v25 = vld [vmem:[%s7726_s25 + $0x14] sm:$0xf] }
 0x23a   : > { %2372 = vmatpush1.bf16.msra.mxu1 %v2366_v37  ;;  %2467 = vmatprep.mubr.bf16.mxu0 %v9490_v23 }
 0x23b   : > { %v2422_v18 = vpack.c.bf16 %v2420_v11, %v2420_v11  ;;  %v2423_v20 = vpack.c.bf16 %v2421_v32, %v2421_v32  ;;  %6630 = vmatprep.subr.msk.bf16.mxu1 %vm9546_vm10, %v2481_v13  ;;  %v2539_v29 = vpop.permute.xlu1 %2538  ;;  %v2665_v51 = vpop.permute.xlu0 %2664 }
 0x23c   : > { %v2540_v35 = vsel %vm9551_vm6, %v2537_v59, %v2539_v29  ;;  %v2541_v30 = vsel %vm9551_vm6, %v2539_v29, %v2537_v59  ;;  %v6638_v29 = vld [vmem:[%s7726_s25 + $0x1c] sm:$0xf] }
 0x23d   : > { %v2542_v31 = vmul.f32 %v2540_v35, %v7625_v10  ;;  %v2543_v34 = vmul.f32 %v2541_v30, %v7607_v2  ;;  %6625 = vmatmul.mubr.msk.bf16.vlgmr.msra.gmra.mrb[8].mxu1 %vm9545_vm14, %v6623_v14  ;;  %6627 = vmatprep.subr.msk.bf16.mxu0 %vm9546_vm10, %v2423_v20  ;;  %v2430_v8 = vsel %vm9546_vm10, %v2422_v18, 0  ;;  %v6635_v14 = vld [vmem:[%s7726_s25 + $0x18] sm:$0xf]  ;;  %v6641_v35 = vld [vmem:[%s7726_s25 + $0x20] sm:$0xf]  ;;  %s9514_s25 = smov 8  }
 0x23e   : > { %2436 = vmatpush1.bf16.msra.mxu0 %v2430_v8  ;;  %2494 = vmatpush1.bf16.msra.mxu1 %v2488_v36 }
 0x23f   : > { %v2544_v38 = vpack.c.bf16 %v2542_v31, %v2542_v31  ;;  %v2545_v42 = vpack.c.bf16 %v2543_v34, %v2543_v34  ;;  %v2603_v41 = vpop.permute.xlu1 %2602  ;;  %2525 = vmatprep.mubr.bf16.mxu1 %v9490_v23  ;;  %v2729_v5 = vpop.permute.xlu0 %2728 }
 0x240   : > { %v2604_v43 = vsel %vm9486_vm9, %v2601_v17, %v2603_v41  ;;  %v2605_v48 = vsel %vm9486_vm9, %v2603_v41, %v2601_v17 }
 0x241   : > { %v2606_v52 = vmul.f32 %v2604_v43, %v7653_v19  ;;  %v2607_v53 = vmul.f32 %v2605_v48, %v7640_v15  ;;  %6628 = vmatmul.mubr.msk.bf16.vlgmr.msra.gmra.mrb[36].mxu0 %vm9545_vm14, %v6626_v39  ;;  %6633 = vmatprep.subr.msk.bf16.mxu0 %vm9546_vm10, %v2545_v42  ;;  %v2552_v54 = vsel %vm9546_vm10, %v2544_v38, 0 }
 0x242   : > { %2558 = vmatpush1.bf16.msra.mxu0 %v2552_v54  ;;  %2589 = vmatprep.mubr.bf16.mxu0 %v9490_v23 }
 0x243   : > { %v2608_v56 = vpack.c.bf16 %v2606_v52, %v2606_v52  ;;  %v2609_v57 = vpack.c.bf16 %v2607_v53, %v2607_v53  ;;  %v2667_v59 = vpop.permute.xlu1 %2666 }
 0x244   : > { %v2668_v60 = vsel %vm9547_vm13, %v2665_v51, %v2667_v59  ;;  %v2669_v61 = vsel %vm9547_vm13, %v2667_v59, %v2665_v51 }
 0x245   : > { %v2670_v62 = vmul.f32 %v2668_v60, %v7588_v50  ;;  %v2671_v63 = vmul.f32 %v2669_v61, %v7583_v49  ;;  %6631 = vmatmul.mubr.msk.bf16.vlgmr.msra.gmra.mrb[12].mxu1 %vm9545_vm14, %v6629_v55  ;;  %6636 = vmatprep.subr.msk.bf16.mxu1 %vm9546_vm10, %v2609_v57  ;;  %v2616_v0 = vsel %vm9546_vm10, %v2608_v56, 0 }
 0x246   : > { %2622 = vmatpush1.bf16.msra.mxu1 %v2616_v0  ;;  %2653 = vmatprep.mubr.bf16.mxu1 %v9490_v23 }
 0x247   : > { %v2672_v6 = vpack.c.bf16 %v2670_v62, %v2670_v62  ;;  %v2673_v7 = vpack.c.bf16 %v2671_v63, %v2671_v63  ;;  %v2731_v9 = vpop.permute.xlu1 %2730 }
 0x248   : > { %v2732_v24 = vsel %vm9485_vm11, %v2729_v5, %v2731_v9  ;;  %v2733_v11 = vsel %vm9485_vm11, %v2731_v9, %v2729_v5 }
 0x249   : > { %v2734_v32 = vmul.f32 %v2732_v24, %v7679_v40  ;;  %v2735_v37 = vmul.f32 %v2733_v11, %v7666_v12  ;;  %6634 = vmatmul.mubr.msk.bf16.vlgmr.msra.gmra.mrb[40].mxu0 %vm9545_vm14, %v6632_v25  ;;  %6639 = vmatprep.subr.msk.bf16.mxu0 %vm9546_vm10, %v2673_v7  ;;  %v2680_v13 = vsel %vm9546_vm10, %v2672_v6, 0 }
 0x24a   : > { %2686 = vmatpush1.bf16.msra.mxu0 %v2680_v13  ;;  %2717 = vmatprep.mubr.bf16.mxu0 %v9490_v23 }
 0x24b   : > { %v2736_v17 = vpack.c.bf16 %v2734_v32, %v2734_v32  ;;  %v2737_v18 = vpack.c.bf16 %v2735_v37, %v2735_v37 }
 0x24d   : > { %6637 = vmatmul.mubr.msk.bf16.vlgmr.msra.gmra.mrb[16].mxu1 %vm9545_vm14, %v6635_v14  ;;  %6642 = vmatprep.subr.msk.bf16.mxu1 %vm9546_vm10, %v2737_v18  ;;  %v2744_v20 = vsel %vm9546_vm10, %v2736_v17, 0 }
 0x24e   : > { %2750 = vmatpush1.bf16.msra.mxu1 %v2744_v20  ;;  %2781 = vmatprep.mubr.bf16.mxu1 %v9490_v23 }
 0x251   : > { %6640 = vmatmul.mubr.msk.bf16.vlgmr.msra.gmra.mrb[44].mxu0 %vm9545_vm14, %v6638_v29 }
 0x255   : > { %6643 = vmatmul.mubr.msk.bf16.vlgmr.msra.gmra.mrb[20].mxu1 %vm9545_vm14, %v6641_v35 }
 0x256   : > { %2934 = vmatprep.mubr.bf16.mxu1 %v9490_v23 }
 0x308   : > { %v2293_v30 = vpop.f32.mrb[4].mxu1 }
 0x309   : > { %v2295_v31 = vpop.f32.mrb[5].mxu1 }
 0x30a   : > { %v2297_v34 = vpop.f32.mrb[6].mxu1 }
 0x30b   : > { %v2298_v8 = vpop.f32.mrb[7].mxu1 }
 0x30c   : > { %v2343_v36 = vpop.f32.mrb[32].mxu0 }
 0x30d   : > { %v2344_v39 = vadd.f32 %v2343_v36, %v2293_v30  ;;  %v2345_v38 = vpop.f32.mrb[33].mxu0 }
 0x30e   : > { %v2346_v42 = vadd.f32 %v2345_v38, %v2295_v31  ;;  %v2347_v41 = vpop.f32.mrb[34].mxu0 }
 0x30f   : > { %v2348_v43 = vpop.f32.mrb[35].mxu0  ;;  %v7820_v41 = vand.u32 7, %v7350_v4 }
 0x310   : > { %v2405_v48 = vpop.f32.mrb[8].mxu1 }
 0x311   : > { %v2412_v51 = vadd.f32 %v2405_v48, %v2344_v39  ;;  %v2407_v52 = vpop.f32.mrb[9].mxu1 }
 0x312   : > { %v2413_v53 = vadd.f32 %v2407_v52, %v2346_v42  ;;  %v2409_v54 = vpop.f32.mrb[10].mxu1  ;;  %v7817_v42 = vshra.s32 %v7350_v4, 3 }
 0x313   : > { %v2410_v55 = vpop.f32.mrb[11].mxu1 }
 0x314   : > { %v2469_v56 = vpop.f32.mrb[36].mxu0  ;;  %v1207_v54 = vmul.u32 2, %v7817_v42  ;;  %v1211_v55 = vmul.u32 2, %v7820_v41 }
 0x315   : > { %v2476_v57 = vadd.f32 %v2469_v56, %v2412_v51  ;;  %v2471_v59 = vpop.f32.mrb[37].mxu0  ;;  %v2796_v51 = vpop.permute.xlu0 %2795 }
 0x316   : > { %v2477_v60 = vadd.f32 %v2471_v59, %v2413_v53  ;;  %v2473_v61 = vpop.f32.mrb[38].mxu0 }
 0x317   : > { %v2474_v62 = vpop.f32.mrb[39].mxu0  ;;  %v7828_v61 = vadd.s32 136, %v7348_v3 }
 0x318   : > { %v2527_v63 = vpop.f32.mrb[12].mxu1  ;;  %v1209_v62 = vmul.u32 16, %v1207_v54  ;;  %v8040_v54 = vadd.s32 248, %v7348_v3 }
 0x319   : > { %v2534_v0 = vadd.f32 %v2527_v63, %v2476_v57  ;;  %v2529_v25 = vpop.f32.mrb[13].mxu1 }
 0x31a   : > { %v2535_v5 = vadd.f32 %v2529_v25, %v2477_v60  ;;  %v2531_v6 = vpop.f32.mrb[14].mxu1  ;;  %v7825_v60 = vadd.s32 128, %v7348_v3  ;;  %v7835_v25 = vadd.s32 %v1211_v55, %v1209_v62  ;;  %v8043_v55 = vadd.s32 112, %v7348_v3 }
 0x31b   : > { %v2532_v7 = vpop.f32.mrb[15].mxu1  ;;  %v7849_v6 = vadd.s32 144, %v7348_v3 }
 0x31c   : > { %v2591_v9 = vpop.f32.mrb[40].mxu0  ;;  %vm1247_vm8 = vcmp.eq.s32.totalorder %v7825_v60, %v7835_v25  ;;  %vm1249_vm0 = vcmp.eq.s32.totalorder %v7828_v61, %v7835_v25  ;;  %vm1215_vm3 = vcmp.eq.s32.totalorder %v7348_v3, %v7835_v25  ;;  %v7856_v7 = vadd.s32 152, %v7348_v3 }
 0x31d   : > { %v2598_v24 = vadd.f32 %v2591_v9, %v2534_v0  ;;  %v2593_v11 = vpop.f32.mrb[41].mxu0  ;;  %vm1311_vm2 = vmand %vm1080_vm12, %vm1247_vm8  ;;  %v7863_v9 = vadd.s32 16, %v7348_v3  ;;  %vm1251_vm8 = vcmp.eq.s32.totalorder %v7849_v6, %v7835_v25 }
 0x31e   : > { %v2599_v32 = vadd.f32 %v2593_v11, %v2535_v5  ;;  %v2595_v37 = vpop.f32.mrb[42].mxu0  ;;  %v7838_v5 = vadd.s32 8, %v7348_v3  ;;  %vm1313_vm15 = vmand %vm1080_vm12, %vm1249_vm0  ;;  %v7871_v11 = vadd.s32 24, %v7348_v3 }
 0x31f   : > { %v2596_v13 = vpop.f32.mrb[43].mxu0  ;;  %vm6660_vm5 = vmpackc.low %vm1313_vm15, %vm1311_vm2  ;;  %vm1253_vm2 = vcmp.eq.s32.totalorder %v7856_v7, %v7835_v25  ;;  %v7886_v37 = vadd.s32 168, %v7348_v3 }
 0x320   : > { %v2655_v14 = vpop.f32.mrb[16].mxu1  ;;  %vm1217_vm7 = vcmp.eq.s32.totalorder %v7838_v5, %v7835_v25  ;;  %vm1279_vm4 = vmand %vm1080_vm12, %vm1215_vm3  ;;  %v7893_v13 = vadd.s32 32, %v7348_v3 }
 0x321   : > { %v2662_v17 = vadd.f32 %v2655_v14, %v2598_v24  ;;  %v2657_v18 = vpop.f32.mrb[17].mxu1  ;;  %v9525_v24 = vmov 1.0|1.0   ;;  %vm1281_vm0 = vmand %vm1080_vm12, %vm1217_vm7  ;;  %v7901_v14 = vadd.s32 40, %v7348_v3 }
 0x322   : > { %v2663_v20 = vadd.f32 %v2657_v18, %v2599_v32  ;;  %v2659_v29 = vpop.f32.mrb[18].mxu1  ;;  %6968 = vmatprep.subr.msk.bf16.mxu0 %vm6660_vm5, %v9525_v24  ;;  %vm6644_vm15 = vmpackc.low %vm1281_vm0, %vm1279_vm4  ;;  %v7878_v32 = vadd.s32 160, %v7348_v3  ;;  %vm1219_vm5 = vcmp.eq.s32.totalorder %v7863_v9, %v7835_v25  ;;  %vm1221_vm4 = vcmp.eq.s32.totalorder %v7871_v11, %v7835_v25 }
 0x323   : > { %v2660_v35 = vpop.f32.mrb[19].mxu1  ;;  %6969 = vmatpush3.bf16.msk.msra.mxu0 %vm6644_vm15, %v9525_v24  ;;  %vm1315_vm3 = vmand %vm1080_vm12, %vm1251_vm8  ;;  %v7916_v18 = vadd.s32 184, %v7348_v3  ;;  %v7931_v29 = vadd.s32 56, %v7348_v3 }
 0x324   : > { %v2719_v30 = vpop.f32.mrb[44].mxu0  ;;  %vm1317_vm7 = vmand %vm1080_vm12, %vm1253_vm2  ;;  %vm1255_vm15 = vcmp.eq.s32.totalorder %v7878_v32, %v7835_v25  ;;  %v7938_v35 = vadd.s32 192, %v7348_v3 }
 0x325   : > { %v2726_v31 = vadd.f32 %v2719_v30, %v2662_v17  ;;  %v2721_v34 = vpop.f32.mrb[45].mxu0  ;;  %vm6662_vm0 = vmpackc.low %vm1317_vm7, %vm1315_vm3  ;;  %vm1257_vm3 = vcmp.eq.s32.totalorder %v7886_v37, %v7835_v25  ;;  %v7908_v17 = vadd.s32 176, %v7348_v3  ;;  %v7946_v30 = vadd.s32 200, %v7348_v3 }
 0x326   : > { %v2727_v8 = vadd.f32 %v2721_v34, %v2663_v20  ;;  %v2723_v36 = vpop.f32.mrb[46].mxu0  ;;  %6970 = vmatprep.subr.msk.bf16.mxu0 %vm6662_vm0, %v9525_v24  ;;  %vm1283_vm8 = vmand %vm1080_vm12, %vm1219_vm5  ;;  %vm1223_vm0 = vcmp.eq.s32.totalorder %v7893_v13, %v7835_v25  ;;  %v7923_v20 = vadd.s32 48, %v7348_v3  ;;  %v7961_v34 = vadd.s32 72, %v7348_v3 }
 0x327   : > { %v2724_v39 = vpop.f32.mrb[47].mxu0  ;;  %vm1285_vm2 = vmand %vm1080_vm12, %vm1221_vm4  ;;  %v7976_v36 = vadd.s32 216, %v7348_v3 }
 0x328   : > { %v2783_v38 = vpop.f32.mrb[20].mxu1  ;;  %vm6646_vm7 = vmpackc.low %vm1285_vm2, %vm1283_vm8  ;;  %vm1225_vm8 = vcmp.eq.s32.totalorder %v7901_v14, %v7835_v25  ;;  %v7983_v39 = vadd.s32 80, %v7348_v3 }
 0x329   : > { %v2790_v43 = vadd.f32 %v2783_v38, %v2726_v31  ;;  %v2785_v48 = vpop.f32.mrb[21].mxu1  ;;  %6971 = vmatpush3.bf16.msk.msra.mxu0 %vm6646_vm7, %v9525_v24  ;;  %vm1319_vm5 = vmand %vm1080_vm12, %vm1255_vm15  ;;  %vm1259_vm7 = vcmp.eq.s32.totalorder %v7908_v17, %v7835_v25  ;;  %v7953_v31 = vadd.s32 64, %v7348_v3  ;;  %v7991_v38 = vadd.s32 88, %v7348_v3 }
 0x32a   : > { %v2791_v52 = vadd.f32 %v2785_v48, %v2727_v8  ;;  %v2787_v53 = vpop.f32.mrb[22].mxu1  ;;  %vm1321_vm4 = vmand %vm1080_vm12, %vm1257_vm3  ;;  %v7968_v8 = vadd.s32 208, %v7348_v3  ;;  %v8016_v48 = vadd.s32 232, %v7348_v3 }
 0x32b   : > { %v2798_v56 = vadd.f32 %v2796_v51, %v2790_v43  ;;  %v2788_v57 = vpop.f32.mrb[23].mxu1  ;;  %vm6664_vm2 = vmpackc.low %vm1321_vm4, %vm1319_vm5  ;;  %vm1261_vm5 = vcmp.eq.s32.totalorder %v7916_v18, %v7835_v25  ;;  %vm1237_vm9 = vcmp.eq.s32.totalorder %v7991_v38, %v7835_v25  ;;  %v8013_v43 = vadd.s32 224, %v7348_v3 }
 0x32c   : > { %v2799_v59 = vadd.f32 %v2796_v51, %v2791_v52  ;;  %6972 = vmatprep.subr.msk.bf16.mxu0 %vm6664_vm2, %v9525_v24  ;;  %vm1287_vm15 = vmand %vm1080_vm12, %vm1223_vm0  ;;  %vm1227_vm2 = vcmp.eq.s32.totalorder %v7923_v20, %v7835_v25  ;;  %v8019_v51 = vadd.s32 96, %v7348_v3  ;;  %v8022_v52 = vadd.s32 104, %v7348_v3 }
 0x32d   : > { %v7830_v63 = vmax.f32 %v2798_v56, 0.0  ;;  %vm1289_vm3 = vmand %vm1080_vm12, %vm1225_vm8  ;;  %v8037_v53 = vadd.s32 240, %v7348_v3  ;;  %v8051_v56 = vadd.s32 120, %v7348_v3 }
 0x32e   : > { %v7832_v0 = vmax.f32 %v2799_v59, 0.0  ;;  %vm6648_vm4 = vmpackc.low %vm1289_vm3, %vm1287_vm15  ;;  %vm1229_vm15 = vcmp.eq.s32.totalorder %v7931_v29, %v7835_v25 }
 0x32f   : > { %2802 = vrot.lane.b32.xlu1 %v7830_v63, %s9643_s29  ;;  %6973 = vmatpush3.bf16.msk.msra.mxu0 %vm6648_vm4, %v9525_v24  ;;  %vm1323_vm0 = vmand %vm1080_vm12, %vm1259_vm7  ;;  %vm1263_vm4 = vcmp.eq.s32.totalorder %v7938_v35, %v7835_v25 }
 0x330   : > { %2804 = vrot.lane.b32.xlu0 %v7832_v0, %s9643_s29  ;;  %vm1325_vm8 = vmand %vm1080_vm12, %vm1261_vm5 }
 0x331   : > { %vm6666_vm3 = vmpackc.low %vm1325_vm8, %vm1323_vm0  ;;  %vm1265_vm0 = vcmp.eq.s32.totalorder %v7946_v30, %v7835_v25 }
 0x332   : > { %6974 = vmatprep.subr.msk.bf16.mxu0 %vm6666_vm3, %v9525_v24  ;;  %vm1291_vm7 = vmand %vm1080_vm12, %vm1227_vm2  ;;  %vm1231_vm3 = vcmp.eq.s32.totalorder %v7953_v31, %v7835_v25 }
 0x333   : > { %vm1293_vm5 = vmand %vm1080_vm12, %vm1229_vm15 }
 0x334   : > { %vm6650_vm8 = vmpackc.low %vm1293_vm5, %vm1291_vm7  ;;  %vm1233_vm7 = vcmp.eq.s32.totalorder %v7961_v34, %v7835_v25 }
 0x335   : > { %6975 = vmatpush3.bf16.msk.msra.mxu0 %vm6650_vm8, %v9525_v24  ;;  %vm1327_vm2 = vmand %vm1080_vm12, %vm1263_vm4  ;;  %vm1267_vm8 = vcmp.eq.s32.totalorder %v7968_v8, %v7835_v25 }
 0x336   : > { %vm1329_vm15 = vmand %vm1080_vm12, %vm1265_vm0 }
 0x337   : > { %vm6668_vm5 = vmpackc.low %vm1329_vm15, %vm1327_vm2  ;;  %vm1269_vm2 = vcmp.eq.s32.totalorder %v7976_v36, %v7835_v25 }
 0x338   : > { %6976 = vmatprep.subr.msk.bf16.mxu0 %vm6668_vm5, %v9525_v24  ;;  %vm1295_vm4 = vmand %vm1080_vm12, %vm1231_vm3  ;;  %vm1235_vm3 = vcmp.eq.s32.totalorder %v7983_v39, %v7835_v25 }
 0x339   : > { %vm1297_vm0 = vmand %vm1080_vm12, %vm1233_vm7 }
 0x33a   : > { %vm6652_vm15 = vmpackc.low %vm1297_vm0, %vm1295_vm4 }
 0x33b   : > { %6977 = vmatpush3.bf16.msk.msra.mxu0 %vm6652_vm15, %v9525_v24  ;;  %vm1331_vm5 = vmand %vm1080_vm12, %vm1267_vm8  ;;  %vm1239_vm8 = vcmp.eq.s32.totalorder %v8019_v51, %v7835_v25  ;;  %vm1241_vm15 = vcmp.eq.s32.totalorder %v8022_v52, %v7835_v25 }
 0x33c   : > { %vm1333_vm11 = vmand %vm1080_vm12, %vm1269_vm2 }
 0x33d   : > { %vm6670_vm1 = vmpackc.low %vm1333_vm11, %vm1331_vm5 }
 0x33e   : > { %6978 = vmatprep.subr.msk.bf16.mxu0 %vm6670_vm1, %v9525_v24  ;;  %vm1299_vm7 = vmand %vm1080_vm12, %vm1235_vm3  ;;  %vm1271_vm1 = vcmp.eq.s32.totalorder %v8013_v43, %v7835_v25 }
 0x33f   : > { %vm1301_vm4 = vmand %vm1080_vm12, %vm1237_vm9  ;;  %vm1273_vm9 = vcmp.eq.s32.totalorder %v8016_v48, %v7835_v25 }
 0x340   : > { %vm6654_vm0 = vmpackc.low %vm1301_vm4, %vm1299_vm7  ;;  %vm1275_vm7 = vcmp.eq.s32.totalorder %v8037_v53, %v7835_v25 }
 0x341   : > { %6979 = vmatpush3.bf16.msk.msra.mxu0 %vm6654_vm0, %v9525_v24  ;;  %vm1335_vm11 = vmand %vm1080_vm12, %vm1271_vm1  ;;  %vm1277_vm0 = vcmp.eq.s32.totalorder %v8040_v54, %v7835_v25 }
 0x342   : > { %vm1337_vm2 = vmand %vm1080_vm12, %vm1273_vm9 }
 0x343   : > { %vm6672_vm5 = vmpackc.low %vm1337_vm2, %vm1335_vm11  ;;  %vm1243_vm11 = vcmp.eq.s32.totalorder %v8043_v55, %v7835_v25  ;;  %vm1245_vm2 = vcmp.eq.s32.totalorder %v8051_v56, %v7835_v25 }
 0x344   : > { %6980 = vmatprep.subr.msk.bf16.mxu0 %vm6672_vm5, %v9525_v24  ;;  %vm1303_vm3 = vmand %vm1080_vm12, %vm1239_vm8 }
 0x345   : > { %vm1305_vm4 = vmand %vm1080_vm12, %vm1241_vm15 }
 0x346   : > { %vm6656_vm1 = vmpackc.low %vm1305_vm4, %vm1303_vm3 }
 0x347   : > { %6981 = vmatpush3.bf16.msk.msra.mxu0 %vm6656_vm1, %v9525_v24  ;;  %vm1339_vm9 = vmand %vm1080_vm12, %vm1275_vm7 }
 0x348   : > { %vm1341_vm8 = vmand %vm1080_vm12, %vm1277_vm0 }
 0x349   : > { %vm6674_vm15 = vmpackc.low %vm1341_vm8, %vm1339_vm9 }
 0x34a   : > { %6982 = vmatprep.subr.msk.bf16.mxu0 %vm6674_vm15, %v9525_v24  ;;  %vm1307_vm5 = vmand %vm1080_vm12, %vm1243_vm11 }
 0x34b   : > { %vm1309_vm3 = vmand %vm1080_vm12, %vm1245_vm2  ;;  %vm9554_vm2 = vcmp.lt.s32.totalorder %v7350_v4, 8 }
 0x34c   : > { %vm6658_vm7 = vmpackc.low %vm1309_vm3, %vm1307_vm5  ;;  %vm9553_vm5 = vcmp.lt.s32.totalorder %v7350_v4, 9 }
 0x34d   : > { %6983 = vmatpush3.bf16.msk.msra.mxu0 %vm6658_vm7, %v9525_v24 }
 0x3a1   : > { %v2803_v57 = vpop.permute.xlu1 %2802 }
 0x3a2   : > { %v2805_v59 = vpop.permute.xlu0 %2804 }
 0x3a3   : > { %v8071_v62 = vsel %vm9551_vm6, %v2803_v57, %v2805_v59  ;;  %v8075_v26 = vsel %vm9551_vm6, %v2805_v59, %v2803_v57 }
 0x3a4   : > { %9654 = vst [vmem:[#allocation26_spill] sm:$0xff] %v8071_v62  ;;  %9655 = vst [vmem:[#allocation27_spill] sm:$0xff] %v8075_v26  ;;  %v2808_v25 = vmax.f32 %v7830_v63, %v8071_v62  ;;  %v2809_v23 = vmax.f32 %v7832_v0, %v8075_v26  ;;  %v9656_v26 = vmov 0  }
 0x3a6   : > { %v7116_v12 = vpack.i.bf16 %v2809_v23, %v2808_v25 }
 0x3a8   : > { %7117 = vrot.lane.b32.xlu1 %v7116_v12, %s9508_s24  ;;  %v9657_v12 = vmov 0.0   ;;  %s9517_s24 = smov 120  }
 0x3ac   : > { %2876 = vrot.lane.b32.xlu1 %v9657_v12, %s9514_s25  ;;  %s6966_s25 = sshll.u32 %s7353_s23, 4 }
 0x3ad   : > { %s892_s3 = scalar_lea.vmem %s9452_s6, %s6966_s25 }
 0x3b0   : > { %2863 = vrot.lane.b32.xlu1 %v9657_v12, %s9510_s18  ;;  %s9521_s18 = smov 119  }
 0x3b4   : > { %3004 = vrot.lane.b32.xlu1 %v9657_v12, %s9512_s19  ;;  %s9523_s19 = smul.u32 72, %s7353_s23 }
 0x3b6   : > { %s8112_s1 = scalar_lea.vmem %s9658_s5, %s9523_s19  ;;  %s9663_s19 = smov 120  }
 0x3b7   : > { %v7127_v44 = vld [vmem:[%s8112_s1 + $0x28] sm:$0xff]   ;;  %s9673_s5 = smul.u32 72, %s7353_s23 }
 0x3b8   : > { %3079 = vrot.lane.b32.xlu1 %v9657_v12, %s9642_s28 }
 0x3bc   : > { %3221 = vrot.lane.b32.xlu1 %v9657_v12, %s9643_s29 }
 0x3c0   : > { %3295 = vrot.lane.b32.xlu1 %v9657_v12, %s9519_s2  ;;  %s9660_s2 = smov 9  }
 0x3c4   : > { %3370 = vrot.lane.b32.xlu1 %v9657_v12, %s9517_s24  ;;  %s9659_s24 = smov 8  }
 0x3c8   : > { %3445 = vrot.lane.b32.xlu1 %v9657_v12, %s9521_s18  ;;  %s9661_s18 = smov 7  }
 0x41a   : > { %v7118_v40 = vpop.permute.xlu1 %7117 }
 0x41b   : > { %v7120_v49 = vunpack.i.h.bf16 %v7118_v40  ;;  %v7119_v50 = vunpack.i.l.bf16 %v7118_v40  ;;  %v3519_v40 = vld [vmem:[%s892_s3 + $0x8] sm:$0xff] }
 0x41c   : > { %3527 = vperm.xlu1 %7121, %v3519_v40  }
 0x41d   : > { %v2814_v57 = vsel %vm9547_vm13, %v7119_v50, %v7120_v49  ;;  %v2815_v59 = vsel %vm9547_vm13, %v7120_v49, %v7119_v50  ;;  %vm1453_vm13 = vcmp.eq.s32.totalorder %v7871_v11, %v7387_v21 }
 0x41e   : > { %v2817_v15 = vmax.f32 %v2809_v23, %v2815_v59  ;;  %v2816_v62 = vmax.f32 %v2808_v25, %v2814_v57  ;;  %v8140_v25 = vadd.s32 4294967295, %v7820_v41  ;;  %v2877_v59 = vpop.permute.xlu1 %2876 }
 0x420   : > { %v2819_v19 = vpack.c.bf16 %v2817_v15, %v2817_v15  ;;  %v2818_v2 = vpack.c.bf16 %v2816_v62, %v2816_v62  ;;  %v1062_v62 = vadd.s32 4294967295, %v7817_v42  ;;  %vm1072_vm9 = vcmp.ge.s32.totalorder %v8140_v25, 0 }
 0x422   : > { %2852 = vmatprep.mubr.bf16.mxu0 %v2819_v19  ;;  %v3518_v19 = vld [vmem:[%s892_s3] sm:$0xff]  ;;  %vm1064_vm4 = vcmp.ge.s32.totalorder %v1062_v62, 0  ;;  %vm1066_vm0 = vcmp.lt.s32.totalorder %v1062_v62, 8  ;;  %s8335_s3 = scalar_lea.vmem %s9453_s7, %s9673_s5 }
 0x423   : > { %2853 = vmatmul.mubr.bf16.vlgmr.msra.gmra.mrb[48].mxu0 %v2818_v2  ;;  %vm8142_vm1 = vmand %vm1064_vm4, %vm1066_vm0  ;;  %vm9552_vm4 = vcmp.lt.s32.totalorder %v7350_v4, 7 }
 0x424   : > { %3620 = vmatprep.mubr.bf16.mxu0 %v9656_v26  ;;  %vm1094_vm11 = vmand %vm8142_vm1, %vm1080_vm12 }
 0x425   : > { %vm1074_vm8 = vmand %vm8142_vm1, %vm1072_vm9 }
 0x426   : > { %vm1082_vm15 = vmand %vm1074_vm8, %vm1080_vm12  ;;  %vm9667_vm8 = vcmp.lt.s32.totalorder %v7350_v4, 1 }
 0x4f6   : > { %v6984_v23 = vpop.f32.mrb[48].mxu0 }
 0x4f7   : > { %v6985_v49 = vpop.f32.mrb[49].mxu0 }
 0x4f8   : > { %v8114_v50 = vadd.f32 %v6985_v49, %v6984_v23  ;;  %v6987_v2 = vpop.f32.mrb[50].mxu0  ;;  %v8157_v23 = vadd.s32 1, %v7820_v41  ;;  %v8160_v49 = vsel %vm1094_vm11, 1.0, %v9657_v12  ;;  %v8172_v41 = vsel %vm1082_vm15, 1.0, %v9657_v12 }
 0x4f9   : > { %v6988_v15 = vpop.f32.mrb[51].mxu0  ;;  %vm1114_vm11 = vcmp.lt.s32.totalorder %v7817_v42, 8 }
 0x4fa   : > { %2874 = vrot.lane.b32.xlu0 %v8114_v50, %s9659_s24  ;;  %v2864_v15 = vpop.permute.xlu1 %2863  ;;  %vm1104_vm3 = vcmp.lt.s32.totalorder %v8157_v23, 8 }
 0x4fb   : > { %vm1106_vm7 = vmand %vm8142_vm1, %vm1104_vm3  ;;  %vm1112_vm1 = vcmp.ge.s32.totalorder %v7817_v42, 0 }
 0x4fc   : > { %vm1108_vm0 = vmand %vm1106_vm7, %vm1080_vm12 }
 0x4fd   : > { %vm8206_vm15 = vmand %vm1112_vm1, %vm1114_vm11 }
 0x4fe   : > { %2861 = vrot.lane.b32.xlu0 %v8114_v50, %s9660_s2  ;;  %vm1118_vm7 = vmand %vm8206_vm15, %vm1072_vm9 }
 0x4ff   : > { %vm9670_vm1 = vmmov %vm9667_vm8 }
 0x500   : > { %vm1130_vm11 = vmand %vm8206_vm15, %vm1080_vm12 }
 0x502   : > { %3002 = vrot.lane.b32.xlu0 %v8114_v50, %s9661_s18 }
 0x506   : > { %3077 = vrot.lane.b32.xlu0 %v8114_v50, %s9642_s28 }
 0x50a   : > { %3219 = vrot.lane.b32.xlu0 %v8114_v50, %s9643_s29 }
 0x50e   : > { %3293 = vrot.lane.b32.xlu0 %v8114_v50, %s9662_s4 }
 0x512   : > { %3368 = vrot.lane.b32.xlu0 %v8114_v50, %s9663_s19 }
 0x516   : > { %3443 = vrot.lane.b32.xlu0 %v8114_v50, %s9664_s30 }
 0x51a   : > { %3522 = vperm.xlu0 %7115, %v3518_v19  }
 0x56c   : > { %v2875_v2 = vpop.permute.xlu0 %2874 }
 0x56d   : > { %v2879_v19 = vsel %vm9554_vm2, %v2875_v2, %v2877_v59  ;;  %v2880_v40 = vsel %vm9554_vm2, %v2877_v59, %v2875_v2  ;;  %vm1468_vm2 = vcmp.eq.s32.totalorder %v7983_v39, %v7391_v22 }
 0x56e   : > { %v2881_v62 = vmul.f32 %v2880_v40, %v8160_v49  ;;  %v2882_v24 = vmul.f32 0.0, %v2879_v19 }
 0x570   : > { %v2883_v10 = vpack.c.bf16 %v2881_v62, %v2881_v62  ;;  %v2884_v16 = vpack.c.bf16 %v2882_v24, %v2882_v24  ;;  %v2862_v33 = vpop.permute.xlu0 %2861  ;;  %v3005_v24 = vpop.permute.xlu1 %3004  ;;  %v7122_v62 = vld [vmem:[%s8112_s1 + $0x8] sm:$0xff]  }
 0x571   : > { %v2866_v58 = vsel %vm9553_vm5, %v2862_v33, %v2864_v15  ;;  %v2867_v59 = vsel %vm9553_vm5, %v2864_v15, %v2862_v33  ;;  %vm1466_vm5 = vcmp.eq.s32.totalorder %v7961_v34, %v7391_v22 }
 0x572   : > { %v2868_v2 = vmul.f32 %v2867_v59, %v8172_v41  ;;  %v2869_v19 = vmul.f32 0.0, %v2866_v58  ;;  %6679 = vmatprep.subr.msk.bf16.mxu1 %vm9546_vm10, %v2884_v16  ;;  %v2897_v40 = vsel %vm9546_vm10, %v2883_v10, 0  ;;  %v8195_v16 = vsel %vm1108_vm0, 1.0, %v9657_v12  ;;  %vm1122_vm0 = vmand %vm1118_vm7, %vm1080_vm12 }
 0x573   : > { %2903 = vmatpush1.bf16.msra.mxu1 %v2897_v40 }
 0x574   : > { %v2870_v1 = vpack.c.bf16 %v2868_v2, %v2868_v2  ;;  %v2871_v45 = vpack.c.bf16 %v2869_v19, %v2869_v19  ;;  %v3003_v33 = vpop.permute.xlu0 %3002  ;;  %v3080_v2 = vpop.permute.xlu1 %3079 }
 0x575   : > { %v3007_v57 = vsel %vm9552_vm4, %v3003_v33, %v3005_v24  ;;  %v3008_v10 = vsel %vm9552_vm4, %v3005_v24, %v3003_v33  ;;  %v7123_v33 = vld [vmem:[%s8112_s1] sm:$0xff]   ;;  %vm1464_vm4 = vcmp.eq.s32.totalorder %v7953_v31, %v7391_v22 }
 0x576   : > { %v3010_v15 = vmul.f32 0.0, %v3007_v57  ;;  %6680 = vmatmul.mubr.msk.bf16.vlgmr.msra.gmra.mrb[24].mxu1 %vm9545_vm14, %v7122_v62  ;;  %6682 = vmatprep.subr.msk.bf16.mxu1 %vm9546_vm10, %v2871_v45  ;;  %v2954_v58 = vsel %vm9546_vm10, %v2870_v1, 0  ;;  %v3009_v45 = vmul.f32 %v3008_v10, %v8195_v16 }
 0x577   : > { %2960 = vmatpush1.bf16.msra.mxu1 %v2954_v58  ;;  %2991 = vmatprep.mubr.bf16.mxu1 %v9656_v26  ;;  %v8220_v58 = vsel %vm1122_vm0, 1.0, %v9657_v12 }
 0x578   : > { %v3012_v59 = vpack.c.bf16 %v3010_v15, %v3010_v15  ;;  %v3078_v19 = vpop.permute.xlu0 %3077  ;;  %v3011_v24 = vpack.c.bf16 %v3009_v45, %v3009_v45 }
 0x579   : > { %v3081_v1 = vsel %vm9667_vm8, %v3078_v19, %v3080_v2  ;;  %v3082_v10 = vsel %vm9670_vm1, %v3080_v2, %v3078_v19  ;;  %v8236_v2 = vsel %vm1130_vm11, 1.0, %v9657_v12  ;;  %v3222_v19 = vpop.permute.xlu1 %3221  ;;  %vm1136_vm8 = vmand %vm8206_vm15, %vm1104_vm3  ;;  %vm9550_vm1 = vcmp.lt.s32.totalorder %v7350_v4, 121 }
 0x57a   : > { %6687 = vmatprep.subr.msk.bf16.mxu1 %vm9546_vm10, %v3012_v59  ;;  %v3084_v62 = vmul.f32 0.0, %v3081_v1  ;;  %v3025_v15 = vsel %vm9546_vm10, %v3011_v24, 0  ;;  %v3083_v59 = vmul.f32 %v3082_v10, %v8220_v58  ;;  %v7124_v1 = vld [vmem:[%s8112_s1 + $0x10] sm:$0xff]   ;;  %vm1138_vm7 = vmand %vm1136_vm8, %vm1080_vm12 }
 0x57c   : > { %v3086_v57 = vpack.c.bf16 %v3084_v62, %v3084_v62  ;;  %v3085_v45 = vpack.c.bf16 %v3083_v59, %v3083_v59  ;;  %v3220_v62 = vpop.permute.xlu0 %3219  ;;  %v7125_v59 = vld [vmem:[%s8112_s1 + $0x18] sm:$0xff]  }
 0x57d   : > { %v3223_v40 = vsel %vm9551_vm6, %v3220_v62, %v3222_v19 }
 0x57e   : > { %v3099_v24 = vsel %vm9546_vm10, %v3085_v45, 0 }
 0x582   : > { %6683 = vmatmul.mubr.msk.bf16.vlgmr.msra.gmra.mrb[24].mxu1 %vm9545_vm14, %v7123_v33  ;;  %v7214_v33 = vmov 0.0|0.0  }
 0x583   : > { %3031 = vmatpush1.bf16.msra.mxu1 %v3025_v15  ;;  %3062 = vmatprep.mubr.bf16.mxu1 %v9656_v26  ;;  %v3224_v15 = vsel %vm9551_vm6, %v3222_v19, %v3220_v62  ;;  %vm1462_vm6 = vcmp.eq.s32.totalorder %v7931_v29, %v7391_v22 }
 0x584   : > { %6692 = vmatprep.subr.msk.bf16.mxu1 %vm9546_vm10, %v3086_v57  ;;  %v3151_v57 = vmul.f32 %v8114_v50, %v8236_v2  ;;  %v3226_v10 = vmul.f32 0.0, %v3224_v15 }
 0x586   : > { %v3153_v45 = vpack.c.bf16 %v3151_v57, %v3151_v57  ;;  %v3294_v57 = vpop.permute.xlu0 %3293 }
 0x588   : > { %v3167_v50 = vsel %vm9546_vm10, %v3153_v45, 0  ;;  %v7126_v45 = vld [vmem:[%s8112_s1 + $0x20] sm:$0xff]  }
 0x58e   : > { %6688 = vmatmul.mubr.msk.bf16.vlgmr.msra.gmra.mrb[24].mxu1 %vm9545_vm14, %v7124_v1  ;;  %v1142_v1 = vadd.s32 1, %v7817_v42  ;;  %v3296_v42 = vpop.permute.xlu1 %3295 }
 0x58f   : > { %3105 = vmatpush1.bf16.msra.mxu1 %v3099_v24  ;;  %3136 = vmatprep.mubr.bf16.mxu1 %v9656_v26  ;;  %v3228_v24 = vpack.c.bf16 %v3226_v10, %v3226_v10  ;;  %v3299_v19 = vsel %vm9550_vm1, %v3296_v42, %v3294_v57  ;;  %v3298_v25 = vsel %vm9550_vm1, %v3294_v57, %v3296_v42 }
 0x590   : > { %6697 = vmatprep.subr.msk.bf16.mxu1 %vm9546_vm10, %v7214_v33  ;;  %v8254_v33 = vsel %vm1138_vm7, 1.0, %v9657_v12  ;;  %vm1144_vm15 = vcmp.ge.s32.totalorder %v1142_v1, 0  ;;  %vm1146_vm0 = vcmp.lt.s32.totalorder %v1142_v1, 8  ;;  %vm1455_vm1 = vcmp.eq.s32.totalorder %v7893_v13, %v7387_v21 }
 0x591   : > { %v3225_v15 = vmul.f32 %v3223_v40, %v8254_v33  ;;  %vm8262_vm11 = vmand %vm1144_vm15, %vm1146_vm0  ;;  %vm9548_vm0 = vcmp.lt.s32.totalorder %v7350_v4, 119 }
 0x592   : > { %vm1150_vm8 = vmand %vm8262_vm11, %vm1072_vm9  ;;  %v3371_v40 = vpop.permute.xlu1 %3370  ;;  %vm9549_vm9 = vcmp.lt.s32.totalorder %v7350_v4, 120 }
 0x593   : > { %v3227_v62 = vpack.c.bf16 %v3225_v15, %v3225_v15  ;;  %vm1154_vm7 = vmand %vm1150_vm8, %vm1080_vm12  ;;  %v3369_v15 = vpop.permute.xlu0 %3368 }
 0x594   : > { %vm1162_vm15 = vmand %vm8262_vm11, %vm1080_vm12 }
 0x595   : > { %vm1168_vm8 = vmand %vm8262_vm11, %vm1104_vm3  ;;  %vm1450_vm3 = vcmp.eq.s32.totalorder %v7838_v5, %v7391_v22  ;;  %vm1447_vm11 = vcmp.eq.s32.totalorder %v7348_v3, %v7387_v21 }
 0x59a   : > { %6693 = vmatmul.mubr.msk.bf16.vlgmr.msra.gmra.mrb[24].mxu1 %vm9545_vm14, %v7125_v59  ;;  %v3301_v59 = vmul.f32 0.0, %v3299_v19 }
 0x59b   : > { %3173 = vmatpush1.bf16.msra.mxu1 %v3167_v50  ;;  %3204 = vmatprep.mubr.bf16.mxu1 %v9656_v26  ;;  %v8278_v50 = vsel %vm1154_vm7, 1.0, %v9657_v12  ;;  %vm1170_vm7 = vmand %vm1168_vm8, %vm1080_vm12  ;;  %vm1448_vm12 = vcmp.eq.s32.totalorder %v7348_v3, %v7391_v22  ;;  %v9676_v3 = vmov 1.0|1.0  }
 0x59c   : > { %6702 = vmatprep.subr.msk.bf16.mxu1 %vm9546_vm10, %v3228_v24  ;;  %v3303_v1 = vpack.c.bf16 %v3301_v59, %v3301_v59  ;;  %v3241_v24 = vsel %vm9546_vm10, %v3227_v62, 0  ;;  %v3300_v19 = vmul.f32 %v3298_v25, %v8278_v50  ;;  %v3374_v62 = vsel %vm9549_vm9, %v3371_v40, %v3369_v15  ;;  %v3446_v25 = vpop.permute.xlu1 %3445  ;;  %vm8395_vm8 = vmpackc.low %vm1450_vm3, %vm1448_vm12 }
 0x59d   : > { %vm1456_vm3 = vcmp.eq.s32.totalorder %v7893_v13, %v7391_v22  ;;  %v9687_v13 = vmov 0 }
 0x59e   : > { %v3302_v59 = vpack.c.bf16 %v3300_v19, %v3300_v19  ;;  %v3444_v19 = vpop.permute.xlu0 %3443 }
 0x59f   : > { %v3448_v23 = vsel %vm9548_vm0, %v3444_v19, %v3446_v25 }
 0x5a0   : > { %v3316_v57 = vsel %vm9546_vm10, %v3302_v59, 0  ;;  %v7128_v59 = vld [vmem:[%s8112_s1 + $0x30] sm:$0xff]  }
 0x5a6   : > { %6698 = vmatmul.mubr.msk.bf16.vlgmr.msra.gmra.mrb[24].mxu1 %vm9545_vm14, %v7126_v45  ;;  %v3376_v45 = vmul.f32 0.0, %v3374_v62 }
 0x5a7   : > { %3247 = vmatpush1.bf16.msra.mxu1 %v3241_v24  ;;  %3278 = vmatprep.mubr.bf16.mxu1 %v9656_v26  ;;  %v3373_v24 = vsel %vm9549_vm9, %v3369_v15, %v3371_v40 }
 0x5a8   : > { %6707 = vmatprep.subr.msk.bf16.mxu1 %vm9546_vm10, %v3303_v1  ;;  %v3378_v42 = vpack.c.bf16 %v3376_v45, %v3376_v45  ;;  %v8296_v1 = vsel %vm1162_vm15, 1.0, %v9657_v12  ;;  %vm1449_vm15 = vcmp.eq.s32.totalorder %v7838_v5, %v7387_v21 }
 0x5a9   : > { %v3375_v62 = vmul.f32 %v3373_v24, %v8296_v1  ;;  %vm8410_vm12 = vmpackc.low %vm1449_vm15, %vm1447_vm11 }
 0x5ab   : > { %v3377_v40 = vpack.c.bf16 %v3375_v62, %v3375_v62  ;;  %v7129_v62 = vld [vmem:[%s8112_s1 + $0x38] sm:$0xff]  }
 0x5b2   : > { %6703 = vmatmul.mubr.msk.bf16.vlgmr.msra.gmra.mrb[24].mxu1 %vm9545_vm14, %v7127_v44  ;;  %v3449_v44 = vsel %vm9548_vm0, %v3446_v25, %v3444_v19  ;;  %v3523_v25 = vpop.permute.xlu0 %3522  ;;  %vm1458_vm0 = vcmp.eq.s32.totalorder %v7901_v14, %v7391_v22 }
 0x5b3   : > { %3322 = vmatpush1.bf16.msra.mxu1 %v3316_v57  ;;  %3353 = vmatprep.mubr.bf16.mxu1 %v9656_v26  ;;  %v3451_v15 = vmul.f32 0.0, %v3449_v44  ;;  %v8316_v57 = vsel %vm1170_vm7, 1.0, %v9657_v12  ;;  %v7130_v12 = vld [vmem:[%s8112_s1 + $0x40] sm:$0xff]   ;;  %vm1452_vm7 = vcmp.eq.s32.totalorder %v7863_v9, %v7391_v22  ;;  %vm8432_vm15 = vmpackc.low %vm1458_vm0, %vm1456_vm3  ;;  %vm1459_vm0 = vcmp.eq.s32.totalorder %v7923_v20, %v7387_v21 }
 0x5b4   : > { %6712 = vmatprep.subr.msk.bf16.mxu1 %vm9546_vm10, %v3378_v42  ;;  %v3391_v42 = vsel %vm9546_vm10, %v3377_v40, 0  ;;  %v3450_v10 = vmul.f32 %v3448_v23, %v8316_v57  ;;  %v3528_v40 = vpop.permute.xlu1 %3527  ;;  %vm1461_vm3 = vcmp.eq.s32.totalorder %v7931_v29, %v7387_v21 }
 0x5b5   : > { %v3453_v45 = vpack.c.bf16 %v3451_v15, %v3451_v15 }
 0x5b6   : > { %v3452_v24 = vpack.c.bf16 %v3450_v10, %v3450_v10 }
 0x5b8   : > { %v3466_v44 = vsel %vm9546_vm10, %v3452_v24, 0 }
 0x5be   : > { %6708 = vmatmul.mubr.msk.bf16.vlgmr.msra.gmra.mrb[24].mxu1 %vm9545_vm14, %v7128_v59 }
 0x5bf   : > { %3397 = vmatpush1.bf16.msra.mxu1 %v3391_v42  ;;  %3428 = vmatprep.mubr.bf16.mxu1 %v9656_v26 }
 0x5c0   : > { %6717 = vmatprep.subr.msk.bf16.mxu1 %vm9546_vm10, %v3453_v45  ;;  %vm1451_vm10 = vcmp.eq.s32.totalorder %v7863_v9, %v7387_v21 }
 0x5c1   : > { %vm8428_vm11 = vmpackc.low %vm1453_vm13, %vm1451_vm10 }
 0x5ca   : > { %6713 = vmatmul.mubr.msk.bf16.vlgmr.msra.gmra.mrb[24].mxu1 %vm9545_vm14, %v7129_v62 }
 0x5cb   : > { %3472 = vmatpush1.bf16.msra.mxu1 %v3466_v44  ;;  %3503 = vmatprep.mubr.bf16.mxu1 %v9656_v26 }
 0x5cc   : > { %6754 = vmatprep.subr.msk.bf16.mxu1 %vm8395_vm8, %v9676_v3 }
 0x5d6   : > { %6718 = vmatmul.mubr.msk.bf16.vlgmr.msra.gmra.mrb[24].mxu1 %vm9545_vm14, %v7130_v12  ;;  %vm1454_vm14 = vcmp.eq.s32.totalorder %v7871_v11, %v7391_v22 }
 0x5d7   : > { %6756 = vmatpush1.bf16.msk.msra.mxu1 %vm8410_vm12, %v9676_v3  ;;  %vm8421_vm9 = vmpackc.low %vm1454_vm14, %vm1452_vm7  ;;  %vm1457_vm14 = vcmp.eq.s32.totalorder %v7901_v14, %v7387_v21  ;;  %vm1460_vm7 = vcmp.eq.s32.totalorder %v7923_v20, %v7391_v22  ;;  %v9689_v14 = vmov 0  ;;  %v9691_v20 = vmov 0 }
 0x5d8   : > { %6758 = vmatprep.subr.msk.bf16.mxu1 %vm8421_vm9, %v9676_v3  ;;  %vm8450_vm13 = vmpackc.low %vm1457_vm14, %vm1455_vm1  ;;  %vm1463_vm14 = vcmp.eq.s32.totalorder %v7953_v31, %v7387_v21  ;;  %v9693_v31 = vmov 0 }
 0x5d9   : > { %vm8454_vm10 = vmpackc.low %vm1462_vm6, %vm1460_vm7  ;;  %vm1465_vm7 = vcmp.eq.s32.totalorder %v7961_v34, %v7387_v21  ;;  %v9695_v34 = vmov 0 }
 0x5da   : > { %v9688_v13 = vsel %vm8454_vm10, 4294967295, %v9687_v13  ;;  %vm8472_vm6 = vmpackc.low %vm1461_vm3, %vm1459_vm0  ;;  %vm1467_vm0 = vcmp.eq.s32.totalorder %v7983_v39, %v7387_v21  ;;  %vm1469_vm3 = vcmp.eq.s32.totalorder %v7991_v38, %v7387_v21  ;;  %v9697_v39 = vmov 0 }
 0x5db   : > { %6760 = vmatpush1.bf16.msk.msra.mxu1 %vm8428_vm11, %v9676_v3  ;;  %v9690_v14 = vsel %vm8472_vm6, 4294967295, %v9689_v14  ;;  %vm8476_vm1 = vmpackc.low %vm1466_vm5, %vm1464_vm4 }
 0x5dc   : > { %6762 = vmatprep.subr.msk.bf16.mxu1 %vm8432_vm15, %v9676_v3  ;;  %v9692_v20 = vsel %vm8476_vm1, 4294967295, %v9691_v20  ;;  %vm8494_vm5 = vmpackc.low %vm1465_vm7, %vm1463_vm14  ;;  %vm1474_vm14 = vcmp.eq.s32.totalorder %v8022_v52, %v7391_v22 }
 0x5dd   : > { %v9694_v31 = vsel %vm8494_vm5, 4294967295, %v9693_v31 }
 0x5df   : > { %6764 = vmatpush1.bf16.msk.msra.mxu1 %vm8450_vm13, %v9676_v3 }
 0x5e0   : > { %6766 = vmatprep.subr.msk.bf16.mxu1 %vm8454_vm10, %v9676_v3  ;;  %vm1470_vm10 = vcmp.eq.s32.totalorder %v7991_v38, %v7391_v22 }
 0x5e1   : > { %vm8498_vm4 = vmpackc.low %vm1470_vm10, %vm1468_vm2  ;;  %vm9699_vm10 = vcmp.lt.s32.totalorder %v7350_v4, 8 }
 0x5e2   : > { %v9696_v34 = vsel %vm8498_vm4, 4294967295, %v9695_v34  ;;  %vm8516_vm2 = vmpackc.low %vm1469_vm3, %vm1467_vm0  ;;  %vm1476_vm0 = vcmp.eq.s32.totalorder %v8043_v55, %v7391_v22  ;;  %vm1478_vm3 = vcmp.eq.s32.totalorder %v8051_v56, %v7391_v22 }
 0x5e3   : > { %6768 = vmatpush1.bf16.msk.msra.mxu1 %vm8472_vm6, %v9676_v3  ;;  %vm1472_vm6 = vcmp.eq.s32.totalorder %v8019_v51, %v7391_v22  ;;  %v9698_v39 = vsel %vm8516_vm2, 4294967295, %v9697_v39  ;;  %vm9700_vm7 = vmmov %vm9699_vm10 }
 0x5e4   : > { %6770 = vmatprep.subr.msk.bf16.mxu1 %vm8476_vm1, %v9676_v3  ;;  %vm8524_vm1 = vmpackc.low %vm1474_vm14, %vm1472_vm6 }
 0x5e5   : > { %vm9704_vm6 = vmmov %vm9700_vm7 }
 0x5e7   : > { %6772 = vmatpush1.bf16.msk.msra.mxu1 %vm8494_vm5, %v9676_v3  ;;  %vm1471_vm5 = vcmp.eq.s32.totalorder %v8019_v51, %v7387_v21 }
 0x5e8   : > { %6774 = vmatprep.subr.msk.bf16.mxu1 %vm8498_vm4, %v9676_v3  ;;  %vm1473_vm4 = vcmp.eq.s32.totalorder %v8022_v52, %v7387_v21 }
 0x5e9   : > { %vm8548_vm14 = vmpackc.low %vm1473_vm4, %vm1471_vm5  ;;  %vm1482_vm5 = vcmp.eq.s32.totalorder %v7828_v61, %v7391_v22  ;;  %vm1479_vm4 = vcmp.eq.s32.totalorder %v7825_v60, %v7387_v21 }
 0x5eb   : > { %6776 = vmatpush1.bf16.msk.msra.mxu1 %vm8516_vm2, %v9676_v3 }
 0x5ec   : > { %6778 = vmatprep.subr.msk.bf16.mxu1 %vm8524_vm1, %v9676_v3 }
 0x5ef   : > { %6780 = vmatpush1.bf16.msk.msra.mxu1 %vm8548_vm14, %v9676_v3 }
 0x6a9   : > { %v3505_v19 = vpop.f32.mrb[24].mxu1 }
 0x6aa   : > { %v3530_v15 = vadd.f32 %v3523_v25, %v3505_v19  ;;  %v3507_v59 = vpop.f32.mrb[25].mxu1 }
 0x6ab   : > { %v3531_v45 = vadd.f32 %v3523_v25, %v3507_v59  ;;  %v3509_v42 = vpop.f32.mrb[26].mxu1 }
 0x6ac   : > { %v3534_v23 = vmax.f32 %v3530_v15, 0.0  ;;  %v3532_v10 = vadd.f32 %v3528_v40, %v3509_v42  ;;  %v3511_v46 = vpop.f32.mrb[27].mxu1  ;;  %v9685_v42 = vmov 0 }
 0x6ad   : > { %v3535_v62 = vmax.f32 %v3531_v45, 0.0  ;;  %v3533_v47 = vadd.f32 %v3528_v40, %v3511_v46  ;;  %v9686_v42 = vsel %vm8450_vm13, 4294967295, %v9685_v42 }
 0x6ae   : > { %v3536_v24 = vmax.f32 %v3532_v10, 0.0  ;;  %3558 = vrot.lane.b32.xlu0 %v3534_v23, %s9659_s24  ;;  %v8339_v12 = vmul.f32 %v3534_v23, %v8236_v2 }
 0x6af   : > { %v3537_v44 = vmax.f32 %v3533_v47, 0.0  ;;  %v8344_v19 = vmul.f32 0.0, %v3535_v62  ;;  %v9705_v47 = vmov 0 }
 0x6b0   : > { %3560 = vrot.lane.b32.xlu1 %v3536_v24, %s9659_s24  ;;  %v8342_v25 = vmul.f32 %v3536_v24, %v8236_v2  ;;  %v9706_v47 = vsel %vm8548_vm14, 4294967295, %v9705_v47 }
 0x6b1   : > { %v8346_v46 = vmul.f32 0.0, %v3537_v44 }
 0x6b2   : > { %3562 = vrot.lane.b32.xlu0 %v3535_v62, %s9659_s24 }
 0x6b4   : > { %3564 = vrot.lane.b32.xlu1 %v3537_v44, %s9659_s24  ;;  %s8967_s24 = scalar_lea.vmem %s9455_s9, %s7495_s22 }
 0x6b6   : > { %3538 = vrot.lane.b32.xlu0 %v3534_v23, %s9660_s2 }
 0x6b8   : > { %3540 = vrot.lane.b32.xlu1 %v3536_v24, %s9660_s2 }
 0x6ba   : > { %3542 = vrot.lane.b32.xlu0 %v3535_v62, %s9660_s2 }
 0x6bc   : > { %3544 = vrot.lane.b32.xlu1 %v3537_v44, %s9660_s2  ;;  %s902_s2 = scalar_lea.vmem %s9454_s8, %s6966_s25  ;;  %s9094_s25 = scalar_lea.vmem %s9456_s10, %s7495_s22 }
 0x6bd   : > { %v4202_v2 = vld [vmem:[%s902_s2] sm:$0xff]  ;;  %v4203_v15 = vld [vmem:[%s902_s2 + $0x8] sm:$0xff] }
 0x6be   : > { %3682 = vrot.lane.b32.xlu0 %v3534_v23, %s9661_s18 }
 0x6c0   : > { %3684 = vrot.lane.b32.xlu1 %v3536_v24, %s9661_s18 }
 0x6c2   : > { %3686 = vrot.lane.b32.xlu0 %v3535_v62, %s9661_s18 }
 0x6c4   : > { %3688 = vrot.lane.b32.xlu1 %v3537_v44, %s9661_s18  ;;  %s935_s18 = scalar_lea.vmem %s9462_s16, %s7353_s23 }
 0x6c6   : > { %3758 = vrot.lane.b32.xlu0 %v3534_v23, %s9642_s28 }
 0x6c8   : > { %3760 = vrot.lane.b32.xlu1 %v3536_v24, %s9642_s28 }
 0x6ca   : > { %3762 = vrot.lane.b32.xlu0 %v3535_v62, %s9642_s28 }
 0x6cc   : > { %3764 = vrot.lane.b32.xlu1 %v3537_v44, %s9642_s28 }
 0x6ce   : > { %3898 = vrot.lane.b32.xlu0 %v3534_v23, %s9643_s29 }
 0x6d0   : > { %3900 = vrot.lane.b32.xlu1 %v3536_v24, %s9643_s29 }
 0x6d2   : > { %3902 = vrot.lane.b32.xlu0 %v3535_v62, %s9643_s29 }
 0x6d4   : > { %3904 = vrot.lane.b32.xlu1 %v3537_v44, %s9643_s29 }
 0x6d6   : > { %3974 = vrot.lane.b32.xlu0 %v3534_v23, %s9662_s4 }
 0x6d8   : > { %3976 = vrot.lane.b32.xlu1 %v3536_v24, %s9662_s4 }
 0x6da   : > { %3978 = vrot.lane.b32.xlu0 %v3535_v62, %s9662_s4 }
 0x6dc   : > { %3980 = vrot.lane.b32.xlu1 %v3537_v44, %s9662_s4  ;;  %s9796_s4 = smov 112  }
 0x6de   : > { %4050 = vrot.lane.b32.xlu0 %v3534_v23, %s9663_s19 }
 0x6e0   : > { %4052 = vrot.lane.b32.xlu1 %v3536_v24, %s9663_s19 }
 0x6e2   : > { %4054 = vrot.lane.b32.xlu0 %v3535_v62, %s9663_s19 }
 0x6e4   : > { %4056 = vrot.lane.b32.xlu1 %v3537_v44, %s9663_s19  ;;  %s9795_s19 = smov 17  }
 0x6e6   : > { %4126 = vrot.lane.b32.xlu0 %v3534_v23, %s9664_s30 }
 0x6e8   : > { %4128 = vrot.lane.b32.xlu1 %v3536_v24, %s9664_s30  ;;  %v9701_v24 = vmov 0 }
 0x6e9   : > { %v9702_v24 = vsel %vm8524_vm1, 4294967295, %v9701_v24  ;;  %vm1480_vm1 = vcmp.eq.s32.totalorder %v7825_v60, %v7391_v22 }
 0x6ea   : > { %4130 = vrot.lane.b32.xlu0 %v3535_v62, %s9664_s30  ;;  %vm8579_vm14 = vmpackc.low %vm1482_vm5, %vm1480_vm1  ;;  %vm9716_vm5 = vcmask 130048  }
 0x6ec   : > { %4132 = vrot.lane.b32.xlu1 %v3537_v44, %s9664_s30  ;;  %s9794_s30 = smov 16  }
 0x6ee   : > { %4206 = vperm.xlu0 %7115, %v4202_v2  }
 0x6f0   : > { %4211 = vperm.xlu1 %7121, %v4203_v15  }
 0x720   : > { %v3559_v29 = vpop.permute.xlu0 %3558 }
 0x722   : > { %v3561_v23 = vpop.permute.xlu1 %3560 }
 0x724   : > { %v3563_v10 = vpop.permute.xlu0 %3562 }
 0x725   : > { %v3566_v38 = vsel %vm9699_vm10, %v3559_v29, %v3563_v10  ;;  %v3568_v62 = vsel %vm9700_vm7, %v3563_v10, %v3559_v29  ;;  %vm9703_vm10 = vmmov %vm9700_vm7 }
 0x726   : > { %v3565_v44 = vpop.permute.xlu1 %3564  ;;  %v3570_v51 = vmul.f32 %v3568_v62, %v8160_v49  ;;  %v3571_v52 = vmul.f32 0.0, %v3566_v38  ;;  %vm8552_vm7 = vmpackc.low %vm1478_vm3, %vm1476_vm0  ;;  %vm9711_vm3 = vcmp.lt.s32.totalorder %v7350_v4, 9 }
 0x727   : > { %v3567_v2 = vsel %vm9703_vm10, %v3561_v23, %v3565_v44  ;;  %v3569_v15 = vsel %vm9704_vm6, %v3565_v44, %v3561_v23  ;;  %v9707_v23 = vmov 0  ;;  %vm1475_vm10 = vcmp.eq.s32.totalorder %v8043_v55, %v7387_v21  ;;  %6782 = vmatprep.subr.msk.bf16.mxu1 %vm8552_vm7, %v9676_v3  ;;  %vm9712_vm2 = vmmov %vm9711_vm3 }
 0x728   : > { %v3572_v29 = vmul.f32 %v3569_v15, %v8160_v49  ;;  %v3573_v10 = vmul.f32 0.0, %v3567_v2  ;;  %v3539_v40 = vpop.permute.xlu0 %3538  ;;  %v9708_v23 = vsel %vm8552_vm7, 4294967295, %v9707_v23  ;;  %vm1477_vm6 = vcmp.eq.s32.totalorder %v8051_v56, %v7387_v21  ;;  %v7131_v2 = vld [vmem:[%s8335_s3 + $0x8] sm:$0xff]   ;;  %vm9715_vm1 = vmmov %vm9712_vm2 }
 0x729   : > { %vm8571_vm0 = vmpackc.low %vm1477_vm6, %vm1475_vm10  ;;  %v9709_v55 = vmov 0  ;;  %vm1481_vm10 = vcmp.eq.s32.totalorder %v7828_v61, %v7387_v21  ;;  %vm1484_vm6 = vcmp.eq.s32.totalorder %v7849_v6, %v7391_v22 }
 0x72a   : > { %v3574_v49 = vpack.c.bf16 %v3572_v29, %v3570_v51  ;;  %v3541_v38 = vpop.permute.xlu1 %3540  ;;  %v3575_v62 = vpack.c.bf16 %v3573_v10, %v3571_v52  ;;  %v9710_v55 = vsel %vm8571_vm0, 4294967295, %v9709_v55  ;;  %v9713_v51 = vmov 0  ;;  %6784 = vmatpush1.bf16.msk.msra.mxu1 %vm8571_vm0, %v9676_v3 }
 0x72b   : > { %v9714_v51 = vsel %vm8579_vm14, 4294967295, %v9713_v51  ;;  %6786 = vmatprep.subr.msk.bf16.mxu1 %vm8579_vm14, %v9676_v3  ;;  %vm1485_vm0 = vcmp.eq.s32.totalorder %v7856_v7, %v7387_v21 }
 0x72c   : > { %v3543_v44 = vpop.permute.xlu0 %3542  ;;  %3588 = vmatprep.subr.bf16.mxu0 %v3575_v62 }
 0x72d   : > { %v3546_v56 = vsel %vm9711_vm3, %v3539_v40, %v3543_v44  ;;  %v3548_v15 = vsel %vm9712_vm2, %v3543_v44, %v3539_v40  ;;  %3589 = vmatpush1.bf16.msra.mxu0 %v3574_v49  ;;  %vm1486_vm3 = vcmp.eq.s32.totalorder %v7856_v7, %v7391_v22 }
 0x72e   : > { %v3545_v52 = vpop.permute.xlu1 %3544  ;;  %v3550_v10 = vmul.f32 %v3548_v15, %v8172_v41  ;;  %v3551_v61 = vmul.f32 0.0, %v3546_v56  ;;  %v9719_v56 = vmov 0 }
 0x72f   : > { %v3547_v40 = vsel %vm9712_vm2, %v3541_v38, %v3545_v52  ;;  %v3549_v29 = vsel %vm9715_vm1, %v3545_v52, %v3541_v38  ;;  %vm8607_vm2 = vmpackc.low %vm1481_vm10, %vm1479_vm4  ;;  %v9717_v38 = vmov 0  ;;  %vm1488_vm4 = vcmp.eq.s32.totalorder %v7878_v32, %v7391_v22 }
 0x730   : > { %v3552_v49 = vmul.f32 %v3549_v29, %v8172_v41  ;;  %v3553_v62 = vmul.f32 0.0, %v3547_v40  ;;  %v3683_v44 = vpop.permute.xlu0 %3682  ;;  %6722 = vmatmul.mubr.msk.bf16.vlgmr.msra.gmra.mrb[52].mxu0 %vm9716_vm5, %v7131_v2  ;;  %v9718_v38 = vsel %vm8607_vm2, 4294967295, %v9717_v38  ;;  %vm8612_vm1 = vmpackc.low %vm1486_vm3, %vm1484_vm6  ;;  %vm1483_vm5 = vcmp.eq.s32.totalorder %v7849_v6, %v7387_v21  ;;  %6788 = vmatpush1.bf16.msk.msra.mxu1 %vm8607_vm2, %v9676_v3 }
 0x731   : > { %3671 = vmatprep.mubr.bf16.mxu0 %v9656_v26  ;;  %v9720_v56 = vsel %vm8612_vm1, 4294967295, %v9719_v56  ;;  %vm1490_vm10 = vcmp.eq.s32.totalorder %v7886_v37, %v7391_v22  ;;  %6790 = vmatprep.subr.msk.bf16.mxu1 %vm8612_vm1, %v9676_v3  ;;  %vm8630_vm6 = vmpackc.low %vm1485_vm0, %vm1483_vm5  ;;  %v9722_v6 = vmov 0  ;;  %vm9725_vm3 = vcmp.lt.s32.totalorder %v7350_v4, 7 }
 0x732   : > { %9721 = vst [vmem:[#allocation28_spill] sm:$0xff] %v9720_v56  ;;  %v3554_v41 = vpack.c.bf16 %v3552_v49, %v3550_v10  ;;  %v3685_v2 = vpop.permute.xlu1 %3684  ;;  %v3555_v15 = vpack.c.bf16 %v3553_v62, %v3551_v61  ;;  %v9723_v6 = vsel %vm8630_vm6, 4294967295, %v9722_v6  ;;  %vm9726_vm14 = vmmov %vm9725_vm3  ;;  %v9727_v40 = vmov 0 }
 0x733   : > { %9724 = vst [vmem:[#allocation29_spill] sm:$0xff] %v9723_v6  ;;  %vm8638_vm7 = vmpackc.low %vm1490_vm10, %vm1488_vm4  ;;  %vm1487_vm2 = vcmp.eq.s32.totalorder %v7878_v32, %v7387_v21  ;;  %vm1489_vm0 = vcmp.eq.s32.totalorder %v7886_v37, %v7387_v21  ;;  %vm1496_vm4 = vcmp.eq.s32.totalorder %v7938_v35, %v7391_v22  ;;  %v9736_v32 = vmov 0 }
 0x734   : > { %v3687_v60 = vpop.permute.xlu0 %3686  ;;  %3639 = vmatprep.subr.bf16.mxu0 %v3555_v15  ;;  %v9728_v40 = vsel %vm8638_vm7, 4294967295, %v9727_v40  ;;  %vm9730_vm5 = vmmov %vm9725_vm3  ;;  %6792 = vmatpush1.bf16.msk.msra.mxu1 %vm8630_vm6, %v9676_v3  ;;  %v7132_v15 = vld [vmem:[%s8335_s3] sm:$0xff]   ;;  %vm9739_vm6 = vcmask 130048  }
 0x735   : > { %v3690_v7 = vsel %vm9725_vm3, %v3683_v44, %v3687_v60  ;;  %v3692_v52 = vsel %vm9726_vm14, %v3687_v60, %v3683_v44  ;;  %3640 = vmatpush1.bf16.msra.mxu0 %v3554_v41  ;;  %9729 = vst [vmem:[#allocation30_spill] sm:$0xff] %v9728_v40  ;;  %6794 = vmatprep.subr.msk.bf16.mxu1 %vm8638_vm7, %v9676_v3  ;;  %vm8666_vm10 = vmpackc.low %vm1489_vm0, %vm1487_vm2 }
 0x736   : > { %v3689_v29 = vpop.permute.xlu1 %3688  ;;  %v3694_v49 = vmul.f32 %v3692_v52, %v8195_v16  ;;  %v3695_v37 = vmul.f32 0.0, %v3690_v7  ;;  %vm1498_vm14 = vcmp.eq.s32.totalorder %v7946_v30, %v7391_v22  ;;  %vm9734_vm2 = vcmp.eq.s32.totalorder %v7908_v17, %v7391_v22 }
 0x737   : > { %v3691_v10 = vsel %vm9730_vm5, %v3685_v2, %v3689_v29  ;;  %v3693_v61 = vsel %vm9725_vm3, %v3689_v29, %v3685_v2  ;;  %v9731_v2 = vmov 0  ;;  %vm1491_vm5 = vcmp.eq.s32.totalorder %v7908_v17, %v7387_v21  ;;  %vm8699_vm13 = vmpackc.low %vm1498_vm14, %vm1496_vm4 }
 0x738   : > { %v3696_v62 = vmul.f32 %v3693_v61, %v8195_v16  ;;  %v3697_v44 = vmul.f32 0.0, %v3691_v10  ;;  %v3759_v41 = vpop.permute.xlu0 %3758  ;;  %v9732_v2 = vsel %vm8666_vm10, 4294967295, %v9731_v2  ;;  %vm1493_vm3 = vcmp.eq.s32.totalorder %v7916_v18, %v7387_v21  ;;  %6796 = vmatpush1.bf16.msk.msra.mxu1 %vm8666_vm10, %v9676_v3 }
 0x739   : > { %9733 = vst [vmem:[#allocation31_spill] sm:$0xff] %v9732_v2  ;;  %vm9735_vm0 = vcmp.eq.s32.totalorder %v7916_v18, %v7391_v22  ;;  %vm8692_vm1 = vmpackc.low %vm1493_vm3, %vm1491_vm5  ;;  %v9740_v29 = vmov 0  ;;  %vm9743_vm10 = vcmp.lt.s32.totalorder %v7350_v4, 1  ;;  %v9744_v17 = vmov 0  ;;  %v9835_v2 = vld [vmem:[#allocation22_spill] sm:$0xff]  ;;  %v9947_v59 = vld [vmem:[#allocation28_spill] sm:$0xff] }
 0x73a   : > { %v3698_v16 = vpack.c.bf16 %v3696_v62, %v3694_v49  ;;  %v3761_v60 = vpop.permute.xlu1 %3760  ;;  %v3699_v7 = vpack.c.bf16 %v3697_v44, %v3695_v37  ;;  %vm8687_vm7 = vmpackc.low %vm9735_vm0, %vm9734_vm2  ;;  %v9741_v29 = vsel %vm8692_vm1, 4294967295, %v9740_v29  ;;  %v9745_v17 = vsel %vm8699_vm13, 4294967295, %v9744_v17 }
 0x73b   : > { %v9737_v32 = vsel %vm8687_vm7, 4294967295, %v9736_v32  ;;  %9742 = vst [vmem:[#allocation33_spill] sm:$0xff] %v9741_v29  ;;  %9746 = vst [vmem:[#allocation34_spill] sm:$0xff] %v9745_v17  ;;  %vm1495_vm2 = vcmp.eq.s32.totalorder %v7938_v35, %v7387_v21  ;;  %6798 = vmatprep.subr.msk.bf16.mxu1 %vm8687_vm7, %v9676_v3  ;;  %vm1502_vm14 = vcmp.eq.s32.totalorder %v7976_v36, %v7391_v22  ;;  %vm9747_vm4 = vcmp.lt.s32.totalorder %v7350_v4, 1 }
 0x73c   : > { %9738 = vst [vmem:[#allocation32_spill] sm:$0xff] %v9737_v32  ;;  %v3763_v52 = vpop.permute.xlu0 %3762  ;;  %6724 = vmatmul.mubr.msk.bf16.vlgmr.msra.gmra.mrb[52].mxu0 %vm9739_vm6, %v7132_v15  ;;  %3711 = vmatprep.subr.bf16.mxu0 %v3699_v7  ;;  %vm1497_vm6 = vcmp.eq.s32.totalorder %v7946_v30, %v7387_v21  ;;  %vm9748_vm5 = vmmov %vm9747_vm4  ;;  %v9749_v37 = vmov 0  ;;  %v9752_v62 = vmov 0  ;;  %v7133_v7 = vld [vmem:[%s8335_s3 + $0x10] sm:$0xff]   ;;  %v9951_v5 = vld [vmem:[#allocation30_spill] sm:$0xff] }
 0x73d   : > { %v3766_v10 = vsel %vm9743_vm10, %v3759_v41, %v3763_v52  ;;  %3712 = vmatpush1.bf16.msra.mxu0 %v3698_v16  ;;  %3743 = vmatprep.mubr.bf16.mxu0 %v9656_v26  ;;  %vm1500_vm10 = vcmp.eq.s32.totalorder %v7968_v8, %v7391_v22  ;;  %vm8724_vm3 = vmpackc.low %vm1497_vm6, %vm1495_vm2  ;;  %v3768_v44 = vsel %vm9747_vm4, %v3763_v52, %v3759_v41  ;;  %vm9755_vm2 = vcmask 130048  }
 0x73e   : > { %v3765_v18 = vpop.permute.xlu1 %3764  ;;  %6800 = vmatpush1.bf16.msk.msra.mxu1 %vm8692_vm1, %v9676_v3  ;;  %v3771_v35 = vmul.f32 0.0, %v3766_v10  ;;  %v9750_v37 = vsel %vm8724_vm3, 4294967295, %v9749_v37  ;;  %vm8728_vm0 = vmpackc.low %vm1502_vm14, %vm1500_vm10  ;;  %v3770_v10 = vmul.f32 %v3768_v44, %v8220_v58  ;;  %v9756_v52 = vpack.c.bf16 %v8346_v46, %v8344_v19 }
 0x73f   : > { %v3767_v61 = vsel %vm9747_vm4, %v3761_v60, %v3765_v18  ;;  %v3769_v30 = vsel %vm9748_vm5, %v3765_v18, %v3761_v60  ;;  %6802 = vmatprep.subr.msk.bf16.mxu1 %vm8699_vm13, %v9676_v3  ;;  %9751 = vst [vmem:[#allocation35_spill] sm:$0xff] %v9750_v37  ;;  %v9753_v62 = vsel %vm8728_vm0, 4294967295, %v9752_v62  ;;  %vm9757_vm6 = vcmp.lt.s32.totalorder %v7350_v4, 127  ;;  %vm9759_vm14 = vmmov %vm9755_vm2 }
 0x740   : > { %v3773_v49 = vmul.f32 0.0, %v3767_v61  ;;  %9754 = vst [vmem:[#allocation36_spill] sm:$0xff] %v9753_v62  ;;  %v3772_v16 = vmul.f32 %v3769_v30, %v8220_v58  ;;  %v3899_v18 = vpop.permute.xlu0 %3898  ;;  %vm9758_vm10 = vmmov %vm9757_vm6  ;;  %v9760_v19 = vpack.c.bf16 %v8342_v25, %v8339_v12  ;;  %vm9762_vm4 = vcmp.lt.s32.totalorder %v7350_v4, 121  ;;  %v9953_v9 = vld [vmem:[#allocation31_spill] sm:$0xff] }
 0x741   : > { %vm9761_vm5 = vmmov %vm9757_vm6 }
 0x742   : > { %v3775_v15 = vpack.c.bf16 %v3773_v49, %v3771_v35  ;;  %6804 = vmatpush1.bf16.msk.msra.mxu1 %vm8724_vm3, %v9676_v3  ;;  %v3901_v60 = vpop.permute.xlu1 %3900  ;;  %v3774_v61 = vpack.c.bf16 %v3772_v16, %v3770_v10 }
 0x743   : > { %6806 = vmatprep.subr.msk.bf16.mxu1 %vm8728_vm0, %v9676_v3 }
 0x744   : > { %3787 = vmatprep.subr.bf16.mxu0 %v3775_v15  ;;  %v3903_v35 = vpop.permute.xlu0 %3902  ;;  %v7134_v15 = vld [vmem:[%s8335_s3 + $0x18] sm:$0xff]  }
 0x745   : > { %v3908_v49 = vsel %vm9758_vm10, %v3903_v35, %v3899_v18  ;;  %vm9765_vm10 = vmmov %vm9759_vm14 }
 0x746   : > { %v3905_v41 = vpop.permute.xlu1 %3904  ;;  %v3911_v16 = vmul.f32 0.0, %v3908_v49 }
 0x747   : > { %v3909_v30 = vsel %vm9757_vm6, %v3905_v41, %v3901_v60  ;;  %vm9764_vm6 = vmmov %vm9762_vm4 }
 0x748   : > { %6728 = vmatmul.mubr.msk.bf16.vlgmr.msra.gmra.mrb[52].mxu0 %vm9755_vm2, %v7133_v7  ;;  %v3913_v58 = vmul.f32 0.0, %v3909_v30  ;;  %v3975_v7 = vpop.permute.xlu0 %3974  ;;  %vm9763_vm2 = vmmov %vm9761_vm5 }
 0x749   : > { %3788 = vmatpush1.bf16.msra.mxu0 %v3774_v61  ;;  %3819 = vmatprep.mubr.bf16.mxu0 %v9656_v26  ;;  %v3907_v61 = vsel %vm9761_vm5, %v3901_v60, %v3905_v41  ;;  %v3906_v49 = vsel %vm9763_vm2, %v3899_v18, %v3903_v35  ;;  %vm9767_vm5 = vcmp.lt.s32.totalorder %v7350_v4, 120 }
 0x74a   : > { %3851 = vmatprep.subr.bf16.mxu0 %v9756_v52  ;;  %v3977_v44 = vpop.permute.xlu1 %3976  ;;  %v3915_v10 = vpack.c.bf16 %v3913_v58, %v3911_v16  ;;  %v3912_v58 = vmul.f32 %v3907_v61, %v8254_v33  ;;  %v7135_v16 = vld [vmem:[%s8335_s3 + $0x20] sm:$0xff]   ;;  %vm9768_vm2 = vmmov %vm9767_vm5 }
 0x74c   : > { %v3979_v52 = vpop.permute.xlu0 %3978 }
 0x74d   : > { %v3984_v12 = vsel %vm9764_vm6, %v3979_v52, %v3975_v7  ;;  %vm9769_vm6 = vmmov %vm9765_vm10 }
 0x74e   : > { %v3981_v46 = vpop.permute.xlu1 %3980 }
 0x74f   : > { %v3985_v30 = vsel %vm9762_vm4, %v3981_v46, %v3977_v44 }
 0x750   : > { %v3989_v25 = vmul.f32 0.0, %v3985_v30  ;;  %v4051_v62 = vpop.permute.xlu0 %4050 }
 0x754   : > { %6732 = vmatmul.mubr.msk.bf16.vlgmr.msra.gmra.mrb[52].mxu0 %vm9759_vm14, %v7134_v15  ;;  %v4053_v15 = vpop.permute.xlu1 %4052  ;;  %vm9766_vm14 = vmmov %vm9762_vm4  ;;  %v4055_v61 = vpop.permute.xlu0 %4054 }
 0x755   : > { %3852 = vmatpush1.bf16.msra.mxu0 %v9760_v19  ;;  %3883 = vmatprep.mubr.bf16.mxu0 %v9656_v26  ;;  %v3987_v19 = vmul.f32 0.0, %v3984_v12  ;;  %v3983_v35 = vsel %vm9766_vm14, %v3977_v44, %v3981_v46  ;;  %vm9771_vm14 = vcmp.lt.s32.totalorder %v7350_v4, 119 }
 0x756   : > { %3927 = vmatprep.subr.bf16.mxu0 %v3915_v10  ;;  %v3910_v10 = vmul.f32 %v3906_v49, %v8254_v33  ;;  %v3982_v33 = vsel %vm9762_vm4, %v3975_v7, %v3979_v52  ;;  %v3988_v49 = vmul.f32 %v3983_v35, %v8278_v50  ;;  %vm9773_vm4 = vmmov %vm9771_vm14 }
 0x757   : > { %v3991_v41 = vpack.c.bf16 %v3989_v25, %v3987_v19 }
 0x758   : > { %v3914_v60 = vpack.c.bf16 %v3912_v58, %v3910_v10  ;;  %v4057_v18 = vpop.permute.xlu1 %4056  ;;  %v4060_v58 = vsel %vm9768_vm2, %v4055_v61, %v4051_v62  ;;  %v3986_v10 = vmul.f32 %v3982_v33, %v8278_v50  ;;  %v4127_v44 = vpop.permute.xlu0 %4126 }
 0x759   : > { %v4061_v30 = vsel %vm9767_vm5, %v4057_v18, %v4053_v15  ;;  %v4063_v19 = vmul.f32 0.0, %v4060_v58  ;;  %vm9772_vm5 = vmmov %vm9768_vm2  ;;  %v7137_v58 = vld [vmem:[%s8335_s3 + $0x30] sm:$0xff]  }
 0x75a   : > { %v4065_v12 = vmul.f32 0.0, %v4061_v30  ;;  %v3990_v46 = vpack.c.bf16 %v3988_v49, %v3986_v10  ;;  %v4058_v50 = vsel %vm9772_vm5, %v4051_v62, %v4055_v61 }
 0x75c   : > { %v4129_v25 = vpop.permute.xlu1 %4128 }
 0x760   : > { %6736 = vmatmul.mubr.msk.bf16.vlgmr.msra.gmra.mrb[52].mxu0 %vm9765_vm10, %v7135_v16  ;;  %v7136_v16 = vld [vmem:[%s8335_s3 + $0x28] sm:$0xff]   ;;  %v4133_v7 = vpop.permute.xlu1 %4132  ;;  %vm9770_vm10 = vmmov %vm9768_vm2 }
 0x761   : > { %3928 = vmatpush1.bf16.msra.mxu0 %v3914_v60  ;;  %3959 = vmatprep.mubr.bf16.mxu0 %v9656_v26  ;;  %v4067_v60 = vpack.c.bf16 %v4065_v12, %v4063_v19  ;;  %v4059_v52 = vsel %vm9770_vm10, %v4053_v15, %v4057_v18  ;;  %v4137_v35 = vsel %vm9771_vm14, %v4133_v7, %v4129_v25  ;;  %vm9774_vm2 = vmmov %vm9769_vm6  ;;  %v7138_v19 = vld [vmem:[%s8335_s3 + $0x38] sm:$0xff]  }
 0x762   : > { %4003 = vmatprep.subr.bf16.mxu0 %v3991_v41  ;;  %v4131_v41 = vpop.permute.xlu0 %4130  ;;  %v4064_v30 = vmul.f32 %v4059_v52, %v8296_v1  ;;  %v4141_v49 = vmul.f32 0.0, %v4137_v35  ;;  %v4062_v12 = vmul.f32 %v4058_v50, %v8296_v1  ;;  %vm9776_vm10 = vmmov %vm9773_vm4 }
 0x763   : > { %v4136_v33 = vsel %vm9773_vm4, %v4131_v41, %v4127_v44  ;;  %v4134_v61 = vsel %vm9776_vm10, %v4127_v44, %v4131_v41  ;;  %vm9777_vm14 = vmmov %vm9774_vm2  ;;  %vm1504_vm10 = vcmp.eq.s32.totalorder %v8013_v43, %v7391_v22 }
 0x764   : > { %v4066_v15 = vpack.c.bf16 %v4064_v30, %v4062_v12  ;;  %v4138_v1 = vmul.f32 %v4134_v61, %v8316_v57  ;;  %vm9778_vm5 = vmmov %vm9774_vm2 }
 0x76c   : > { %6740 = vmatmul.mubr.msk.bf16.vlgmr.msra.gmra.mrb[52].mxu0 %vm9769_vm6, %v7136_v16  ;;  %v4139_v16 = vmul.f32 0.0, %v4136_v33  ;;  %vm9775_vm6 = vmmov %vm9773_vm4  ;;  %vm1499_vm4 = vcmp.eq.s32.totalorder %v7968_v8, %v7387_v21  ;;  %v9785_v8 = vmov 0 }
 0x76d   : > { %4004 = vmatpush1.bf16.msra.mxu0 %v3990_v46  ;;  %4035 = vmatprep.mubr.bf16.mxu0 %v9656_v26  ;;  %v4135_v62 = vsel %vm9775_vm6, %v4129_v25, %v4133_v7  ;;  %v9779_v25 = vmov 0 }
 0x76e   : > { %4079 = vmatprep.subr.bf16.mxu0 %v4067_v60  ;;  %v4143_v18 = vpack.c.bf16 %v4141_v49, %v4139_v16  ;;  %v4140_v10 = vmul.f32 %v4135_v62, %v8316_v57  ;;  %v7139_v60 = vld [vmem:[%s8335_s3 + $0x40] sm:$0xff]   ;;  %v9782_v57 = vmov 0 }
 0x770   : > { %v4142_v46 = vpack.c.bf16 %v4140_v10, %v4138_v1 }
 0x778   : > { %6744 = vmatmul.mubr.msk.bf16.vlgmr.msra.gmra.mrb[52].mxu0 %vm9774_vm2, %v7137_v58  ;;  %vm1501_vm2 = vcmp.eq.s32.totalorder %v7976_v36, %v7387_v21  ;;  %v9788_v36 = vmov 0 }
 0x779   : > { %4080 = vmatpush1.bf16.msra.mxu0 %v4066_v15  ;;  %4111 = vmatprep.mubr.bf16.mxu0 %v9656_v26  ;;  %vm8813_vm6 = vmpackc.low %vm1501_vm2, %vm1499_vm4  ;;  %vm1503_vm4 = vcmp.eq.s32.totalorder %v8013_v43, %v7387_v21  ;;  %vm1505_vm2 = vcmp.eq.s32.totalorder %v8016_v48, %v7387_v21  ;;  %v9791_v43 = vmov 0 }
 0x77a   : > { %4155 = vmatprep.subr.bf16.mxu0 %v4143_v18  ;;  %v9780_v25 = vsel %vm8813_vm6, 4294967295, %v9779_v25  ;;  %6808 = vmatpush1.bf16.msk.msra.mxu1 %vm8813_vm6, %v9676_v3  ;;  %vm8835_vm6 = vmpackc.low %vm1505_vm2, %vm1503_vm4  ;;  %vm1507_vm4 = vcmp.eq.s32.totalorder %v8037_v53, %v7387_v21  ;;  %vm1509_vm2 = vcmp.eq.s32.totalorder %v8040_v54, %v7387_v21 }
 0x77b   : > { %9781 = vst [vmem:[#allocation37_spill] sm:$0xff] %v9780_v25  ;;  %v9786_v8 = vsel %vm8835_vm6, 4294967295, %v9785_v8 }
 0x77c   : > { %9787 = vst [vmem:[#allocation39_spill] sm:$0xff] %v9786_v8 }
 0x784   : > { %6748 = vmatmul.mubr.msk.bf16.vlgmr.msra.gmra.mrb[52].mxu0 %vm9777_vm14, %v7138_v19  ;;  %vm1506_vm14 = vcmp.eq.s32.totalorder %v8016_v48, %v7391_v22 }
 0x785   : > { %4156 = vmatpush1.bf16.msra.mxu0 %v4142_v46  ;;  %4187 = vmatprep.mubr.bf16.mxu0 %v9656_v26 }
 0x790   : > { %6752 = vmatmul.mubr.msk.bf16.vlgmr.msra.gmra.mrb[52].mxu0 %vm9778_vm5, %v7139_v60  ;;  %vm8824_vm5 = vmpackc.low %vm1506_vm14, %vm1504_vm10  ;;  %vm1508_vm10 = vcmp.eq.s32.totalorder %v8037_v53, %v7391_v22  ;;  %vm1510_vm14 = vcmp.eq.s32.totalorder %v8040_v54, %v7391_v22  ;;  %v4207_v22 = vpop.permute.xlu0 %4206  ;;  %v4212_v53 = vpop.permute.xlu1 %4211 }
 0x791   : > { %4341 = vmatprep.mubr.bf16.mxu0 %v9656_v26  ;;  %v9783_v57 = vsel %vm8824_vm5, 4294967295, %v9782_v57  ;;  %6810 = vmatprep.subr.msk.bf16.mxu1 %vm8824_vm5, %v9676_v3  ;;  %vm8846_vm0 = vmpackc.low %vm1510_vm14, %vm1508_vm10  ;;  %vm9797_vm10 = vcmp.lt.s32.totalorder %v7350_v4, 16 }
 0x792   : > { %9784 = vst [vmem:[#allocation38_spill] sm:$0xff] %v9783_v57  ;;  %6812 = vmatpush1.bf16.msk.msra.mxu1 %vm8835_vm6, %v9676_v3  ;;  %v9789_v36 = vsel %vm8846_vm0, 4294967295, %v9788_v36  ;;  %vm8857_vm6 = vmpackc.low %vm1509_vm2, %vm1507_vm4 }
 0x793   : > { %9790 = vst [vmem:[#allocation40_spill] sm:$0xff] %v9789_v36  ;;  %6814 = vmatprep.subr.msk.bf16.mxu1 %vm8846_vm0, %v9676_v3  ;;  %v9792_v43 = vsel %vm8857_vm6, 4294967295, %v9791_v43  ;;  %vm9798_vm14 = vmmov %vm9797_vm10 }
 0x794   : > { %9793 = vst [vmem:[#allocation41_spill] sm:$0xff] %v9792_v43  ;;  %vm9799_vm4 = vmmov %vm9797_vm10 }
 0x795   : > { %vm9800_vm2 = vmmov %vm9799_vm4 }
 0x796   : > { %6816 = vmatpush1.bf16.msk.msra.mxu1 %vm8857_vm6, %v9676_v3 }
 0x863   : > { %v4189_v48 = vpop.f32.mrb[52].mxu0 }
 0x864   : > { %v4214_v44 = vadd.f32 %v4207_v22, %v4189_v48  ;;  %v4191_v7 = vpop.f32.mrb[53].mxu0 }
 0x865   : > { %v4215_v52 = vadd.f32 %v4207_v22, %v4191_v7  ;;  %v4193_v41 = vpop.f32.mrb[54].mxu0  ;;  %v5407_v22 = vld [vmem:[%s916_s21] sm:$0xff] }
 0x866   : > { %v4216_v21 = vadd.f32 %v4212_v53, %v4193_v41  ;;  %v4195_v54 = vpop.f32.mrb[55].mxu0  ;;  %v4218_v50 = vmax.f32 %v4214_v44, 0.0 }
 0x867   : > { %v4217_v35 = vadd.f32 %v4212_v53, %v4195_v54  ;;  %v4219_v33 = vmax.f32 %v4215_v52, 0.0 }
 0x868   : > { %v4220_v30 = vmax.f32 %v4216_v21, 0.0 }
 0x869   : > { %v4221_v49 = vmax.f32 %v4217_v35, 0.0 }
 0x86a   : > { %v8864_v58 = vpack.c.bf16 %v4220_v30, %v4218_v50 }
 0x86b   : > { %v8866_v12 = vpack.c.bf16 %v4221_v49, %v4219_v33  ;;  %v9801_v49 = vld [vmem:[#allocation13_spill] sm:$0xff] }
 0x86d   : > { %4256 = vmatprep.mubr.bf16.mxu1 %v8866_v12 }
 0x86e   : > { %4257 = vmatmul.mubr.bf16.vlgmr.msra.gmra.mrb[28].mxu1 %v8864_v58 }
 0x86f   : > { %4635 = vmatprep.mubr.bf16.mxu1 %v9656_v26 }
 0x941   : > { %v4258_v16 = vpop.f32.mrb[28].mxu1 }
 0x942   : > { %4286 = vrot.lane.b32.xlu0 %v4258_v16, %s9794_s30  ;;  %v4260_v15 = vpop.f32.mrb[29].mxu1  ;;  %v8874_v61 = vmul.f32 %v4258_v16, %v7416_v27 }
 0x943   : > { %v4262_v18 = vpop.f32.mrb[30].mxu1  ;;  %v8880_v19 = vmul.f32 %v4260_v15, %v7421_v28 }
 0x944   : > { %4288 = vrot.lane.b32.xlu1 %v4262_v18, %s9794_s30  ;;  %v4264_v62 = vpop.f32.mrb[31].mxu1  ;;  %v8877_v10 = vmul.f32 %v4262_v18, %v7416_v27 }
 0x945   : > { %v8883_v1 = vmul.f32 %v4264_v62, %v7421_v28 }
 0x946   : > { %4267 = vrot.lane.b32.xlu0 %v4258_v16, %s9795_s19 }
 0x948   : > { %4269 = vrot.lane.b32.xlu1 %v4262_v18, %s9795_s19 }
 0x94a   : > { %4394 = vrot.lane.b32.xlu0 %v4258_v16, %s9641_s26 }
 0x94c   : > { %4396 = vrot.lane.b32.xlu1 %v4262_v18, %s9641_s26 }
 0x94e   : > { %4290 = vrot.lane.b32.xlu0 %v4260_v15, %s9794_s30 }
 0x950   : > { %4292 = vrot.lane.b32.xlu1 %v4264_v62, %s9794_s30 }
 0x952   : > { %4460 = vrot.lane.b32.xlu0 %v4258_v16, %s9642_s28 }
 0x954   : > { %4462 = vrot.lane.b32.xlu1 %v4262_v18, %s9642_s28 }
 0x956   : > { %4271 = vrot.lane.b32.xlu0 %v4260_v15, %s9795_s19 }
 0x958   : > { %4273 = vrot.lane.b32.xlu1 %v4264_v62, %s9795_s19 }
 0x95a   : > { %4398 = vrot.lane.b32.xlu0 %v4260_v15, %s9641_s26 }
 0x95c   : > { %4582 = vrot.lane.b32.xlu1 %v4262_v18, %s9643_s29 }
 0x95e   : > { %4464 = vrot.lane.b32.xlu0 %v4260_v15, %s9642_s28 }
 0x960   : > { %4400 = vrot.lane.b32.xlu1 %v4264_v62, %s9641_s26 }
 0x962   : > { %4580 = vrot.lane.b32.xlu0 %v4258_v16, %s9643_s29 }
 0x964   : > { %4648 = vrot.lane.b32.xlu1 %v4262_v18, %s9644_s0 }
 0x966   : > { %4584 = vrot.lane.b32.xlu0 %v4260_v15, %s9643_s29 }
 0x968   : > { %4466 = vrot.lane.b32.xlu1 %v4264_v62, %s9642_s28 }
 0x96a   : > { %4646 = vrot.lane.b32.xlu0 %v4258_v16, %s9644_s0 }
 0x96c   : > { %4714 = vrot.lane.b32.xlu1 %v4262_v18, %s9796_s4 }
 0x96e   : > { %4650 = vrot.lane.b32.xlu0 %v4260_v15, %s9644_s0 }
 0x970   : > { %4780 = vrot.lane.b32.xlu1 %v4262_v18, %s9646_s20 }
 0x972   : > { %4712 = vrot.lane.b32.xlu0 %v4258_v16, %s9796_s4 }
 0x974   : > { %4586 = vrot.lane.b32.xlu1 %v4264_v62, %s9643_s29 }
 0x976   : > { %4716 = vrot.lane.b32.xlu0 %v4260_v15, %s9796_s4 }
 0x978   : > { %4652 = vrot.lane.b32.xlu1 %v4264_v62, %s9644_s0 }
 0x97a   : > { %4778 = vrot.lane.b32.xlu0 %v4258_v16, %s9646_s20 }
 0x97c   : > { %4718 = vrot.lane.b32.xlu1 %v4264_v62, %s9796_s4 }
 0x97e   : > { %4782 = vrot.lane.b32.xlu0 %v4260_v15, %s9646_s20  ;;  %v9802_v15 = vld [vmem:[#allocation12_spill] sm:$0xff] }
 0x980   : > { %4784 = vrot.lane.b32.xlu1 %v4264_v62, %s9646_s20 }
 0x982   : > { %4844 = vrot.lane.b32.xlu0 %v7830_v63, %s9795_s19 }
 0x984   : > { %4846 = vrot.lane.b32.xlu1 %v7832_v0, %s9795_s19 }
 0x986   : > { %4907 = vrot.lane.b32.xlu0 %v7830_v63, %s9794_s30 }
 0x988   : > { %4909 = vrot.lane.b32.xlu1 %v7832_v0, %s9794_s30 }
 0x98a   : > { %4971 = vrot.lane.b32.xlu0 %v7830_v63, %s9641_s26 }
 0x98c   : > { %4973 = vrot.lane.b32.xlu1 %v7832_v0, %s9641_s26 }
 0x98e   : > { %5035 = vrot.lane.b32.xlu0 %v7830_v63, %s9642_s28 }
 0x990   : > { %5037 = vrot.lane.b32.xlu1 %v7832_v0, %s9642_s28 }
 0x992   : > { %5215 = vrot.lane.b32.xlu0 %v7830_v63, %s9644_s0 }
 0x994   : > { %5217 = vrot.lane.b32.xlu1 %v7832_v0, %s9644_s0 }
 0x996   : > { %5279 = vrot.lane.b32.xlu0 %v7830_v63, %s9796_s4 }
 0x998   : > { %5281 = vrot.lane.b32.xlu1 %v7832_v0, %s9796_s4 }
 0x99a   : > { %5343 = vrot.lane.b32.xlu0 %v7830_v63, %s9646_s20 }
 0x99c   : > { %5345 = vrot.lane.b32.xlu1 %v7832_v0, %s9646_s20 }
 0x99e   : > { %5410 = vperm.xlu0 %7115, %v5407_v22  }
 0x9b4   : > { %v4287_v48 = vpop.permute.xlu0 %4286 }
 0x9b6   : > { %v4289_v44 = vpop.permute.xlu1 %4288 }
 0x9b8   : > { %v4268_v7 = vpop.permute.xlu0 %4267 }
 0x9ba   : > { %v4270_v53 = vpop.permute.xlu1 %4269 }
 0x9bc   : > { %v4395_v52 = vpop.permute.xlu0 %4394 }
 0x9be   : > { %v4397_v41 = vpop.permute.xlu1 %4396 }
 0x9c0   : > { %v4291_v21 = vpop.permute.xlu0 %4290 }
 0x9c1   : > { %v4294_v54 = vsel %vm9797_vm10, %v4287_v48, %v4291_v21  ;;  %v4296_v35 = vsel %vm9798_vm14, %v4291_v21, %v4287_v48  ;;  %vm9803_vm10 = vcmp.lt.s32.totalorder %v7350_v4, 17 }
 0x9c2   : > { %v4293_v50 = vpop.permute.xlu1 %4292  ;;  %v4298_v16 = vmul.f32 %v4296_v35, %v9801_v49  ;;  %v4299_v18 = vmul.f32 %v4294_v54, %v9802_v15  ;;  %vm9804_vm14 = vmmov %vm9803_vm10  ;;  %v6817_v54 = vld [vmem:[%s8967_s24 + $0x4] sm:$0xf] }
 0x9c3   : > { %v4295_v30 = vsel %vm9799_vm4, %v4289_v44, %v4293_v50  ;;  %v4297_v33 = vsel %vm9800_vm2, %v4293_v50, %v4289_v44  ;;  %vm9805_vm4 = vmmov %vm9803_vm10 }
 0x9c4   : > { %v4300_v62 = vmul.f32 %v4297_v33, %v9801_v49  ;;  %v4301_v22 = vmul.f32 %v4295_v30, %v9802_v15  ;;  %v4461_v46 = vpop.permute.xlu0 %4460  ;;  %vm9806_vm2 = vmmov %vm9805_vm4  ;;  %v9807_v33 = vld [vmem:[#allocation10_spill] sm:$0xff] }
 0x9c6   : > { %v4302_v60 = vpack.c.bf16 %v4300_v62, %v4298_v16  ;;  %v4463_v43 = vpop.permute.xlu1 %4462  ;;  %v4303_v36 = vpack.c.bf16 %v4301_v22, %v4299_v18  ;;  %v9808_v18 = vld [vmem:[#allocation11_spill] sm:$0xff] }
 0x9c8   : > { %v4272_v48 = vpop.permute.xlu0 %4271  ;;  %4309 = vmatprep.subr.bf16.mxu0 %v4303_v36 }
 0x9c9   : > { %v4275_v44 = vsel %vm9803_vm10, %v4268_v7, %v4272_v48  ;;  %v4277_v21 = vsel %vm9804_vm14, %v4272_v48, %v4268_v7  ;;  %4310 = vmatpush1.bf16.msra.mxu0 %v4302_v60  ;;  %vm9809_vm10 = vcmask 130048   ;;  %vm9810_vm14 = vcmp.lt.s32.totalorder %v7350_v4, 15 }
 0x9ca   : > { %v4274_v35 = vpop.permute.xlu1 %4273  ;;  %v4279_v16 = vmul.f32 %v4277_v21, %v9807_v33  ;;  %v4280_v36 = vmul.f32 %v4275_v44, %v9808_v18  ;;  %v4285_v21 = vld [vmem:[%s8967_s24] sm:$0xf] }
 0x9cb   : > { %v4276_v50 = vsel %vm9805_vm4, %v4270_v53, %v4274_v35  ;;  %v4278_v30 = vsel %vm9806_vm2, %v4274_v35, %v4270_v53  ;;  %vm9811_vm4 = vmmov %vm9810_vm14 }
 0x9cc   : > { %v4281_v62 = vmul.f32 %v4278_v30, %v9807_v33  ;;  %v4282_v22 = vmul.f32 %v4276_v50, %v9808_v18  ;;  %v4399_v8 = vpop.permute.xlu0 %4398  ;;  %6818 = vmatmul.mubr.msk.bf16.vlgmr.msra.gmra.mrb[56].mxu0 %vm9809_vm10, %v6817_v54  ;;  %vm9812_vm2 = vmmov %vm9811_vm4  ;;  %v9814_v30 = vld [vmem:[#allocation15_spill] sm:$0xff] }
 0x9cd   : > { %4385 = vmatprep.mubr.bf16.mxu0 %v9656_v26  ;;  %v4402_v53 = vsel %vm9810_vm14, %v4395_v52, %v4399_v8  ;;  %v4404_v44 = vsel %vm9811_vm4, %v4399_v8, %v4395_v52  ;;  %vm9813_vm10 = vmmov %vm9812_vm2  ;;  %vm9816_vm14 = vcmask 130048   ;;  %vm9817_vm4 = vcmp.lt.s32.totalorder %v7350_v4, 1 }
 0x9ce   : > { %v4283_v60 = vpack.c.bf16 %v4281_v62, %v4279_v16  ;;  %v4583_v7 = vpop.permute.xlu1 %4582  ;;  %v4284_v48 = vpack.c.bf16 %v4282_v22, %v4280_v36  ;;  %v4406_v16 = vmul.f32 %v4404_v44, %v9814_v30  ;;  %v9815_v36 = vld [vmem:[#allocation14_spill] sm:$0xff]  ;;  %v6820_v44 = vld [vmem:[%s8967_s24 + $0x8] sm:$0xf] }
 0x9cf   : > { %v4407_v62 = vmul.f32 %v4402_v53, %v9815_v36 }
 0x9d0   : > { %v4465_v57 = vpop.permute.xlu0 %4464  ;;  %4353 = vmatprep.subr.bf16.mxu0 %v4284_v48 }
 0x9d1   : > { %4354 = vmatpush1.bf16.msra.mxu0 %v4283_v60 }
 0x9d2   : > { %v4401_v35 = vpop.permute.xlu1 %4400 }
 0x9d3   : > { %v4403_v50 = vsel %vm9812_vm2, %v4397_v41, %v4401_v35  ;;  %v4405_v54 = vsel %vm9813_vm10, %v4401_v35, %v4397_v41  ;;  %v4468_v41 = vsel %vm9817_vm4, %v4461_v46, %v4465_v57  ;;  %vm9818_vm2 = vmmov %vm9817_vm4  ;;  %vm9823_vm4 = vcmask 130048  }
 0x9d4   : > { %v4408_v22 = vmul.f32 %v4405_v54, %v9814_v30  ;;  %v4409_v48 = vmul.f32 %v4403_v50, %v9815_v36  ;;  %v4581_v25 = vpop.permute.xlu0 %4580  ;;  %6819 = vmatmul.mubr.msk.bf16.vlgmr.msra.gmra.mrb[60].mxu0 %vm9816_vm14, %v4285_v21  ;;  %v4470_v53 = vsel %vm9818_vm2, %v4465_v57, %v4461_v46  ;;  %vm9819_vm10 = vmmov %vm9818_vm2  ;;  %v9821_v54 = vld [vmem:[#allocation17_spill] sm:$0xff] }
 0x9d5   : > { %4449 = vmatprep.mubr.bf16.mxu0 %v9656_v26  ;;  %vm9820_vm14 = vmmov %vm9818_vm2  ;;  %vm9825_vm2 = vcmp.lt.s32.totalorder %v7350_v4, 127 }
 0x9d6   : > { %v4410_v8 = vpack.c.bf16 %v4408_v22, %v4406_v16  ;;  %v4649_v52 = vpop.permute.xlu1 %4648  ;;  %v4411_v60 = vpack.c.bf16 %v4409_v48, %v4407_v62  ;;  %v4472_v16 = vmul.f32 %v4470_v53, %v9821_v54  ;;  %v9822_v62 = vld [vmem:[#allocation16_spill] sm:$0xff] }
 0x9d7   : > { %v4473_v22 = vmul.f32 %v4468_v41, %v9822_v62  ;;  %v9824_v41 = vpack.c.bf16 %v8883_v1, %v8880_v19  ;;  %v9830_v1 = vld [vmem:[#allocation20_spill] sm:$0xff] }
 0x9d8   : > { %v4585_v37 = vpop.permute.xlu0 %4584  ;;  %4417 = vmatprep.subr.bf16.mxu0 %v4411_v60 }
 0x9d9   : > { %4418 = vmatpush1.bf16.msra.mxu0 %v4410_v8  ;;  %v4588_v53 = vsel %vm9825_vm2, %v4581_v25, %v4585_v37 }
 0x9da   : > { %v4467_v35 = vpop.permute.xlu1 %4466 }
 0x9db   : > { %v4469_v21 = vsel %vm9819_vm10, %v4463_v43, %v4467_v35  ;;  %v4471_v50 = vsel %vm9820_vm14, %v4467_v35, %v4463_v43  ;;  %v6822_v43 = vld [vmem:[%s8967_s24 + $0xc] sm:$0xf]  ;;  %vm9826_vm10 = vmmov %vm9825_vm2 }
 0x9dc   : > { %v4474_v48 = vmul.f32 %v4471_v50, %v9821_v54  ;;  %v4475_v60 = vmul.f32 %v4469_v21, %v9822_v62  ;;  %v4647_v17 = vpop.permute.xlu0 %4646  ;;  %6821 = vmatmul.mubr.msk.bf16.vlgmr.msra.gmra.mrb[64].mxu0 %vm9823_vm4, %v6820_v44  ;;  %v4590_v44 = vsel %vm9826_vm10, %v4585_v37, %v4581_v25  ;;  %vm9827_vm14 = vmmov %vm9823_vm4  ;;  %v9828_v50 = vpack.c.bf16 %v8877_v10, %v8874_v61 }
 0x9dd   : > { %4515 = vmatprep.mubr.bf16.mxu0 %v9656_v26  ;;  %vm9831_vm4 = vmmov %vm9825_vm2  ;;  %vm9832_vm10 = vcmp.lt.s32.totalorder %v7350_v4, 113 }
 0x9de   : > { %v4476_v57 = vpack.c.bf16 %v4474_v48, %v4472_v16  ;;  %v4715_v46 = vpop.permute.xlu1 %4714  ;;  %v4477_v8 = vpack.c.bf16 %v4475_v60, %v4473_v22  ;;  %v9829_v22 = vld [vmem:[#allocation21_spill] sm:$0xff]  ;;  %v4593_v48 = vmul.f32 %v4590_v44, %v9830_v1 }
 0x9df   : > { %v4592_v19 = vmul.f32 %v4588_v53, %v9829_v22 }
 0x9e0   : > { %v4651_v29 = vpop.permute.xlu0 %4650  ;;  %4483 = vmatprep.subr.bf16.mxu0 %v4477_v8 }
 0x9e1   : > { %4484 = vmatpush1.bf16.msra.mxu0 %v4476_v57  ;;  %v4654_v25 = vsel %vm9832_vm10, %v4647_v17, %v4651_v29 }
 0x9e2   : > { %v4781_v35 = vpop.permute.xlu1 %4780  ;;  %4537 = vmatprep.subr.bf16.mxu0 %v9824_v41 }
 0x9e4   : > { %v4713_v21 = vpop.permute.xlu0 %4712  ;;  %6823 = vmatmul.mubr.msk.bf16.vlgmr.msra.gmra.mrb[68].mxu0 %vm9827_vm14, %v6822_v43  ;;  %vm9833_vm14 = vmmov %vm9832_vm10  ;;  %v6824_v43 = vld [vmem:[%s8967_s24 + $0x10] sm:$0xf] }
 0x9e5   : > { %4538 = vmatpush1.bf16.msra.mxu0 %v9828_v50  ;;  %4569 = vmatprep.mubr.bf16.mxu0 %v9656_v26  ;;  %v4656_v61 = vsel %vm9833_vm14, %v4651_v29, %v4647_v17  ;;  %v9834_v50 = vld [vmem:[#allocation23_spill] sm:$0xff]  ;;  %vm9839_vm14 = vcmask 130048  }
 0x9e6   : > { %v4587_v16 = vpop.permute.xlu1 %4586  ;;  %v4658_v32 = vmul.f32 %v4654_v25, %v9834_v50  ;;  %v6826_v25 = vld [vmem:[%s8967_s24 + $0x14] sm:$0xf] }
 0x9e7   : > { %v4589_v60 = vsel %vm9831_vm4, %v4583_v7, %v4587_v16  ;;  %v4591_v37 = vsel %vm9825_vm2, %v4587_v16, %v4583_v7  ;;  %v4659_v7 = vmul.f32 %v4656_v61, %v9835_v2  ;;  %vm9836_vm4 = vmmov %vm9832_vm10  ;;  %vm9838_vm10 = vcmp.lt.s32.totalorder %v7350_v4, 112 }
 0x9e8   : > { %v4594_v10 = vmul.f32 %v4589_v60, %v9829_v22  ;;  %v4595_v57 = vmul.f32 %v4591_v37, %v9830_v1  ;;  %v4717_v8 = vpop.permute.xlu0 %4716  ;;  %vm9837_vm2 = vmmov %vm9836_vm4 }
 0x9e9   : > { %v4720_v17 = vsel %vm9838_vm10, %v4713_v21, %v4717_v8  ;;  %vm9840_vm6 = vmmov %vm9838_vm10  ;;  %vm9846_vm10 = vcmp.lt.s32.totalorder %v7350_v4, 111 }
 0x9ea   : > { %v4596_v41 = vpack.c.bf16 %v4594_v10, %v4592_v19  ;;  %v4653_v53 = vpop.permute.xlu1 %4652  ;;  %v4597_v44 = vpack.c.bf16 %v4595_v57, %v4593_v48  ;;  %v4722_v48 = vsel %vm9840_vm6, %v4717_v8, %v4713_v21  ;;  %v9841_v57 = vld [vmem:[#allocation19_spill] sm:$0xff] }
 0x9eb   : > { %v4655_v16 = vsel %vm9836_vm4, %v4649_v52, %v4653_v53  ;;  %v4657_v29 = vsel %vm9837_vm2, %v4653_v53, %v4649_v52  ;;  %v4724_v53 = vmul.f32 %v4720_v17, %v9841_v57  ;;  %vm9842_vm4 = vmmov %vm9840_vm6  ;;  %v6828_v17 = vld [vmem:[%s8967_s24 + $0x18] sm:$0xf] }
 0x9ec   : > { %v4660_v60 = vmul.f32 %v4655_v16, %v9834_v50  ;;  %v4661_v37 = vmul.f32 %v4657_v29, %v9835_v2  ;;  %v4779_v19 = vpop.permute.xlu0 %4778  ;;  %6825 = vmatmul.mubr.msk.bf16.vlgmr.msra.gmra.mrb[72].mxu0 %vm9839_vm14, %v6824_v43  ;;  %4603 = vmatprep.subr.bf16.mxu1 %v4597_v44  ;;  %vm9843_vm2 = vmmov %vm9842_vm4  ;;  %v9844_v44 = vld [vmem:[#allocation18_spill] sm:$0xff] }
 0x9ed   : > { %4604 = vmatpush1.bf16.msra.mxu1 %v4596_v41  ;;  %4701 = vmatprep.mubr.bf16.mxu0 %v9656_v26  ;;  %v4725_v29 = vmul.f32 %v4722_v48, %v9844_v44  ;;  %vm9845_vm6 = vmmov %vm9839_vm14  ;;  %v9848_v48 = vld [vmem:[#allocation25_spill] sm:$0xff] }
 0x9ee   : > { %v4662_v52 = vpack.c.bf16 %v4660_v60, %v4658_v32  ;;  %v4719_v61 = vpop.permute.xlu1 %4718  ;;  %v4663_v10 = vpack.c.bf16 %v4661_v37, %v4659_v7  ;;  %vm9847_vm14 = vmmov %vm9846_vm10 }
 0x9ef   : > { %v4721_v16 = vsel %vm9842_vm4, %v4715_v46, %v4719_v61  ;;  %v4723_v43 = vsel %vm9843_vm2, %v4719_v61, %v4715_v46  ;;  %vm9849_vm4 = vmmov %vm9846_vm10 }
 0x9f0   : > { %v4726_v21 = vmul.f32 %v4721_v16, %v9841_v57  ;;  %v4727_v8 = vmul.f32 %v4723_v43, %v9844_v44  ;;  %v4783_v41 = vpop.permute.xlu0 %4782  ;;  %6827 = vmatmul.mubr.msk.bf16.vlgmr.msra.gmra.mrb[32].mxu1 %vm9845_vm6, %v6826_v25  ;;  %4669 = vmatprep.subr.bf16.mxu0 %v4663_v10  ;;  %vm9850_vm2 = vmmov %vm9849_vm4  ;;  %v9851_v16 = vld [vmem:[#allocation24_spill] sm:$0xff] }
 0x9f1   : > { %v4786_v32 = vsel %vm9846_vm10, %v4779_v19, %v4783_v41  ;;  %v4788_v7 = vsel %vm9847_vm14, %v4783_v41, %v4779_v19  ;;  %4670 = vmatpush1.bf16.msra.mxu0 %v4662_v52  ;;  %4767 = vmatprep.mubr.bf16.mxu1 %v9656_v26  ;;  %vm9852_vm10 = vcmp.lt.s32.totalorder %v7350_v4, 17 }
 0x9f2   : > { %v4728_v46 = vpack.c.bf16 %v4726_v21, %v4724_v53  ;;  %v4785_v60 = vpop.permute.xlu1 %4784  ;;  %v4729_v37 = vpack.c.bf16 %v4727_v8, %v4725_v29  ;;  %v4790_v61 = vmul.f32 %v4786_v32, %v9848_v48  ;;  %v4791_v43 = vmul.f32 %v4788_v7, %v9851_v16  ;;  %v6830_v53 = vld [vmem:[%s8967_s24 + $0x1c] sm:$0xf]  ;;  %vm9853_vm14 = vmmov %vm9852_vm10 }
 0x9f3   : > { %v4787_v25 = vsel %vm9849_vm4, %v4781_v35, %v4785_v60  ;;  %v4789_v10 = vsel %vm9850_vm2, %v4785_v60, %v4781_v35  ;;  %vm9854_vm4 = vmmov %vm9845_vm6  ;;  %vm9855_vm2 = vcmp.lt.s32.totalorder %v7350_v4, 16 }
 0x9f4   : > { %v4792_v19 = vmul.f32 %v4787_v25, %v9848_v48  ;;  %v4793_v52 = vmul.f32 %v4789_v10, %v9851_v16  ;;  %v4845_v41 = vpop.permute.xlu0 %4844  ;;  %6829 = vmatmul.mubr.msk.bf16.vlgmr.msra.gmra.mrb[76].mxu0 %vm9845_vm6, %v6828_v17  ;;  %4735 = vmatprep.subr.bf16.mxu1 %v4729_v37  ;;  %vm9856_vm6 = vmmov %vm9855_vm2 }
 0x9f5   : > { %4736 = vmatpush1.bf16.msra.mxu1 %v4728_v46  ;;  %4833 = vmatprep.mubr.bf16.mxu0 %v9656_v26  ;;  %v6832_v46 = vld [vmem:[%s8967_s24 + $0x20] sm:$0xf] }
 0x9f6   : > { %v4794_v29 = vpack.c.bf16 %v4792_v19, %v4790_v61  ;;  %v4847_v21 = vpop.permute.xlu1 %4846  ;;  %v4795_v8 = vpack.c.bf16 %v4793_v52, %v4791_v43 }
 0x9f7   : > { %v4848_v35 = vsel %vm9852_vm10, %v4845_v41, %v4847_v21  ;;  %v4849_v32 = vsel %vm9853_vm14, %v4847_v21, %v4845_v41  ;;  %vm9857_vm10 = vmmov %vm9854_vm4  ;;  %vm9858_vm14 = vcmask 1043456  }
 0x9f8   : > { %v4850_v7 = vmul.f32 %v4849_v32, %v9807_v33  ;;  %v4851_v17 = vmul.f32 %v4848_v35, %v9808_v18  ;;  %v4908_v60 = vpop.permute.xlu0 %4907  ;;  %6831 = vmatmul.mubr.msk.bf16.vlgmr.msra.gmra.mrb[36].mxu1 %vm9854_vm4, %v6830_v53  ;;  %4801 = vmatprep.subr.bf16.mxu0 %v4795_v8  ;;  %vm9859_vm4 = vmmov %vm9858_vm14  ;;  %v5100_v32 = vmul.f32 %v7832_v0, %v7421_v28 }
 0x9f9   : > { %4802 = vmatpush1.bf16.msra.mxu0 %v4794_v29  ;;  %4896 = vmatprep.mubr.bf16.mxu1 %v9656_v26  ;;  %v4854_v29 = vld [vmem:[%s9094_s25] sm:$0xf] }
 0x9fa   : > { %v4852_v37 = vpack.c.bf16 %v4850_v7, %v4850_v7  ;;  %v4853_v61 = vpack.c.bf16 %v4851_v17, %v4851_v17  ;;  %v4910_v25 = vpop.permute.xlu1 %4909 }
 0x9fb   : > { %v4911_v10 = vsel %vm9855_vm2, %v4908_v60, %v4910_v25  ;;  %v4912_v43 = vsel %vm9856_vm6, %v4910_v25, %v4908_v60  ;;  %vm9860_vm2 = vcmp.lt.s32.totalorder %v7350_v4, 15  ;;  %v5099_v60 = vmul.f32 %v7830_v63, %v7416_v27  ;;  %v6836_v25 = vld [vmem:[%s9094_s25 + $0x4] sm:$0xf] }
 0x9fc   : > { %v4913_v19 = vmul.f32 %v4912_v43, %v9801_v49  ;;  %v4914_v52 = vmul.f32 %v4911_v10, %v9802_v15  ;;  %v4972_v41 = vpop.permute.xlu0 %4971  ;;  %6833 = vmatmul.mubr.msk.bf16.vlgmr.msra.gmra.mrb[80].mxu0 %vm9857_vm10, %v6832_v46  ;;  %6834 = vmatprep.subr.msk.bf16.mxu1 %vm9858_vm14, %v4853_v61  ;;  %v4859_v53 = vsel %vm9859_vm4, %v4852_v37, 0  ;;  %vm9861_vm6 = vmmov %vm9860_vm2  ;;  %vm9862_vm10 = vcmask 64512  }
 0x9fd   : > { %4865 = vmatpush1.bf16.msra.mxu1 %v4859_v53  ;;  %4960 = vmatprep.mubr.bf16.mxu0 %v9656_v26  ;;  %vm9863_vm14 = vmmov %vm9859_vm4  ;;  %v5102_v63 = vpack.c.bf16 %v5100_v32, %v5100_v32 }
 0x9fe   : > { %v4915_v21 = vpack.c.bf16 %v4913_v19, %v4913_v19  ;;  %v4916_v8 = vpack.c.bf16 %v4914_v52, %v4914_v52  ;;  %v4974_v35 = vpop.permute.xlu1 %4973  ;;  %v9864_v52 = vld [vmem:[#allocation26_spill] sm:$0xff] }
 0x9ff   : > { %v4975_v7 = vsel %vm9860_vm2, %v4972_v41, %v4974_v35  ;;  %v4976_v17 = vsel %vm9861_vm6, %v4974_v35, %v4972_v41  ;;  %v5157_v41 = vmul.f32 %v9864_v52, %v9829_v22  ;;  %vm9865_vm2 = vcmp.lt.s32.totalorder %v7350_v4, 1 }
 0xa00   : > { %v4977_v46 = vmul.f32 %v4976_v17, %v9814_v30  ;;  %v4978_v37 = vmul.f32 %v4975_v7, %v9815_v36  ;;  %v5036_v61 = vpop.permute.xlu0 %5035  ;;  %6835 = vmatmul.mubr.msk.bf16.vlgmr.msra.gmra.mrb[40].mxu1 %vm9862_vm10, %v4854_v29  ;;  %6837 = vmatprep.subr.msk.bf16.mxu0 %vm9863_vm14, %v4916_v8  ;;  %v4923_v0 = vsel %vm9859_vm4, %v4915_v21, 0  ;;  %vm9866_vm6 = vmmov %vm9865_vm2  ;;  %v5101_v8 = vpack.c.bf16 %v5099_v60, %v5099_v60  ;;  %v9867_v21 = vld [vmem:[#allocation27_spill] sm:$0xff] }
 0xa01   : > { %4929 = vmatpush1.bf16.msra.mxu0 %v4923_v0  ;;  %5024 = vmatprep.mubr.bf16.mxu1 %v9656_v26  ;;  %v5158_v35 = vmul.f32 %v9867_v21, %v9830_v1  ;;  %vm9868_vm14 = vmmov %vm9859_vm4 }
 0xa02   : > { %v4979_v10 = vpack.c.bf16 %v4977_v46, %v4977_v46  ;;  %v4980_v43 = vpack.c.bf16 %v4978_v37, %v4978_v37  ;;  %v5038_v19 = vpop.permute.xlu1 %5037  ;;  %v6839_v37 = vld [vmem:[%s9094_s25 + $0x8] sm:$0xf] }
 0xa03   : > { %v5039_v53 = vsel %vm9865_vm2, %v5036_v61, %v5038_v19  ;;  %v5040_v29 = vsel %vm9866_vm6, %v5038_v19, %v5036_v61  ;;  %vm9869_vm2 = vmmov %vm9859_vm4  ;;  %v5159_v19 = vpack.c.bf16 %v5157_v41, %v5157_v41  ;;  %vm9870_vm6 = vcmp.lt.s32.totalorder %v7350_v4, 113  ;;  %v6842_v41 = vld [vmem:[%s9094_s25 + $0xc] sm:$0xf] }
 0xa04   : > { %v5041_v7 = vmul.f32 %v5040_v29, %v9821_v54  ;;  %v5042_v17 = vmul.f32 %v5039_v53, %v9822_v62  ;;  %v5216_v46 = vpop.permute.xlu0 %5215  ;;  %6838 = vmatmul.mubr.msk.bf16.vlgmr.msra.gmra.mrb[84].mxu0 %vm9862_vm10, %v6836_v25  ;;  %6840 = vmatprep.subr.msk.bf16.mxu1 %vm9868_vm14, %v4980_v43  ;;  %v4987_v32 = vsel %vm9859_vm4, %v4979_v10, 0  ;;  %vm9871_vm10 = vmmov %vm9870_vm6  ;;  %v5160_v10 = vpack.c.bf16 %v5158_v35, %v5158_v35 }
 0xa05   : > { %4993 = vmatpush1.bf16.msra.mxu1 %v4987_v32  ;;  %5088 = vmatprep.mubr.bf16.mxu0 %v9656_v26  ;;  %vm9872_vm14 = vmmov %vm9869_vm2  ;;  %vm9873_vm4 = vcmask 64512  }
 0xa06   : > { %v5043_v61 = vpack.c.bf16 %v5041_v7, %v5041_v7  ;;  %v5044_v60 = vpack.c.bf16 %v5042_v17, %v5042_v17  ;;  %6846 = vmatprep.subr.msk.bf16.mxu1 %vm9869_vm2, %v5102_v63  ;;  %v5218_v0 = vpop.permute.xlu1 %5217  ;;  %v5109_v43 = vsel %vm9872_vm14, %v5101_v8, 0  ;;  %vm9874_vm0 = vmmov %vm9869_vm2 }
 0xa07   : > { %v5219_v52 = vsel %vm9870_vm6, %v5216_v46, %v5218_v0  ;;  %v5220_v25 = vsel %vm9871_vm10, %v5218_v0, %v5216_v46  ;;  %vm9875_vm2 = vmmov %vm9874_vm0  ;;  %vm9877_vm10 = vcmp.lt.s32.totalorder %v7350_v4, 112 }
 0xa08   : > { %v5221_v53 = vmul.f32 %v5219_v52, %v9834_v50  ;;  %v5222_v29 = vmul.f32 %v5220_v25, %v9835_v2  ;;  %v5280_v21 = vpop.permute.xlu0 %5279  ;;  %6841 = vmatmul.mubr.msk.bf16.vlgmr.msra.gmra.mrb[44].mxu1 %vm9873_vm4, %v6839_v37  ;;  %6843 = vmatprep.subr.msk.bf16.mxu0 %vm9874_vm0, %v5044_v60  ;;  %v5051_v63 = vsel %vm9875_vm2, %v5043_v61, 0  ;;  %vm9876_vm6 = vmmov %vm9874_vm0  ;;  %v5167_v61 = vsel %vm9875_vm2, %v5159_v19, 0  ;;  %v6845_v60 = vld [vmem:[%s9094_s25 + $0x10] sm:$0xf] }
 0xa09   : > { %5057 = vmatpush1.bf16.msra.mxu0 %v5051_v63  ;;  %5115 = vmatpush1.bf16.msra.mxu1 %v5109_v43  ;;  %vm9878_vm14 = vmmov %vm9877_vm10  ;;  %v6848_v63 = vld [vmem:[%s9094_s25 + $0x14] sm:$0xf] }
 0xa0a   : > { %v5224_v7 = vpack.c.bf16 %v5222_v29, %v5222_v29  ;;  %v5282_v17 = vpop.permute.xlu1 %5281  ;;  %6849 = vmatprep.subr.msk.bf16.mxu0 %vm9876_vm6, %v5160_v10  ;;  %5146 = vmatprep.mubr.bf16.mxu1 %v9656_v26  ;;  %v5223_v46 = vpack.c.bf16 %v5221_v53, %v5221_v53  ;;  %vm9879_vm0 = vmmov %vm9873_vm4  ;;  %vm9881_vm6 = vcmp.lt.s32.totalorder %v7350_v4, 111 }
 0xa0b   : > { %v5283_v8 = vsel %vm9877_vm10, %v5280_v21, %v5282_v17  ;;  %v5284_v35 = vsel %vm9878_vm14, %v5282_v17, %v5280_v21  ;;  %vm9880_vm4 = vmmov %vm9875_vm2 }
 0xa0c   : > { %v5285_v32 = vmul.f32 %v5283_v8, %v9841_v57  ;;  %v5286_v37 = vmul.f32 %v5284_v35, %v9844_v44  ;;  %6844 = vmatmul.mubr.msk.bf16.vlgmr.msra.gmra.mrb[88].mxu0 %vm9879_vm0, %v6842_v41  ;;  %6852 = vmatprep.subr.msk.bf16.mxu1 %vm9880_vm4, %v5224_v7  ;;  %v5344_v52 = vpop.permute.xlu0 %5343  ;;  %vm9882_vm10 = vmmov %vm9881_vm6  ;;  %v6851_v8 = vld [vmem:[%s9094_s25 + $0x18] sm:$0xf] }
 0xa0d   : > { %5173 = vmatpush1.bf16.msra.mxu0 %v5167_v61  ;;  %5204 = vmatprep.mubr.bf16.mxu0 %v9656_v26  ;;  %vm9883_vm14 = vmmov %vm9879_vm0 }
 0xa0e   : > { %v5288_v0 = vpack.c.bf16 %v5286_v37, %v5286_v37  ;;  %v5346_v25 = vpop.permute.xlu1 %5345  ;;  %v5287_v53 = vpack.c.bf16 %v5285_v32, %v5285_v32  ;;  %vm9884_vm0 = vmmov %vm9875_vm2  ;;  %v6857_v32 = vld [vmem:[%s9094_s25 + $0x20] sm:$0xf] }
 0xa0f   : > { %v5347_v43 = vsel %vm9881_vm6, %v5344_v52, %v5346_v25  ;;  %v5348_v10 = vsel %vm9882_vm10, %v5346_v25, %v5344_v52  ;;  %v5231_v21 = vsel %vm9884_vm0, %v5223_v46, 0  ;;  %vm9885_vm4 = vmmov %vm9884_vm0  ;;  %v6854_v46 = vld [vmem:[%s9094_s25 + $0x1c] sm:$0xf] }
 0xa10   : > { %v5349_v29 = vmul.f32 %v5347_v43, %v9848_v48  ;;  %v5350_v19 = vmul.f32 %v5348_v10, %v9851_v16  ;;  %6847 = vmatmul.mubr.msk.bf16.vlgmr.msra.gmra.mrb[48].mxu1 %vm9883_vm14, %v6845_v60  ;;  %6855 = vmatprep.subr.msk.bf16.mxu0 %vm9885_vm4, %v5288_v0  ;;  %vm9886_vm2 = vmmov %vm9883_vm14 }
 0xa11   : > { %5237 = vmatpush1.bf16.msra.mxu1 %v5231_v21  ;;  %5268 = vmatprep.mubr.bf16.mxu1 %v9656_v26  ;;  %vm9887_vm6 = vmmov %vm9884_vm0 }
 0xa12   : > { %v5352_v41 = vpack.c.bf16 %v5350_v19, %v5350_v19  ;;  %v5351_v7 = vpack.c.bf16 %v5349_v29, %v5349_v29  ;;  %v5295_v17 = vsel %vm9887_vm6, %v5287_v53, 0  ;;  %vm9888_vm10 = vmmov %vm9884_vm0  ;;  %vm9891_vm6 = vcmp.lt.s32.totalorder %v7350_v4, 16 }
 0xa13   : > { %vm9889_vm14 = vmmov %vm9886_vm2 }
 0xa14   : > { %6850 = vmatmul.mubr.msk.bf16.vlgmr.msra.gmra.mrb[92].mxu0 %vm9886_vm2, %v6848_v63  ;;  %6858 = vmatprep.subr.msk.bf16.mxu1 %vm9888_vm10, %v5352_v41  ;;  %v5359_v35 = vsel %vm9884_vm0, %v5351_v7, 0  ;;  %vm9890_vm4 = vmmov %vm9886_vm2 }
 0xa15   : > { %5301 = vmatpush1.bf16.msra.mxu0 %v5295_v17  ;;  %5332 = vmatprep.mubr.bf16.mxu0 %v9656_v26  ;;  %vm9892_vm10 = vmmov %vm9891_vm6 }
 0xa18   : > { %6853 = vmatmul.mubr.msk.bf16.vlgmr.msra.gmra.mrb[52].mxu1 %vm9889_vm14, %v6851_v8  ;;  %vm9893_vm14 = vcmp.lt.s32.totalorder %v7350_v4, 17 }
 0xa19   : > { %5365 = vmatpush1.bf16.msra.mxu1 %v5359_v35  ;;  %5396 = vmatprep.mubr.bf16.mxu1 %v9656_v26  ;;  %vm9894_vm0 = vmmov %vm9893_vm14 }
 0xa1c   : > { %6856 = vmatmul.mubr.msk.bf16.vlgmr.msra.gmra.mrb[96].mxu0 %vm9890_vm4, %v6854_v46  ;;  %vm9895_vm4 = vcmask 1043456  }
 0xa1d   : > { %5481 = vmatprep.mubr.bf16.mxu0 %v9656_v26 }
 0xa20   : > { %6859 = vmatmul.mubr.msk.bf16.vlgmr.msra.gmra.mrb[56].mxu1 %vm9886_vm2, %v6857_v32  ;;  %vm9896_vm2 = vmmov %vm9895_vm4 }
 0xa21   : > { %5531 = vmatprep.mubr.bf16.mxu1 %v9656_v26 }
 0xa9f   : > { %v4343_v37 = vpop.f32.mrb[56].mxu0 }
 0xaa0   : > { %v4345_v61 = vpop.f32.mrb[57].mxu0 }
 0xaa1   : > { %v4347_v60 = vpop.f32.mrb[58].mxu0 }
 0xaa2   : > { %v4348_v0 = vpop.f32.mrb[59].mxu0 }
 0xaa7   : > { %v4387_v52 = vpop.f32.mrb[60].mxu0 }
 0xaa8   : > { %v4388_v25 = vadd.f32 %v4387_v52, %v4343_v37  ;;  %v4389_v43 = vpop.f32.mrb[61].mxu0 }
 0xaa9   : > { %v4390_v10 = vadd.f32 %v4389_v43, %v4345_v61  ;;  %v4391_v53 = vpop.f32.mrb[62].mxu0 }
 0xaaa   : > { %v4392_v29 = vpop.f32.mrb[63].mxu0 }
 0xaaf   : > { %v4451_v19 = vpop.f32.mrb[64].mxu0 }
 0xab0   : > { %v4458_v21 = vadd.f32 %v4451_v19, %v4388_v25  ;;  %v4453_v63 = vpop.f32.mrb[65].mxu0 }
 0xab1   : > { %v4459_v41 = vadd.f32 %v4453_v63, %v4390_v10  ;;  %v4455_v7 = vpop.f32.mrb[66].mxu0 }
 0xab2   : > { %v4456_v17 = vpop.f32.mrb[67].mxu0 }
 0xab7   : > { %v4517_v8 = vpop.f32.mrb[68].mxu0 }
 0xab8   : > { %v4524_v35 = vadd.f32 %v4517_v8, %v4458_v21  ;;  %v4519_v46 = vpop.f32.mrb[69].mxu0 }
 0xab9   : > { %v4525_v32 = vadd.f32 %v4519_v46, %v4459_v41  ;;  %v4521_v40 = vpop.f32.mrb[70].mxu0 }
 0xaba   : > { %v4522_v6 = vpop.f32.mrb[71].mxu0 }
 0xabf   : > { %v4571_v60 = vpop.f32.mrb[72].mxu0 }
 0xac0   : > { %v4578_v0 = vadd.f32 %v4571_v60, %v4524_v35  ;;  %v4573_v56 = vpop.f32.mrb[73].mxu0 }
 0xac1   : > { %v4579_v37 = vadd.f32 %v4573_v56, %v4525_v32  ;;  %v4575_v52 = vpop.f32.mrb[74].mxu0 }
 0xac2   : > { %v4576_v61 = vpop.f32.mrb[75].mxu0 }
 0xac3   : > { %v4637_v43 = vpop.f32.mrb[32].mxu1 }
 0xac4   : > { %v4644_v53 = vadd.f32 %v4637_v43, %v4578_v0  ;;  %v4639_v29 = vpop.f32.mrb[33].mxu1 }
 0xac5   : > { %v4645_v25 = vadd.f32 %v4639_v29, %v4579_v37  ;;  %v4641_v19 = vpop.f32.mrb[34].mxu1 }
 0xac6   : > { %v4642_v10 = vpop.f32.mrb[35].mxu1 }
 0xac7   : > { %v4703_v63 = vpop.f32.mrb[76].mxu0 }
 0xac8   : > { %v4710_v7 = vadd.f32 %v4703_v63, %v4644_v53  ;;  %v4705_v17 = vpop.f32.mrb[77].mxu0 }
 0xac9   : > { %v4711_v21 = vadd.f32 %v4705_v17, %v4645_v25  ;;  %v4707_v8 = vpop.f32.mrb[78].mxu0 }
 0xaca   : > { %v4708_v41 = vpop.f32.mrb[79].mxu0 }
 0xacb   : > { %v4769_v40 = vpop.f32.mrb[36].mxu1 }
 0xacc   : > { %v4776_v6 = vadd.f32 %v4769_v40, %v4710_v7  ;;  %v4771_v46 = vpop.f32.mrb[37].mxu1 }
 0xacd   : > { %v4777_v35 = vadd.f32 %v4771_v46, %v4711_v21  ;;  %v4773_v60 = vpop.f32.mrb[38].mxu1 }
 0xace   : > { %v4774_v56 = vpop.f32.mrb[39].mxu1 }
 0xacf   : > { %v4835_v32 = vpop.f32.mrb[80].mxu0 }
 0xad0   : > { %v4842_v52 = vadd.f32 %v4835_v32, %v4776_v6  ;;  %v4837_v61 = vpop.f32.mrb[81].mxu0 }
 0xad1   : > { %v4843_v0 = vadd.f32 %v4837_v61, %v4777_v35  ;;  %v4839_v43 = vpop.f32.mrb[82].mxu0 }
 0xad2   : > { %v4840_v37 = vpop.f32.mrb[83].mxu0 }
 0xad3   : > { %v4898_v29 = vpop.f32.mrb[40].mxu1 }
 0xad4   : > { %v4905_v19 = vadd.f32 %v4898_v29, %v4842_v52  ;;  %v4900_v10 = vpop.f32.mrb[41].mxu1 }
 0xad5   : > { %v4906_v53 = vadd.f32 %v4900_v10, %v4843_v0  ;;  %v4902_v63 = vpop.f32.mrb[42].mxu1 }
 0xad6   : > { %v4903_v25 = vpop.f32.mrb[43].mxu1 }
 0xad7   : > { %v4962_v17 = vpop.f32.mrb[84].mxu0 }
 0xad8   : > { %v4969_v8 = vadd.f32 %v4962_v17, %v4905_v19  ;;  %v4964_v41 = vpop.f32.mrb[85].mxu0 }
 0xad9   : > { %v4970_v7 = vadd.f32 %v4964_v41, %v4906_v53  ;;  %v4966_v40 = vpop.f32.mrb[86].mxu0 }
 0xada   : > { %v4967_v21 = vpop.f32.mrb[87].mxu0 }
 0xadb   : > { %v5026_v46 = vpop.f32.mrb[44].mxu1 }
 0xadc   : > { %v5033_v60 = vadd.f32 %v5026_v46, %v4969_v8  ;;  %v5028_v56 = vpop.f32.mrb[45].mxu1 }
 0xadd   : > { %v5034_v6 = vadd.f32 %v5028_v56, %v4970_v7  ;;  %v5030_v32 = vpop.f32.mrb[46].mxu1 }
 0xade   : > { %v5031_v35 = vpop.f32.mrb[47].mxu1 }
 0xadf   : > { %v5090_v61 = vpop.f32.mrb[88].mxu0 }
 0xae0   : > { %v5097_v43 = vadd.f32 %v5090_v61, %v5033_v60  ;;  %v5092_v37 = vpop.f32.mrb[89].mxu0 }
 0xae1   : > { %v5098_v52 = vadd.f32 %v5092_v37, %v5034_v6  ;;  %v5094_v29 = vpop.f32.mrb[90].mxu0 }
 0xae2   : > { %v5095_v0 = vpop.f32.mrb[91].mxu0 }
 0xae3   : > { %v5148_v10 = vpop.f32.mrb[48].mxu1 }
 0xae4   : > { %v5155_v63 = vadd.f32 %v5148_v10, %v5097_v43  ;;  %v5150_v25 = vpop.f32.mrb[49].mxu1 }
 0xae5   : > { %v5156_v19 = vadd.f32 %v5150_v25, %v5098_v52  ;;  %v5152_v17 = vpop.f32.mrb[50].mxu1 }
 0xae6   : > { %v5153_v53 = vpop.f32.mrb[51].mxu1 }
 0xae7   : > { %v5206_v41 = vpop.f32.mrb[92].mxu0 }
 0xae8   : > { %v5213_v40 = vadd.f32 %v5206_v41, %v5155_v63  ;;  %v5208_v21 = vpop.f32.mrb[93].mxu0  ;;  %v5411_v63 = vpop.permute.xlu0 %5410 }
 0xae9   : > { %v5214_v8 = vadd.f32 %v5208_v21, %v5156_v19  ;;  %v5210_v46 = vpop.f32.mrb[94].mxu0 }
 0xaea   : > { %v5211_v7 = vpop.f32.mrb[95].mxu0 }
 0xaeb   : > { %v5270_v56 = vpop.f32.mrb[52].mxu1 }
 0xaec   : > { %v5277_v32 = vadd.f32 %v5270_v56, %v5213_v40  ;;  %v5272_v35 = vpop.f32.mrb[53].mxu1 }
 0xaed   : > { %v5278_v60 = vadd.f32 %v5272_v35, %v5214_v8  ;;  %v5274_v61 = vpop.f32.mrb[54].mxu1 }
 0xaee   : > { %v5275_v6 = vpop.f32.mrb[55].mxu1 }
 0xaef   : > { %v5334_v37 = vpop.f32.mrb[96].mxu0 }
 0xaf0   : > { %v5341_v29 = vadd.f32 %v5334_v37, %v5277_v32  ;;  %v5336_v0 = vpop.f32.mrb[97].mxu0 }
 0xaf1   : > { %v5342_v43 = vadd.f32 %v5336_v0, %v5278_v60  ;;  %v5338_v10 = vpop.f32.mrb[98].mxu0 }
 0xaf2   : > { %v5339_v52 = vpop.f32.mrb[99].mxu0 }
 0xaf3   : > { %v5398_v25 = vpop.f32.mrb[56].mxu1 }
 0xaf4   : > { %v5405_v17 = vadd.f32 %v5398_v25, %v5341_v29  ;;  %v5400_v53 = vpop.f32.mrb[57].mxu1 }
 0xaf5   : > { %v5406_v41 = vadd.f32 %v5400_v53, %v5342_v43  ;;  %v5402_v19 = vpop.f32.mrb[58].mxu1 }
 0xaf6   : > { %v5413_v21 = vadd.f32 %v5411_v63, %v5405_v17  ;;  %v5403_v46 = vpop.f32.mrb[59].mxu1 }
 0xaf7   : > { %v5414_v7 = vadd.f32 %v5411_v63, %v5406_v41 }
 0xaf8   : > { %v5415_v40 = vmax.f32 %v5413_v21, 0.0 }
 0xaf9   : > { %v5416_v8 = vmax.f32 %v5414_v7, 0.0 }
 0xafa   : > { %5428 = vrot.lane.b32.xlu1 %v5415_v40, %s9794_s30 }
 0xafb   : > { %5430 = vrot.lane.b32.xlu0 %v5416_v8, %s9794_s30  ;;  %s6584_s30 = sshll.u32 %s7353_s23, 1 }
 0xafc   : > { %s932_s3 = scalar_lea.vmem %s9461_s15, %s6584_s30 }
 0xafd   : > { %v5995_v35 = vld [vmem:[%s932_s3] sm:$0x3] }
 0xafe   : > { %5417 = vrot.lane.b32.xlu1 %v5415_v40, %s9795_s19 }
 0xaff   : > { %5419 = vrot.lane.b32.xlu0 %v5416_v8, %s9795_s19 }
 0xb02   : > { %5540 = vrot.lane.b32.xlu1 %v5415_v40, %s9641_s26 }
 0xb03   : > { %5542 = vrot.lane.b32.xlu0 %v5416_v8, %s9641_s26  ;;  %s925_s26 = scalar_lea.vmem %s9459_s13, %s7436_s27 }
 0xb04   : > { %v5982_v56 = vld [vmem:[%s925_s26] sm:$0xff] }
 0xb06   : > { %5604 = vrot.lane.b32.xlu1 %v5415_v40, %s9642_s28 }
 0xb07   : > { %5606 = vrot.lane.b32.xlu0 %v5416_v8, %s9642_s28  ;;  %s939_s28 = scalar_lea.vmem %s9463_s17, %s6584_s30  ;;  %s928_s30 = scalar_lea.vmem %s9460_s14, %s7353_s23 }
 0xb08   : > { %v6052_v32 = vld [vmem:[%s939_s28] sm:$0x3]  ;;  %s9971_s23 = sld [smem:[#allocation2_spill]] }
 0xb0a   : > { %5726 = vrot.lane.b32.xlu1 %v5415_v40, %s9643_s29 }
 0xb0b   : > { %5728 = vrot.lane.b32.xlu0 %v5416_v8, %s9643_s29 }
 0xb0e   : > { %5790 = vrot.lane.b32.xlu1 %v5415_v40, %s9644_s0  ;;  %p6953_p7 = scmp.ne.s32.totalorder %s9971_s23, 0 }
 0xb0f   : > { %5792 = vrot.lane.b32.xlu0 %v5416_v8, %s9644_s0  ;;  %s9972_s19 = sld [smem:[#allocation8_spill]] (!%p6953_p7)  ;;  %s9973_s5 = sld [smem:[#allocation9_spill]] (!%p6953_p7) }
 0xb12   : > { %5854 = vrot.lane.b32.xlu1 %v5415_v40, %s9796_s4 }
 0xb13   : > { %5856 = vrot.lane.b32.xlu0 %v5416_v8, %s9796_s4  ;;  %s9224_s4 = scalar_lea.vmem %s9458_s12, %s7495_s22 }
 0xb14   : > { %v6860_v19 = vld [vmem:[%s9224_s4 + $0x4] sm:$0xf] }
 0xb16   : > { %5918 = vrot.lane.b32.xlu1 %v5415_v40, %s9646_s20 }
 0xb17   : > { %5920 = vrot.lane.b32.xlu0 %v5416_v8, %s9646_s20 }
 0xb1a   : > { %5985 = vperm.xlu1 %7121, %v5982_v56  }
 0xb1b   : > { %6055 = vperm.xlu0 %7115, %v6052_v32  }
 0xb1e   : > { %5998 = vperm.xlu1 %7121, %v5995_v35  }
 0xb6c   : > { %v5429_v60 = vpop.permute.xlu1 %5428 }
 0xb6d   : > { %v5431_v61 = vpop.permute.xlu0 %5430 }
 0xb6e   : > { %v5432_v6 = vsel %vm9891_vm6, %v5429_v60, %v5431_v61  ;;  %v5433_v37 = vsel %vm9892_vm10, %v5431_v61, %v5429_v60  ;;  %vm9897_vm6 = vcmp.lt.s32.totalorder %v7350_v4, 15  ;;  %v5669_v61 = vmul.f32 %v5416_v8, %v7421_v28 }
 0xb6f   : > { %v5434_v29 = vmul.f32 %v5433_v37, %v9801_v49  ;;  %v5435_v0 = vmul.f32 %v5432_v6, %v9802_v15  ;;  %vm9898_vm10 = vmmov %vm9897_vm6  ;;  %v5427_v37 = vld [vmem:[%s9224_s4] sm:$0xf] }
 0xb70   : > { %v5418_v43 = vpop.permute.xlu1 %5417 }
 0xb71   : > { %v5436_v10 = vpack.c.bf16 %v5434_v29, %v5434_v29  ;;  %v5437_v52 = vpack.c.bf16 %v5435_v0, %v5435_v0  ;;  %v5420_v25 = vpop.permute.xlu0 %5419 }
 0xb72   : > { %v5421_v17 = vsel %vm9893_vm14, %v5418_v43, %v5420_v25  ;;  %v5422_v53 = vsel %vm9894_vm0, %v5420_v25, %v5418_v43  ;;  %vm9899_vm14 = vcmask 64512   ;;  %vm9900_vm0 = vmmov %vm9896_vm2  ;;  %v6865_v25 = vld [vmem:[%s9224_s4 + $0x8] sm:$0xf] }
 0xb73   : > { %v5423_v49 = vmul.f32 %v5422_v53, %v9807_v33  ;;  %v5424_v15 = vmul.f32 %v5421_v17, %v9808_v18  ;;  %6861 = vmatprep.subr.msk.bf16.mxu0 %vm9895_vm4, %v5437_v52  ;;  %v5444_v63 = vsel %vm9896_vm2, %v5436_v10, 0  ;;  %v5668_v33 = vmul.f32 %v5415_v40, %v7416_v27  ;;  %vm9901_vm4 = vmmov %vm9900_vm0 }
 0xb74   : > { %v5541_v41 = vpop.permute.xlu1 %5540  ;;  %5450 = vmatpush1.bf16.msra.mxu0 %v5444_v63  ;;  %vm9902_vm2 = vcmp.lt.s32.totalorder %v7350_v4, 1  ;;  %v5671_v10 = vpack.c.bf16 %v5669_v61, %v5669_v61  ;;  %vm9910_vm5 = vmmov %vm9900_vm0  ;;  %v6871_v61 = vld [vmem:[%s9224_s4 + $0x10] sm:$0xf] }
 0xb75   : > { %v5425_v21 = vpack.c.bf16 %v5423_v49, %v5423_v49  ;;  %v5426_v46 = vpack.c.bf16 %v5424_v15, %v5424_v15  ;;  %v5543_v7 = vpop.permute.xlu0 %5542  ;;  %v5670_v0 = vpack.c.bf16 %v5668_v33, %v5668_v33 }
 0xb76   : > { %v5544_v56 = vsel %vm9897_vm6, %v5541_v41, %v5543_v7  ;;  %v5545_v32 = vsel %vm9898_vm10, %v5543_v7, %v5541_v41  ;;  %vm9903_vm6 = vmmov %vm9902_vm2 }
 0xb77   : > { %v5546_v18 = vmul.f32 %v5545_v32, %v9814_v30  ;;  %v5547_v35 = vmul.f32 %v5544_v56, %v9815_v36  ;;  %6862 = vmatmul.mubr.msk.bf16.vlgmr.msra.gmra.mrb[100].mxu0 %vm9899_vm14, %v6860_v19  ;;  %6863 = vmatprep.subr.msk.bf16.mxu1 %vm9900_vm0, %v5426_v46  ;;  %v5494_v60 = vsel %vm9901_vm4, %v5425_v21, 0  ;;  %vm9904_vm10 = vmmov %vm9899_vm14  ;;  %v5678_v19 = vsel %vm9910_vm5, %v5670_v0, 0  ;;  %v6868_v46 = vld [vmem:[%s9224_s4 + $0xc] sm:$0xf]  ;;  %v6874_v0 = vld [vmem:[%s9224_s4 + $0x14] sm:$0xf] }
 0xb78   : > { %v5605_v6 = vpop.permute.xlu1 %5604  ;;  %5500 = vmatpush1.bf16.msra.mxu1 %v5494_v60  ;;  %5593 = vmatprep.mubr.bf16.mxu0 %v9656_v26  ;;  %vm9905_vm14 = vmmov %vm9900_vm0 }
 0xb79   : > { %v5548_v29 = vpack.c.bf16 %v5546_v18, %v5546_v18  ;;  %v5549_v27 = vpack.c.bf16 %v5547_v35, %v5547_v35  ;;  %v5607_v40 = vpop.permute.xlu0 %5606  ;;  %vm9906_vm4 = vmmov %vm9900_vm0 }
 0xb7a   : > { %v5608_v30 = vsel %vm9902_vm2, %v5605_v6, %v5607_v40  ;;  %v5609_v36 = vsel %vm9903_vm6, %v5607_v40, %v5605_v6  ;;  %vm9907_vm2 = vcmp.lt.s32.totalorder %v7350_v4, 127  ;;  %vm9913_vm5 = vmmov %vm9904_vm10 }
 0xb7b   : > { %v5610_v43 = vmul.f32 %v5609_v36, %v9821_v54  ;;  %v5611_v28 = vmul.f32 %v5608_v30, %v9822_v62  ;;  %6864 = vmatmul.mubr.msk.bf16.vlgmr.msra.gmra.mrb[60].mxu1 %vm9904_vm10, %v5427_v37  ;;  %6866 = vmatprep.subr.msk.bf16.mxu0 %vm9905_vm14, %v5549_v27  ;;  %v5556_v8 = vsel %vm9900_vm0, %v5548_v29, 0  ;;  %vm9908_vm6 = vmmov %vm9907_vm2 }
 0xb7c   : > { %v5727_v52 = vpop.permute.xlu1 %5726  ;;  %5562 = vmatpush1.bf16.msra.mxu0 %v5556_v8  ;;  %5657 = vmatprep.mubr.bf16.mxu1 %v9656_v26  ;;  %vm9909_vm14 = vmmov %vm9900_vm0 }
 0xb7d   : > { %v5612_v17 = vpack.c.bf16 %v5610_v43, %v5610_v43  ;;  %v5613_v53 = vpack.c.bf16 %v5611_v28, %v5611_v28  ;;  %v5729_v49 = vpop.permute.xlu0 %5728  ;;  %6872 = vmatprep.subr.msk.bf16.mxu0 %vm9906_vm4, %v5671_v10  ;;  %vm9911_vm4 = vcmp.lt.s32.totalorder %v7350_v4, 113 }
 0xb7e   : > { %v5730_v54 = vsel %vm9907_vm2, %v5727_v52, %v5729_v49  ;;  %v5731_v62 = vsel %vm9908_vm6, %v5729_v49, %v5727_v52  ;;  %vm9912_vm2 = vmmov %vm9911_vm4  ;;  %v6883_v49 = vld [vmem:[%s9224_s4 + $0x20] sm:$0xf] }
 0xb7f   : > { %v5732_v15 = vmul.f32 %v5730_v54, %v9829_v22  ;;  %v5733_v63 = vmul.f32 %v5731_v62, %v9830_v1  ;;  %6867 = vmatmul.mubr.msk.bf16.vlgmr.msra.gmra.mrb[104].mxu0 %vm9904_vm10, %v6865_v25  ;;  %6869 = vmatprep.subr.msk.bf16.mxu1 %vm9909_vm14, %v5613_v53  ;;  %v5620_v41 = vsel %vm9900_vm0, %v5612_v17, 0  ;;  %vm9914_vm6 = vmmov %vm9900_vm0  ;;  %vm9916_vm14 = vcmp.lt.s32.totalorder %v7350_v4, 112  ;;  %v6877_v17 = vld [vmem:[%s9224_s4 + $0x18] sm:$0xf]  ;;  %v6051_v54 = vld [vmem:[%s935_s18] sm:$0x1] }
 0xb80   : > { %v5791_v21 = vpop.permute.xlu1 %5790  ;;  %5626 = vmatpush1.bf16.msra.mxu1 %v5620_v41  ;;  %5684 = vmatpush1.bf16.msra.mxu0 %v5678_v19  ;;  %vm9915_vm10 = vmmov %vm9900_vm0 }
 0xb81   : > { %v5734_v7 = vpack.c.bf16 %v5732_v15, %v5732_v15  ;;  %v5735_v56 = vpack.c.bf16 %v5733_v63, %v5733_v63  ;;  %v5793_v32 = vpop.permute.xlu0 %5792  ;;  %5715 = vmatprep.mubr.bf16.mxu0 %v9656_v26  ;;  %vm9917_vm0 = vmmov %vm9916_vm14 }
 0xb82   : > { %v5794_v22 = vsel %vm9911_vm4, %v5791_v21, %v5793_v32  ;;  %v5795_v1 = vsel %vm9912_vm2, %v5793_v32, %v5791_v21  ;;  %vm9918_vm4 = vmmov %vm9913_vm5 }
 0xb83   : > { %v5796_v33 = vmul.f32 %v5794_v22, %v9834_v50  ;;  %v5797_v18 = vmul.f32 %v5795_v1, %v9835_v2  ;;  %6870 = vmatmul.mubr.msk.bf16.vlgmr.msra.gmra.mrb[64].mxu1 %vm9913_vm5, %v6868_v46  ;;  %6875 = vmatprep.subr.msk.bf16.mxu1 %vm9914_vm6, %v5735_v56  ;;  %v5742_v35 = vsel %vm9915_vm10, %v5734_v7, 0  ;;  %vm9919_vm2 = vmmov %vm9914_vm6  ;;  %vm9921_vm6 = vcmp.lt.s32.totalorder %v7350_v4, 111 }
 0xb84   : > { %v5855_v60 = vpop.permute.xlu1 %5854  ;;  %5748 = vmatpush1.bf16.msra.mxu1 %v5742_v35  ;;  %5779 = vmatprep.mubr.bf16.mxu1 %v9656_v26  ;;  %vm9920_vm5 = vmmov %vm9919_vm2 }
 0xb85   : > { %v5798_v6 = vpack.c.bf16 %v5796_v33, %v5796_v33  ;;  %v5799_v37 = vpack.c.bf16 %v5797_v18, %v5797_v18  ;;  %v5857_v29 = vpop.permute.xlu0 %5856  ;;  %vm9922_vm10 = vmmov %vm9921_vm6 }
 0xb86   : > { %v5858_v50 = vsel %vm9916_vm14, %v5855_v60, %v5857_v29  ;;  %v5859_v2 = vsel %vm9917_vm0, %v5857_v29, %v5855_v60  ;;  %vm9923_vm14 = vmmov %vm9918_vm4 }
 0xb87   : > { %v5860_v27 = vmul.f32 %v5858_v50, %v9841_v57  ;;  %v5861_v40 = vmul.f32 %v5859_v2, %v9844_v44  ;;  %6873 = vmatmul.mubr.msk.bf16.vlgmr.msra.gmra.mrb[108].mxu0 %vm9918_vm4, %v6871_v61  ;;  %6878 = vmatprep.subr.msk.bf16.mxu0 %vm9919_vm2, %v5799_v37  ;;  %v5806_v30 = vsel %vm9920_vm5, %v5798_v6, 0  ;;  %vm9924_vm0 = vmmov %vm9919_vm2 }
 0xb88   : > { %v5919_v36 = vpop.permute.xlu1 %5918  ;;  %5812 = vmatpush1.bf16.msra.mxu0 %v5806_v30  ;;  %5843 = vmatprep.mubr.bf16.mxu0 %v9656_v26  ;;  %vm9925_vm4 = vmmov %vm9924_vm0 }
 0xb89   : > { %v5862_v43 = vpack.c.bf16 %v5860_v27, %v5860_v27  ;;  %v5863_v28 = vpack.c.bf16 %v5861_v40, %v5861_v40  ;;  %v5921_v8 = vpop.permute.xlu0 %5920  ;;  %vm9926_vm2 = vmmov %vm9923_vm14 }
 0xb8a   : > { %v5922_v57 = vsel %vm9921_vm6, %v5919_v36, %v5921_v8  ;;  %v5923_v44 = vsel %vm9922_vm10, %v5921_v8, %v5919_v36  ;;  %vm9927_vm5 = vmmov %vm9924_vm0 }
 0xb8b   : > { %v5924_v10 = vmul.f32 %v5922_v57, %v9848_v48  ;;  %v5925_v52 = vmul.f32 %v5923_v44, %v9851_v16  ;;  %6876 = vmatmul.mubr.msk.bf16.vlgmr.msra.gmra.mrb[68].mxu1 %vm9923_vm14, %v6874_v0  ;;  %6881 = vmatprep.subr.msk.bf16.mxu1 %vm9924_vm0, %v5863_v28  ;;  %v5870_v25 = vsel %vm9925_vm4, %v5862_v43, 0  ;;  %vm9928_vm6 = vmmov %vm9924_vm0  ;;  %v6880_v16 = vld [vmem:[%s9224_s4 + $0x1c] sm:$0xf]  ;;  %vm9931_vm0 = vcmask 130048  }
 0xb8c   : > { %5876 = vmatpush1.bf16.msra.mxu1 %v5870_v25  ;;  %5907 = vmatprep.mubr.bf16.mxu1 %v9656_v26  ;;  %vm9929_vm10 = vmmov %vm9926_vm2 }
 0xb8d   : > { %v5926_v53 = vpack.c.bf16 %v5924_v10, %v5924_v10  ;;  %v5927_v4 = vpack.c.bf16 %v5925_v52, %v5925_v52  ;;  %vm9930_vm14 = vmmov %vm9926_vm2 }
 0xb8f   : > { %6879 = vmatmul.mubr.msk.bf16.vlgmr.msra.gmra.mrb[112].mxu0 %vm9926_vm2, %v6877_v17  ;;  %6884 = vmatprep.subr.msk.bf16.mxu0 %vm9927_vm5, %v5927_v4  ;;  %v5934_v48 = vsel %vm9928_vm6, %v5926_v53, 0  ;;  %vm9932_vm2 = vmmov %vm9925_vm4  ;;  %vm9936_vm6 = vnez %v9690_v14  ;;  %v9959_v14 = vld [vmem:[#allocation36_spill] sm:$0xff] }
 0xb90   : > { %5940 = vmatpush1.bf16.msra.mxu0 %v5934_v48  ;;  %5971 = vmatprep.mubr.bf16.mxu0 %v9656_v26  ;;  %vm9933_vm5 = vmmov %vm9929_vm10 }
 0xb91   : > { %6061 = vmatprep.subr.bf16.mxu0 %v8866_v12 }
 0xb93   : > { %6882 = vmatmul.mubr.msk.bf16.vlgmr.msra.gmra.mrb[72].mxu1 %vm9929_vm10, %v6880_v16  ;;  %vm9940_vm10 = vnez %v9698_v39 }
 0xb94   : > { %6042 = vmatprep.mubr.bf16.mxu1 %v9656_v26 }
 0xb97   : > { %6885 = vmatmul.mubr.msk.bf16.vlgmr.msra.gmra.mrb[116].mxu0 %vm9930_vm14, %v6883_v49  ;;  %vm9941_vm14 = vnez %v9702_v24  ;;  %v9967_v24 = vld [vmem:[#allocation40_spill] sm:$0xff] }
 0xb98   : > { %6062 = vmatpush1.bf16.msra.mxu0 %v8864_v58  ;;  %6093 = vmatprep.mubr.bf16.mxu0 %v9656_v26 }
 0xb9f   : > { %6888 = vmatmul.mubr.msk.bf16.vlgmr.msra.gmra.mrb[120].mxu0 %vm9931_vm0, %v6051_v54  ;;  %vm9942_vm0 = vnez %v9706_v47  ;;  %v9949_v47 = vld [vmem:[#allocation29_spill] sm:$0xff] }
 0xc4a   : > { %v5483_v62 = vpop.f32.mrb[100].mxu0 }
 0xc4b   : > { %v5485_v12 = vpop.f32.mrb[101].mxu0 }
 0xc4c   : > { %v5487_v15 = vpop.f32.mrb[102].mxu0 }
 0xc4d   : > { %v5488_v63 = vpop.f32.mrb[103].mxu0 }
 0xc4e   : > { %v5533_v41 = vpop.f32.mrb[60].mxu1 }
 0xc4f   : > { %v5534_v19 = vadd.f32 %v5533_v41, %v5483_v62  ;;  %v5535_v21 = vpop.f32.mrb[61].mxu1  ;;  %v5986_v41 = vpop.permute.xlu1 %5985 }
 0xc50   : > { %v5536_v46 = vadd.f32 %v5535_v21, %v5485_v12  ;;  %v5537_v7 = vpop.f32.mrb[62].mxu1 }
 0xc51   : > { %v5538_v56 = vpop.f32.mrb[63].mxu1 }
 0xc52   : > { %v5595_v58 = vpop.f32.mrb[104].mxu0 }
 0xc53   : > { %v5602_v32 = vadd.f32 %v5595_v58, %v5534_v19  ;;  %v5597_v26 = vpop.f32.mrb[105].mxu0 }
 0xc54   : > { %v5603_v22 = vadd.f32 %v5597_v26, %v5536_v46  ;;  %v5599_v1 = vpop.f32.mrb[106].mxu0 }
 0xc55   : > { %v5600_v33 = vpop.f32.mrb[107].mxu0 }
 0xc56   : > { %v5659_v18 = vpop.f32.mrb[64].mxu1  ;;  %v6056_v33 = vpop.permute.xlu0 %6055 }
 0xc57   : > { %v5666_v35 = vadd.f32 %v5659_v18, %v5602_v32  ;;  %v5661_v60 = vpop.f32.mrb[65].mxu1 }
 0xc58   : > { %v5667_v61 = vadd.f32 %v5661_v60, %v5603_v22  ;;  %v5663_v6 = vpop.f32.mrb[66].mxu1 }
 0xc59   : > { %v5664_v37 = vpop.f32.mrb[67].mxu1  ;;  %v5992_v6 = vld [vmem:[%s928_s30] sm:$0x1] }
 0xc5a   : > { %v5717_v29 = vpop.f32.mrb[108].mxu0 }
 0xc5b   : > { %v5724_v50 = vadd.f32 %v5717_v29, %v5666_v35  ;;  %v5719_v2 = vpop.f32.mrb[109].mxu0 }
 0xc5c   : > { %v5725_v27 = vadd.f32 %v5719_v2, %v5667_v61  ;;  %v5721_v40 = vpop.f32.mrb[110].mxu0 }
 0xc5d   : > { %v5722_v30 = vpop.f32.mrb[111].mxu0 }
 0xc5e   : > { %v5781_v36 = vpop.f32.mrb[68].mxu1 }
 0xc5f   : > { %v5788_v0 = vadd.f32 %v5781_v36, %v5724_v50  ;;  %v5783_v43 = vpop.f32.mrb[69].mxu1 }
 0xc60   : > { %v5789_v28 = vadd.f32 %v5783_v43, %v5725_v27  ;;  %v5785_v8 = vpop.f32.mrb[70].mxu1 }
 0xc61   : > { %v5786_v57 = vpop.f32.mrb[71].mxu1 }
 0xc62   : > { %v5845_v44 = vpop.f32.mrb[112].mxu0 }
 0xc63   : > { %v5852_v10 = vadd.f32 %v5845_v44, %v5788_v0  ;;  %v5847_v52 = vpop.f32.mrb[113].mxu0 }
 0xc64   : > { %v5853_v25 = vadd.f32 %v5847_v52, %v5789_v28  ;;  %v5849_v17 = vpop.f32.mrb[114].mxu0 }
 0xc65   : > { %v5850_v53 = vpop.f32.mrb[115].mxu0 }
 0xc66   : > { %v5909_v4 = vpop.f32.mrb[72].mxu1 }
 0xc67   : > { %v5916_v48 = vadd.f32 %v5909_v4, %v5852_v10  ;;  %v5911_v16 = vpop.f32.mrb[73].mxu1 }
 0xc68   : > { %v5917_v49 = vadd.f32 %v5911_v16, %v5853_v25  ;;  %v5913_v54 = vpop.f32.mrb[74].mxu1 }
 0xc69   : > { %v5914_v62 = vpop.f32.mrb[75].mxu1 }
 0xc6a   : > { %v5973_v12 = vpop.f32.mrb[116].mxu0 }
 0xc6b   : > { %v5980_v15 = vadd.f32 %v5973_v12, %v5916_v48  ;;  %v5975_v63 = vpop.f32.mrb[117].mxu0 }
 0xc6c   : > { %v5981_v19 = vadd.f32 %v5975_v63, %v5917_v49  ;;  %v5977_v21 = vpop.f32.mrb[118].mxu0 }
 0xc6d   : > { %v5988_v46 = vadd.f32 %v5986_v41, %v5980_v15  ;;  %v5978_v7 = vpop.f32.mrb[119].mxu0 }
 0xc6e   : > { %v5989_v56 = vadd.f32 %v5986_v41, %v5981_v19 }
 0xc6f   : > { %v5990_v58 = vmax.f32 %v5988_v46, 0.0 }
 0xc70   : > { %v5991_v32 = vmax.f32 %v5989_v56, 0.0 }
 0xc71   : > { %v5993_v26 = vpack.c.bf16 %v5990_v58, %v5990_v58 }
 0xc72   : > { %v5994_v22 = vpack.c.bf16 %v5991_v32, %v5991_v32  ;;  %v6095_v1 = vpop.f32.mrb[120].mxu0 }
 0xc73   : > { %v6097_v18 = vpop.f32.mrb[121].mxu0  ;;  %v6005_v35 = vsel %vm9925_vm4, %v5993_v26, 0  ;;  %vm9943_vm4 = vnez %v9708_v23  ;;  %v6096_v39 = vadd.f32 %v6095_v1, %v6056_v33  ;;  %v9969_v23 = vld [vmem:[#allocation41_spill] sm:$0xff] }
 0xc74   : > { %v6098_v60 = vadd.f32 %v6097_v18, %v6056_v33  ;;  %6886 = vmatprep.subr.msk.bf16.mxu1 %vm9932_vm2, %v5994_v22  ;;  %v6099_v61 = vpop.f32.mrb[122].mxu0  ;;  %vm9944_vm2 = vnez %v9710_v55 }
 0xc75   : > { %6011 = vmatpush1.bf16.msra.mxu1 %v6005_v35  ;;  %v6100_v37 = vpop.f32.mrb[123].mxu0  ;;  %v6102_v55 = vpack.c.bf16 %v6096_v39, %v6096_v39 }
 0xc76   : > { %v6103_v29 = vpack.c.bf16 %v6098_v60, %v6098_v60  ;;  %6890 = vmatprep.subr.msk.bf16.mxu1 %vm8395_vm8, %v9676_v3  ;;  %vm9934_vm8 = vnez %v9686_v42 }
 0xc78   : > { %6887 = vmatmul.mubr.msk.bf16.vlgmr.msra.gmra.mrb[76].mxu1 %vm9933_vm5, %v5992_v6  ;;  %vm9945_vm5 = vnez %v9714_v51  ;;  %v5999_v51 = vpop.permute.xlu1 %5998 }
 0xc79   : > { %6892 = vmatpush1.bf16.msk.msra.mxu1 %vm8410_vm12, %v9676_v3  ;;  %6136 = vmatprep.mubr.bf16.mxu1 %v6103_v29  ;;  %vm9935_vm12 = vnez %v9688_v13 }
 0xc7a   : > { %6894 = vmatprep.subr.msk.bf16.mxu1 %vm8421_vm9, %v9676_v3  ;;  %vm9937_vm9 = vnez %v9692_v20  ;;  %v9961_v20 = vld [vmem:[#allocation37_spill] sm:$0xff] }
 0xc7d   : > { %6896 = vmatpush1.bf16.msk.msra.mxu1 %vm8428_vm11, %v9676_v3  ;;  %vm9938_vm11 = vnez %v9694_v31  ;;  %v9963_v31 = vld [vmem:[#allocation38_spill] sm:$0xff] }
 0xc7e   : > { %6898 = vmatprep.subr.msk.bf16.mxu1 %vm8432_vm15, %v9676_v3  ;;  %vm9939_vm15 = vnez %v9696_v34  ;;  %v9965_v34 = vld [vmem:[#allocation39_spill] sm:$0xff] }
 0xc81   : > { %6900 = vmatpush1.bf16.msk.msra.mxu1 %vm9934_vm8, %v9676_v3  ;;  %vm9946_vm8 = vnez %v9718_v38 }
 0xc82   : > { %6902 = vmatprep.subr.msk.bf16.mxu1 %vm9935_vm12, %v9676_v3  ;;  %vm9948_vm12 = vnez %v9947_v59 }
 0xc85   : > { %6904 = vmatpush1.bf16.msk.msra.mxu1 %vm9936_vm6, %v9676_v3  ;;  %vm9950_vm6 = vnez %v9949_v47 }
 0xc86   : > { %6906 = vmatprep.subr.msk.bf16.mxu1 %vm9937_vm9, %v9676_v3  ;;  %vm9952_vm9 = vnez %v9951_v5 }
 0xc89   : > { %6908 = vmatpush1.bf16.msk.msra.mxu1 %vm9938_vm11, %v9676_v3  ;;  %vm9954_vm11 = vnez %v9953_v9 }
 0xc8a   : > { %6910 = vmatprep.subr.msk.bf16.mxu1 %vm9939_vm15, %v9676_v3  ;;  %vm9960_vm15 = vnez %v9959_v14 }
 0xc8d   : > { %6912 = vmatpush1.bf16.msk.msra.mxu1 %vm9940_vm10, %v9676_v3  ;;  %vm9962_vm10 = vnez %v9961_v20 }
 0xc8e   : > { %6914 = vmatprep.subr.msk.bf16.mxu1 %vm9941_vm14, %v9676_v3 }
 0xc91   : > { %6916 = vmatpush1.bf16.msk.msra.mxu1 %vm9942_vm0, %v9676_v3 }
 0xc92   : > { %6918 = vmatprep.subr.msk.bf16.mxu1 %vm9943_vm4, %v9676_v3 }
 0xc95   : > { %6920 = vmatpush1.bf16.msk.msra.mxu1 %vm9944_vm2, %v9676_v3 }
 0xc96   : > { %6922 = vmatprep.subr.msk.bf16.mxu1 %vm9945_vm5, %v9676_v3 }
 0xc99   : > { %6924 = vmatpush1.bf16.msk.msra.mxu1 %vm9946_vm8, %v9676_v3 }
 0xc9a   : > { %6926 = vmatprep.subr.msk.bf16.mxu1 %vm9948_vm12, %v9676_v3 }
 0xc9d   : > { %6928 = vmatpush1.bf16.msk.msra.mxu1 %vm9950_vm6, %v9676_v3 }
 0xc9e   : > { %6930 = vmatprep.subr.msk.bf16.mxu1 %vm9952_vm9, %v9676_v3 }
 0xca1   : > { %6932 = vmatpush1.bf16.msk.msra.mxu1 %vm9954_vm11, %v9676_v3 }
 0xca2   : > { %6934 = vmatprep.subr.msk.bf16.mxu1 %vm8687_vm7, %v9676_v3  ;;  %vm9964_vm7 = vnez %v9963_v31 }
 0xca5   : > { %6936 = vmatpush1.bf16.msk.msra.mxu1 %vm8692_vm1, %v9676_v3  ;;  %vm9966_vm1 = vnez %v9965_v34 }
 0xca6   : > { %6938 = vmatprep.subr.msk.bf16.mxu1 %vm8699_vm13, %v9676_v3  ;;  %vm9968_vm13 = vnez %v9967_v24 }
 0xca9   : > { %6940 = vmatpush1.bf16.msk.msra.mxu1 %vm8724_vm3, %v9676_v3  ;;  %vm9970_vm3 = vnez %v9969_v23 }
 0xcaa   : > { %6942 = vmatprep.subr.msk.bf16.mxu1 %vm9960_vm15, %v9676_v3 }
 0xcad   : > { %6944 = vmatpush1.bf16.msk.msra.mxu1 %vm9962_vm10, %v9676_v3 }
 0xcae   : > { %6946 = vmatprep.subr.msk.bf16.mxu1 %vm9964_vm7, %v9676_v3 }
 0xcb1   : > { %6948 = vmatpush1.bf16.msk.msra.mxu1 %vm9966_vm1, %v9676_v3 }
 0xcb2   : > { %6950 = vmatprep.subr.msk.bf16.mxu1 %vm9968_vm13, %v9676_v3 }
 0xcb5   : > { %6952 = vmatpush1.bf16.msk.msra.mxu1 %vm9970_vm3, %v9676_v3 }
 0xcb8   : > { %6137 = vmatmul.mubr.bf16.vlgmr.msra.gmra.mrb[80].mxu1 %v6102_v55 }
 0xd4b   : > { %v6044_v38 = vpop.f32.mrb[76].mxu1 }
 0xd4c   : > { %v6045_v50 = vadd.f32 %v6044_v38, %v5999_v51  ;;  %v6046_v2 = vpop.f32.mrb[77].mxu1 }
 0xd4d   : > { %v6047_v27 = vadd.f32 %v6046_v2, %v5999_v51  ;;  %v6048_v40 = vpop.f32.mrb[78].mxu1 }
 0xd4e   : > { %v6049_v30 = vpop.f32.mrb[79].mxu1  ;;  %v6954_v8 = vmul.f32 (!%p6953_p7), -1.442695, %v6045_v50 }
 0xd4f   : > { %v6955_v57 = vmul.f32 (!%p6953_p7), -1.442695, %v6047_v27 }
 0xd50   : > { %7140 = vpow2.f32 (!%p6953_p7), %v6954_v8 }
 0xd51   : > { %7142 = vpow2.f32 (!%p6953_p7), %v6955_v57 }
 0xd5a   : > { %v7141_v10 = vpop.eup (!%p6953_p7), %7140 }
 0xd5b   : > { %v7143_v52 = vpop.eup (!%p6953_p7), %7142  ;;  %v6155_v25 = vadd.f32 (!%p6953_p7), 1.0, %v7141_v10 }
 0xd5c   : > { %v6156_v53 = vadd.f32 (!%p6953_p7), 1.0, %v7143_v52 }
 0xd88   : > { %6148 = sbr.rel (%p6953_p7) target bundleno = 3498 (0xdaa), region = 96 }
 0xd8b   : > { %v6138_v36 = vpop.f32.mrb[80].mxu1 }
 0xd8c   : > { %v6140_v0 = vpop.f32.mrb[81].mxu1  ;;  %v6957_v44 = vmul.f32 (!%p6953_p7), -1.442695, %v6138_v36 }
 0xd8d   : > { %v6142_v43 = vpop.f32.mrb[82].mxu1  ;;  %v6958_v3 = vmul.f32 (!%p6953_p7), -1.442695, %v6140_v0 }
 0xd8e   : > { %v6143_v28 = vpop.f32.mrb[83].mxu1  ;;  %7144 = vpow2.f32 (!%p6953_p7), %v6957_v44 }
 0xd8f   : > { %7146 = vpow2.f32 %v6958_v3 }
 0xd90   : > { %7148 = vrcp.f32 %v6155_v25 }
 0xd91   : > { %7150 = vrcp.f32 %v6156_v53 }
 0xd98   : > { %v7145_v17 = vpop.eup %7144 }
 0xd99   : > { %v7147_v4 = vpop.eup %7146  ;;  %v6179_v48 = vadd.f32 1.0, %v7145_v17 }
 0xd9a   : > { %v6180_v16 = vadd.f32 1.0, %v7147_v4  ;;  %v7149_v49 = vpop.eup %7148 }
 0xd9b   : > { %7152 = vrcp.f32 %v6179_v48  ;;  %v7151_v54 = vpop.eup %7150 }
 0xd9c   : > { %7154 = vrcp.f32 %v6180_v16  ;;  %v6163_v12 = vcombine.low %v7149_v49, %v7151_v54 }
 0xd9e   : > { %6956 = vst.sshfl [vmem:[%s9972_s19] sm:$0x33 pattern:$0x76325410] %v6163_v12 }
 0xda5   : > { %v7153_v62 = vpop.eup %7152 }
 0xda6   : > { %v7155_v15 = vpop.eup %7154 }
 0xda7   : > { %v6187_v63 = vcombine.low %v7153_v62, %v7155_v15 }
 0xda9   : > { %6959 = vst.sshfl [vmem:[%s9973_s5] sm:$0x33 pattern:$0x76325410] %v6187_v63 }
 0xdaa PF: > { %s9974_s26 = sld [smem:[#allocation2_spill]] }
 0xdb0   : > { %p6960_p8 = scmp.eq.s32.totalorder %s9974_s26, 0 }
 0xdb1   : > { %v6203_v41 = vcombine.low (!%p6960_p8), %v6045_v50, %v6047_v27  ;;  %s9975_s21 = sld [smem:[#allocation8_spill]] (!%p6960_p8)  ;;  %s9976_s1 = sld [smem:[#allocation9_spill]] (!%p6960_p8)  ;;  %v6215_v19 = vcombine.low (!%p6960_p8), %v6138_v36, %v6140_v0 }
 0xdb2   : > { %6200 = sbr.rel (%p6960_p8) target bundleno = 3513 (0xdb9), region = 100 }
 0xdb7   : > { %6961 = vst.sshfl [vmem:[%s9975_s21] sm:$0x33 pattern:$0x76325410] (!%p6960_p8), %v6203_v41  ;;  %6962 = vst.sshfl [vmem:[%s9976_s1] sm:$0x33 pattern:$0x76325410] (!%p6960_p8), %v6215_v19 }
 0xdb9 PF: > { %s9977_s28 = sld [smem:[#allocation5_spill]]  ;;  %s9978_s0 = sld [smem:[#allocation3_spill]] }
 0xdba   : > { %s9979_s30 = sld [smem:[#allocation4_spill]]  ;;  %s9980_s20 = sld [smem:[#allocation6_spill]] }
 0xdbb   : > { %s9981_s21 = sld [smem:[#allocation7_spill]] }
 0xdbf   : > { %s30_s1 = sadd.s32 1, %s9977_s28  }
 0xdc0   : > { %p27_p9 = scmp.ge.s32.totalorder %s30_s1, 6  }
 0xdc2   :  { %29 = sbr.rel (!%p27_p9) target bundleno = 9 (0x9), region = 249 }

</bundles_post_ra>
